<compile_context>
chip_gen: v7x
topology: tpu7x:2x2x1
jax: 0.10.0
libtpu: 0.0.40
codegen_flags: <defaults>
</compile_context>

<pallas_src>
import functools

import jax
import jax.numpy as jnp
import numpy as np
from jax.experimental import pallas as pl
from jax.experimental.pallas import tpu as pltpu

LP = 128  # lane-padded width for inputs, hidden states and each gate block


# ----------------------------------------------------------------------------
# Fused kernel factory (encoder stack -> +graph encoding -> decoder stack -> FC)
# ----------------------------------------------------------------------------
def make_fused_kernel(L, Bp, T_in, T_out, mm_dtype):
    LP2, LP3 = 2 * LP, 3 * LP

    def gru_layer(inp_mm, w_ih_ref, w_hh_ref, b_i_ref, b_hn_ref, h0, T, need_seq):
        # Hoisted input projection for all timesteps: (T*Bp, LP) @ (LP, 3*LP).
        proj = (jnp.dot(inp_mm, w_ih_ref[...], preferred_element_type=jnp.float32)
                + b_i_ref[...])
        w_hh = w_hh_ref[...]
        # Hoist the loop-invariant broadcast (JAX does not CSE broadcast_in_dim).
        b_hn = jnp.broadcast_to(b_hn_ref[...], (Bp, LP))
        h = h0
        seq = []
        for t in range(T):                       # static unroll, T is small
            gi = proj[t * Bp:(t + 1) * Bp, :]    # (Bp, 3*LP), lane-aligned
            gh = jnp.dot(h.astype(mm_dtype), w_hh,
                         preferred_element_type=jnp.float32)
            # merged r/z sigmoid over one 256-lane block
            rz = jax.nn.sigmoid(gi[:, :LP2] + gh[:, :LP2])
            z = rz[:, LP:LP2]
            n = jnp.tanh(gi[:, LP2:LP3] + rz[:, :LP] * (gh[:, LP2:LP3] + b_hn))
            h = n + z * (h - n)
            if need_seq:
                seq.append(h)
        return h, seq

    def kernel(*refs):
        x_ref, y_ref, ge_ref = refs[0], refs[1], refs[2]
        pos = 3
        enc = [refs[pos + 4 * l: pos + 4 * l + 4] for l in range(L)]
        pos += 4 * L
        dec = [refs[pos + 4 * l: pos + 4 * l + 4] for l in range(L)]
        pos += 4 * L
        fc_w_ref, fc_b_ref = refs[pos], refs[pos + 1]
        out_ref = refs[pos + 2]

        # ---- encoder stack (hidden padded to LP lanes, h0 = 0) ----
        h0_enc = jnp.zeros((Bp, LP), jnp.float32)
        inp = x_ref[...]                              # already mm_dtype
        h_enc = []
        for l in range(L):
            need_seq = l < L - 1
            h, seq = gru_layer(inp, *enc[l], h0_enc, T_in, need_seq)
            h_enc.append(h)
            if need_seq:
                inp = jnp.concatenate(seq, axis=0).astype(mm_dtype)

        # ---- decoder stack ----
        # h0 = concat(enc_hidden, graph_encoding) realized as a lane-dense add:
        # encoder hidden has exact zeros in lanes [H, LP), ge_ref carries the
        # graph encoding at lanes [H, 2H) and zeros elsewhere.
        inp = y_ref[...]
        for l in range(L):
            _, seq = gru_layer(inp, *dec[l], h_enc[l] + ge_ref[l], T_out, True)
            seq_f32 = jnp.concatenate(seq, axis=0)
            inp = seq_f32.astype(mm_dtype)

        # ---- final Linear, lane-dense (T_out*Bp, LP) HBM write ----
        out_ref[...] = (jnp.dot(inp, fc_w_ref[...],
                                preferred_element_type=jnp.float32)
                        + fc_b_ref[...])

    return kernel


# ----------------------------------------------------------------------------
# Parameter packing: per-gate [r,z,n] layout -> gate blocks padded to 128 lanes.
# Done ONCE outside the jitted forward so repacking/casting is not paid per call.
# ----------------------------------------------------------------------------
def _pad_gate_weights(w):
    """(3, in_dim, hid) -> (LP, 3*LP), zeros in padded rows/lanes."""
    _, in_dim, hid = w.shape
    out = jnp.zeros((LP, 3 * LP), jnp.float32)
    for g in range(3):
        out = out.at[:in_dim, g * LP:g * LP + hid].set(w[g])
    return out


def _pad_gate_bias(b_r, b_z, b_n):
    hid = b_r.shape[-1]
    out = jnp.zeros((1, 3 * LP), jnp.float32)
    out = out.at[:, 0 * LP:0 * LP + hid].set(b_r)
    out = out.at[:, 1 * LP:1 * LP + hid].set(b_z)
    out = out.at[:, 2 * LP:2 * LP + hid].set(b_n)
    return out


def pack_gru_layer(w_ih, w_hh, b_ih, b_hh, matmul_dtype):
    hid = w_hh.shape[-1]
    assert w_ih.shape[1] <= LP and hid <= LP
    w_ih_p = _pad_gate_weights(w_ih).astype(matmul_dtype)
    w_hh_p = _pad_gate_weights(w_hh).astype(matmul_dtype)
    # fold b_hh into b_ih for r and z; keep b_hh_n separate (inside r*(...)).
    b_i = _pad_gate_bias(b_ih[0] + b_hh[0], b_ih[1] + b_hh[1], b_ih[2])
    b_hn = jnp.zeros((1, LP), jnp.float32).at[:, :hid].set(b_hh[2])
    return w_ih_p, w_hh_p, b_i, b_hn


def pack_params(params, matmul_dtype=jnp.bfloat16):
    enc_params, dec_params, (fc_w, fc_b) = params
    enc_p = tuple(pack_gru_layer(*p, matmul_dtype) for p in enc_params)
    dec_p = tuple(pack_gru_layer(*p, matmul_dtype) for p in dec_params)
    in_f, out_f = fc_w.shape
    assert in_f <= LP and out_f <= LP
    fc_w_p = (jnp.zeros((LP, LP), jnp.float32)
              .at[:in_f, :out_f].set(fc_w).astype(matmul_dtype))
    fc_b_p = jnp.zeros((1, LP), jnp.float32).at[:, :out_f].set(fc_b)
    return enc_p, dec_p, fc_w_p, fc_b_p


# ----------------------------------------------------------------------------
# Forward
# ----------------------------------------------------------------------------
@functools.partial(jax.jit, static_argnames=("output_size",))
def forward(packed, x_input, y_input, server_graph_encoding, *, output_size):
    """x_input: (T_in, B, I), y_input: (T_out, B, I),
       server_graph_encoding: (L, B, H).  Returns (T_out, B, output_size)."""
    enc_p, dec_p, fc_w_p, fc_b_p = packed
    L = len(enc_p)
    T_in, B, I = x_input.shape
    T_out = y_input.shape[0]
    H = server_graph_encoding.shape[-1]
    assert I <= LP and 2 * H <= LP
    mm_dtype = enc_p[0][0].dtype

    # pad batch to a multiple of 8 sublanes, features to LP lanes (zeros).
    Bp = max(8, ((B + 7) // 8) * 8)
    pad_b = Bp - B
    xp = jnp.pad(x_input, ((0, 0), (0, pad_b), (0, LP - I))
                 ).reshape(T_in * Bp, LP).astype(mm_dtype)
    yp = jnp.pad(y_input, ((0, 0), (0, pad_b), (0, LP - I))
                 ).reshape(T_out * Bp, LP).astype(mm_dtype)
    # place graph encoding at lanes [H, 2H) of the decoder initial hidden.
    gep = jnp.pad(server_graph_encoding, ((0, 0), (0, pad_b), (H, LP - 2 * H)))

    flat = [xp, yp, gep]
    for p in enc_p:
        flat.extend(p)
    for p in dec_p:
        flat.extend(p)
    flat.extend([fc_w_p, fc_b_p])

    kernel = make_fused_kernel(L, Bp, T_in, T_out, mm_dtype)
    vmem = pl.BlockSpec(memory_space=pltpu.MemorySpace.VMEM)
    out2d = pl.pallas_call(
        kernel,
        out_shape=jax.ShapeDtypeStruct((T_out * Bp, LP), jnp.float32),
        in_specs=[vmem] * len(flat),
        out_specs=vmem,
    )(*flat)

    return out2d.reshape(T_out, Bp, LP)[:, :B, :output_size]


# ----------------------------------------------------------------------------
# Deterministic parameter init (PyTorch-style uniform(-1/sqrt(H), 1/sqrt(H)))
# ----------------------------------------------------------------------------
def init_gru_params(key, num_layers, input_size, hidden_size):
    params = []
    bound = 1.0 / np.sqrt(hidden_size)
    for layer in range(num_layers):
        in_dim = input_size if layer == 0 else hidden_size
        key, k0, k1, k2, k3 = jax.random.split(key, 5)
        w_ih = jax.random.uniform(k0, (3, in_dim, hidden_size), jnp.float32, -bound, bound)
        w_hh = jax.random.uniform(k1, (3, hidden_size, hidden_size), jnp.float32, -bound, bound)
        b_ih = jax.random.uniform(k2, (3, 1, hidden_size), jnp.float32, -bound, bound)
        b_hh = jax.random.uniform(k3, (3, 1, hidden_size), jnp.float32, -bound, bound)
        params.append((w_ih, w_hh, b_ih, b_hh))
    return params, key


def init_model_params(key, input_size, hidden_size, output_size, num_layers):
    enc_params, key = init_gru_params(key, num_layers, input_size, hidden_size)
    dec_params, key = init_gru_params(key, num_layers, input_size, 2 * hidden_size)
    bound = 1.0 / np.sqrt(2 * hidden_size)
    key, k0, k1 = jax.random.split(key, 3)
    fc_w = jax.random.uniform(k0, (2 * hidden_size, output_size), jnp.float32, -bound, bound)
    fc_b = jax.random.uniform(k1, (1, output_size), jnp.float32, -bound, bound)
    return (enc_params, dec_params, (fc_w, fc_b)), key


# ----------------------------------------------------------------------------
# Pure-JAX reference (per-gate layout, PyTorch GRU semantics).  `mm_dtype`
# mirrors the kernel's matmul operand precision (f32 accumulation, f32 gates).
# ----------------------------------------------------------------------------
def ref_gru_stack(x, h0_layers, layer_params, mm_dtype):
    outs = x
    h_last = []
    for layer, (w_ih, w_hh, b_ih, b_hh) in enumerate(layer_params):
        T = outs.shape[0]
        h = h0_layers[layer]
        seq = []
        for t in range(T):
            x_t = outs[t].astype(mm_dtype)
            h_m = h.astype(mm_dtype)
            i_r = jnp.dot(x_t, w_ih[0].astype(mm_dtype), preferred_element_type=jnp.float32) + b_ih[0]
            i_z = jnp.dot(x_t, w_ih[1].astype(mm_dtype), preferred_element_type=jnp.float32) + b_ih[1]
            i_n = jnp.dot(x_t, w_ih[2].astype(mm_dtype), preferred_element_type=jnp.float32) + b_ih[2]
            h_r = jnp.dot(h_m, w_hh[0].astype(mm_dtype), preferred_element_type=jnp.float32) + b_hh[0]
            h_z = jnp.dot(h_m, w_hh[1].astype(mm_dtype), preferred_element_type=jnp.float32) + b_hh[1]
            h_n = jnp.dot(h_m, w_hh[2].astype(mm_dtype), preferred_element_type=jnp.float32) + b_hh[2]
            r = jax.nn.sigmoid(i_r + h_r)
            z = jax.nn.sigmoid(i_z + h_z)
            n = jnp.tanh(i_n + r * h_n)
            h = (1.0 - z) * n + z * h
            seq.append(h)
        outs = jnp.stack(seq, axis=0)
        h_last.append(h)
    return outs, jnp.stack(h_last, axis=0)


def ref_forward(params, x_input, y_input, server_graph_encoding, mm_dtype=jnp.float32):
    enc_params, dec_params, (fc_w, fc_b) = params
    L = len(enc_params)
    B = x_input.shape[1]
    H = enc_params[0][0].shape[-1]
    _, h_encode = ref_gru_stack(x_input, jnp.zeros((L, B, H), jnp.float32),
                                enc_params, mm_dtype)
    h_dec0 = jnp.concatenate([h_encode, server_graph_encoding], axis=-1)
    out_hidden, _ = ref_gru_stack(y_input, h_dec0, dec_params, mm_dtype)
    return (jnp.dot(out_hidden.astype(mm_dtype), fc_w.astype(mm_dtype),
                    preferred_element_type=jnp.float32) + fc_b)


# ----------------------------------------------------------------------------
if __name__ == "__main__":
    input_size = 4
    hidden_size = 32
    output_size = 2
    num_layers = 2
    T_in, T_out, B = 8, 8, 2

    key = jax.random.PRNGKey(0)
    params, key = init_model_params(key, input_size, hidden_size, output_size, num_layers)

    key, kx, ky, kg = jax.random.split(key, 4)
    x_input = jax.random.normal(kx, (T_in, B, input_size), jnp.float32)
    y_input = jax.random.normal(ky, (T_out, B, input_size), jnp.float32)
    server_graph_encoding = jax.random.normal(kg, (num_layers, B, hidden_size), jnp.float32)

    # bf16 matmul operands (v6e/v7x MXU-native), f32 accumulation & gate math.
    MM_DTYPE = jnp.bfloat16
    packed = pack_params(params, matmul_dtype=MM_DTYPE)

    out = forward(packed, x_input, y_input, server_graph_encoding,
                  output_size=output_size)
    out = jax.block_until_ready(out)

    # Primary check: precision-matched reference (same bf16-operand matmuls).
    ref_match = ref_forward(params, x_input, y_input, server_graph_encoding,
                            mm_dtype=MM_DTYPE)
    np.testing.assert_allclose(np.asarray(out), np.asarray(ref_match),
                               rtol=5e-3, atol=5e-3)
    # Secondary sanity check vs. the full-f32 reference (bf16 operand rounding).
    ref_f32 = ref_forward(params, x_input, y_input, server_graph_encoding,
                          mm_dtype=jnp.float32)
    np.testing.assert_allclose(np.asarray(out), np.asarray(ref_f32),
                               rtol=6e-2, atol=6e-2)

    print("KERNEL_OK")
</pallas_src>

<mosaic_0001>
module attributes {stable_mosaic.version = 11 : i64} {
  func.func @kernel(%arg0: memref<64x128xbf16, #tpu.memory_space<vmem>>, %arg1: memref<64x128xbf16, #tpu.memory_space<vmem>>, %arg2: memref<2x8x128xf32, #tpu.memory_space<vmem>>, %arg3: memref<128x384xbf16, #tpu.memory_space<vmem>>, %arg4: memref<128x384xbf16, #tpu.memory_space<vmem>>, %arg5: memref<1x384xf32, #tpu.memory_space<vmem>>, %arg6: memref<1x128xf32, #tpu.memory_space<vmem>>, %arg7: memref<128x384xbf16, #tpu.memory_space<vmem>>, %arg8: memref<128x384xbf16, #tpu.memory_space<vmem>>, %arg9: memref<1x384xf32, #tpu.memory_space<vmem>>, %arg10: memref<1x128xf32, #tpu.memory_space<vmem>>, %arg11: memref<128x384xbf16, #tpu.memory_space<vmem>>, %arg12: memref<128x384xbf16, #tpu.memory_space<vmem>>, %arg13: memref<1x384xf32, #tpu.memory_space<vmem>>, %arg14: memref<1x128xf32, #tpu.memory_space<vmem>>, %arg15: memref<128x384xbf16, #tpu.memory_space<vmem>>, %arg16: memref<128x384xbf16, #tpu.memory_space<vmem>>, %arg17: memref<1x384xf32, #tpu.memory_space<vmem>>, %arg18: memref<1x128xf32, #tpu.memory_space<vmem>>, %arg19: memref<128x128xbf16, #tpu.memory_space<vmem>>, %arg20: memref<1x128xf32, #tpu.memory_space<vmem>>, %arg21: memref<64x128xf32, #tpu.memory_space<vmem>>) attributes {dimension_semantics = [], scalar_prefetch = 0 : i64, scratch_operands = 0 : i64, tpu.core_type = #tpu.core_type<tc>} {
    %cst = arith.constant 0.000000e+00 : f32
    %0 = vector.broadcast %cst : f32 to vector<8x128xf32>
    %c0 = arith.constant 0 : index
    %c0_0 = arith.constant 0 : index
    %1 = vector.load %arg0[%c0, %c0_0] : memref<64x128xbf16, #tpu.memory_space<vmem>>, vector<64x128xbf16>
    %c0_1 = arith.constant 0 : index
    %c0_2 = arith.constant 0 : index
    %2 = vector.load %arg3[%c0_1, %c0_2] : memref<128x384xbf16, #tpu.memory_space<vmem>>, vector<128x384xbf16>
    %cst_3 = arith.constant dense<0.000000e+00> : vector<64x384xf32>
    %3 = tpu.matmul %1, %2, %cst_3 {dimension_numbers = #tpu.dot_dimension_numbers<[1], [0], [0], [1], [0, 0, 1, 1], [], []>} : vector<64x128xbf16>, vector<128x384xbf16>, vector<64x384xf32> -> vector<64x384xf32>
    %c0_4 = arith.constant 0 : index
    %c0_5 = arith.constant 0 : index
    %4 = vector.load %arg5[%c0_4, %c0_5] : memref<1x384xf32, #tpu.memory_space<vmem>>, vector<1x384xf32>
    %5 = vector.broadcast %4 : vector<1x384xf32> to vector<64x384xf32>
    %6 = arith.addf %3, %5 : vector<64x384xf32>
    %c0_6 = arith.constant 0 : index
    %c0_7 = arith.constant 0 : index
    %7 = vector.load %arg4[%c0_6, %c0_7] : memref<128x384xbf16, #tpu.memory_space<vmem>>, vector<128x384xbf16>
    %c0_8 = arith.constant 0 : index
    %c0_9 = arith.constant 0 : index
    %8 = vector.load %arg6[%c0_8, %c0_9] : memref<1x128xf32, #tpu.memory_space<vmem>>, vector<1x128xf32>
    %9 = vector.shape_cast %8 : vector<1x128xf32> to vector<1x128xf32>
    %10 = vector.broadcast %9 : vector<1x128xf32> to vector<8x128xf32>
    %11 = vector.extract_strided_slice %6 {offsets = [0, 0], sizes = [8, 384], strides = [1, 1]} : vector<64x384xf32> to vector<8x384xf32>
    %12 = arith.truncf %0 : vector<8x128xf32> to vector<8x128xbf16>
    %cst_10 = arith.constant dense<0.000000e+00> : vector<8x384xf32>
    %13 = tpu.matmul %12, %7, %cst_10 {dimension_numbers = #tpu.dot_dimension_numbers<[1], [0], [0], [1], [0, 0, 1, 1], [], []>} : vector<8x128xbf16>, vector<128x384xbf16>, vector<8x384xf32> -> vector<8x384xf32>
    %14 = vector.extract_strided_slice %11 {offsets = [0, 0], sizes = [8, 256], strides = [1, 1]} : vector<8x384xf32> to vector<8x256xf32>
    %15 = vector.extract_strided_slice %13 {offsets = [0, 0], sizes = [8, 256], strides = [1, 1]} : vector<8x384xf32> to vector<8x256xf32>
    %16 = arith.addf %14, %15 : vector<8x256xf32>
    %17 = arith.negf %16 : vector<8x256xf32>
    %18 = math.exp %17 : vector<8x256xf32>
    %cst_11 = arith.constant 1.000000e+00 : f32
    %19 = vector.broadcast %cst_11 : f32 to vector<8x256xf32>
    %20 = arith.addf %19, %18 : vector<8x256xf32>
    %21 = arith.divf %19, %20 : vector<8x256xf32>
    %22 = vector.extract_strided_slice %21 {offsets = [0, 128], sizes = [8, 128], strides = [1, 1]} : vector<8x256xf32> to vector<8x128xf32>
    %23 = vector.extract_strided_slice %11 {offsets = [0, 256], sizes = [8, 128], strides = [1, 1]} : vector<8x384xf32> to vector<8x128xf32>
    %24 = vector.extract_strided_slice %21 {offsets = [0, 0], sizes = [8, 128], strides = [1, 1]} : vector<8x256xf32> to vector<8x128xf32>
    %25 = vector.extract_strided_slice %13 {offsets = [0, 256], sizes = [8, 128], strides = [1, 1]} : vector<8x384xf32> to vector<8x128xf32>
    %26 = arith.addf %25, %10 : vector<8x128xf32>
    %27 = arith.mulf %24, %26 : vector<8x128xf32>
    %28 = arith.addf %23, %27 : vector<8x128xf32>
    %29 = math.tanh %28 : vector<8x128xf32>
    %30 = arith.subf %0, %29 : vector<8x128xf32>
    %31 = arith.mulf %22, %30 : vector<8x128xf32>
    %32 = arith.addf %29, %31 : vector<8x128xf32>
    %33 = vector.extract_strided_slice %6 {offsets = [8, 0], sizes = [8, 384], strides = [1, 1]} : vector<64x384xf32> to vector<8x384xf32>
    %34 = arith.truncf %32 : vector<8x128xf32> to vector<8x128xbf16>
    %cst_12 = arith.constant dense<0.000000e+00> : vector<8x384xf32>
    %35 = tpu.matmul %34, %7, %cst_12 {dimension_numbers = #tpu.dot_dimension_numbers<[1], [0], [0], [1], [0, 0, 1, 1], [], []>} : vector<8x128xbf16>, vector<128x384xbf16>, vector<8x384xf32> -> vector<8x384xf32>
    %36 = vector.extract_strided_slice %33 {offsets = [0, 0], sizes = [8, 256], strides = [1, 1]} : vector<8x384xf32> to vector<8x256xf32>
    %37 = vector.extract_strided_slice %35 {offsets = [0, 0], sizes = [8, 256], strides = [1, 1]} : vector<8x384xf32> to vector<8x256xf32>
    %38 = arith.addf %36, %37 : vector<8x256xf32>
    %39 = arith.negf %38 : vector<8x256xf32>
    %40 = math.exp %39 : vector<8x256xf32>
    %cst_13 = arith.constant 1.000000e+00 : f32
    %41 = vector.broadcast %cst_13 : f32 to vector<8x256xf32>
    %42 = arith.addf %41, %40 : vector<8x256xf32>
    %43 = arith.divf %41, %42 : vector<8x256xf32>
    %44 = vector.extract_strided_slice %43 {offsets = [0, 128], sizes = [8, 128], strides = [1, 1]} : vector<8x256xf32> to vector<8x128xf32>
    %45 = vector.extract_strided_slice %33 {offsets = [0, 256], sizes = [8, 128], strides = [1, 1]} : vector<8x384xf32> to vector<8x128xf32>
    %46 = vector.extract_strided_slice %43 {offsets = [0, 0], sizes = [8, 128], strides = [1, 1]} : vector<8x256xf32> to vector<8x128xf32>
    %47 = vector.extract_strided_slice %35 {offsets = [0, 256], sizes = [8, 128], strides = [1, 1]} : vector<8x384xf32> to vector<8x128xf32>
    %48 = arith.addf %47, %10 : vector<8x128xf32>
    %49 = arith.mulf %46, %48 : vector<8x128xf32>
    %50 = arith.addf %45, %49 : vector<8x128xf32>
    %51 = math.tanh %50 : vector<8x128xf32>
    %52 = arith.subf %32, %51 : vector<8x128xf32>
    %53 = arith.mulf %44, %52 : vector<8x128xf32>
    %54 = arith.addf %51, %53 : vector<8x128xf32>
    %55 = vector.extract_strided_slice %6 {offsets = [16, 0], sizes = [8, 384], strides = [1, 1]} : vector<64x384xf32> to vector<8x384xf32>
    %56 = arith.truncf %54 : vector<8x128xf32> to vector<8x128xbf16>
    %cst_14 = arith.constant dense<0.000000e+00> : vector<8x384xf32>
    %57 = tpu.matmul %56, %7, %cst_14 {dimension_numbers = #tpu.dot_dimension_numbers<[1], [0], [0], [1], [0, 0, 1, 1], [], []>} : vector<8x128xbf16>, vector<128x384xbf16>, vector<8x384xf32> -> vector<8x384xf32>
    %58 = vector.extract_strided_slice %55 {offsets = [0, 0], sizes = [8, 256], strides = [1, 1]} : vector<8x384xf32> to vector<8x256xf32>
    %59 = vector.extract_strided_slice %57 {offsets = [0, 0], sizes = [8, 256], strides = [1, 1]} : vector<8x384xf32> to vector<8x256xf32>
    %60 = arith.addf %58, %59 : vector<8x256xf32>
    %61 = arith.negf %60 : vector<8x256xf32>
    %62 = math.exp %61 : vector<8x256xf32>
    %cst_15 = arith.constant 1.000000e+00 : f32
    %63 = vector.broadcast %cst_15 : f32 to vector<8x256xf32>
    %64 = arith.addf %63, %62 : vector<8x256xf32>
    %65 = arith.divf %63, %64 : vector<8x256xf32>
    %66 = vector.extract_strided_slice %65 {offsets = [0, 128], sizes = [8, 128], strides = [1, 1]} : vector<8x256xf32> to vector<8x128xf32>
    %67 = vector.extract_strided_slice %55 {offsets = [0, 256], sizes = [8, 128], strides = [1, 1]} : vector<8x384xf32> to vector<8x128xf32>
    %68 = vector.extract_strided_slice %65 {offsets = [0, 0], sizes = [8, 128], strides = [1, 1]} : vector<8x256xf32> to vector<8x128xf32>
    %69 = vector.extract_strided_slice %57 {offsets = [0, 256], sizes = [8, 128], strides = [1, 1]} : vector<8x384xf32> to vector<8x128xf32>
    %70 = arith.addf %69, %10 : vector<8x128xf32>
    %71 = arith.mulf %68, %70 : vector<8x128xf32>
    %72 = arith.addf %67, %71 : vector<8x128xf32>
    %73 = math.tanh %72 : vector<8x128xf32>
    %74 = arith.subf %54, %73 : vector<8x128xf32>
    %75 = arith.mulf %66, %74 : vector<8x128xf32>
    %76 = arith.addf %73, %75 : vector<8x128xf32>
    %77 = vector.extract_strided_slice %6 {offsets = [24, 0], sizes = [8, 384], strides = [1, 1]} : vector<64x384xf32> to vector<8x384xf32>
    %78 = arith.truncf %76 : vector<8x128xf32> to vector<8x128xbf16>
    %cst_16 = arith.constant dense<0.000000e+00> : vector<8x384xf32>
    %79 = tpu.matmul %78, %7, %cst_16 {dimension_numbers = #tpu.dot_dimension_numbers<[1], [0], [0], [1], [0, 0, 1, 1], [], []>} : vector<8x128xbf16>, vector<128x384xbf16>, vector<8x384xf32> -> vector<8x384xf32>
    %80 = vector.extract_strided_slice %77 {offsets = [0, 0], sizes = [8, 256], strides = [1, 1]} : vector<8x384xf32> to vector<8x256xf32>
    %81 = vector.extract_strided_slice %79 {offsets = [0, 0], sizes = [8, 256], strides = [1, 1]} : vector<8x384xf32> to vector<8x256xf32>
    %82 = arith.addf %80, %81 : vector<8x256xf32>
    %83 = arith.negf %82 : vector<8x256xf32>
    %84 = math.exp %83 : vector<8x256xf32>
    %cst_17 = arith.constant 1.000000e+00 : f32
    %85 = vector.broadcast %cst_17 : f32 to vector<8x256xf32>
    %86 = arith.addf %85, %84 : vector<8x256xf32>
    %87 = arith.divf %85, %86 : vector<8x256xf32>
    %88 = vector.extract_strided_slice %87 {offsets = [0, 128], sizes = [8, 128], strides = [1, 1]} : vector<8x256xf32> to vector<8x128xf32>
    %89 = vector.extract_strided_slice %77 {offsets = [0, 256], sizes = [8, 128], strides = [1, 1]} : vector<8x384xf32> to vector<8x128xf32>
    %90 = vector.extract_strided_slice %87 {offsets = [0, 0], sizes = [8, 128], strides = [1, 1]} : vector<8x256xf32> to vector<8x128xf32>
    %91 = vector.extract_strided_slice %79 {offsets = [0, 256], sizes = [8, 128], strides = [1, 1]} : vector<8x384xf32> to vector<8x128xf32>
    %92 = arith.addf %91, %10 : vector<8x128xf32>
    %93 = arith.mulf %90, %92 : vector<8x128xf32>
    %94 = arith.addf %89, %93 : vector<8x128xf32>
    %95 = math.tanh %94 : vector<8x128xf32>
    %96 = arith.subf %76, %95 : vector<8x128xf32>
    %97 = arith.mulf %88, %96 : vector<8x128xf32>
    %98 = arith.addf %95, %97 : vector<8x128xf32>
    %99 = vector.extract_strided_slice %6 {offsets = [32, 0], sizes = [8, 384], strides = [1, 1]} : vector<64x384xf32> to vector<8x384xf32>
    %100 = arith.truncf %98 : vector<8x128xf32> to vector<8x128xbf16>
    %cst_18 = arith.constant dense<0.000000e+00> : vector<8x384xf32>
    %101 = tpu.matmul %100, %7, %cst_18 {dimension_numbers = #tpu.dot_dimension_numbers<[1], [0], [0], [1], [0, 0, 1, 1], [], []>} : vector<8x128xbf16>, vector<128x384xbf16>, vector<8x384xf32> -> vector<8x384xf32>
    %102 = vector.extract_strided_slice %99 {offsets = [0, 0], sizes = [8, 256], strides = [1, 1]} : vector<8x384xf32> to vector<8x256xf32>
    %103 = vector.extract_strided_slice %101 {offsets = [0, 0], sizes = [8, 256], strides = [1, 1]} : vector<8x384xf32> to vector<8x256xf32>
    %104 = arith.addf %102, %103 : vector<8x256xf32>
    %105 = arith.negf %104 : vector<8x256xf32>
    %106 = math.exp %105 : vector<8x256xf32>
    %cst_19 = arith.constant 1.000000e+00 : f32
    %107 = vector.broadcast %cst_19 : f32 to vector<8x256xf32>
    %108 = arith.addf %107, %106 : vector<8x256xf32>
    %109 = arith.divf %107, %108 : vector<8x256xf32>
    %110 = vector.extract_strided_slice %109 {offsets = [0, 128], sizes = [8, 128], strides = [1, 1]} : vector<8x256xf32> to vector<8x128xf32>
    %111 = vector.extract_strided_slice %99 {offsets = [0, 256], sizes = [8, 128], strides = [1, 1]} : vector<8x384xf32> to vector<8x128xf32>
    %112 = vector.extract_strided_slice %109 {offsets = [0, 0], sizes = [8, 128], strides = [1, 1]} : vector<8x256xf32> to vector<8x128xf32>
    %113 = vector.extract_strided_slice %101 {offsets = [0, 256], sizes = [8, 128], strides = [1, 1]} : vector<8x384xf32> to vector<8x128xf32>
    %114 = arith.addf %113, %10 : vector<8x128xf32>
    %115 = arith.mulf %112, %114 : vector<8x128xf32>
    %116 = arith.addf %111, %115 : vector<8x128xf32>
    %117 = math.tanh %116 : vector<8x128xf32>
    %118 = arith.subf %98, %117 : vector<8x128xf32>
    %119 = arith.mulf %110, %118 : vector<8x128xf32>
    %120 = arith.addf %117, %119 : vector<8x128xf32>
    %121 = vector.extract_strided_slice %6 {offsets = [40, 0], sizes = [8, 384], strides = [1, 1]} : vector<64x384xf32> to vector<8x384xf32>
    %122 = arith.truncf %120 : vector<8x128xf32> to vector<8x128xbf16>
    %cst_20 = arith.constant dense<0.000000e+00> : vector<8x384xf32>
    %123 = tpu.matmul %122, %7, %cst_20 {dimension_numbers = #tpu.dot_dimension_numbers<[1], [0], [0], [1], [0, 0, 1, 1], [], []>} : vector<8x128xbf16>, vector<128x384xbf16>, vector<8x384xf32> -> vector<8x384xf32>
    %124 = vector.extract_strided_slice %121 {offsets = [0, 0], sizes = [8, 256], strides = [1, 1]} : vector<8x384xf32> to vector<8x256xf32>
    %125 = vector.extract_strided_slice %123 {offsets = [0, 0], sizes = [8, 256], strides = [1, 1]} : vector<8x384xf32> to vector<8x256xf32>
    %126 = arith.addf %124, %125 : vector<8x256xf32>
    %127 = arith.negf %126 : vector<8x256xf32>
    %128 = math.exp %127 : vector<8x256xf32>
    %cst_21 = arith.constant 1.000000e+00 : f32
    %129 = vector.broadcast %cst_21 : f32 to vector<8x256xf32>
    %130 = arith.addf %129, %128 : vector<8x256xf32>
    %131 = arith.divf %129, %130 : vector<8x256xf32>
    %132 = vector.extract_strided_slice %131 {offsets = [0, 128], sizes = [8, 128], strides = [1, 1]} : vector<8x256xf32> to vector<8x128xf32>
    %133 = vector.extract_strided_slice %121 {offsets = [0, 256], sizes = [8, 128], strides = [1, 1]} : vector<8x384xf32> to vector<8x128xf32>
    %134 = vector.extract_strided_slice %131 {offsets = [0, 0], sizes = [8, 128], strides = [1, 1]} : vector<8x256xf32> to vector<8x128xf32>
    %135 = vector.extract_strided_slice %123 {offsets = [0, 256], sizes = [8, 128], strides = [1, 1]} : vector<8x384xf32> to vector<8x128xf32>
    %136 = arith.addf %135, %10 : vector<8x128xf32>
    %137 = arith.mulf %134, %136 : vector<8x128xf32>
    %138 = arith.addf %133, %137 : vector<8x128xf32>
    %139 = math.tanh %138 : vector<8x128xf32>
    %140 = arith.subf %120, %139 : vector<8x128xf32>
    %141 = arith.mulf %132, %140 : vector<8x128xf32>
    %142 = arith.addf %139, %141 : vector<8x128xf32>
    %143 = vector.extract_strided_slice %6 {offsets = [48, 0], sizes = [8, 384], strides = [1, 1]} : vector<64x384xf32> to vector<8x384xf32>
    %144 = arith.truncf %142 : vector<8x128xf32> to vector<8x128xbf16>
    %cst_22 = arith.constant dense<0.000000e+00> : vector<8x384xf32>
    %145 = tpu.matmul %144, %7, %cst_22 {dimension_numbers = #tpu.dot_dimension_numbers<[1], [0], [0], [1], [0, 0, 1, 1], [], []>} : vector<8x128xbf16>, vector<128x384xbf16>, vector<8x384xf32> -> vector<8x384xf32>
    %146 = vector.extract_strided_slice %143 {offsets = [0, 0], sizes = [8, 256], strides = [1, 1]} : vector<8x384xf32> to vector<8x256xf32>
    %147 = vector.extract_strided_slice %145 {offsets = [0, 0], sizes = [8, 256], strides = [1, 1]} : vector<8x384xf32> to vector<8x256xf32>
    %148 = arith.addf %146, %147 : vector<8x256xf32>
    %149 = arith.negf %148 : vector<8x256xf32>
    %150 = math.exp %149 : vector<8x256xf32>
    %cst_23 = arith.constant 1.000000e+00 : f32
    %151 = vector.broadcast %cst_23 : f32 to vector<8x256xf32>
    %152 = arith.addf %151, %150 : vector<8x256xf32>
    %153 = arith.divf %151, %152 : vector<8x256xf32>
    %154 = vector.extract_strided_slice %153 {offsets = [0, 128], sizes = [8, 128], strides = [1, 1]} : vector<8x256xf32> to vector<8x128xf32>
    %155 = vector.extract_strided_slice %143 {offsets = [0, 256], sizes = [8, 128], strides = [1, 1]} : vector<8x384xf32> to vector<8x128xf32>
    %156 = vector.extract_strided_slice %153 {offsets = [0, 0], sizes = [8, 128], strides = [1, 1]} : vector<8x256xf32> to vector<8x128xf32>
    %157 = vector.extract_strided_slice %145 {offsets = [0, 256], sizes = [8, 128], strides = [1, 1]} : vector<8x384xf32> to vector<8x128xf32>
    %158 = arith.addf %157, %10 : vector<8x128xf32>
    %159 = arith.mulf %156, %158 : vector<8x128xf32>
    %160 = arith.addf %155, %159 : vector<8x128xf32>
    %161 = math.tanh %160 : vector<8x128xf32>
    %162 = arith.subf %142, %161 : vector<8x128xf32>
    %163 = arith.mulf %154, %162 : vector<8x128xf32>
    %164 = arith.addf %161, %163 : vector<8x128xf32>
    %165 = vector.extract_strided_slice %6 {offsets = [56, 0], sizes = [8, 384], strides = [1, 1]} : vector<64x384xf32> to vector<8x384xf32>
    %166 = arith.truncf %164 : vector<8x128xf32> to vector<8x128xbf16>
    %cst_24 = arith.constant dense<0.000000e+00> : vector<8x384xf32>
    %167 = tpu.matmul %166, %7, %cst_24 {dimension_numbers = #tpu.dot_dimension_numbers<[1], [0], [0], [1], [0, 0, 1, 1], [], []>} : vector<8x128xbf16>, vector<128x384xbf16>, vector<8x384xf32> -> vector<8x384xf32>
    %168 = vector.extract_strided_slice %165 {offsets = [0, 0], sizes = [8, 256], strides = [1, 1]} : vector<8x384xf32> to vector<8x256xf32>
    %169 = vector.extract_strided_slice %167 {offsets = [0, 0], sizes = [8, 256], strides = [1, 1]} : vector<8x384xf32> to vector<8x256xf32>
    %170 = arith.addf %168, %169 : vector<8x256xf32>
    %171 = arith.negf %170 : vector<8x256xf32>
    %172 = math.exp %171 : vector<8x256xf32>
    %cst_25 = arith.constant 1.000000e+00 : f32
    %173 = vector.broadcast %cst_25 : f32 to vector<8x256xf32>
    %174 = arith.addf %173, %172 : vector<8x256xf32>
    %175 = arith.divf %173, %174 : vector<8x256xf32>
    %176 = vector.extract_strided_slice %175 {offsets = [0, 128], sizes = [8, 128], strides = [1, 1]} : vector<8x256xf32> to vector<8x128xf32>
    %177 = vector.extract_strided_slice %165 {offsets = [0, 256], sizes = [8, 128], strides = [1, 1]} : vector<8x384xf32> to vector<8x128xf32>
    %178 = vector.extract_strided_slice %175 {offsets = [0, 0], sizes = [8, 128], strides = [1, 1]} : vector<8x256xf32> to vector<8x128xf32>
    %179 = vector.extract_strided_slice %167 {offsets = [0, 256], sizes = [8, 128], strides = [1, 1]} : vector<8x384xf32> to vector<8x128xf32>
    %180 = arith.addf %179, %10 : vector<8x128xf32>
    %181 = arith.mulf %178, %180 : vector<8x128xf32>
    %182 = arith.addf %177, %181 : vector<8x128xf32>
    %183 = math.tanh %182 : vector<8x128xf32>
    %184 = arith.subf %164, %183 : vector<8x128xf32>
    %185 = arith.mulf %176, %184 : vector<8x128xf32>
    %186 = arith.addf %183, %185 : vector<8x128xf32>
    %187 = tpu.concatenate %32, %54, %76, %98, %120, %142, %164, %186 in 0 : vector<8x128xf32>, vector<8x128xf32>, vector<8x128xf32>, vector<8x128xf32>, vector<8x128xf32>, vector<8x128xf32>, vector<8x128xf32>, vector<8x128xf32> -> vector<64x128xf32>
    %188 = arith.truncf %187 : vector<64x128xf32> to vector<64x128xbf16>
    %c0_26 = arith.constant 0 : index
    %c0_27 = arith.constant 0 : index
    %189 = vector.load %arg7[%c0_26, %c0_27] : memref<128x384xbf16, #tpu.memory_space<vmem>>, vector<128x384xbf16>
    %cst_28 = arith.constant dense<0.000000e+00> : vector<64x384xf32>
    %190 = tpu.matmul %188, %189, %cst_28 {dimension_numbers = #tpu.dot_dimension_numbers<[1], [0], [0], [1], [0, 0, 1, 1], [], []>} : vector<64x128xbf16>, vector<128x384xbf16>, vector<64x384xf32> -> vector<64x384xf32>
    %c0_29 = arith.constant 0 : index
    %c0_30 = arith.constant 0 : index
    %191 = vector.load %arg9[%c0_29, %c0_30] : memref<1x384xf32, #tpu.memory_space<vmem>>, vector<1x384xf32>
    %192 = vector.broadcast %191 : vector<1x384xf32> to vector<64x384xf32>
    %193 = arith.addf %190, %192 : vector<64x384xf32>
    %c0_31 = arith.constant 0 : index
    %c0_32 = arith.constant 0 : index
    %194 = vector.load %arg8[%c0_31, %c0_32] : memref<128x384xbf16, #tpu.memory_space<vmem>>, vector<128x384xbf16>
    %c0_33 = arith.constant 0 : index
    %c0_34 = arith.constant 0 : index
    %195 = vector.load %arg10[%c0_33, %c0_34] : memref<1x128xf32, #tpu.memory_space<vmem>>, vector<1x128xf32>
    %196 = vector.shape_cast %195 : vector<1x128xf32> to vector<1x128xf32>
    %197 = vector.broadcast %196 : vector<1x128xf32> to vector<8x128xf32>
    %198 = vector.extract_strided_slice %193 {offsets = [0, 0], sizes = [8, 384], strides = [1, 1]} : vector<64x384xf32> to vector<8x384xf32>
    %199 = arith.truncf %0 : vector<8x128xf32> to vector<8x128xbf16>
    %cst_35 = arith.constant dense<0.000000e+00> : vector<8x384xf32>
    %200 = tpu.matmul %199, %194, %cst_35 {dimension_numbers = #tpu.dot_dimension_numbers<[1], [0], [0], [1], [0, 0, 1, 1], [], []>} : vector<8x128xbf16>, vector<128x384xbf16>, vector<8x384xf32> -> vector<8x384xf32>
    %201 = vector.extract_strided_slice %198 {offsets = [0, 0], sizes = [8, 256], strides = [1, 1]} : vector<8x384xf32> to vector<8x256xf32>
    %202 = vector.extract_strided_slice %200 {offsets = [0, 0], sizes = [8, 256], strides = [1, 1]} : vector<8x384xf32> to vector<8x256xf32>
    %203 = arith.addf %201, %202 : vector<8x256xf32>
    %204 = arith.negf %203 : vector<8x256xf32>
    %205 = math.exp %204 : vector<8x256xf32>
    %cst_36 = arith.constant 1.000000e+00 : f32
    %206 = vector.broadcast %cst_36 : f32 to vector<8x256xf32>
    %207 = arith.addf %206, %205 : vector<8x256xf32>
    %208 = arith.divf %206, %207 : vector<8x256xf32>
    %209 = vector.extract_strided_slice %208 {offsets = [0, 128], sizes = [8, 128], strides = [1, 1]} : vector<8x256xf32> to vector<8x128xf32>
    %210 = vector.extract_strided_slice %198 {offsets = [0, 256], sizes = [8, 128], strides = [1, 1]} : vector<8x384xf32> to vector<8x128xf32>
    %211 = vector.extract_strided_slice %208 {offsets = [0, 0], sizes = [8, 128], strides = [1, 1]} : vector<8x256xf32> to vector<8x128xf32>
    %212 = vector.extract_strided_slice %200 {offsets = [0, 256], sizes = [8, 128], strides = [1, 1]} : vector<8x384xf32> to vector<8x128xf32>
    %213 = arith.addf %212, %197 : vector<8x128xf32>
    %214 = arith.mulf %211, %213 : vector<8x128xf32>
    %215 = arith.addf %210, %214 : vector<8x128xf32>
    %216 = math.tanh %215 : vector<8x128xf32>
    %217 = arith.subf %0, %216 : vector<8x128xf32>
    %218 = arith.mulf %209, %217 : vector<8x128xf32>
    %219 = arith.addf %216, %218 : vector<8x128xf32>
    %220 = vector.extract_strided_slice %193 {offsets = [8, 0], sizes = [8, 384], strides = [1, 1]} : vector<64x384xf32> to vector<8x384xf32>
    %221 = arith.truncf %219 : vector<8x128xf32> to vector<8x128xbf16>
    %cst_37 = arith.constant dense<0.000000e+00> : vector<8x384xf32>
    %222 = tpu.matmul %221, %194, %cst_37 {dimension_numbers = #tpu.dot_dimension_numbers<[1], [0], [0], [1], [0, 0, 1, 1], [], []>} : vector<8x128xbf16>, vector<128x384xbf16>, vector<8x384xf32> -> vector<8x384xf32>
    %223 = vector.extract_strided_slice %220 {offsets = [0, 0], sizes = [8, 256], strides = [1, 1]} : vector<8x384xf32> to vector<8x256xf32>
    %224 = vector.extract_strided_slice %222 {offsets = [0, 0], sizes = [8, 256], strides = [1, 1]} : vector<8x384xf32> to vector<8x256xf32>
    %225 = arith.addf %223, %224 : vector<8x256xf32>
    %226 = arith.negf %225 : vector<8x256xf32>
    %227 = math.exp %226 : vector<8x256xf32>
    %cst_38 = arith.constant 1.000000e+00 : f32
    %228 = vector.broadcast %cst_38 : f32 to vector<8x256xf32>
    %229 = arith.addf %228, %227 : vector<8x256xf32>
    %230 = arith.divf %228, %229 : vector<8x256xf32>
    %231 = vector.extract_strided_slice %230 {offsets = [0, 128], sizes = [8, 128], strides = [1, 1]} : vector<8x256xf32> to vector<8x128xf32>
    %232 = vector.extract_strided_slice %220 {offsets = [0, 256], sizes = [8, 128], strides = [1, 1]} : vector<8x384xf32> to vector<8x128xf32>
    %233 = vector.extract_strided_slice %230 {offsets = [0, 0], sizes = [8, 128], strides = [1, 1]} : vector<8x256xf32> to vector<8x128xf32>
    %234 = vector.extract_strided_slice %222 {offsets = [0, 256], sizes = [8, 128], strides = [1, 1]} : vector<8x384xf32> to vector<8x128xf32>
    %235 = arith.addf %234, %197 : vector<8x128xf32>
    %236 = arith.mulf %233, %235 : vector<8x128xf32>
    %237 = arith.addf %232, %236 : vector<8x128xf32>
    %238 = math.tanh %237 : vector<8x128xf32>
    %239 = arith.subf %219, %238 : vector<8x128xf32>
    %240 = arith.mulf %231, %239 : vector<8x128xf32>
    %241 = arith.addf %238, %240 : vector<8x128xf32>
    %242 = vector.extract_strided_slice %193 {offsets = [16, 0], sizes = [8, 384], strides = [1, 1]} : vector<64x384xf32> to vector<8x384xf32>
    %243 = arith.truncf %241 : vector<8x128xf32> to vector<8x128xbf16>
    %cst_39 = arith.constant dense<0.000000e+00> : vector<8x384xf32>
    %244 = tpu.matmul %243, %194, %cst_39 {dimension_numbers = #tpu.dot_dimension_numbers<[1], [0], [0], [1], [0, 0, 1, 1], [], []>} : vector<8x128xbf16>, vector<128x384xbf16>, vector<8x384xf32> -> vector<8x384xf32>
    %245 = vector.extract_strided_slice %242 {offsets = [0, 0], sizes = [8, 256], strides = [1, 1]} : vector<8x384xf32> to vector<8x256xf32>
    %246 = vector.extract_strided_slice %244 {offsets = [0, 0], sizes = [8, 256], strides = [1, 1]} : vector<8x384xf32> to vector<8x256xf32>
    %247 = arith.addf %245, %246 : vector<8x256xf32>
    %248 = arith.negf %247 : vector<8x256xf32>
    %249 = math.exp %248 : vector<8x256xf32>
    %cst_40 = arith.constant 1.000000e+00 : f32
    %250 = vector.broadcast %cst_40 : f32 to vector<8x256xf32>
    %251 = arith.addf %250, %249 : vector<8x256xf32>
    %252 = arith.divf %250, %251 : vector<8x256xf32>
    %253 = vector.extract_strided_slice %252 {offsets = [0, 128], sizes = [8, 128], strides = [1, 1]} : vector<8x256xf32> to vector<8x128xf32>
    %254 = vector.extract_strided_slice %242 {offsets = [0, 256], sizes = [8, 128], strides = [1, 1]} : vector<8x384xf32> to vector<8x128xf32>
    %255 = vector.extract_strided_slice %252 {offsets = [0, 0], sizes = [8, 128], strides = [1, 1]} : vector<8x256xf32> to vector<8x128xf32>
    %256 = vector.extract_strided_slice %244 {offsets = [0, 256], sizes = [8, 128], strides = [1, 1]} : vector<8x384xf32> to vector<8x128xf32>
    %257 = arith.addf %256, %197 : vector<8x128xf32>
    %258 = arith.mulf %255, %257 : vector<8x128xf32>
    %259 = arith.addf %254, %258 : vector<8x128xf32>
    %260 = math.tanh %259 : vector<8x128xf32>
    %261 = arith.subf %241, %260 : vector<8x128xf32>
    %262 = arith.mulf %253, %261 : vector<8x128xf32>
    %263 = arith.addf %260, %262 : vector<8x128xf32>
    %264 = vector.extract_strided_slice %193 {offsets = [24, 0], sizes = [8, 384], strides = [1, 1]} : vector<64x384xf32> to vector<8x384xf32>
    %265 = arith.truncf %263 : vector<8x128xf32> to vector<8x128xbf16>
    %cst_41 = arith.constant dense<0.000000e+00> : vector<8x384xf32>
    %266 = tpu.matmul %265, %194, %cst_41 {dimension_numbers = #tpu.dot_dimension_numbers<[1], [0], [0], [1], [0, 0, 1, 1], [], []>} : vector<8x128xbf16>, vector<128x384xbf16>, vector<8x384xf32> -> vector<8x384xf32>
    %267 = vector.extract_strided_slice %264 {offsets = [0, 0], sizes = [8, 256], strides = [1, 1]} : vector<8x384xf32> to vector<8x256xf32>
    %268 = vector.extract_strided_slice %266 {offsets = [0, 0], sizes = [8, 256], strides = [1, 1]} : vector<8x384xf32> to vector<8x256xf32>
    %269 = arith.addf %267, %268 : vector<8x256xf32>
    %270 = arith.negf %269 : vector<8x256xf32>
    %271 = math.exp %270 : vector<8x256xf32>
    %cst_42 = arith.constant 1.000000e+00 : f32
    %272 = vector.broadcast %cst_42 : f32 to vector<8x256xf32>
    %273 = arith.addf %272, %271 : vector<8x256xf32>
    %274 = arith.divf %272, %273 : vector<8x256xf32>
    %275 = vector.extract_strided_slice %274 {offsets = [0, 128], sizes = [8, 128], strides = [1, 1]} : vector<8x256xf32> to vector<8x128xf32>
    %276 = vector.extract_strided_slice %264 {offsets = [0, 256], sizes = [8, 128], strides = [1, 1]} : vector<8x384xf32> to vector<8x128xf32>
    %277 = vector.extract_strided_slice %274 {offsets = [0, 0], sizes = [8, 128], strides = [1, 1]} : vector<8x256xf32> to vector<8x128xf32>
    %278 = vector.extract_strided_slice %266 {offsets = [0, 256], sizes = [8, 128], strides = [1, 1]} : vector<8x384xf32> to vector<8x128xf32>
    %279 = arith.addf %278, %197 : vector<8x128xf32>
    %280 = arith.mulf %277, %279 : vector<8x128xf32>
    %281 = arith.addf %276, %280 : vector<8x128xf32>
    %282 = math.tanh %281 : vector<8x128xf32>
    %283 = arith.subf %263, %282 : vector<8x128xf32>
    %284 = arith.mulf %275, %283 : vector<8x128xf32>
    %285 = arith.addf %282, %284 : vector<8x128xf32>
    %286 = vector.extract_strided_slice %193 {offsets = [32, 0], sizes = [8, 384], strides = [1, 1]} : vector<64x384xf32> to vector<8x384xf32>
    %287 = arith.truncf %285 : vector<8x128xf32> to vector<8x128xbf16>
    %cst_43 = arith.constant dense<0.000000e+00> : vector<8x384xf32>
    %288 = tpu.matmul %287, %194, %cst_43 {dimension_numbers = #tpu.dot_dimension_numbers<[1], [0], [0], [1], [0, 0, 1, 1], [], []>} : vector<8x128xbf16>, vector<128x384xbf16>, vector<8x384xf32> -> vector<8x384xf32>
    %289 = vector.extract_strided_slice %286 {offsets = [0, 0], sizes = [8, 256], strides = [1, 1]} : vector<8x384xf32> to vector<8x256xf32>
    %290 = vector.extract_strided_slice %288 {offsets = [0, 0], sizes = [8, 256], strides = [1, 1]} : vector<8x384xf32> to vector<8x256xf32>
    %291 = arith.addf %289, %290 : vector<8x256xf32>
    %292 = arith.negf %291 : vector<8x256xf32>
    %293 = math.exp %292 : vector<8x256xf32>
    %cst_44 = arith.constant 1.000000e+00 : f32
    %294 = vector.broadcast %cst_44 : f32 to vector<8x256xf32>
    %295 = arith.addf %294, %293 : vector<8x256xf32>
    %296 = arith.divf %294, %295 : vector<8x256xf32>
    %297 = vector.extract_strided_slice %296 {offsets = [0, 128], sizes = [8, 128], strides = [1, 1]} : vector<8x256xf32> to vector<8x128xf32>
    %298 = vector.extract_strided_slice %286 {offsets = [0, 256], sizes = [8, 128], strides = [1, 1]} : vector<8x384xf32> to vector<8x128xf32>
    %299 = vector.extract_strided_slice %296 {offsets = [0, 0], sizes = [8, 128], strides = [1, 1]} : vector<8x256xf32> to vector<8x128xf32>
    %300 = vector.extract_strided_slice %288 {offsets = [0, 256], sizes = [8, 128], strides = [1, 1]} : vector<8x384xf32> to vector<8x128xf32>
    %301 = arith.addf %300, %197 : vector<8x128xf32>
    %302 = arith.mulf %299, %301 : vector<8x128xf32>
    %303 = arith.addf %298, %302 : vector<8x128xf32>
    %304 = math.tanh %303 : vector<8x128xf32>
    %305 = arith.subf %285, %304 : vector<8x128xf32>
    %306 = arith.mulf %297, %305 : vector<8x128xf32>
    %307 = arith.addf %304, %306 : vector<8x128xf32>
    %308 = vector.extract_strided_slice %193 {offsets = [40, 0], sizes = [8, 384], strides = [1, 1]} : vector<64x384xf32> to vector<8x384xf32>
    %309 = arith.truncf %307 : vector<8x128xf32> to vector<8x128xbf16>
    %cst_45 = arith.constant dense<0.000000e+00> : vector<8x384xf32>
    %310 = tpu.matmul %309, %194, %cst_45 {dimension_numbers = #tpu.dot_dimension_numbers<[1], [0], [0], [1], [0, 0, 1, 1], [], []>} : vector<8x128xbf16>, vector<128x384xbf16>, vector<8x384xf32> -> vector<8x384xf32>
    %311 = vector.extract_strided_slice %308 {offsets = [0, 0], sizes = [8, 256], strides = [1, 1]} : vector<8x384xf32> to vector<8x256xf32>
    %312 = vector.extract_strided_slice %310 {offsets = [0, 0], sizes = [8, 256], strides = [1, 1]} : vector<8x384xf32> to vector<8x256xf32>
    %313 = arith.addf %311, %312 : vector<8x256xf32>
    %314 = arith.negf %313 : vector<8x256xf32>
    %315 = math.exp %314 : vector<8x256xf32>
    %cst_46 = arith.constant 1.000000e+00 : f32
    %316 = vector.broadcast %cst_46 : f32 to vector<8x256xf32>
    %317 = arith.addf %316, %315 : vector<8x256xf32>
    %318 = arith.divf %316, %317 : vector<8x256xf32>
    %319 = vector.extract_strided_slice %318 {offsets = [0, 128], sizes = [8, 128], strides = [1, 1]} : vector<8x256xf32> to vector<8x128xf32>
    %320 = vector.extract_strided_slice %308 {offsets = [0, 256], sizes = [8, 128], strides = [1, 1]} : vector<8x384xf32> to vector<8x128xf32>
    %321 = vector.extract_strided_slice %318 {offsets = [0, 0], sizes = [8, 128], strides = [1, 1]} : vector<8x256xf32> to vector<8x128xf32>
    %322 = vector.extract_strided_slice %310 {offsets = [0, 256], sizes = [8, 128], strides = [1, 1]} : vector<8x384xf32> to vector<8x128xf32>
    %323 = arith.addf %322, %197 : vector<8x128xf32>
    %324 = arith.mulf %321, %323 : vector<8x128xf32>
    %325 = arith.addf %320, %324 : vector<8x128xf32>
    %326 = math.tanh %325 : vector<8x128xf32>
    %327 = arith.subf %307, %326 : vector<8x128xf32>
    %328 = arith.mulf %319, %327 : vector<8x128xf32>
    %329 = arith.addf %326, %328 : vector<8x128xf32>
    %330 = vector.extract_strided_slice %193 {offsets = [48, 0], sizes = [8, 384], strides = [1, 1]} : vector<64x384xf32> to vector<8x384xf32>
    %331 = arith.truncf %329 : vector<8x128xf32> to vector<8x128xbf16>
    %cst_47 = arith.constant dense<0.000000e+00> : vector<8x384xf32>
    %332 = tpu.matmul %331, %194, %cst_47 {dimension_numbers = #tpu.dot_dimension_numbers<[1], [0], [0], [1], [0, 0, 1, 1], [], []>} : vector<8x128xbf16>, vector<128x384xbf16>, vector<8x384xf32> -> vector<8x384xf32>
    %333 = vector.extract_strided_slice %330 {offsets = [0, 0], sizes = [8, 256], strides = [1, 1]} : vector<8x384xf32> to vector<8x256xf32>
    %334 = vector.extract_strided_slice %332 {offsets = [0, 0], sizes = [8, 256], strides = [1, 1]} : vector<8x384xf32> to vector<8x256xf32>
    %335 = arith.addf %333, %334 : vector<8x256xf32>
    %336 = arith.negf %335 : vector<8x256xf32>
    %337 = math.exp %336 : vector<8x256xf32>
    %cst_48 = arith.constant 1.000000e+00 : f32
    %338 = vector.broadcast %cst_48 : f32 to vector<8x256xf32>
    %339 = arith.addf %338, %337 : vector<8x256xf32>
    %340 = arith.divf %338, %339 : vector<8x256xf32>
    %341 = vector.extract_strided_slice %340 {offsets = [0, 128], sizes = [8, 128], strides = [1, 1]} : vector<8x256xf32> to vector<8x128xf32>
    %342 = vector.extract_strided_slice %330 {offsets = [0, 256], sizes = [8, 128], strides = [1, 1]} : vector<8x384xf32> to vector<8x128xf32>
    %343 = vector.extract_strided_slice %340 {offsets = [0, 0], sizes = [8, 128], strides = [1, 1]} : vector<8x256xf32> to vector<8x128xf32>
    %344 = vector.extract_strided_slice %332 {offsets = [0, 256], sizes = [8, 128], strides = [1, 1]} : vector<8x384xf32> to vector<8x128xf32>
    %345 = arith.addf %344, %197 : vector<8x128xf32>
    %346 = arith.mulf %343, %345 : vector<8x128xf32>
    %347 = arith.addf %342, %346 : vector<8x128xf32>
    %348 = math.tanh %347 : vector<8x128xf32>
    %349 = arith.subf %329, %348 : vector<8x128xf32>
    %350 = arith.mulf %341, %349 : vector<8x128xf32>
    %351 = arith.addf %348, %350 : vector<8x128xf32>
    %352 = vector.extract_strided_slice %193 {offsets = [56, 0], sizes = [8, 384], strides = [1, 1]} : vector<64x384xf32> to vector<8x384xf32>
    %353 = arith.truncf %351 : vector<8x128xf32> to vector<8x128xbf16>
    %cst_49 = arith.constant dense<0.000000e+00> : vector<8x384xf32>
    %354 = tpu.matmul %353, %194, %cst_49 {dimension_numbers = #tpu.dot_dimension_numbers<[1], [0], [0], [1], [0, 0, 1, 1], [], []>} : vector<8x128xbf16>, vector<128x384xbf16>, vector<8x384xf32> -> vector<8x384xf32>
    %355 = vector.extract_strided_slice %352 {offsets = [0, 0], sizes = [8, 256], strides = [1, 1]} : vector<8x384xf32> to vector<8x256xf32>
    %356 = vector.extract_strided_slice %354 {offsets = [0, 0], sizes = [8, 256], strides = [1, 1]} : vector<8x384xf32> to vector<8x256xf32>
    %357 = arith.addf %355, %356 : vector<8x256xf32>
    %358 = arith.negf %357 : vector<8x256xf32>
    %359 = math.exp %358 : vector<8x256xf32>
    %cst_50 = arith.constant 1.000000e+00 : f32
    %360 = vector.broadcast %cst_50 : f32 to vector<8x256xf32>
    %361 = arith.addf %360, %359 : vector<8x256xf32>
    %362 = arith.divf %360, %361 : vector<8x256xf32>
    %363 = vector.extract_strided_slice %362 {offsets = [0, 128], sizes = [8, 128], strides = [1, 1]} : vector<8x256xf32> to vector<8x128xf32>
    %364 = vector.extract_strided_slice %352 {offsets = [0, 256], sizes = [8, 128], strides = [1, 1]} : vector<8x384xf32> to vector<8x128xf32>
    %365 = vector.extract_strided_slice %362 {offsets = [0, 0], sizes = [8, 128], strides = [1, 1]} : vector<8x256xf32> to vector<8x128xf32>
    %366 = vector.extract_strided_slice %354 {offsets = [0, 256], sizes = [8, 128], strides = [1, 1]} : vector<8x384xf32> to vector<8x128xf32>
    %367 = arith.addf %366, %197 : vector<8x128xf32>
    %368 = arith.mulf %365, %367 : vector<8x128xf32>
    %369 = arith.addf %364, %368 : vector<8x128xf32>
    %370 = math.tanh %369 : vector<8x128xf32>
    %371 = arith.subf %351, %370 : vector<8x128xf32>
    %372 = arith.mulf %363, %371 : vector<8x128xf32>
    %373 = arith.addf %370, %372 : vector<8x128xf32>
    %c0_51 = arith.constant 0 : index
    %c0_52 = arith.constant 0 : index
    %374 = vector.load %arg1[%c0_51, %c0_52] : memref<64x128xbf16, #tpu.memory_space<vmem>>, vector<64x128xbf16>
    %c0_53 = arith.constant 0 : index
    %c0_54 = arith.constant 0 : index
    %c0_55 = arith.constant 0 : index
    %375 = vector.load %arg2[%c0_53, %c0_54, %c0_55] : memref<2x8x128xf32, #tpu.memory_space<vmem>>, vector<1x8x128xf32>
    %376 = vector.shape_cast %375 : vector<1x8x128xf32> to vector<8x128xf32>
    %377 = arith.addf %186, %376 : vector<8x128xf32>
    %c0_56 = arith.constant 0 : index
    %c0_57 = arith.constant 0 : index
    %378 = vector.load %arg11[%c0_56, %c0_57] : memref<128x384xbf16, #tpu.memory_space<vmem>>, vector<128x384xbf16>
    %cst_58 = arith.constant dense<0.000000e+00> : vector<64x384xf32>
    %379 = tpu.matmul %374, %378, %cst_58 {dimension_numbers = #tpu.dot_dimension_numbers<[1], [0], [0], [1], [0, 0, 1, 1], [], []>} : vector<64x128xbf16>, vector<128x384xbf16>, vector<64x384xf32> -> vector<64x384xf32>
    %c0_59 = arith.constant 0 : index
    %c0_60 = arith.constant 0 : index
    %380 = vector.load %arg13[%c0_59, %c0_60] : memref<1x384xf32, #tpu.memory_space<vmem>>, vector<1x384xf32>
    %381 = vector.broadcast %380 : vector<1x384xf32> to vector<64x384xf32>
    %382 = arith.addf %379, %381 : vector<64x384xf32>
    %c0_61 = arith.constant 0 : index
    %c0_62 = arith.constant 0 : index
    %383 = vector.load %arg12[%c0_61, %c0_62] : memref<128x384xbf16, #tpu.memory_space<vmem>>, vector<128x384xbf16>
    %c0_63 = arith.constant 0 : index
    %c0_64 = arith.constant 0 : index
    %384 = vector.load %arg14[%c0_63, %c0_64] : memref<1x128xf32, #tpu.memory_space<vmem>>, vector<1x128xf32>
    %385 = vector.shape_cast %384 : vector<1x128xf32> to vector<1x128xf32>
    %386 = vector.broadcast %385 : vector<1x128xf32> to vector<8x128xf32>
    %387 = vector.extract_strided_slice %382 {offsets = [0, 0], sizes = [8, 384], strides = [1, 1]} : vector<64x384xf32> to vector<8x384xf32>
    %388 = arith.truncf %377 : vector<8x128xf32> to vector<8x128xbf16>
    %cst_65 = arith.constant dense<0.000000e+00> : vector<8x384xf32>
    %389 = tpu.matmul %388, %383, %cst_65 {dimension_numbers = #tpu.dot_dimension_numbers<[1], [0], [0], [1], [0, 0, 1, 1], [], []>} : vector<8x128xbf16>, vector<128x384xbf16>, vector<8x384xf32> -> vector<8x384xf32>
    %390 = vector.extract_strided_slice %387 {offsets = [0, 0], sizes = [8, 256], strides = [1, 1]} : vector<8x384xf32> to vector<8x256xf32>
    %391 = vector.extract_strided_slice %389 {offsets = [0, 0], sizes = [8, 256], strides = [1, 1]} : vector<8x384xf32> to vector<8x256xf32>
    %392 = arith.addf %390, %391 : vector<8x256xf32>
    %393 = arith.negf %392 : vector<8x256xf32>
    %394 = math.exp %393 : vector<8x256xf32>
    %cst_66 = arith.constant 1.000000e+00 : f32
    %395 = vector.broadcast %cst_66 : f32 to vector<8x256xf32>
    %396 = arith.addf %395, %394 : vector<8x256xf32>
    %397 = arith.divf %395, %396 : vector<8x256xf32>
    %398 = vector.extract_strided_slice %397 {offsets = [0, 128], sizes = [8, 128], strides = [1, 1]} : vector<8x256xf32> to vector<8x128xf32>
    %399 = vector.extract_strided_slice %387 {offsets = [0, 256], sizes = [8, 128], strides = [1, 1]} : vector<8x384xf32> to vector<8x128xf32>
    %400 = vector.extract_strided_slice %397 {offsets = [0, 0], sizes = [8, 128], strides = [1, 1]} : vector<8x256xf32> to vector<8x128xf32>
    %401 = vector.extract_strided_slice %389 {offsets = [0, 256], sizes = [8, 128], strides = [1, 1]} : vector<8x384xf32> to vector<8x128xf32>
    %402 = arith.addf %401, %386 : vector<8x128xf32>
    %403 = arith.mulf %400, %402 : vector<8x128xf32>
    %404 = arith.addf %399, %403 : vector<8x128xf32>
    %405 = math.tanh %404 : vector<8x128xf32>
    %406 = arith.subf %377, %405 : vector<8x128xf32>
    %407 = arith.mulf %398, %406 : vector<8x128xf32>
    %408 = arith.addf %405, %407 : vector<8x128xf32>
    %409 = vector.extract_strided_slice %382 {offsets = [8, 0], sizes = [8, 384], strides = [1, 1]} : vector<64x384xf32> to vector<8x384xf32>
    %410 = arith.truncf %408 : vector<8x128xf32> to vector<8x128xbf16>
    %cst_67 = arith.constant dense<0.000000e+00> : vector<8x384xf32>
    %411 = tpu.matmul %410, %383, %cst_67 {dimension_numbers = #tpu.dot_dimension_numbers<[1], [0], [0], [1], [0, 0, 1, 1], [], []>} : vector<8x128xbf16>, vector<128x384xbf16>, vector<8x384xf32> -> vector<8x384xf32>
    %412 = vector.extract_strided_slice %409 {offsets = [0, 0], sizes = [8, 256], strides = [1, 1]} : vector<8x384xf32> to vector<8x256xf32>
    %413 = vector.extract_strided_slice %411 {offsets = [0, 0], sizes = [8, 256], strides = [1, 1]} : vector<8x384xf32> to vector<8x256xf32>
    %414 = arith.addf %412, %413 : vector<8x256xf32>
    %415 = arith.negf %414 : vector<8x256xf32>
    %416 = math.exp %415 : vector<8x256xf32>
    %cst_68 = arith.constant 1.000000e+00 : f32
    %417 = vector.broadcast %cst_68 : f32 to vector<8x256xf32>
    %418 = arith.addf %417, %416 : vector<8x256xf32>
    %419 = arith.divf %417, %418 : vector<8x256xf32>
    %420 = vector.extract_strided_slice %419 {offsets = [0, 128], sizes = [8, 128], strides = [1, 1]} : vector<8x256xf32> to vector<8x128xf32>
    %421 = vector.extract_strided_slice %409 {offsets = [0, 256], sizes = [8, 128], strides = [1, 1]} : vector<8x384xf32> to vector<8x128xf32>
    %422 = vector.extract_strided_slice %419 {offsets = [0, 0], sizes = [8, 128], strides = [1, 1]} : vector<8x256xf32> to vector<8x128xf32>
    %423 = vector.extract_strided_slice %411 {offsets = [0, 256], sizes = [8, 128], strides = [1, 1]} : vector<8x384xf32> to vector<8x128xf32>
    %424 = arith.addf %423, %386 : vector<8x128xf32>
    %425 = arith.mulf %422, %424 : vector<8x128xf32>
    %426 = arith.addf %421, %425 : vector<8x128xf32>
    %427 = math.tanh %426 : vector<8x128xf32>
    %428 = arith.subf %408, %427 : vector<8x128xf32>
    %429 = arith.mulf %420, %428 : vector<8x128xf32>
    %430 = arith.addf %427, %429 : vector<8x128xf32>
    %431 = vector.extract_strided_slice %382 {offsets = [16, 0], sizes = [8, 384], strides = [1, 1]} : vector<64x384xf32> to vector<8x384xf32>
    %432 = arith.truncf %430 : vector<8x128xf32> to vector<8x128xbf16>
    %cst_69 = arith.constant dense<0.000000e+00> : vector<8x384xf32>
    %433 = tpu.matmul %432, %383, %cst_69 {dimension_numbers = #tpu.dot_dimension_numbers<[1], [0], [0], [1], [0, 0, 1, 1], [], []>} : vector<8x128xbf16>, vector<128x384xbf16>, vector<8x384xf32> -> vector<8x384xf32>
    %434 = vector.extract_strided_slice %431 {offsets = [0, 0], sizes = [8, 256], strides = [1, 1]} : vector<8x384xf32> to vector<8x256xf32>
    %435 = vector.extract_strided_slice %433 {offsets = [0, 0], sizes = [8, 256], strides = [1, 1]} : vector<8x384xf32> to vector<8x256xf32>
    %436 = arith.addf %434, %435 : vector<8x256xf32>
    %437 = arith.negf %436 : vector<8x256xf32>
    %438 = math.exp %437 : vector<8x256xf32>
    %cst_70 = arith.constant 1.000000e+00 : f32
    %439 = vector.broadcast %cst_70 : f32 to vector<8x256xf32>
    %440 = arith.addf %439, %438 : vector<8x256xf32>
    %441 = arith.divf %439, %440 : vector<8x256xf32>
    %442 = vector.extract_strided_slice %441 {offsets = [0, 128], sizes = [8, 128], strides = [1, 1]} : vector<8x256xf32> to vector<8x128xf32>
    %443 = vector.extract_strided_slice %431 {offsets = [0, 256], sizes = [8, 128], strides = [1, 1]} : vector<8x384xf32> to vector<8x128xf32>
    %444 = vector.extract_strided_slice %441 {offsets = [0, 0], sizes = [8, 128], strides = [1, 1]} : vector<8x256xf32> to vector<8x128xf32>
    %445 = vector.extract_strided_slice %433 {offsets = [0, 256], sizes = [8, 128], strides = [1, 1]} : vector<8x384xf32> to vector<8x128xf32>
    %446 = arith.addf %445, %386 : vector<8x128xf32>
    %447 = arith.mulf %444, %446 : vector<8x128xf32>
    %448 = arith.addf %443, %447 : vector<8x128xf32>
    %449 = math.tanh %448 : vector<8x128xf32>
    %450 = arith.subf %430, %449 : vector<8x128xf32>
    %451 = arith.mulf %442, %450 : vector<8x128xf32>
    %452 = arith.addf %449, %451 : vector<8x128xf32>
    %453 = vector.extract_strided_slice %382 {offsets = [24, 0], sizes = [8, 384], strides = [1, 1]} : vector<64x384xf32> to vector<8x384xf32>
    %454 = arith.truncf %452 : vector<8x128xf32> to vector<8x128xbf16>
    %cst_71 = arith.constant dense<0.000000e+00> : vector<8x384xf32>
    %455 = tpu.matmul %454, %383, %cst_71 {dimension_numbers = #tpu.dot_dimension_numbers<[1], [0], [0], [1], [0, 0, 1, 1], [], []>} : vector<8x128xbf16>, vector<128x384xbf16>, vector<8x384xf32> -> vector<8x384xf32>
    %456 = vector.extract_strided_slice %453 {offsets = [0, 0], sizes = [8, 256], strides = [1, 1]} : vector<8x384xf32> to vector<8x256xf32>
    %457 = vector.extract_strided_slice %455 {offsets = [0, 0], sizes = [8, 256], strides = [1, 1]} : vector<8x384xf32> to vector<8x256xf32>
    %458 = arith.addf %456, %457 : vector<8x256xf32>
    %459 = arith.negf %458 : vector<8x256xf32>
    %460 = math.exp %459 : vector<8x256xf32>
    %cst_72 = arith.constant 1.000000e+00 : f32
    %461 = vector.broadcast %cst_72 : f32 to vector<8x256xf32>
    %462 = arith.addf %461, %460 : vector<8x256xf32>
    %463 = arith.divf %461, %462 : vector<8x256xf32>
    %464 = vector.extract_strided_slice %463 {offsets = [0, 128], sizes = [8, 128], strides = [1, 1]} : vector<8x256xf32> to vector<8x128xf32>
    %465 = vector.extract_strided_slice %453 {offsets = [0, 256], sizes = [8, 128], strides = [1, 1]} : vector<8x384xf32> to vector<8x128xf32>
    %466 = vector.extract_strided_slice %463 {offsets = [0, 0], sizes = [8, 128], strides = [1, 1]} : vector<8x256xf32> to vector<8x128xf32>
    %467 = vector.extract_strided_slice %455 {offsets = [0, 256], sizes = [8, 128], strides = [1, 1]} : vector<8x384xf32> to vector<8x128xf32>
    %468 = arith.addf %467, %386 : vector<8x128xf32>
    %469 = arith.mulf %466, %468 : vector<8x128xf32>
    %470 = arith.addf %465, %469 : vector<8x128xf32>
    %471 = math.tanh %470 : vector<8x128xf32>
    %472 = arith.subf %452, %471 : vector<8x128xf32>
    %473 = arith.mulf %464, %472 : vector<8x128xf32>
    %474 = arith.addf %471, %473 : vector<8x128xf32>
    %475 = vector.extract_strided_slice %382 {offsets = [32, 0], sizes = [8, 384], strides = [1, 1]} : vector<64x384xf32> to vector<8x384xf32>
    %476 = arith.truncf %474 : vector<8x128xf32> to vector<8x128xbf16>
    %cst_73 = arith.constant dense<0.000000e+00> : vector<8x384xf32>
    %477 = tpu.matmul %476, %383, %cst_73 {dimension_numbers = #tpu.dot_dimension_numbers<[1], [0], [0], [1], [0, 0, 1, 1], [], []>} : vector<8x128xbf16>, vector<128x384xbf16>, vector<8x384xf32> -> vector<8x384xf32>
    %478 = vector.extract_strided_slice %475 {offsets = [0, 0], sizes = [8, 256], strides = [1, 1]} : vector<8x384xf32> to vector<8x256xf32>
    %479 = vector.extract_strided_slice %477 {offsets = [0, 0], sizes = [8, 256], strides = [1, 1]} : vector<8x384xf32> to vector<8x256xf32>
    %480 = arith.addf %478, %479 : vector<8x256xf32>
    %481 = arith.negf %480 : vector<8x256xf32>
    %482 = math.exp %481 : vector<8x256xf32>
    %cst_74 = arith.constant 1.000000e+00 : f32
    %483 = vector.broadcast %cst_74 : f32 to vector<8x256xf32>
    %484 = arith.addf %483, %482 : vector<8x256xf32>
    %485 = arith.divf %483, %484 : vector<8x256xf32>
    %486 = vector.extract_strided_slice %485 {offsets = [0, 128], sizes = [8, 128], strides = [1, 1]} : vector<8x256xf32> to vector<8x128xf32>
    %487 = vector.extract_strided_slice %475 {offsets = [0, 256], sizes = [8, 128], strides = [1, 1]} : vector<8x384xf32> to vector<8x128xf32>
    %488 = vector.extract_strided_slice %485 {offsets = [0, 0], sizes = [8, 128], strides = [1, 1]} : vector<8x256xf32> to vector<8x128xf32>
    %489 = vector.extract_strided_slice %477 {offsets = [0, 256], sizes = [8, 128], strides = [1, 1]} : vector<8x384xf32> to vector<8x128xf32>
    %490 = arith.addf %489, %386 : vector<8x128xf32>
    %491 = arith.mulf %488, %490 : vector<8x128xf32>
    %492 = arith.addf %487, %491 : vector<8x128xf32>
    %493 = math.tanh %492 : vector<8x128xf32>
    %494 = arith.subf %474, %493 : vector<8x128xf32>
    %495 = arith.mulf %486, %494 : vector<8x128xf32>
    %496 = arith.addf %493, %495 : vector<8x128xf32>
    %497 = vector.extract_strided_slice %382 {offsets = [40, 0], sizes = [8, 384], strides = [1, 1]} : vector<64x384xf32> to vector<8x384xf32>
    %498 = arith.truncf %496 : vector<8x128xf32> to vector<8x128xbf16>
    %cst_75 = arith.constant dense<0.000000e+00> : vector<8x384xf32>
    %499 = tpu.matmul %498, %383, %cst_75 {dimension_numbers = #tpu.dot_dimension_numbers<[1], [0], [0], [1], [0, 0, 1, 1], [], []>} : vector<8x128xbf16>, vector<128x384xbf16>, vector<8x384xf32> -> vector<8x384xf32>
    %500 = vector.extract_strided_slice %497 {offsets = [0, 0], sizes = [8, 256], strides = [1, 1]} : vector<8x384xf32> to vector<8x256xf32>
    %501 = vector.extract_strided_slice %499 {offsets = [0, 0], sizes = [8, 256], strides = [1, 1]} : vector<8x384xf32> to vector<8x256xf32>
    %502 = arith.addf %500, %501 : vector<8x256xf32>
    %503 = arith.negf %502 : vector<8x256xf32>
    %504 = math.exp %503 : vector<8x256xf32>
    %cst_76 = arith.constant 1.000000e+00 : f32
    %505 = vector.broadcast %cst_76 : f32 to vector<8x256xf32>
    %506 = arith.addf %505, %504 : vector<8x256xf32>
    %507 = arith.divf %505, %506 : vector<8x256xf32>
    %508 = vector.extract_strided_slice %507 {offsets = [0, 128], sizes = [8, 128], strides = [1, 1]} : vector<8x256xf32> to vector<8x128xf32>
    %509 = vector.extract_strided_slice %497 {offsets = [0, 256], sizes = [8, 128], strides = [1, 1]} : vector<8x384xf32> to vector<8x128xf32>
    %510 = vector.extract_strided_slice %507 {offsets = [0, 0], sizes = [8, 128], strides = [1, 1]} : vector<8x256xf32> to vector<8x128xf32>
    %511 = vector.extract_strided_slice %499 {offsets = [0, 256], sizes = [8, 128], strides = [1, 1]} : vector<8x384xf32> to vector<8x128xf32>
    %512 = arith.addf %511, %386 : vector<8x128xf32>
    %513 = arith.mulf %510, %512 : vector<8x128xf32>
    %514 = arith.addf %509, %513 : vector<8x128xf32>
    %515 = math.tanh %514 : vector<8x128xf32>
    %516 = arith.subf %496, %515 : vector<8x128xf32>
    %517 = arith.mulf %508, %516 : vector<8x128xf32>
    %518 = arith.addf %515, %517 : vector<8x128xf32>
    %519 = vector.extract_strided_slice %382 {offsets = [48, 0], sizes = [8, 384], strides = [1, 1]} : vector<64x384xf32> to vector<8x384xf32>
    %520 = arith.truncf %518 : vector<8x128xf32> to vector<8x128xbf16>
    %cst_77 = arith.constant dense<0.000000e+00> : vector<8x384xf32>
    %521 = tpu.matmul %520, %383, %cst_77 {dimension_numbers = #tpu.dot_dimension_numbers<[1], [0], [0], [1], [0, 0, 1, 1], [], []>} : vector<8x128xbf16>, vector<128x384xbf16>, vector<8x384xf32> -> vector<8x384xf32>
    %522 = vector.extract_strided_slice %519 {offsets = [0, 0], sizes = [8, 256], strides = [1, 1]} : vector<8x384xf32> to vector<8x256xf32>
    %523 = vector.extract_strided_slice %521 {offsets = [0, 0], sizes = [8, 256], strides = [1, 1]} : vector<8x384xf32> to vector<8x256xf32>
    %524 = arith.addf %522, %523 : vector<8x256xf32>
    %525 = arith.negf %524 : vector<8x256xf32>
    %526 = math.exp %525 : vector<8x256xf32>
    %cst_78 = arith.constant 1.000000e+00 : f32
    %527 = vector.broadcast %cst_78 : f32 to vector<8x256xf32>
    %528 = arith.addf %527, %526 : vector<8x256xf32>
    %529 = arith.divf %527, %528 : vector<8x256xf32>
    %530 = vector.extract_strided_slice %529 {offsets = [0, 128], sizes = [8, 128], strides = [1, 1]} : vector<8x256xf32> to vector<8x128xf32>
    %531 = vector.extract_strided_slice %519 {offsets = [0, 256], sizes = [8, 128], strides = [1, 1]} : vector<8x384xf32> to vector<8x128xf32>
    %532 = vector.extract_strided_slice %529 {offsets = [0, 0], sizes = [8, 128], strides = [1, 1]} : vector<8x256xf32> to vector<8x128xf32>
    %533 = vector.extract_strided_slice %521 {offsets = [0, 256], sizes = [8, 128], strides = [1, 1]} : vector<8x384xf32> to vector<8x128xf32>
    %534 = arith.addf %533, %386 : vector<8x128xf32>
    %535 = arith.mulf %532, %534 : vector<8x128xf32>
    %536 = arith.addf %531, %535 : vector<8x128xf32>
    %537 = math.tanh %536 : vector<8x128xf32>
    %538 = arith.subf %518, %537 : vector<8x128xf32>
    %539 = arith.mulf %530, %538 : vector<8x128xf32>
    %540 = arith.addf %537, %539 : vector<8x128xf32>
    %541 = vector.extract_strided_slice %382 {offsets = [56, 0], sizes = [8, 384], strides = [1, 1]} : vector<64x384xf32> to vector<8x384xf32>
    %542 = arith.truncf %540 : vector<8x128xf32> to vector<8x128xbf16>
    %cst_79 = arith.constant dense<0.000000e+00> : vector<8x384xf32>
    %543 = tpu.matmul %542, %383, %cst_79 {dimension_numbers = #tpu.dot_dimension_numbers<[1], [0], [0], [1], [0, 0, 1, 1], [], []>} : vector<8x128xbf16>, vector<128x384xbf16>, vector<8x384xf32> -> vector<8x384xf32>
    %544 = vector.extract_strided_slice %541 {offsets = [0, 0], sizes = [8, 256], strides = [1, 1]} : vector<8x384xf32> to vector<8x256xf32>
    %545 = vector.extract_strided_slice %543 {offsets = [0, 0], sizes = [8, 256], strides = [1, 1]} : vector<8x384xf32> to vector<8x256xf32>
    %546 = arith.addf %544, %545 : vector<8x256xf32>
    %547 = arith.negf %546 : vector<8x256xf32>
    %548 = math.exp %547 : vector<8x256xf32>
    %cst_80 = arith.constant 1.000000e+00 : f32
    %549 = vector.broadcast %cst_80 : f32 to vector<8x256xf32>
    %550 = arith.addf %549, %548 : vector<8x256xf32>
    %551 = arith.divf %549, %550 : vector<8x256xf32>
    %552 = vector.extract_strided_slice %551 {offsets = [0, 128], sizes = [8, 128], strides = [1, 1]} : vector<8x256xf32> to vector<8x128xf32>
    %553 = vector.extract_strided_slice %541 {offsets = [0, 256], sizes = [8, 128], strides = [1, 1]} : vector<8x384xf32> to vector<8x128xf32>
    %554 = vector.extract_strided_slice %551 {offsets = [0, 0], sizes = [8, 128], strides = [1, 1]} : vector<8x256xf32> to vector<8x128xf32>
    %555 = vector.extract_strided_slice %543 {offsets = [0, 256], sizes = [8, 128], strides = [1, 1]} : vector<8x384xf32> to vector<8x128xf32>
    %556 = arith.addf %555, %386 : vector<8x128xf32>
    %557 = arith.mulf %554, %556 : vector<8x128xf32>
    %558 = arith.addf %553, %557 : vector<8x128xf32>
    %559 = math.tanh %558 : vector<8x128xf32>
    %560 = arith.subf %540, %559 : vector<8x128xf32>
    %561 = arith.mulf %552, %560 : vector<8x128xf32>
    %562 = arith.addf %559, %561 : vector<8x128xf32>
    %563 = tpu.concatenate %408, %430, %452, %474, %496, %518, %540, %562 in 0 : vector<8x128xf32>, vector<8x128xf32>, vector<8x128xf32>, vector<8x128xf32>, vector<8x128xf32>, vector<8x128xf32>, vector<8x128xf32>, vector<8x128xf32> -> vector<64x128xf32>
    %564 = arith.truncf %563 : vector<64x128xf32> to vector<64x128xbf16>
    %c1 = arith.constant 1 : index
    %c0_81 = arith.constant 0 : index
    %c0_82 = arith.constant 0 : index
    %565 = vector.load %arg2[%c1, %c0_81, %c0_82] : memref<2x8x128xf32, #tpu.memory_space<vmem>>, vector<1x8x128xf32>
    %566 = vector.shape_cast %565 : vector<1x8x128xf32> to vector<8x128xf32>
    %567 = arith.addf %373, %566 : vector<8x128xf32>
    %c0_83 = arith.constant 0 : index
    %c0_84 = arith.constant 0 : index
    %568 = vector.load %arg15[%c0_83, %c0_84] : memref<128x384xbf16, #tpu.memory_space<vmem>>, vector<128x384xbf16>
    %cst_85 = arith.constant dense<0.000000e+00> : vector<64x384xf32>
    %569 = tpu.matmul %564, %568, %cst_85 {dimension_numbers = #tpu.dot_dimension_numbers<[1], [0], [0], [1], [0, 0, 1, 1], [], []>} : vector<64x128xbf16>, vector<128x384xbf16>, vector<64x384xf32> -> vector<64x384xf32>
    %c0_86 = arith.constant 0 : index
    %c0_87 = arith.constant 0 : index
    %570 = vector.load %arg17[%c0_86, %c0_87] : memref<1x384xf32, #tpu.memory_space<vmem>>, vector<1x384xf32>
    %571 = vector.broadcast %570 : vector<1x384xf32> to vector<64x384xf32>
    %572 = arith.addf %569, %571 : vector<64x384xf32>
    %c0_88 = arith.constant 0 : index
    %c0_89 = arith.constant 0 : index
    %573 = vector.load %arg16[%c0_88, %c0_89] : memref<128x384xbf16, #tpu.memory_space<vmem>>, vector<128x384xbf16>
    %c0_90 = arith.constant 0 : index
    %c0_91 = arith.constant 0 : index
    %574 = vector.load %arg18[%c0_90, %c0_91] : memref<1x128xf32, #tpu.memory_space<vmem>>, vector<1x128xf32>
    %575 = vector.shape_cast %574 : vector<1x128xf32> to vector<1x128xf32>
    %576 = vector.broadcast %575 : vector<1x128xf32> to vector<8x128xf32>
    %577 = vector.extract_strided_slice %572 {offsets = [0, 0], sizes = [8, 384], strides = [1, 1]} : vector<64x384xf32> to vector<8x384xf32>
    %578 = arith.truncf %567 : vector<8x128xf32> to vector<8x128xbf16>
    %cst_92 = arith.constant dense<0.000000e+00> : vector<8x384xf32>
    %579 = tpu.matmul %578, %573, %cst_92 {dimension_numbers = #tpu.dot_dimension_numbers<[1], [0], [0], [1], [0, 0, 1, 1], [], []>} : vector<8x128xbf16>, vector<128x384xbf16>, vector<8x384xf32> -> vector<8x384xf32>
    %580 = vector.extract_strided_slice %577 {offsets = [0, 0], sizes = [8, 256], strides = [1, 1]} : vector<8x384xf32> to vector<8x256xf32>
    %581 = vector.extract_strided_slice %579 {offsets = [0, 0], sizes = [8, 256], strides = [1, 1]} : vector<8x384xf32> to vector<8x256xf32>
    %582 = arith.addf %580, %581 : vector<8x256xf32>
    %583 = arith.negf %582 : vector<8x256xf32>
    %584 = math.exp %583 : vector<8x256xf32>
    %cst_93 = arith.constant 1.000000e+00 : f32
    %585 = vector.broadcast %cst_93 : f32 to vector<8x256xf32>
    %586 = arith.addf %585, %584 : vector<8x256xf32>
    %587 = arith.divf %585, %586 : vector<8x256xf32>
    %588 = vector.extract_strided_slice %587 {offsets = [0, 128], sizes = [8, 128], strides = [1, 1]} : vector<8x256xf32> to vector<8x128xf32>
    %589 = vector.extract_strided_slice %577 {offsets = [0, 256], sizes = [8, 128], strides = [1, 1]} : vector<8x384xf32> to vector<8x128xf32>
    %590 = vector.extract_strided_slice %587 {offsets = [0, 0], sizes = [8, 128], strides = [1, 1]} : vector<8x256xf32> to vector<8x128xf32>
    %591 = vector.extract_strided_slice %579 {offsets = [0, 256], sizes = [8, 128], strides = [1, 1]} : vector<8x384xf32> to vector<8x128xf32>
    %592 = arith.addf %591, %576 : vector<8x128xf32>
    %593 = arith.mulf %590, %592 : vector<8x128xf32>
    %594 = arith.addf %589, %593 : vector<8x128xf32>
    %595 = math.tanh %594 : vector<8x128xf32>
    %596 = arith.subf %567, %595 : vector<8x128xf32>
    %597 = arith.mulf %588, %596 : vector<8x128xf32>
    %598 = arith.addf %595, %597 : vector<8x128xf32>
    %599 = vector.extract_strided_slice %572 {offsets = [8, 0], sizes = [8, 384], strides = [1, 1]} : vector<64x384xf32> to vector<8x384xf32>
    %600 = arith.truncf %598 : vector<8x128xf32> to vector<8x128xbf16>
    %cst_94 = arith.constant dense<0.000000e+00> : vector<8x384xf32>
    %601 = tpu.matmul %600, %573, %cst_94 {dimension_numbers = #tpu.dot_dimension_numbers<[1], [0], [0], [1], [0, 0, 1, 1], [], []>} : vector<8x128xbf16>, vector<128x384xbf16>, vector<8x384xf32> -> vector<8x384xf32>
    %602 = vector.extract_strided_slice %599 {offsets = [0, 0], sizes = [8, 256], strides = [1, 1]} : vector<8x384xf32> to vector<8x256xf32>
    %603 = vector.extract_strided_slice %601 {offsets = [0, 0], sizes = [8, 256], strides = [1, 1]} : vector<8x384xf32> to vector<8x256xf32>
    %604 = arith.addf %602, %603 : vector<8x256xf32>
    %605 = arith.negf %604 : vector<8x256xf32>
    %606 = math.exp %605 : vector<8x256xf32>
    %cst_95 = arith.constant 1.000000e+00 : f32
    %607 = vector.broadcast %cst_95 : f32 to vector<8x256xf32>
    %608 = arith.addf %607, %606 : vector<8x256xf32>
    %609 = arith.divf %607, %608 : vector<8x256xf32>
    %610 = vector.extract_strided_slice %609 {offsets = [0, 128], sizes = [8, 128], strides = [1, 1]} : vector<8x256xf32> to vector<8x128xf32>
    %611 = vector.extract_strided_slice %599 {offsets = [0, 256], sizes = [8, 128], strides = [1, 1]} : vector<8x384xf32> to vector<8x128xf32>
    %612 = vector.extract_strided_slice %609 {offsets = [0, 0], sizes = [8, 128], strides = [1, 1]} : vector<8x256xf32> to vector<8x128xf32>
    %613 = vector.extract_strided_slice %601 {offsets = [0, 256], sizes = [8, 128], strides = [1, 1]} : vector<8x384xf32> to vector<8x128xf32>
    %614 = arith.addf %613, %576 : vector<8x128xf32>
    %615 = arith.mulf %612, %614 : vector<8x128xf32>
    %616 = arith.addf %611, %615 : vector<8x128xf32>
    %617 = math.tanh %616 : vector<8x128xf32>
    %618 = arith.subf %598, %617 : vector<8x128xf32>
    %619 = arith.mulf %610, %618 : vector<8x128xf32>
    %620 = arith.addf %617, %619 : vector<8x128xf32>
    %621 = vector.extract_strided_slice %572 {offsets = [16, 0], sizes = [8, 384], strides = [1, 1]} : vector<64x384xf32> to vector<8x384xf32>
    %622 = arith.truncf %620 : vector<8x128xf32> to vector<8x128xbf16>
    %cst_96 = arith.constant dense<0.000000e+00> : vector<8x384xf32>
    %623 = tpu.matmul %622, %573, %cst_96 {dimension_numbers = #tpu.dot_dimension_numbers<[1], [0], [0], [1], [0, 0, 1, 1], [], []>} : vector<8x128xbf16>, vector<128x384xbf16>, vector<8x384xf32> -> vector<8x384xf32>
    %624 = vector.extract_strided_slice %621 {offsets = [0, 0], sizes = [8, 256], strides = [1, 1]} : vector<8x384xf32> to vector<8x256xf32>
    %625 = vector.extract_strided_slice %623 {offsets = [0, 0], sizes = [8, 256], strides = [1, 1]} : vector<8x384xf32> to vector<8x256xf32>
    %626 = arith.addf %624, %625 : vector<8x256xf32>
    %627 = arith.negf %626 : vector<8x256xf32>
    %628 = math.exp %627 : vector<8x256xf32>
    %cst_97 = arith.constant 1.000000e+00 : f32
    %629 = vector.broadcast %cst_97 : f32 to vector<8x256xf32>
    %630 = arith.addf %629, %628 : vector<8x256xf32>
    %631 = arith.divf %629, %630 : vector<8x256xf32>
    %632 = vector.extract_strided_slice %631 {offsets = [0, 128], sizes = [8, 128], strides = [1, 1]} : vector<8x256xf32> to vector<8x128xf32>
    %633 = vector.extract_strided_slice %621 {offsets = [0, 256], sizes = [8, 128], strides = [1, 1]} : vector<8x384xf32> to vector<8x128xf32>
    %634 = vector.extract_strided_slice %631 {offsets = [0, 0], sizes = [8, 128], strides = [1, 1]} : vector<8x256xf32> to vector<8x128xf32>
    %635 = vector.extract_strided_slice %623 {offsets = [0, 256], sizes = [8, 128], strides = [1, 1]} : vector<8x384xf32> to vector<8x128xf32>
    %636 = arith.addf %635, %576 : vector<8x128xf32>
    %637 = arith.mulf %634, %636 : vector<8x128xf32>
    %638 = arith.addf %633, %637 : vector<8x128xf32>
    %639 = math.tanh %638 : vector<8x128xf32>
    %640 = arith.subf %620, %639 : vector<8x128xf32>
    %641 = arith.mulf %632, %640 : vector<8x128xf32>
    %642 = arith.addf %639, %641 : vector<8x128xf32>
    %643 = vector.extract_strided_slice %572 {offsets = [24, 0], sizes = [8, 384], strides = [1, 1]} : vector<64x384xf32> to vector<8x384xf32>
    %644 = arith.truncf %642 : vector<8x128xf32> to vector<8x128xbf16>
    %cst_98 = arith.constant dense<0.000000e+00> : vector<8x384xf32>
    %645 = tpu.matmul %644, %573, %cst_98 {dimension_numbers = #tpu.dot_dimension_numbers<[1], [0], [0], [1], [0, 0, 1, 1], [], []>} : vector<8x128xbf16>, vector<128x384xbf16>, vector<8x384xf32> -> vector<8x384xf32>
    %646 = vector.extract_strided_slice %643 {offsets = [0, 0], sizes = [8, 256], strides = [1, 1]} : vector<8x384xf32> to vector<8x256xf32>
    %647 = vector.extract_strided_slice %645 {offsets = [0, 0], sizes = [8, 256], strides = [1, 1]} : vector<8x384xf32> to vector<8x256xf32>
    %648 = arith.addf %646, %647 : vector<8x256xf32>
    %649 = arith.negf %648 : vector<8x256xf32>
    %650 = math.exp %649 : vector<8x256xf32>
    %cst_99 = arith.constant 1.000000e+00 : f32
    %651 = vector.broadcast %cst_99 : f32 to vector<8x256xf32>
    %652 = arith.addf %651, %650 : vector<8x256xf32>
    %653 = arith.divf %651, %652 : vector<8x256xf32>
    %654 = vector.extract_strided_slice %653 {offsets = [0, 128], sizes = [8, 128], strides = [1, 1]} : vector<8x256xf32> to vector<8x128xf32>
    %655 = vector.extract_strided_slice %643 {offsets = [0, 256], sizes = [8, 128], strides = [1, 1]} : vector<8x384xf32> to vector<8x128xf32>
    %656 = vector.extract_strided_slice %653 {offsets = [0, 0], sizes = [8, 128], strides = [1, 1]} : vector<8x256xf32> to vector<8x128xf32>
    %657 = vector.extract_strided_slice %645 {offsets = [0, 256], sizes = [8, 128], strides = [1, 1]} : vector<8x384xf32> to vector<8x128xf32>
    %658 = arith.addf %657, %576 : vector<8x128xf32>
    %659 = arith.mulf %656, %658 : vector<8x128xf32>
    %660 = arith.addf %655, %659 : vector<8x128xf32>
    %661 = math.tanh %660 : vector<8x128xf32>
    %662 = arith.subf %642, %661 : vector<8x128xf32>
    %663 = arith.mulf %654, %662 : vector<8x128xf32>
    %664 = arith.addf %661, %663 : vector<8x128xf32>
    %665 = vector.extract_strided_slice %572 {offsets = [32, 0], sizes = [8, 384], strides = [1, 1]} : vector<64x384xf32> to vector<8x384xf32>
    %666 = arith.truncf %664 : vector<8x128xf32> to vector<8x128xbf16>
    %cst_100 = arith.constant dense<0.000000e+00> : vector<8x384xf32>
    %667 = tpu.matmul %666, %573, %cst_100 {dimension_numbers = #tpu.dot_dimension_numbers<[1], [0], [0], [1], [0, 0, 1, 1], [], []>} : vector<8x128xbf16>, vector<128x384xbf16>, vector<8x384xf32> -> vector<8x384xf32>
    %668 = vector.extract_strided_slice %665 {offsets = [0, 0], sizes = [8, 256], strides = [1, 1]} : vector<8x384xf32> to vector<8x256xf32>
    %669 = vector.extract_strided_slice %667 {offsets = [0, 0], sizes = [8, 256], strides = [1, 1]} : vector<8x384xf32> to vector<8x256xf32>
    %670 = arith.addf %668, %669 : vector<8x256xf32>
    %671 = arith.negf %670 : vector<8x256xf32>
    %672 = math.exp %671 : vector<8x256xf32>
    %cst_101 = arith.constant 1.000000e+00 : f32
    %673 = vector.broadcast %cst_101 : f32 to vector<8x256xf32>
    %674 = arith.addf %673, %672 : vector<8x256xf32>
    %675 = arith.divf %673, %674 : vector<8x256xf32>
    %676 = vector.extract_strided_slice %675 {offsets = [0, 128], sizes = [8, 128], strides = [1, 1]} : vector<8x256xf32> to vector<8x128xf32>
    %677 = vector.extract_strided_slice %665 {offsets = [0, 256], sizes = [8, 128], strides = [1, 1]} : vector<8x384xf32> to vector<8x128xf32>
    %678 = vector.extract_strided_slice %675 {offsets = [0, 0], sizes = [8, 128], strides = [1, 1]} : vector<8x256xf32> to vector<8x128xf32>
    %679 = vector.extract_strided_slice %667 {offsets = [0, 256], sizes = [8, 128], strides = [1, 1]} : vector<8x384xf32> to vector<8x128xf32>
    %680 = arith.addf %679, %576 : vector<8x128xf32>
    %681 = arith.mulf %678, %680 : vector<8x128xf32>
    %682 = arith.addf %677, %681 : vector<8x128xf32>
    %683 = math.tanh %682 : vector<8x128xf32>
    %684 = arith.subf %664, %683 : vector<8x128xf32>
    %685 = arith.mulf %676, %684 : vector<8x128xf32>
    %686 = arith.addf %683, %685 : vector<8x128xf32>
    %687 = vector.extract_strided_slice %572 {offsets = [40, 0], sizes = [8, 384], strides = [1, 1]} : vector<64x384xf32> to vector<8x384xf32>
    %688 = arith.truncf %686 : vector<8x128xf32> to vector<8x128xbf16>
    %cst_102 = arith.constant dense<0.000000e+00> : vector<8x384xf32>
    %689 = tpu.matmul %688, %573, %cst_102 {dimension_numbers = #tpu.dot_dimension_numbers<[1], [0], [0], [1], [0, 0, 1, 1], [], []>} : vector<8x128xbf16>, vector<128x384xbf16>, vector<8x384xf32> -> vector<8x384xf32>
    %690 = vector.extract_strided_slice %687 {offsets = [0, 0], sizes = [8, 256], strides = [1, 1]} : vector<8x384xf32> to vector<8x256xf32>
    %691 = vector.extract_strided_slice %689 {offsets = [0, 0], sizes = [8, 256], strides = [1, 1]} : vector<8x384xf32> to vector<8x256xf32>
    %692 = arith.addf %690, %691 : vector<8x256xf32>
    %693 = arith.negf %692 : vector<8x256xf32>
    %694 = math.exp %693 : vector<8x256xf32>
    %cst_103 = arith.constant 1.000000e+00 : f32
    %695 = vector.broadcast %cst_103 : f32 to vector<8x256xf32>
    %696 = arith.addf %695, %694 : vector<8x256xf32>
    %697 = arith.divf %695, %696 : vector<8x256xf32>
    %698 = vector.extract_strided_slice %697 {offsets = [0, 128], sizes = [8, 128], strides = [1, 1]} : vector<8x256xf32> to vector<8x128xf32>
    %699 = vector.extract_strided_slice %687 {offsets = [0, 256], sizes = [8, 128], strides = [1, 1]} : vector<8x384xf32> to vector<8x128xf32>
    %700 = vector.extract_strided_slice %697 {offsets = [0, 0], sizes = [8, 128], strides = [1, 1]} : vector<8x256xf32> to vector<8x128xf32>
    %701 = vector.extract_strided_slice %689 {offsets = [0, 256], sizes = [8, 128], strides = [1, 1]} : vector<8x384xf32> to vector<8x128xf32>
    %702 = arith.addf %701, %576 : vector<8x128xf32>
    %703 = arith.mulf %700, %702 : vector<8x128xf32>
    %704 = arith.addf %699, %703 : vector<8x128xf32>
    %705 = math.tanh %704 : vector<8x128xf32>
    %706 = arith.subf %686, %705 : vector<8x128xf32>
    %707 = arith.mulf %698, %706 : vector<8x128xf32>
    %708 = arith.addf %705, %707 : vector<8x128xf32>
    %709 = vector.extract_strided_slice %572 {offsets = [48, 0], sizes = [8, 384], strides = [1, 1]} : vector<64x384xf32> to vector<8x384xf32>
    %710 = arith.truncf %708 : vector<8x128xf32> to vector<8x128xbf16>
    %cst_104 = arith.constant dense<0.000000e+00> : vector<8x384xf32>
    %711 = tpu.matmul %710, %573, %cst_104 {dimension_numbers = #tpu.dot_dimension_numbers<[1], [0], [0], [1], [0, 0, 1, 1], [], []>} : vector<8x128xbf16>, vector<128x384xbf16>, vector<8x384xf32> -> vector<8x384xf32>
    %712 = vector.extract_strided_slice %709 {offsets = [0, 0], sizes = [8, 256], strides = [1, 1]} : vector<8x384xf32> to vector<8x256xf32>
    %713 = vector.extract_strided_slice %711 {offsets = [0, 0], sizes = [8, 256], strides = [1, 1]} : vector<8x384xf32> to vector<8x256xf32>
    %714 = arith.addf %712, %713 : vector<8x256xf32>
    %715 = arith.negf %714 : vector<8x256xf32>
    %716 = math.exp %715 : vector<8x256xf32>
    %cst_105 = arith.constant 1.000000e+00 : f32
    %717 = vector.broadcast %cst_105 : f32 to vector<8x256xf32>
    %718 = arith.addf %717, %716 : vector<8x256xf32>
    %719 = arith.divf %717, %718 : vector<8x256xf32>
    %720 = vector.extract_strided_slice %719 {offsets = [0, 128], sizes = [8, 128], strides = [1, 1]} : vector<8x256xf32> to vector<8x128xf32>
    %721 = vector.extract_strided_slice %709 {offsets = [0, 256], sizes = [8, 128], strides = [1, 1]} : vector<8x384xf32> to vector<8x128xf32>
    %722 = vector.extract_strided_slice %719 {offsets = [0, 0], sizes = [8, 128], strides = [1, 1]} : vector<8x256xf32> to vector<8x128xf32>
    %723 = vector.extract_strided_slice %711 {offsets = [0, 256], sizes = [8, 128], strides = [1, 1]} : vector<8x384xf32> to vector<8x128xf32>
    %724 = arith.addf %723, %576 : vector<8x128xf32>
    %725 = arith.mulf %722, %724 : vector<8x128xf32>
    %726 = arith.addf %721, %725 : vector<8x128xf32>
    %727 = math.tanh %726 : vector<8x128xf32>
    %728 = arith.subf %708, %727 : vector<8x128xf32>
    %729 = arith.mulf %720, %728 : vector<8x128xf32>
    %730 = arith.addf %727, %729 : vector<8x128xf32>
    %731 = vector.extract_strided_slice %572 {offsets = [56, 0], sizes = [8, 384], strides = [1, 1]} : vector<64x384xf32> to vector<8x384xf32>
    %732 = arith.truncf %730 : vector<8x128xf32> to vector<8x128xbf16>
    %cst_106 = arith.constant dense<0.000000e+00> : vector<8x384xf32>
    %733 = tpu.matmul %732, %573, %cst_106 {dimension_numbers = #tpu.dot_dimension_numbers<[1], [0], [0], [1], [0, 0, 1, 1], [], []>} : vector<8x128xbf16>, vector<128x384xbf16>, vector<8x384xf32> -> vector<8x384xf32>
    %734 = vector.extract_strided_slice %731 {offsets = [0, 0], sizes = [8, 256], strides = [1, 1]} : vector<8x384xf32> to vector<8x256xf32>
    %735 = vector.extract_strided_slice %733 {offsets = [0, 0], sizes = [8, 256], strides = [1, 1]} : vector<8x384xf32> to vector<8x256xf32>
    %736 = arith.addf %734, %735 : vector<8x256xf32>
    %737 = arith.negf %736 : vector<8x256xf32>
    %738 = math.exp %737 : vector<8x256xf32>
    %cst_107 = arith.constant 1.000000e+00 : f32
    %739 = vector.broadcast %cst_107 : f32 to vector<8x256xf32>
    %740 = arith.addf %739, %738 : vector<8x256xf32>
    %741 = arith.divf %739, %740 : vector<8x256xf32>
    %742 = vector.extract_strided_slice %741 {offsets = [0, 128], sizes = [8, 128], strides = [1, 1]} : vector<8x256xf32> to vector<8x128xf32>
    %743 = vector.extract_strided_slice %731 {offsets = [0, 256], sizes = [8, 128], strides = [1, 1]} : vector<8x384xf32> to vector<8x128xf32>
    %744 = vector.extract_strided_slice %741 {offsets = [0, 0], sizes = [8, 128], strides = [1, 1]} : vector<8x256xf32> to vector<8x128xf32>
    %745 = vector.extract_strided_slice %733 {offsets = [0, 256], sizes = [8, 128], strides = [1, 1]} : vector<8x384xf32> to vector<8x128xf32>
    %746 = arith.addf %745, %576 : vector<8x128xf32>
    %747 = arith.mulf %744, %746 : vector<8x128xf32>
    %748 = arith.addf %743, %747 : vector<8x128xf32>
    %749 = math.tanh %748 : vector<8x128xf32>
    %750 = arith.subf %730, %749 : vector<8x128xf32>
    %751 = arith.mulf %742, %750 : vector<8x128xf32>
    %752 = arith.addf %749, %751 : vector<8x128xf32>
    %753 = tpu.concatenate %598, %620, %642, %664, %686, %708, %730, %752 in 0 : vector<8x128xf32>, vector<8x128xf32>, vector<8x128xf32>, vector<8x128xf32>, vector<8x128xf32>, vector<8x128xf32>, vector<8x128xf32>, vector<8x128xf32> -> vector<64x128xf32>
    %754 = arith.truncf %753 : vector<64x128xf32> to vector<64x128xbf16>
    %c0_108 = arith.constant 0 : index
    %c0_109 = arith.constant 0 : index
    %755 = vector.load %arg19[%c0_108, %c0_109] : memref<128x128xbf16, #tpu.memory_space<vmem>>, vector<128x128xbf16>
    %cst_110 = arith.constant dense<0.000000e+00> : vector<64x128xf32>
    %756 = tpu.matmul %754, %755, %cst_110 {dimension_numbers = #tpu.dot_dimension_numbers<[1], [0], [0], [1], [0, 0, 1, 1], [], []>} : vector<64x128xbf16>, vector<128x128xbf16>, vector<64x128xf32> -> vector<64x128xf32>
    %c0_111 = arith.constant 0 : index
    %c0_112 = arith.constant 0 : index
    %757 = vector.load %arg20[%c0_111, %c0_112] : memref<1x128xf32, #tpu.memory_space<vmem>>, vector<1x128xf32>
    %758 = vector.broadcast %757 : vector<1x128xf32> to vector<64x128xf32>
    %759 = arith.addf %756, %758 : vector<64x128xf32>
    %c0_113 = arith.constant 0 : index
    %c0_114 = arith.constant 0 : index
    %760 = vector.load %arg21[%c0_113, %c0_114] : memref<64x128xf32, #tpu.memory_space<vmem>>, vector<64x128xf32>
    tpu.vector_store %arg21[%c0_113, %c0_114], %759 {strides = array<i32>} : memref<64x128xf32, #tpu.memory_space<vmem>>, vector<64x128xf32>,
    return
  }
}

</mosaic_0001>

<bundles_post_ra>
// kernel: forward.1
= control target key start
LH: loop header
LB: loop body
LE: loop exit
PB: predicated region body
PF: predicated region fallthrough
CT: control target
= control target key end

     0   :  { %s10547_s0 = inlined_call_operand.vmem [shape: bf16[64,128], index: 0, kind: input, shape index: {}]   ;;  %s10548_s1 = inlined_call_operand.vmem [shape: bf16[64,128], index: 1, kind: input, shape index: {}]   ;;  %s10549_s2 = inlined_call_operand.vmem [shape: f32[2,8,128], index: 2, kind: input, shape index: {}]   ;;  %s10550_s3 = inlined_call_operand.hbm [shape: bf16[128,384], index: 3, kind: input, shape index: {}]   ;;  %s10551_s4 = inlined_call_operand.hbm [shape: bf16[128,384], index: 4, kind: input, shape index: {}]   ;;  %s10552_s5 = inlined_call_operand.hbm [shape: f32[1,384], index: 5, kind: input, shape index: {}]   ;;  %s10553_s6 = inlined_call_operand.vmem [shape: f32[1,128], index: 6, kind: input, shape index: {}]   ;;  %s10554_s7 = inlined_call_operand.hbm [shape: bf16[128,384], index: 7, kind: input, shape index: {}]   ;;  %s10555_s8 = inlined_call_operand.hbm [shape: bf16[128,384], index: 8, kind: input, shape index: {}]   ;;  %s10556_s9 = inlined_call_operand.hbm [shape: f32[1,384], index: 9, kind: input, shape index: {}]   ;;  %s10557_s10 = inlined_call_operand.hbm [shape: f32[1,128], index: 10, kind: input, shape index: {}]   ;;  %s10558_s11 = inlined_call_operand.hbm [shape: bf16[128,384], index: 11, kind: input, shape index: {}]   ;;  %s10559_s12 = inlined_call_operand.hbm [shape: bf16[128,384], index: 12, kind: input, shape index: {}]   ;;  %s10560_s13 = inlined_call_operand.hbm [shape: f32[1,384], index: 13, kind: input, shape index: {}]   ;;  %s10561_s14 = inlined_call_operand.hbm [shape: f32[1,128], index: 14, kind: input, shape index: {}]   ;;  %s10562_s15 = inlined_call_operand.vmem [shape: bf16[128,384], index: 15, kind: input, shape index: {}]   ;;  %s10563_s16 = inlined_call_operand.hbm [shape: bf16[128,384], index: 16, kind: input, shape index: {}]   ;;  %s10564_s17 = inlined_call_operand.hbm [shape: f32[1,384], index: 17, kind: input, shape index: {}]   ;;  %s10565_s18 = inlined_call_operand.hbm [shape: f32[1,128], index: 18, kind: input, shape index: {}]   ;;  %s10566_s19 = inlined_call_operand.hbm [shape: bf16[128,128], index: 19, kind: input, shape index: {}]   ;;  %s10567_s20 = inlined_call_operand.vmem [shape: f32[1,128], index: 20, kind: input, shape index: {}]   ;;  %s10568_s21 = inlined_call_operand.vmem [shape: f32[64,128], index: 21, kind: output, shape index: {}]  }
   0x1   :  { %10588 = sst [smem:[#allocation44_spill]] %s10547_s0 }
   0x2   :  { %10589 = sst [smem:[#allocation45_spill]] %s10548_s1 }
   0x3   :  { %10590 = sst [smem:[#allocation46_spill]] %s10549_s2 }
   0x4   :  { %10591 = sst [smem:[#allocation47_spill]] %s10550_s3 }
   0x5   :  { %10592 = sst [smem:[#allocation48_spill]] %s10551_s4 }
   0x6   :  { %10593 = sst [smem:[#allocation49_spill]] %s10552_s5 }
   0x7   :  { %10594 = sst [smem:[#allocation50_spill]] %s10568_s21 }
   0x8   :  { %26 = vsyncpa [#allocation3], 0 }
   0x9   :  { %27 = vsyncpa [#allocation5], 0 }
   0xa   :  { %28 = vsyncpa [#allocation8], 0 }
   0xb   :  { %29 = vsyncpa [#allocation11], 0 }
   0xc   :  { %30 = vsyncpa [#allocation14], 0 }
   0xd   :  { %31 = vsyncpa [#allocation17], 0 }
   0xe   :  { %32 = vsyncpa [#allocation20], 0 }
   0xf   :  { %33 = vsyncpa [#allocation23], 0  ;;  %s8160_s2 = smov [#allocation4]   ;;  %s8161_s26 = smov [#allocation7]  }
  0x10   :  { %s57_s25 = sshll.u32 %s8160_s2, 4  ;;  %s81_s27 = sshll.u32 %s8161_s26, 4  ;;  %s58_s25 = int_to_ptr.vmem [resolvable:$true] %s57_s25  ;;  %s8292_s27 = int_to_ptr.vmem [resolvable:$true] %s81_s27 }
  0x11   :  { %s10595_s29 = sld [smem:[#allocation48_spill]] }
  0x17   :  { %s7814_s0 = scalar_lea.hbm %s10595_s29, 3072 }
  0x18   :  { %p7815_p0 = scmp.ne.s32.totalorder %s10595_s29, %s7814_s0  ;;  %p7818_p1 = scmp.lt.u32.totalorder %s7814_s0, %s10595_s29 }
  0x1a   :  { %p7820_p2 = pnand %p7818_p1, %p7815_p0 }
  0x1c   :  { %7823 = shalt.err (!%p7820_p2)
}
  0x1d   :  { %s7824_s23 = scalar_lea.vmem %s58_s25, 3072  ;;  %p7829_p4 = scmp.lt.s32.totalorder %s58_s25, %s58_s25 }
  0x1e   :  { %p7825_p3 = scmp.ne.s32.totalorder %s58_s25, %s7824_s23  ;;  %p7830_p5 = scmp.lt.s32.totalorder %s7824_s23, %s7824_s23 }
  0x20   :  { %p7831_p6 = por %p7830_p5, %p7829_p4 }
  0x22   :  { %p7832_p7 = pnand %p7831_p6, %p7825_p3 }
  0x24   :  { %7835 = shalt.err (!%p7832_p7)
}
  0x25   :  { %s8162_s1 = smov 192   ;;  %s8163_s24 = smov 12  }
  0x26   :  { %63 = dma.hbm_to_vmem [thread:$0]  %s10595_s29, 3072, %s58_s25, [#allocation5], %s8162_s1, %s8162_s1, %s8163_s24  }
  0x27   :  { %s7836_s0 = scalar_lea.hbm %s10554_s7, 3072 }
  0x28   :  { %p7837_p8 = scmp.ne.s32.totalorder %s10554_s7, %s7836_s0  ;;  %p7840_p9 = scmp.lt.u32.totalorder %s7836_s0, %s10554_s7 }
  0x2a   :  { %p7842_p10 = pnand %p7840_p9, %p7837_p8 }
  0x2c   :  { %7845 = shalt.err (!%p7842_p10)
}
  0x2d   :  { %s7846_s23 = scalar_lea.vmem %s8292_s27, 3072  ;;  %p7851_p12 = scmp.lt.s32.totalorder %s8292_s27, %s8292_s27 }
  0x2e   :  { %p7847_p11 = scmp.ne.s32.totalorder %s8292_s27, %s7846_s23  ;;  %p7852_p13 = scmp.lt.s32.totalorder %s7846_s23, %s7846_s23 }
  0x30   :  { %p7853_p0 = por %p7852_p13, %p7851_p12 }
  0x32   :  { %p7854_p1 = pnand %p7853_p0, %p7847_p11 }
  0x34   :  { %7857 = shalt.err (!%p7854_p1)
}
  0x35   :  { %87 = dma.hbm_to_vmem [thread:$0]  %s10554_s7, 3072, %s8292_s27, [#allocation8], %s8162_s1, %s8162_s1, %s8163_s24  }
  0x36   :  { %s8164_s2 = smov [#allocation10]   ;;  %s8165_s3 = smov [#allocation13]  }
  0x37   :  { %s106_s26 = sshll.u32 %s8164_s2, 4  ;;  %s125_s28 = sshll.u32 %s8165_s3, 4  ;;  %s107_s26 = int_to_ptr.vmem [resolvable:$true] %s106_s26  ;;  %s8329_s28 = int_to_ptr.vmem [resolvable:$true] %s125_s28 }
  0x38   :  { %s7858_s30 = scalar_lea.hbm %s10556_s9, 48 }
  0x39   :  { %p7859_p2 = scmp.ne.s32.totalorder %s10556_s9, %s7858_s30  ;;  %p7862_p3 = scmp.lt.u32.totalorder %s7858_s30, %s10556_s9 }
  0x3b   :  { %p7864_p4 = pnand %p7862_p3, %p7859_p2 }
  0x3d   :  { %7867 = shalt.err (!%p7864_p4)
}
  0x3e   :  { %s7868_s7 = scalar_lea.vmem %s107_s26, 48  ;;  %s7872_s27 = scalar_lea.vmem %s107_s26, 64 }
  0x3f   :  { %p7869_p5 = scmp.ne.s32.totalorder %s107_s26, %s7868_s7  ;;  %p7873_p6 = scmp.lt.s32.totalorder %s107_s26, %s107_s26 }
  0x40   :  { %p7874_p7 = scmp.lt.s32.totalorder %s7872_s27, %s7868_s7 }
  0x42   :  { %p7875_p8 = por %p7874_p7, %p7873_p6 }
  0x44   :  { %p7876_p9 = pnand %p7875_p8, %p7869_p5 }
  0x46   :  { %7879 = shalt.err (!%p7876_p9)
}
  0x47   :  { %109 = dma.hbm_to_vmem [thread:$0]  %s10556_s9, 48, %s107_s26, [#allocation11]  }
  0x48   :  { %s7880_s0 = scalar_lea.hbm %s10558_s11, 3072 }
  0x49   :  { %p7881_p10 = scmp.ne.s32.totalorder %s10558_s11, %s7880_s0  ;;  %p7884_p11 = scmp.lt.u32.totalorder %s7880_s0, %s10558_s11 }
  0x4b   :  { %p7886_p12 = pnand %p7884_p11, %p7881_p10 }
  0x4d   :  { %7889 = shalt.err (!%p7886_p12)
}
  0x4e   :  { %s7890_s22 = scalar_lea.vmem %s8329_s28, 3072  ;;  %p7895_p0 = scmp.lt.s32.totalorder %s8329_s28, %s8329_s28 }
  0x4f   :  { %p7891_p13 = scmp.ne.s32.totalorder %s8329_s28, %s7890_s22  ;;  %p7896_p1 = scmp.lt.s32.totalorder %s7890_s22, %s7890_s22 }
  0x51   :  { %p7897_p2 = por %p7896_p1, %p7895_p0 }
  0x53   :  { %p7898_p3 = pnand %p7897_p2, %p7891_p13 }
  0x55   :  { %7901 = shalt.err (!%p7898_p3)
}
  0x56   :  { %131 = dma.hbm_to_vmem [thread:$0]  %s10558_s11, 3072, %s8329_s28, [#allocation14], %s8162_s1, %s8162_s1, %s8163_s24  }
  0x57   :  { %s8166_s23 = smov [#allocation16]   ;;  %s8167_s27 = smov [#allocation19]  }
  0x58   :  { %s150_s7 = sshll.u32 %s8166_s23, 4  ;;  %s171_s25 = sshll.u32 %s8167_s27, 4  ;;  %s151_s7 = int_to_ptr.vmem [resolvable:$true] %s150_s7  ;;  %s8363_s25 = int_to_ptr.vmem [resolvable:$true] %s171_s25 }
  0x59   :  { %s7902_s3 = scalar_lea.hbm %s10560_s13, 48 }
  0x5a   :  { %p7903_p4 = scmp.ne.s32.totalorder %s10560_s13, %s7902_s3  ;;  %p7906_p5 = scmp.lt.u32.totalorder %s7902_s3, %s10560_s13 }
  0x5c   :  { %p7908_p6 = pnand %p7906_p5, %p7903_p4 }
  0x5e   :  { %7911 = shalt.err (!%p7908_p6)
}
  0x5f   :  { %s7912_s11 = scalar_lea.vmem %s151_s7, 48  ;;  %s7916_s28 = scalar_lea.vmem %s151_s7, 64 }
  0x60   :  { %p7913_p7 = scmp.ne.s32.totalorder %s151_s7, %s7912_s11  ;;  %p7917_p8 = scmp.lt.s32.totalorder %s151_s7, %s151_s7 }
  0x61   :  { %p7918_p9 = scmp.lt.s32.totalorder %s7916_s28, %s7912_s11 }
  0x63   :  { %p7919_p10 = por %p7918_p9, %p7917_p8 }
  0x65   :  { %p7920_p11 = pnand %p7919_p10, %p7913_p7 }
  0x67   :  { %7923 = shalt.err (!%p7920_p11)
}
  0x68   :  { %153 = dma.hbm_to_vmem [thread:$0]  %s10560_s13, 48, %s151_s7, [#allocation17]  }
  0x69   :  { %s7924_s23 = scalar_lea.hbm %s10563_s16, 3072 }
  0x6a   :  { %p7925_p12 = scmp.ne.s32.totalorder %s10563_s16, %s7924_s23  ;;  %p7928_p13 = scmp.lt.u32.totalorder %s7924_s23, %s10563_s16 }
  0x6c   :  { %p7930_p0 = pnand %p7928_p13, %p7925_p12 }
  0x6e   :  { %7933 = shalt.err (!%p7930_p0)
}
  0x6f   :  { %s7934_s0 = scalar_lea.vmem %s8363_s25, 3072  ;;  %p7939_p2 = scmp.lt.s32.totalorder %s8363_s25, %s8363_s25 }
  0x70   :  { %p7935_p1 = scmp.ne.s32.totalorder %s8363_s25, %s7934_s0  ;;  %p7940_p3 = scmp.lt.s32.totalorder %s7934_s0, %s7934_s0 }
  0x72   :  { %p7941_p4 = por %p7940_p3, %p7939_p2 }
  0x74   :  { %p7942_p5 = pnand %p7941_p4, %p7935_p1 }
  0x76   :  { %7945 = shalt.err (!%p7942_p5)
}
  0x77   :  { %177 = dma.hbm_to_vmem [thread:$0]  %s10563_s16, 3072, %s8363_s25, [#allocation20], %s8162_s1, %s8162_s1, %s8163_s24  }
  0x78   :  { %s8168_s21 = smov [#allocation22]   ;;  %s8169_s30 = smov [#allocation2]  }
  0x79   :  { %s194_s4 = sshll.u32 %s8168_s21, 4  ;;  %s45_s11 = sshll.u32 %s8169_s30, 4  ;;  %s195_s4 = int_to_ptr.vmem [resolvable:$true] %s194_s4  ;;  %s8397_s11 = int_to_ptr.vmem [resolvable:$true] %s45_s11 }
  0x7a   :  { %s7946_s22 = scalar_lea.hbm %s10565_s18, 16 }
  0x7b   :  { %p7947_p6 = scmp.ne.s32.totalorder %s10565_s18, %s7946_s22  ;;  %p7950_p7 = scmp.lt.u32.totalorder %s7946_s22, %s10565_s18 }
  0x7d   :  { %p7952_p8 = pnand %p7950_p7, %p7947_p6 }
  0x7f   :  { %7955 = shalt.err (!%p7952_p8)
}
  0x80   :  { %s7956_s16 = scalar_lea.vmem %s195_s4, 16  ;;  %s7960_s25 = scalar_lea.vmem %s195_s4, 32 }
  0x81   :  { %p7957_p9 = scmp.ne.s32.totalorder %s195_s4, %s7956_s16  ;;  %p7961_p10 = scmp.lt.s32.totalorder %s195_s4, %s195_s4 }
  0x82   :  { %p7962_p11 = scmp.lt.s32.totalorder %s7960_s25, %s7956_s16 }
  0x84   :  { %p7963_p12 = por %p7962_p11, %p7961_p10 }
  0x86   :  { %p7964_p13 = pnand %p7963_p12, %p7957_p9 }
  0x88   :  { %7967 = shalt.err (!%p7964_p13)
}
  0x89   :  { %197 = dma.hbm_to_vmem [thread:$0]  %s10565_s18, 16, %s195_s4, [#allocation23]  }
  0x8a   :  { %s10596_s13 = sld [smem:[#allocation47_spill]] }
  0x90   :  { %s7968_s7 = scalar_lea.hbm %s10596_s13, 3072 }
  0x91   :  { %p7969_p0 = scmp.ne.s32.totalorder %s10596_s13, %s7968_s7  ;;  %p7972_p1 = scmp.lt.u32.totalorder %s7968_s7, %s10596_s13 }
  0x93   :  { %p7974_p2 = pnand %p7972_p1, %p7969_p0 }
  0x95   :  { %7977 = shalt.err (!%p7974_p2)
}
  0x96   :  { %s7978_s22 = scalar_lea.vmem %s8397_s11, 3072  ;;  %p7983_p4 = scmp.lt.s32.totalorder %s8397_s11, %s8397_s11 }
  0x97   :  { %p7979_p3 = scmp.ne.s32.totalorder %s8397_s11, %s7978_s22  ;;  %p7984_p5 = scmp.lt.s32.totalorder %s7978_s22, %s7978_s22 }
  0x99   :  { %p7985_p6 = por %p7984_p5, %p7983_p4 }
  0x9b   :  { %p7986_p7 = pnand %p7985_p6, %p7979_p3 }
  0x9d   :  { %7989 = shalt.err (!%p7986_p7)
}
  0x9e   :  { %51 = dma.hbm_to_vmem [thread:$0]  %s10596_s13, 3072, %s8397_s11, [#allocation3], %s8162_s1, %s8162_s1, %s8163_s24  }
  0x9f   :  { %s8170_s9 = smov [#allocation6]   ;;  %s8171_s23 = smov [#allocation9]  }
  0xa0   :  { %s70_s26 = sshll.u32 %s8170_s9, 4  ;;  %s93_s27 = sshll.u32 %s8171_s23, 4  ;;  %s71_s26 = int_to_ptr.vmem [resolvable:$true] %s70_s26  ;;  %s8431_s27 = int_to_ptr.vmem [resolvable:$true] %s93_s27 }
  0xa1   :  { %s10597_s29 = sld [smem:[#allocation49_spill]] }
  0xa7   :  { %s7990_s2 = scalar_lea.hbm %s10597_s29, 48 }
  0xa8   :  { %p7991_p8 = scmp.ne.s32.totalorder %s10597_s29, %s7990_s2  ;;  %p7994_p9 = scmp.lt.u32.totalorder %s7990_s2, %s10597_s29 }
  0xaa   :  { %p7996_p10 = pnand %p7994_p9, %p7991_p8 }
  0xac   :  { %7999 = shalt.err (!%p7996_p10)
}
  0xad   :  { %s8000_s11 = scalar_lea.vmem %s71_s26, 48  ;;  %s8004_s13 = scalar_lea.vmem %s71_s26, 64 }
  0xae   :  { %p8001_p11 = scmp.ne.s32.totalorder %s71_s26, %s8000_s11  ;;  %p8005_p12 = scmp.lt.s32.totalorder %s71_s26, %s71_s26 }
  0xaf   :  { %p8006_p13 = scmp.lt.s32.totalorder %s8004_s13, %s8000_s11 }
  0xb1   :  { %p8007_p0 = por %p8006_p13, %p8005_p12 }
  0xb3   :  { %p8008_p1 = pnand %p8007_p0, %p8001_p11 }
  0xb5   :  { %8011 = shalt.err (!%p8008_p1)
}
  0xb6   :  { %73 = dma.hbm_to_vmem [thread:$0]  %s10597_s29, 48, %s71_s26, [#allocation5]  }
  0xb7   :  { %s8012_s18 = scalar_lea.hbm %s10555_s8, 3072 }
  0xb8   :  { %p8013_p2 = scmp.ne.s32.totalorder %s10555_s8, %s8012_s18  ;;  %p8016_p3 = scmp.lt.u32.totalorder %s8012_s18, %s10555_s8 }
  0xba   :  { %p8018_p4 = pnand %p8016_p3, %p8013_p2 }
  0xbc   :  { %8021 = shalt.err (!%p8018_p4)
}
  0xbd   :  { %s8022_s25 = scalar_lea.vmem %s8431_s27, 3072  ;;  %p8027_p6 = scmp.lt.s32.totalorder %s8431_s27, %s8431_s27 }
  0xbe   :  { %p8023_p5 = scmp.ne.s32.totalorder %s8431_s27, %s8022_s25  ;;  %p8028_p7 = scmp.lt.s32.totalorder %s8022_s25, %s8022_s25 }
  0xc0   :  { %p8029_p8 = por %p8028_p7, %p8027_p6 }
  0xc2   :  { %p8030_p9 = pnand %p8029_p8, %p8023_p5 }
  0xc4   :  { %8033 = shalt.err (!%p8030_p9)
}
  0xc5   :  { %99 = dma.hbm_to_vmem [thread:$0]  %s10555_s8, 3072, %s8431_s27, [#allocation8], %s8162_s1, %s8162_s1, %s8163_s24  }
  0xc6   :  { %s8172_s2 = smov [#allocation12]   ;;  %s8173_s0 = smov [#allocation15]  }
  0xc7   :  { %s116_s3 = sshll.u32 %s8172_s2, 4  ;;  %s137_s7 = sshll.u32 %s8173_s0, 4  ;;  %s117_s3 = int_to_ptr.vmem [resolvable:$true] %s116_s3  ;;  %s8465_s7 = int_to_ptr.vmem [resolvable:$true] %s137_s7 }
  0xc8   :  { %s8034_s13 = scalar_lea.hbm %s10557_s10, 16 }
  0xc9   :  { %p8035_p10 = scmp.ne.s32.totalorder %s10557_s10, %s8034_s13  ;;  %p8038_p11 = scmp.lt.u32.totalorder %s8034_s13, %s10557_s10 }
  0xcb   :  { %p8040_p12 = pnand %p8038_p11, %p8035_p10 }
  0xcd   :  { %8043 = shalt.err (!%p8040_p12)
}
  0xce   :  { %s8044_s8 = scalar_lea.vmem %s117_s3, 16  ;;  %s8048_s27 = scalar_lea.vmem %s117_s3, 32 }
  0xcf   :  { %p8045_p13 = scmp.ne.s32.totalorder %s117_s3, %s8044_s8  ;;  %p8049_p0 = scmp.lt.s32.totalorder %s117_s3, %s117_s3 }
  0xd0   :  { %p8050_p1 = scmp.lt.s32.totalorder %s8048_s27, %s8044_s8 }
  0xd2   :  { %p8051_p2 = por %p8050_p1, %p8049_p0 }
  0xd4   :  { %p8052_p3 = pnand %p8051_p2, %p8045_p13 }
  0xd6   :  { %8055 = shalt.err (!%p8052_p3)
}
  0xd7   :  { %119 = dma.hbm_to_vmem [thread:$0]  %s10557_s10, 16, %s117_s3, [#allocation11]  }
  0xd8   :  { %s8056_s16 = scalar_lea.hbm %s10559_s12, 3072 }
  0xd9   :  { %p8057_p4 = scmp.ne.s32.totalorder %s10559_s12, %s8056_s16  ;;  %p8060_p5 = scmp.lt.u32.totalorder %s8056_s16, %s10559_s12 }
  0xdb   :  { %p8062_p6 = pnand %p8060_p5, %p8057_p4 }
  0xdd   :  { %8065 = shalt.err (!%p8062_p6)
}
  0xde   :  { %s8066_s0 = scalar_lea.vmem %s8465_s7, 3072  ;;  %p8071_p8 = scmp.lt.s32.totalorder %s8465_s7, %s8465_s7 }
  0xdf   :  { %p8067_p7 = scmp.ne.s32.totalorder %s8465_s7, %s8066_s0  ;;  %p8072_p9 = scmp.lt.s32.totalorder %s8066_s0, %s8066_s0 }
  0xe1   :  { %p8073_p10 = por %p8072_p9, %p8071_p8 }
  0xe3   :  { %p8074_p11 = pnand %p8073_p10, %p8067_p7 }
  0xe5   :  { %8077 = shalt.err (!%p8074_p11)
}
  0xe6   :  { %143 = dma.hbm_to_vmem [thread:$0]  %s10559_s12, 3072, %s8465_s7, [#allocation14], %s8162_s1, %s8162_s1, %s8163_s24  }
  0xe7   :  { %s8174_s21 = smov [#allocation18]   ;;  %s8175_s13 = smov [#allocation21]  }
  0xe8   :  { %s160_s11 = sshll.u32 %s8174_s21, 4  ;;  %s184_s30 = sshll.u32 %s8175_s13, 4  ;;  %s161_s11 = int_to_ptr.vmem [resolvable:$true] %s160_s11  ;;  %s185_s30 = int_to_ptr.vmem [resolvable:$true] %s184_s30 }
  0xe9   :  { %s8078_s22 = scalar_lea.hbm %s10561_s14, 16 }
  0xea   :  { %p8079_p12 = scmp.ne.s32.totalorder %s10561_s14, %s8078_s22  ;;  %p8082_p13 = scmp.lt.u32.totalorder %s8078_s22, %s10561_s14 }
  0xec   :  { %p8084_p0 = pnand %p8082_p13, %p8079_p12 }
  0xee   :  { %8087 = shalt.err (!%p8084_p0)
}
  0xef   :  { %s8088_s12 = scalar_lea.vmem %s161_s11, 16  ;;  %s8092_s1 = scalar_lea.vmem %s161_s11, 32 }
  0xf0   :  { %p8089_p1 = scmp.ne.s32.totalorder %s161_s11, %s8088_s12  ;;  %p8093_p2 = scmp.lt.s32.totalorder %s161_s11, %s161_s11 }
  0xf1   :  { %p8094_p3 = scmp.lt.s32.totalorder %s8092_s1, %s8088_s12 }
  0xf3   :  { %p8095_p4 = por %p8094_p3, %p8093_p2 }
  0xf5   :  { %p8096_p5 = pnand %p8095_p4, %p8089_p1 }
  0xf7   :  { %8099 = shalt.err (!%p8096_p5)
}
  0xf8   :  { %163 = dma.hbm_to_vmem [thread:$0]  %s10561_s14, 16, %s161_s11, [#allocation17]  }
  0xf9   :  { %s8100_s16 = scalar_lea.hbm %s10564_s17, 48 }
  0xfa   :  { %p8101_p6 = scmp.ne.s32.totalorder %s10564_s17, %s8100_s16  ;;  %p8104_p7 = scmp.lt.u32.totalorder %s8100_s16, %s10564_s17 }
  0xfc   :  { %p8106_p8 = pnand %p8104_p7, %p8101_p6 }
  0xfe   :  { %8109 = shalt.err (!%p8106_p8)
}
  0xff   :  { %s8110_s0 = scalar_lea.vmem %s185_s30, 48  ;;  %s8114_s10 = scalar_lea.vmem %s185_s30, 64 }
 0x100   :  { %p8111_p9 = scmp.ne.s32.totalorder %s185_s30, %s8110_s0  ;;  %p8115_p10 = scmp.lt.s32.totalorder %s185_s30, %s185_s30 }
 0x101   :  { %p8116_p11 = scmp.lt.s32.totalorder %s8114_s10, %s8110_s0 }
 0x103   :  { %p8117_p12 = por %p8116_p11, %p8115_p10 }
 0x105   :  { %p8118_p13 = pnand %p8117_p12, %p8111_p9 }
 0x107   :  { %8121 = shalt.err (!%p8118_p13)
}
 0x108   :  { %187 = dma.hbm_to_vmem [thread:$0]  %s10564_s17, 48, %s185_s30, [#allocation20]  }
 0x109   :  { %s8176_s21 = smov [#allocation24]   ;;  %s8122_s5 = scalar_lea.hbm %s10566_s19, 1024 }
 0x10a   :  { %s203_s11 = sshll.u32 %s8176_s21, 4  ;;  %p8123_p0 = scmp.ne.s32.totalorder %s10566_s19, %s8122_s5  ;;  %s204_s11 = int_to_ptr.vmem [resolvable:$true] %s203_s11 }
 0x10b   :  { %p8126_p1 = scmp.lt.u32.totalorder %s8122_s5, %s10566_s19 }
 0x10d   :  { %p8128_p2 = pnand %p8126_p1, %p8123_p0 }
 0x10f   :  { %8131 = shalt.err (!%p8128_p2)
}
 0x110   :  { %s8132_s4 = scalar_lea.vmem %s204_s11, 1024  ;;  %p8137_p4 = scmp.lt.s32.totalorder %s204_s11, %s204_s11 }
 0x111   :  { %p8133_p3 = scmp.ne.s32.totalorder %s204_s11, %s8132_s4  ;;  %p8138_p5 = scmp.lt.s32.totalorder %s8132_s4, %s8132_s4 }
 0x113   :  { %p8139_p6 = por %p8138_p5, %p8137_p4 }
 0x115   :  { %p8140_p7 = pnand %p8139_p6, %p8133_p3 }
 0x117   :  { %8143 = shalt.err (!%p8140_p7)
}
 0x118   :  { %s8177_s17 = smov 64   ;;  %s8178_s30 = smov 4  }
 0x119   :  { %209 = dma.hbm_to_vmem [thread:$0]  %s10566_s19, 1024, %s204_s11, [#allocation23], %s8177_s17, %s8177_s17, %s8178_s30  }
 0x11a   :  { %8144 = dma.done.wait [#allocation3], 3072  }
 0x11b   :  { %8145 = vsyncadd [#allocation3], 4294964224 }
 0x11c   :  { %8146 = dma.done.wait [#allocation5], 3120  }
 0x11d   :  { %8147 = vsyncadd [#allocation5], 4294964176 }
 0x11e   :  { %8148 = dma.done.wait [#allocation8], 6144  }
 0x11f   :  { %8149 = vsyncadd [#allocation8], 4294961152 }
 0x120   :  { %8150 = dma.done.wait [#allocation11], 64  }
 0x121   :  { %8151 = vsyncadd [#allocation11], 4294967232 }
 0x122   :  { %8152 = dma.done.wait [#allocation14], 6144  }
 0x123   :  { %8153 = vsyncadd [#allocation14], 4294961152 }
 0x124   :  { %8154 = dma.done.wait [#allocation17], 64  }
 0x125   :  { %8155 = vsyncadd [#allocation17], 4294967232 }
 0x126   :  { %8156 = dma.done.wait [#allocation20], 3120  }
 0x127   :  { %8157 = vsyncadd [#allocation20], 4294964176 }
 0x128   :  { %8158 = dma.done.wait [#allocation23], 1040  }
 0x129   :  { %8159 = vsyncadd [#allocation23], 4294966256  ;;  %v10576_v0 = vmov 0   ;;  %v7125_v1 = vld [vmem:[#allocation2 + $0x4] ss:$12 sps:$4 sm:$0xff]   ;;  %s10598_s7 = sld [smem:[#allocation44_spill]]  ;;  %v300_v54 = vlaneseq }
 0x12a   :  { %499 = vmatprep.mubr.bf16.mxu1 %v10576_v0  ;;  %804 = vmatprep.mubr.bf16.mxu0 %v10576_v0  ;;  %v7127_v2 = vld [vmem:[#allocation2] ss:$12 sps:$4 sm:$0xff]   ;;  %v8537_v3 = vld [vmem:[#allocation4 + $0x4] ss:$12 sps:$4 sm:$0xff]   ;;  %v7131_v5 = vld [vmem:[#allocation2 + $0x1c] ss:$12 sps:$4 sm:$0xff]  }
 0x12b   :  { %467 = vmatprep.subr.bf16.mxu1 %v7125_v1  ;;  %v8539_v4 = vld [vmem:[#allocation4] ss:$12 sps:$4 sm:$0xff]   ;;  %v7133_v6 = vld [vmem:[#allocation2 + $0x18] ss:$12 sps:$4 sm:$0xff]   ;;  %772 = vmatprep.subr.bf16.mxu0 %v8537_v3  ;;  %v8542_v7 = vld [vmem:[#allocation4 + $0x1c] ss:$12 sps:$4 sm:$0xff]  }
 0x12c   :  { %468 = vmatpush1.bf16.msra.mxu1 %v7127_v2  ;;  %773 = vmatpush1.bf16.msra.mxu0 %v8539_v4  ;;  %v8545_v8 = vld [vmem:[#allocation4 + $0x18] ss:$12 sps:$4 sm:$0xff]   ;;  %v7137_v9 = vld [vmem:[#allocation2 + $0x34] ss:$12 sps:$4 sm:$0xff]   ;;  %v7139_v10 = vld [vmem:[#allocation2 + $0x30] ss:$12 sps:$4 sm:$0xff]  }
 0x12d   :  { %469 = vmatprep.subr.bf16.mxu1 %v7131_v5  ;;  %774 = vmatprep.subr.bf16.mxu0 %v8542_v7  ;;  %v8548_v11 = vld [vmem:[#allocation4 + $0x34] ss:$12 sps:$4 sm:$0xff]   ;;  %v7143_v12 = vld [vmem:[#allocation2 + $0x4c] ss:$12 sps:$4 sm:$0xff]   ;;  %v8551_v13 = vld [vmem:[#allocation4 + $0x30] ss:$12 sps:$4 sm:$0xff]  }
 0x12e   :  { %v8554_v14 = vld [vmem:[#allocation4 + $0x4c] ss:$12 sps:$4 sm:$0xff]   ;;  %v7145_v15 = vld [vmem:[#allocation2 + $0x48] ss:$12 sps:$4 sm:$0xff]   ;;  %v7149_v16 = vld [vmem:[#allocation2 + $0x64] ss:$12 sps:$4 sm:$0xff]  }
 0x12f   :  { %v8557_v17 = vld [vmem:[#allocation4 + $0x48] ss:$12 sps:$4 sm:$0xff]   ;;  %v8560_v18 = vld [vmem:[#allocation4 + $0x64] ss:$12 sps:$4 sm:$0xff]   ;;  %v7151_v19 = vld [vmem:[#allocation2 + $0x60] ss:$12 sps:$4 sm:$0xff]  }
 0x130   :  { %470 = vmatpush1.bf16.msra.mxu1 %v7133_v6  ;;  %775 = vmatpush1.bf16.msra.mxu0 %v8545_v8  ;;  %v7155_v20 = vld [vmem:[#allocation2 + $0x7c] ss:$12 sps:$4 sm:$0xff]   ;;  %v8563_v21 = vld [vmem:[#allocation4 + $0x60] ss:$12 sps:$4 sm:$0xff]   ;;  %v7157_v23 = vld [vmem:[#allocation2 + $0x78] ss:$12 sps:$4 sm:$0xff]  }
 0x131   :  { %471 = vmatprep.subr.bf16.mxu1 %v7137_v9  ;;  %776 = vmatprep.subr.bf16.mxu0 %v8548_v11  ;;  %v8566_v22 = vld [vmem:[#allocation4 + $0x7c] ss:$12 sps:$4 sm:$0xff]   ;;  %v7161_v24 = vld [vmem:[#allocation2 + $0x94] ss:$12 sps:$4 sm:$0xff]   ;;  %v8569_v25 = vld [vmem:[#allocation4 + $0x78] ss:$12 sps:$4 sm:$0xff]  }
 0x132   :  { %v8572_v26 = vld [vmem:[#allocation4 + $0x94] ss:$12 sps:$4 sm:$0xff]   ;;  %v7163_v27 = vld [vmem:[#allocation2 + $0x90] ss:$12 sps:$4 sm:$0xff]   ;;  %v7167_v28 = vld [vmem:[#allocation2 + $0xac] ss:$12 sps:$4 sm:$0xff]  }
 0x133   :  { %v8575_v29 = vld [vmem:[#allocation4 + $0x90] ss:$12 sps:$4 sm:$0xff]   ;;  %v8578_v30 = vld [vmem:[#allocation4 + $0xac] ss:$12 sps:$4 sm:$0xff]   ;;  %v7169_v31 = vld [vmem:[#allocation2 + $0xa8] ss:$12 sps:$4 sm:$0xff]  }
 0x134   :  { %472 = vmatpush1.bf16.msra.mxu1 %v7139_v10  ;;  %777 = vmatpush1.bf16.msra.mxu0 %v8551_v13  ;;  %v7174_v32 = vld [vmem:[#allocation2 + $0x8] ss:$12 sps:$4 sm:$0xff]   ;;  %v7173_v34 = vld [vmem:[%s10598_s7] sm:$0xff]   ;;  %v7178_v38 = vld [vmem:[#allocation2 + $0x50] ss:$12 sps:$4 sm:$0xff]   ;;  %v10578_v46 = vmov 0.0  }
 0x135   :  { %473 = vmatprep.subr.bf16.mxu1 %v7143_v12  ;;  %778 = vmatprep.subr.bf16.mxu0 %v8554_v14  ;;  %v8581_v33 = vld [vmem:[#allocation4 + $0xa8] ss:$12 sps:$4 sm:$0xff]   ;;  %v7175_v35 = vld [vmem:[#allocation2 + $0x20] ss:$12 sps:$4 sm:$0xff]   ;;  %v7177_v36 = vld [vmem:[#allocation2 + $0x38] ss:$12 sps:$4 sm:$0xff]  }
 0x136   :  { %v7176_v37 = vld [vmem:[%s10598_s7 + $0x8] sm:$0xff]   ;;  %v7179_v40 = vld [vmem:[%s10598_s7 + $0x10] sm:$0xff]   ;;  %v7183_v42 = vld [vmem:[#allocation2 + $0x98] ss:$12 sps:$4 sm:$0xff]   ;;  %vm8181_vm0 = vmmov 0   ;;  %v301_v55 = vshrl.u32 %v300_v54, 7 }
 0x137   :  { %v7180_v39 = vld [vmem:[#allocation2 + $0x68] ss:$12 sps:$4 sm:$0xff]   ;;  %v7181_v41 = vld [vmem:[#allocation2 + $0x80] ss:$12 sps:$4 sm:$0xff]   ;;  %v7182_v43 = vld [vmem:[%s10598_s7 + $0x18] sm:$0xff]   ;;  %s10615_s21 = sld [smem:[#allocation45_spill]] }
 0x138   :  { %474 = vmatpush1.bf16.msra.mxu1 %v7145_v15  ;;  %779 = vmatpush1.bf16.msra.mxu0 %v8557_v17  ;;  %v7184_v44 = vld [vmem:[#allocation2 + $0xb0] ss:$12 sps:$4 sm:$0xff]   ;;  %v8615_v45 = vld [vmem:[#allocation4 + $0x8] ss:$12 sps:$4 sm:$0xff]   ;;  %v8620_v47 = vld [vmem:[#allocation4 + $0x20] ss:$12 sps:$4 sm:$0xff]  }
 0x139   :  { %475 = vmatprep.subr.bf16.mxu1 %v7149_v16  ;;  %780 = vmatprep.subr.bf16.mxu0 %v8560_v18  ;;  %v8626_v48 = vld [vmem:[#allocation4 + $0x38] ss:$12 sps:$4 sm:$0xff]   ;;  %v8630_v49 = vld [vmem:[#allocation4 + $0x50] ss:$12 sps:$4 sm:$0xff]   ;;  %v8636_v50 = vld [vmem:[#allocation4 + $0x68] ss:$12 sps:$4 sm:$0xff]  }
 0x13a   :  { %v8640_v51 = vld [vmem:[#allocation4 + $0x80] ss:$12 sps:$4 sm:$0xff]   ;;  %v8644_v52 = vld [vmem:[#allocation4 + $0x98] ss:$12 sps:$4 sm:$0xff]   ;;  %v8648_v53 = vld [vmem:[#allocation4 + $0xb0] ss:$12 sps:$4 sm:$0xff]  }
 0x13b   :  { %v8673_v56 = vsub.s32 0, %v301_v55  ;;  %v298_v57 = vld [vmem:[#allocation6] sm:$0x7]  ;;  %v8675_v58 = vsub.s32 1, %v301_v55  ;;  %s10616_s4 = sld [smem:[#allocation46_spill]]  ;;  %s10656_s22 = sld [smem:[#allocation50_spill]] }
 0x13c   :  { %476 = vmatpush1.bf16.msra.mxu1 %v7151_v19  ;;  %781 = vmatpush1.bf16.msra.mxu0 %v8563_v21 }
 0x13d   :  { %477 = vmatprep.subr.bf16.mxu1 %v7155_v20  ;;  %782 = vmatprep.subr.bf16.mxu0 %v8566_v22  ;;  %10599 = vst [vmem:[#allocation33_spill] sm:$0xff] %v8673_v56  ;;  %10600 = vst [vmem:[#allocation34_spill] sm:$0xff] %v8675_v58  ;;  %v303_v59 = vrot.slane %v298_v57, %v8673_v56  ;;  %v307_v60 = vrot.slane %v298_v57, %v8675_v58 }
 0x140   :  { %478 = vmatpush1.bf16.msra.mxu1 %v7157_v23  ;;  %783 = vmatpush1.bf16.msra.mxu0 %v8569_v25 }
 0x141   :  { %479 = vmatprep.subr.bf16.mxu1 %v7161_v24  ;;  %784 = vmatprep.subr.bf16.mxu0 %v8572_v26 }
 0x144   :  { %480 = vmatpush1.bf16.msra.mxu1 %v7163_v27  ;;  %785 = vmatpush1.bf16.msra.mxu0 %v8575_v29 }
 0x145   :  { %481 = vmatprep.subr.bf16.mxu1 %v7167_v28  ;;  %786 = vmatprep.subr.bf16.mxu0 %v8578_v30 }
 0x148   :  { %482 = vmatpush1.bf16.msra.mxu1 %v7169_v31  ;;  %787 = vmatpush1.bf16.msra.mxu0 %v8581_v33 }
 0x149   :  { %6343 = vmatprep.subr.bf16.mxu1 %v7174_v32  ;;  %875 = vmatprep.subr.bf16.mxu0 %v8537_v3 }
 0x14b   :  { %500 = vmatmul.mubr.bf16.vlgmr.msra.gmra.mrb[0].mxu1 %v7173_v34  ;;  %805 = vmatmul.mubr.bf16.vlgmr.msra.gmra.mrb[0].mxu0 %v10576_v0 }
 0x14c   :  { %6344 = vmatpush3.bf16.msra.mxu1 %v7174_v32  ;;  %509 = vmatprep.mubr.bf16.mxu1 %v10576_v0 }
 0x14d   :  { %6345 = vmatprep.subr.bf16.mxu1 %v7175_v35  ;;  %876 = vmatpush1.bf16.msra.mxu0 %v8539_v4 }
 0x14e   :  { %907 = vmatprep.mubr.bf16.mxu0 %v10576_v0  ;;  %877 = vmatprep.subr.bf16.mxu0 %v8542_v7 }
 0x150   :  { %6346 = vmatpush3.bf16.msra.mxu1 %v7175_v35 }
 0x151   :  { %6347 = vmatprep.subr.bf16.mxu1 %v7177_v36  ;;  %878 = vmatpush1.bf16.msra.mxu0 %v8545_v8 }
 0x152   :  { %879 = vmatprep.subr.bf16.mxu0 %v8548_v11 }
 0x153   :  { %510 = vmatmul.mubr.bf16.gmra.mrb[4].mxu1 %v7176_v37 }
 0x154   :  { %6348 = vmatpush3.bf16.msra.mxu1 %v7177_v36  ;;  %519 = vmatprep.mubr.bf16.mxu1 %v10576_v0 }
 0x155   :  { %6349 = vmatprep.subr.bf16.mxu1 %v7178_v38  ;;  %880 = vmatpush1.bf16.msra.mxu0 %v8551_v13 }
 0x156   :  { %881 = vmatprep.subr.bf16.mxu0 %v8554_v14 }
 0x158   :  { %6350 = vmatpush3.bf16.msra.mxu1 %v7178_v38 }
 0x159   :  { %6351 = vmatprep.subr.bf16.mxu1 %v7180_v39  ;;  %882 = vmatpush1.bf16.msra.mxu0 %v8557_v17 }
 0x15a   :  { %883 = vmatprep.subr.bf16.mxu0 %v8560_v18 }
 0x15b   :  { %520 = vmatmul.mubr.bf16.gmra.mrb[8].mxu1 %v7179_v40 }
 0x15c   :  { %6352 = vmatpush3.bf16.msra.mxu1 %v7180_v39  ;;  %529 = vmatprep.mubr.bf16.mxu1 %v10576_v0  ;;  %v8701_v39 = vsub.s32 2, %v301_v55 }
 0x15d   :  { %6353 = vmatprep.subr.bf16.mxu1 %v7181_v41  ;;  %884 = vmatpush1.bf16.msra.mxu0 %v8563_v21 }
 0x15e   :  { %885 = vmatprep.subr.bf16.mxu0 %v8566_v22  ;;  %10601 = vst [vmem:[#allocation35_spill] sm:$0xff] %v8701_v39  ;;  %v311_v54 = vrot.slane %v298_v57, %v8701_v39 }
 0x160   :  { %6354 = vmatpush3.bf16.msra.mxu1 %v7181_v41 }
 0x161   :  { %6355 = vmatprep.subr.bf16.mxu1 %v7183_v42  ;;  %886 = vmatpush1.bf16.msra.mxu0 %v8569_v25 }
 0x162   :  { %887 = vmatprep.subr.bf16.mxu0 %v8572_v26 }
 0x163   :  { %530 = vmatmul.mubr.bf16.gmra.mrb[12].mxu1 %v7182_v43 }
 0x164   :  { %6356 = vmatpush3.bf16.msra.mxu1 %v7183_v42  ;;  %6359 = vmatprep.mubr.bf16.mxu1 %v7173_v34 }
 0x165   :  { %6357 = vmatprep.subr.bf16.mxu1 %v7184_v44  ;;  %888 = vmatpush1.bf16.msra.mxu0 %v8575_v29 }
 0x166   :  { %889 = vmatprep.subr.bf16.mxu0 %v8578_v30 }
 0x168   :  { %6358 = vmatpush3.bf16.msra.mxu1 %v7184_v44 }
 0x169   :  { %6367 = vmatprep.subr.bf16.mxu1 %v10578_v46  ;;  %890 = vmatpush1.bf16.msra.mxu0 %v8581_v33 }
 0x16a   :  { %978 = vmatprep.subr.bf16.mxu0 %v8537_v3 }
 0x16b   :  { %6360 = vmatmul.mubr.bf16.vlgmr.msra.gmra.mrb[16].mxu1 %v7176_v37 }
 0x16c   :  { %6368 = vmatpush3.bf16.msra.mxu1 %v8615_v45  ;;  %6363 = vmatprep.mubr.bf16.mxu1 %v7179_v40 }
 0x16d   :  { %6369 = vmatprep.subr.bf16.mxu1 %v10578_v46 }
 0x170   :  { %6370 = vmatpush3.bf16.msra.mxu1 %v8620_v47 }
 0x171   :  { %6371 = vmatprep.subr.bf16.mxu1 %v10578_v46 }
 0x173   :  { %6364 = vmatmul.mubr.bf16.gmra.mrb[20].mxu1 %v7182_v43 }
 0x174   :  { %6372 = vmatpush3.bf16.msra.mxu1 %v8626_v48  ;;  %6383 = vmatprep.mubr.msk.bf16.mxu1 %vm8181_vm0, %v10578_v46 }
 0x175   :  { %6373 = vmatprep.subr.bf16.mxu1 %v10578_v46 }
 0x178   :  { %6374 = vmatpush3.bf16.msra.mxu1 %v8630_v49 }
 0x179   :  { %6375 = vmatprep.subr.bf16.mxu1 %v10578_v46 }
 0x17c   :  { %6376 = vmatpush3.bf16.msra.mxu1 %v8636_v50 }
 0x17d   :  { %6377 = vmatprep.subr.bf16.mxu1 %v10578_v46 }
 0x180   :  { %6378 = vmatpush3.bf16.msra.mxu1 %v8640_v51 }
 0x181   :  { %6379 = vmatprep.subr.bf16.mxu1 %v10578_v46 }
 0x184   :  { %6380 = vmatpush3.bf16.msra.mxu1 %v8644_v52 }
 0x185   :  { %6381 = vmatprep.subr.bf16.mxu1 %v10578_v46 }
 0x188   :  { %6382 = vmatpush3.bf16.msra.mxu1 %v8648_v53 }
 0x189   :  { %6387 = vmatprep.subr.bf16.mxu1 %v10578_v46 }
 0x18b   :  { %6384 = vmatmul.mubr.bf16.vlgmr.msra.gmra.mrb[24].mxu1 %v10576_v0 }
 0x18c   :  { %6388 = vmatpush3.bf16.msra.mxu1 %v8615_v45  ;;  %6403 = vmatprep.mubr.msk.bf16.mxu1 %vm8181_vm0, %v10578_v46 }
 0x18d   :  { %6389 = vmatprep.subr.bf16.mxu1 %v10578_v46 }
 0x190   :  { %6390 = vmatpush3.bf16.msra.mxu1 %v8620_v47 }
 0x191   :  { %6391 = vmatprep.subr.bf16.mxu1 %v10578_v46 }
 0x194   :  { %6392 = vmatpush3.bf16.msra.mxu1 %v8626_v48 }
 0x195   :  { %6393 = vmatprep.subr.bf16.mxu1 %v10578_v46 }
 0x198   :  { %6394 = vmatpush3.bf16.msra.mxu1 %v8630_v49 }
 0x199   :  { %6395 = vmatprep.subr.bf16.mxu1 %v10578_v46 }
 0x19c   :  { %6396 = vmatpush3.bf16.msra.mxu1 %v8636_v50 }
 0x19d   :  { %6397 = vmatprep.subr.bf16.mxu1 %v10578_v46 }
 0x1a0   :  { %6398 = vmatpush3.bf16.msra.mxu1 %v8640_v51 }
 0x1a1   :  { %6399 = vmatprep.subr.bf16.mxu1 %v10578_v46 }
 0x1a4   :  { %6400 = vmatpush3.bf16.msra.mxu1 %v8644_v52 }
 0x1a5   :  { %6401 = vmatprep.subr.bf16.mxu1 %v10578_v46 }
 0x1a8   :  { %6402 = vmatpush3.bf16.msra.mxu1 %v8648_v53 }
 0x1a9   :  { %6407 = vmatprep.subr.bf16.mxu1 %v10578_v46 }
 0x21e   :  { %v501_v61 = vpop.f32.mrb[0].mxu1  ;;  %v806_v3 = vpop.f32.mrb[0].mxu0 }
 0x21f   :  { %v502_v62 = vadd.f32 %v501_v61, %v303_v59  ;;  %v503_v63 = vpop.f32.mrb[1].mxu1  ;;  %v808_v7 = vpop.f32.mrb[1].mxu0 }
 0x220   :  { %v504_v1 = vadd.f32 %v503_v63, %v307_v60  ;;  %v505_v2 = vpop.f32.mrb[2].mxu1  ;;  %v810_v10 = vpop.f32.mrb[2].mxu0 }
 0x221   :  { %v8679_v4 = vadd.f32 %v505_v2, %v303_v59  ;;  %v853_v5 = vadd.f32 %v806_v3, %v502_v62  ;;  %v507_v6 = vpop.f32.mrb[3].mxu1  ;;  %v811_v11 = vpop.f32.mrb[3].mxu0 }
 0x222   :  { %v8681_v8 = vadd.f32 %v507_v6, %v307_v60  ;;  %v854_v9 = vadd.f32 %v808_v7, %v504_v1 }
 0x223   :  { %v5770_v2 = vmul.f32 -1.442695, %v853_v5 }
 0x224   :  { %v5771_v5 = vmul.f32 -1.442695, %v854_v9 }
 0x225   :  { %7397 = vpow2.f32 %v5770_v2 }
 0x226   :  { %v511_v12 = vpop.f32.mrb[4].mxu1  ;;  %7399 = vpow2.f32 %v5771_v5  ;;  %v8734_v5 = vld [vmem:[#allocation4] ss:$12 sps:$4 sm:$0xff]  }
 0x227   :  { %v8683_v13 = vadd.f32 %v511_v12, %v303_v59  ;;  %v513_v14 = vpop.f32.mrb[5].mxu1 }
 0x228   :  { %v8685_v15 = vadd.f32 %v513_v14, %v307_v60  ;;  %v515_v16 = vpop.f32.mrb[6].mxu1 }
 0x229   :  { %v8687_v17 = vadd.f32 %v515_v16, %v303_v59  ;;  %v517_v19 = vpop.f32.mrb[7].mxu1 }
 0x22a   :  { %v8689_v20 = vadd.f32 %v517_v19, %v307_v60 }
 0x22e   :  { %v521_v23 = vpop.f32.mrb[8].mxu1 }
 0x22f   :  { %v8691_v24 = vadd.f32 %v521_v23, %v303_v59  ;;  %v523_v27 = vpop.f32.mrb[9].mxu1  ;;  %v7398_v16 = vpop.eup %7397  ;;  %v8727_v23 = vld [vmem:[%s10553_s6] ss:$0 sm:$0xff] }
 0x230   :  { %v8693_v28 = vadd.f32 %v523_v27, %v307_v60  ;;  %v525_v31 = vpop.f32.mrb[10].mxu1  ;;  %v861_v19 = vadd.f32 1.0, %v7398_v16 }
 0x231   :  { %v8695_v32 = vadd.f32 %v525_v31, %v303_v59  ;;  %v527_v34 = vpop.f32.mrb[11].mxu1  ;;  %v7400_v31 = vpop.eup %7399 }
 0x232   :  { %v8697_v35 = vadd.f32 %v527_v34, %v307_v60  ;;  %7401 = vrcp.f32 %v861_v19  ;;  %v862_v2 = vadd.f32 1.0, %v7400_v31  ;;  %v8749_v19 = vld [vmem:[#allocation4 + $0x34] ss:$12 sps:$4 sm:$0xff]   ;;  %v8757_v31 = vld [vmem:[#allocation4 + $0x4c] ss:$12 sps:$4 sm:$0xff]  }
 0x236   :  { %v531_v36 = vpop.f32.mrb[12].mxu1 }
 0x237   :  { %v8699_v37 = vadd.f32 %v531_v36, %v303_v59  ;;  %v533_v38 = vpop.f32.mrb[13].mxu1 }
 0x238   :  { %v8703_v40 = vadd.f32 %v533_v38, %v307_v60  ;;  %v535_v41 = vpop.f32.mrb[14].mxu1 }
 0x239   :  { %v8705_v42 = vadd.f32 %v535_v41, %v303_v59  ;;  %v537_v43 = vpop.f32.mrb[15].mxu1 }
 0x23a   :  { %v8707_v44 = vadd.f32 %v537_v43, %v307_v60 }
 0x23c   :  { %v7402_v38 = vpop.eup %7401 }
 0x23e   :  { %v6361_v61 = vpop.f32.mrb[16].mxu1 }
 0x23f   :  { %v8710_v62 = vadd.f32 %v6361_v61, %v311_v54  ;;  %v574_v63 = vpop.f32.mrb[17].mxu1 }
 0x240   :  { %v6362_v1 = vpop.f32.mrb[18].mxu1  ;;  %v575_v43 = vadd.f32 %v574_v63, %v311_v54  ;;  %v8745_v63 = vld [vmem:[#allocation4 + $0x18] ss:$12 sps:$4 sm:$0xff]  }
 0x241   :  { %v8712_v3 = vadd.f32 %v6362_v1, %v311_v54  ;;  %v577_v55 = vpop.f32.mrb[19].mxu1 }
 0x242   :  { %v8714_v6 = vadd.f32 %v577_v55, %v311_v54 }
 0x246   :  { %v6365_v7 = vpop.f32.mrb[20].mxu1 }
 0x247   :  { %v8716_v59 = vadd.f32 %v6365_v7, %v311_v54  ;;  %v590_v10 = vpop.f32.mrb[21].mxu1 }
 0x248   :  { %v8718_v60 = vadd.f32 %v590_v10, %v311_v54  ;;  %v6366_v11 = vpop.f32.mrb[22].mxu1 }
 0x249   :  { %v8720_v57 = vadd.f32 %v6366_v11, %v311_v54  ;;  %v593_v12 = vpop.f32.mrb[23].mxu1 }
 0x24a   :  { %v8722_v14 = vadd.f32 %v593_v12, %v311_v54  ;;  %v8738_v54 = vld [vmem:[#allocation4 + $0x1c] ss:$12 sps:$4 sm:$0xff]  }
 0x25e   :  { %v847_v27 = vpop.f32.mrb[24].mxu1 }
 0x25f   :  { %v867_v34 = vadd.f32 %v8727_v23, %v847_v27  ;;  %v6385_v36 = vpop.f32.mrb[25].mxu1  ;;  %v8753_v27 = vld [vmem:[#allocation4 + $0x30] ss:$12 sps:$4 sm:$0xff]  }
 0x260   :  { %v850_v41 = vpop.f32.mrb[26].mxu1 }
 0x261   :  { %v868_v61 = vmul.f32 %v7402_v38, %v867_v34  ;;  %v6386_v1 = vpop.f32.mrb[27].mxu1  ;;  %v8761_v34 = vld [vmem:[#allocation4 + $0x48] ss:$12 sps:$4 sm:$0xff]  }
 0x263   :  { %v869_v9 = vadd.f32 %v868_v61, %v575_v43 }
 0x265   :  { %7403 = vtanh.f32 %v869_v9 }
 0x266   :  { %7405 = vrcp.f32 %v862_v2 }
 0x26f   :  { %v7404_v55 = vpop.eup %7403 }
 0x270   :  { %v871_v7 = vsub.f32 0.0, %v7404_v55  ;;  %v7406_v10 = vpop.eup %7405 }
 0x272   :  { %v872_v11 = vmul.f32 %v7406_v10, %v871_v7 }
 0x274   :  { %v8730_v12 = vadd.f32 %v7404_v55, %v872_v11 }
 0x276   :  { %v874_v16 = vpack.c.bf16 %v8730_v12, %v8730_v12 }
 0x278   :  { %908 = vmatmul.mubr.bf16.vlgmr.msra.gmra.mrb[4].mxu0 %v874_v16  ;;  %6404 = vmatmul.mubr.bf16.vlgmr.msra.gmra.mrb[28].mxu1 %v874_v16 }
 0x279   :  { %979 = vmatpush1.bf16.msra.mxu0 %v8734_v5  ;;  %6408 = vmatpush3.bf16.msra.mxu1 %v8615_v45 }
 0x27a   :  { %980 = vmatprep.subr.bf16.mxu0 %v8738_v54  ;;  %6409 = vmatprep.subr.bf16.mxu1 %v10578_v46 }
 0x27b   :  { %1010 = vmatprep.mubr.bf16.mxu0 %v10576_v0  ;;  %6423 = vmatprep.mubr.msk.bf16.mxu1 %vm8181_vm0, %v10578_v46 }
 0x27d   :  { %981 = vmatpush1.bf16.msra.mxu0 %v8745_v63  ;;  %6410 = vmatpush3.bf16.msra.mxu1 %v8620_v47 }
 0x27e   :  { %982 = vmatprep.subr.bf16.mxu0 %v8749_v19  ;;  %6411 = vmatprep.subr.bf16.mxu1 %v10578_v46 }
 0x281   :  { %983 = vmatpush1.bf16.msra.mxu0 %v8753_v27  ;;  %6412 = vmatpush3.bf16.msra.mxu1 %v8626_v48 }
 0x282   :  { %984 = vmatprep.subr.bf16.mxu0 %v8757_v31  ;;  %6413 = vmatprep.subr.bf16.mxu1 %v10578_v46 }
 0x285   :  { %985 = vmatpush1.bf16.msra.mxu0 %v8761_v34  ;;  %6414 = vmatpush3.bf16.msra.mxu1 %v8630_v49 }
 0x286   :  { %986 = vmatprep.subr.bf16.mxu0 %v8560_v18  ;;  %6415 = vmatprep.subr.bf16.mxu1 %v10578_v46  ;;  %v8781_v18 = vld [vmem:[#allocation4 + $0x4] ss:$12 sps:$4 sm:$0xff]  }
 0x289   :  { %987 = vmatpush1.bf16.msra.mxu0 %v8563_v21  ;;  %6416 = vmatpush3.bf16.msra.mxu1 %v8636_v50 }
 0x28a   :  { %988 = vmatprep.subr.bf16.mxu0 %v8566_v22  ;;  %6417 = vmatprep.subr.bf16.mxu1 %v10578_v46 }
 0x28d   :  { %989 = vmatpush1.bf16.msra.mxu0 %v8569_v25  ;;  %6418 = vmatpush3.bf16.msra.mxu1 %v8640_v51 }
 0x28e   :  { %990 = vmatprep.subr.bf16.mxu0 %v8572_v26  ;;  %6419 = vmatprep.subr.bf16.mxu1 %v10578_v46 }
 0x291   :  { %991 = vmatpush1.bf16.msra.mxu0 %v8575_v29  ;;  %6420 = vmatpush3.bf16.msra.mxu1 %v8644_v52 }
 0x292   :  { %992 = vmatprep.subr.bf16.mxu0 %v8578_v30  ;;  %6421 = vmatprep.subr.bf16.mxu1 %v10578_v46 }
 0x295   :  { %993 = vmatpush1.bf16.msra.mxu0 %v8581_v33  ;;  %6422 = vmatpush3.bf16.msra.mxu1 %v8648_v53 }
 0x296   :  { %1081 = vmatprep.subr.bf16.mxu0 %v8781_v18  ;;  %6427 = vmatprep.subr.bf16.mxu1 %v10578_v46 }
 0x34b   :  { %v909_v21 = vpop.f32.mrb[4].mxu0  ;;  %v950_v22 = vpop.f32.mrb[28].mxu1 }
 0x34c   :  { %v956_v25 = vadd.f32 %v909_v21, %v8679_v4  ;;  %v911_v26 = vpop.f32.mrb[5].mxu0  ;;  %v6405_v29 = vpop.f32.mrb[29].mxu1  ;;  %v970_v55 = vadd.f32 %v8727_v23, %v950_v22  ;;  %v8815_v22 = vld [vmem:[#allocation4 + $0x60] ss:$12 sps:$4 sm:$0xff]  }
 0x34d   :  { %v957_v30 = vadd.f32 %v911_v26, %v8681_v8  ;;  %v913_v36 = vpop.f32.mrb[6].mxu0  ;;  %v953_v38 = vpop.f32.mrb[30].mxu1 }
 0x34e   :  { %v5772_v41 = vmul.f32 -1.442695, %v956_v25  ;;  %v914_v33 = vpop.f32.mrb[7].mxu0  ;;  %v6406_v43 = vpop.f32.mrb[31].mxu1  ;;  %v8823_v36 = vld [vmem:[#allocation4 + $0x78] ss:$12 sps:$4 sm:$0xff]  }
 0x34f   :  { %v5773_v61 = vmul.f32 -1.442695, %v957_v30  ;;  %v8819_v30 = vld [vmem:[#allocation4 + $0x7c] ss:$12 sps:$4 sm:$0xff]   ;;  %v8827_v38 = vld [vmem:[#allocation4 + $0x94] ss:$12 sps:$4 sm:$0xff]  }
 0x350   :  { %7407 = vpow2.f32 %v5772_v41  ;;  %v8831_v41 = vld [vmem:[#allocation4 + $0x90] ss:$12 sps:$4 sm:$0xff]   ;;  %v8835_v33 = vld [vmem:[#allocation4 + $0xac] ss:$12 sps:$4 sm:$0xff]   ;;  %v8839_v43 = vld [vmem:[#allocation4 + $0xa8] ss:$12 sps:$4 sm:$0xff]  }
 0x351   :  { %7409 = vpow2.f32 %v5773_v61 }
 0x35a   :  { %v7408_v1 = vpop.eup %7407 }
 0x35b   :  { %v964_v2 = vadd.f32 1.0, %v7408_v1  ;;  %v7410_v9 = vpop.eup %7409 }
 0x35c   :  { %v965_v11 = vadd.f32 1.0, %v7410_v9 }
 0x35d   :  { %7411 = vrcp.f32 %v964_v2 }
 0x367   :  { %v7412_v7 = vpop.eup %7411 }
 0x368   :  { %v971_v4 = vmul.f32 %v7412_v7, %v970_v55 }
 0x36a   :  { %v972_v10 = vadd.f32 %v971_v4, %v8714_v6  ;;  %v8811_v6 = vld [vmem:[#allocation4 + $0x64] ss:$12 sps:$4 sm:$0xff]  }
 0x36c   :  { %7413 = vtanh.f32 %v972_v10 }
 0x36d   :  { %7415 = vrcp.f32 %v965_v11 }
 0x376   :  { %v7414_v8 = vpop.eup %7413 }
 0x377   :  { %v974_v16 = vsub.f32 %v8730_v12, %v7414_v8  ;;  %v7416_v21 = vpop.eup %7415 }
 0x379   :  { %v975_v25 = vmul.f32 %v7416_v21, %v974_v16 }
 0x37b   :  { %v8790_v26 = vadd.f32 %v7414_v8, %v975_v25 }
 0x37d   :  { %v977_v29 = vpack.c.bf16 %v8790_v26, %v8790_v26 }
 0x37f   :  { %1011 = vmatmul.mubr.bf16.vlgmr.msra.gmra.mrb[8].mxu0 %v977_v29  ;;  %6424 = vmatmul.mubr.bf16.vlgmr.msra.gmra.mrb[32].mxu1 %v977_v29 }
 0x380   :  { %1082 = vmatpush1.bf16.msra.mxu0 %v8734_v5  ;;  %6428 = vmatpush3.bf16.msra.mxu1 %v8615_v45 }
 0x381   :  { %1083 = vmatprep.subr.bf16.mxu0 %v8738_v54  ;;  %6429 = vmatprep.subr.bf16.mxu1 %v10578_v46 }
 0x382   :  { %1113 = vmatprep.mubr.bf16.mxu0 %v10576_v0  ;;  %6443 = vmatprep.mubr.msk.bf16.mxu1 %vm8181_vm0, %v10578_v46 }
 0x384   :  { %1084 = vmatpush1.bf16.msra.mxu0 %v8745_v63  ;;  %6430 = vmatpush3.bf16.msra.mxu1 %v8620_v47 }
 0x385   :  { %1085 = vmatprep.subr.bf16.mxu0 %v8749_v19  ;;  %6431 = vmatprep.subr.bf16.mxu1 %v10578_v46 }
 0x388   :  { %1086 = vmatpush1.bf16.msra.mxu0 %v8753_v27  ;;  %6432 = vmatpush3.bf16.msra.mxu1 %v8626_v48 }
 0x389   :  { %1087 = vmatprep.subr.bf16.mxu0 %v8757_v31  ;;  %6433 = vmatprep.subr.bf16.mxu1 %v10578_v46 }
 0x38c   :  { %1088 = vmatpush1.bf16.msra.mxu0 %v8761_v34  ;;  %6434 = vmatpush3.bf16.msra.mxu1 %v8630_v49 }
 0x38d   :  { %1089 = vmatprep.subr.bf16.mxu0 %v8811_v6  ;;  %6435 = vmatprep.subr.bf16.mxu1 %v10578_v46 }
 0x390   :  { %1090 = vmatpush1.bf16.msra.mxu0 %v8815_v22  ;;  %6436 = vmatpush3.bf16.msra.mxu1 %v8636_v50 }
 0x391   :  { %1091 = vmatprep.subr.bf16.mxu0 %v8819_v30  ;;  %6437 = vmatprep.subr.bf16.mxu1 %v10578_v46 }
 0x394   :  { %1092 = vmatpush1.bf16.msra.mxu0 %v8823_v36  ;;  %6438 = vmatpush3.bf16.msra.mxu1 %v8640_v51 }
 0x395   :  { %1093 = vmatprep.subr.bf16.mxu0 %v8827_v38  ;;  %6439 = vmatprep.subr.bf16.mxu1 %v10578_v46 }
 0x398   :  { %1094 = vmatpush1.bf16.msra.mxu0 %v8831_v41  ;;  %6440 = vmatpush3.bf16.msra.mxu1 %v8644_v52 }
 0x399   :  { %1095 = vmatprep.subr.bf16.mxu0 %v8835_v33  ;;  %6441 = vmatprep.subr.bf16.mxu1 %v10578_v46 }
 0x39c   :  { %1096 = vmatpush1.bf16.msra.mxu0 %v8839_v43  ;;  %6442 = vmatpush3.bf16.msra.mxu1 %v8648_v53 }
 0x39d   :  { %1184 = vmatprep.subr.bf16.mxu0 %v8781_v18  ;;  %6447 = vmatprep.subr.bf16.mxu1 %v10578_v46 }
 0x452   :  { %v1012_v61 = vpop.f32.mrb[8].mxu0  ;;  %v1053_v1 = vpop.f32.mrb[32].mxu1 }
 0x453   :  { %v1059_v2 = vadd.f32 %v1012_v61, %v8683_v13  ;;  %v1014_v9 = vpop.f32.mrb[9].mxu0  ;;  %v6425_v55 = vpop.f32.mrb[33].mxu1  ;;  %v1073_v46 = vadd.f32 %v8727_v23, %v1053_v1 }
 0x454   :  { %v1060_v7 = vadd.f32 %v1014_v9, %v8685_v15  ;;  %v1016_v4 = vpop.f32.mrb[10].mxu0  ;;  %v1056_v10 = vpop.f32.mrb[34].mxu1 }
 0x455   :  { %v5774_v11 = vmul.f32 -1.442695, %v1059_v2  ;;  %v1017_v8 = vpop.f32.mrb[11].mxu0  ;;  %v6426_v16 = vpop.f32.mrb[35].mxu1 }
 0x456   :  { %v5775_v21 = vmul.f32 -1.442695, %v1060_v7 }
 0x457   :  { %7417 = vpow2.f32 %v5774_v11 }
 0x458   :  { %7419 = vpow2.f32 %v5775_v21 }
 0x461   :  { %v7418_v25 = vpop.eup %7417 }
 0x462   :  { %v1067_v29 = vadd.f32 1.0, %v7418_v25  ;;  %v7420_v0 = vpop.eup %7419 }
 0x463   :  { %v1068_v55 = vadd.f32 1.0, %v7420_v0  ;;  %v10602_v0 = vmov 0.0  }
 0x464   :  { %7421 = vrcp.f32 %v1067_v29 }
 0x46e   :  { %v7422_v39 = vpop.eup %7421 }
 0x46f   :  { %v1074_v13 = vmul.f32 %v7422_v39, %v1073_v46  ;;  %v10603_v46 = vmov 0  }
 0x471   :  { %v1075_v61 = vadd.f32 %v1074_v13, %v8710_v62 }
 0x473   :  { %7423 = vtanh.f32 %v1075_v61 }
 0x474   :  { %7425 = vrcp.f32 %v1068_v55 }
 0x47d   :  { %v7424_v15 = vpop.eup %7423 }
 0x47e   :  { %v1077_v2 = vsub.f32 %v8790_v26, %v7424_v15  ;;  %v7426_v9 = vpop.eup %7425 }
 0x480   :  { %v1078_v4 = vmul.f32 %v7426_v9, %v1077_v2 }
 0x482   :  { %v8850_v7 = vadd.f32 %v7424_v15, %v1078_v4 }
 0x484   :  { %v1080_v10 = vpack.c.bf16 %v8850_v7, %v8850_v7 }
 0x486   :  { %1114 = vmatmul.mubr.bf16.vlgmr.msra.gmra.mrb[12].mxu0 %v1080_v10  ;;  %6444 = vmatmul.mubr.bf16.vlgmr.msra.gmra.mrb[36].mxu1 %v1080_v10 }
 0x487   :  { %1185 = vmatpush1.bf16.msra.mxu0 %v8734_v5  ;;  %6448 = vmatpush3.bf16.msra.mxu1 %v8615_v45 }
 0x488   :  { %1186 = vmatprep.subr.bf16.mxu0 %v8738_v54  ;;  %6449 = vmatprep.subr.bf16.mxu1 %v10602_v0 }
 0x489   :  { %1216 = vmatprep.mubr.bf16.mxu0 %v10603_v46  ;;  %6463 = vmatprep.mubr.msk.bf16.mxu1 %vm8181_vm0, %v10602_v0 }
 0x48b   :  { %1187 = vmatpush1.bf16.msra.mxu0 %v8745_v63  ;;  %6450 = vmatpush3.bf16.msra.mxu1 %v8620_v47 }
 0x48c   :  { %1188 = vmatprep.subr.bf16.mxu0 %v8749_v19  ;;  %6451 = vmatprep.subr.bf16.mxu1 %v10602_v0 }
 0x48f   :  { %1189 = vmatpush1.bf16.msra.mxu0 %v8753_v27  ;;  %6452 = vmatpush3.bf16.msra.mxu1 %v8626_v48 }
 0x490   :  { %1190 = vmatprep.subr.bf16.mxu0 %v8757_v31  ;;  %6453 = vmatprep.subr.bf16.mxu1 %v10602_v0 }
 0x493   :  { %1191 = vmatpush1.bf16.msra.mxu0 %v8761_v34  ;;  %6454 = vmatpush3.bf16.msra.mxu1 %v8630_v49 }
 0x494   :  { %1192 = vmatprep.subr.bf16.mxu0 %v8811_v6  ;;  %6455 = vmatprep.subr.bf16.mxu1 %v10602_v0 }
 0x497   :  { %1193 = vmatpush1.bf16.msra.mxu0 %v8815_v22  ;;  %6456 = vmatpush3.bf16.msra.mxu1 %v8636_v50 }
 0x498   :  { %1194 = vmatprep.subr.bf16.mxu0 %v8819_v30  ;;  %6457 = vmatprep.subr.bf16.mxu1 %v10602_v0 }
 0x49b   :  { %1195 = vmatpush1.bf16.msra.mxu0 %v8823_v36  ;;  %6458 = vmatpush3.bf16.msra.mxu1 %v8640_v51 }
 0x49c   :  { %1196 = vmatprep.subr.bf16.mxu0 %v8827_v38  ;;  %6459 = vmatprep.subr.bf16.mxu1 %v10602_v0 }
 0x49f   :  { %1197 = vmatpush1.bf16.msra.mxu0 %v8831_v41  ;;  %6460 = vmatpush3.bf16.msra.mxu1 %v8644_v52 }
 0x4a0   :  { %1198 = vmatprep.subr.bf16.mxu0 %v8835_v33  ;;  %6461 = vmatprep.subr.bf16.mxu1 %v10602_v0 }
 0x4a3   :  { %1199 = vmatpush1.bf16.msra.mxu0 %v8839_v43  ;;  %6462 = vmatpush3.bf16.msra.mxu1 %v8648_v53 }
 0x4a4   :  { %1287 = vmatprep.subr.bf16.mxu0 %v8781_v18  ;;  %6467 = vmatprep.subr.bf16.mxu1 %v10602_v0 }
 0x559   :  { %v1115_v39 = vpop.f32.mrb[12].mxu0  ;;  %v1156_v62 = vpop.f32.mrb[36].mxu1 }
 0x55a   :  { %v1162_v1 = vadd.f32 %v1115_v39, %v8687_v17  ;;  %v1117_v11 = vpop.f32.mrb[13].mxu0  ;;  %v6445_v8 = vpop.f32.mrb[37].mxu1  ;;  %v1176_v4 = vadd.f32 %v8727_v23, %v1156_v62 }
 0x55b   :  { %v1163_v16 = vadd.f32 %v1117_v11, %v8689_v20  ;;  %v1119_v21 = vpop.f32.mrb[14].mxu0  ;;  %v1159_v25 = vpop.f32.mrb[38].mxu1 }
 0x55c   :  { %v5776_v29 = vmul.f32 -1.442695, %v1162_v1  ;;  %v1120_v13 = vpop.f32.mrb[15].mxu0  ;;  %v6446_v61 = vpop.f32.mrb[39].mxu1 }
 0x55d   :  { %v5777_v55 = vmul.f32 -1.442695, %v1163_v16 }
 0x55e   :  { %7427 = vpow2.f32 %v5776_v29 }
 0x55f   :  { %7429 = vpow2.f32 %v5777_v55 }
 0x568   :  { %v7428_v15 = vpop.eup %7427 }
 0x569   :  { %v1170_v2 = vadd.f32 1.0, %v7428_v15  ;;  %v7430_v9 = vpop.eup %7429 }
 0x56a   :  { %v1171_v8 = vadd.f32 1.0, %v7430_v9 }
 0x56b   :  { %7431 = vrcp.f32 %v1170_v2 }
 0x575   :  { %v7432_v10 = vpop.eup %7431 }
 0x576   :  { %v1177_v17 = vmul.f32 %v7432_v10, %v1176_v4 }
 0x578   :  { %v1178_v39 = vadd.f32 %v1177_v17, %v8712_v3 }
 0x57a   :  { %7433 = vtanh.f32 %v1178_v39 }
 0x57b   :  { %7435 = vrcp.f32 %v1171_v8 }
 0x584   :  { %v7434_v20 = vpop.eup %7433 }
 0x585   :  { %v1180_v1 = vsub.f32 %v8850_v7, %v7434_v20  ;;  %v7436_v11 = vpop.eup %7435 }
 0x587   :  { %v1181_v21 = vmul.f32 %v7436_v11, %v1180_v1 }
 0x589   :  { %v8894_v16 = vadd.f32 %v7434_v20, %v1181_v21 }
 0x58b   :  { %v1183_v25 = vpack.c.bf16 %v8894_v16, %v8894_v16 }
 0x58d   :  { %1217 = vmatmul.mubr.bf16.vlgmr.msra.gmra.mrb[16].mxu0 %v1183_v25  ;;  %6464 = vmatmul.mubr.bf16.vlgmr.msra.gmra.mrb[40].mxu1 %v1183_v25 }
 0x58e   :  { %1288 = vmatpush1.bf16.msra.mxu0 %v8734_v5  ;;  %6468 = vmatpush3.bf16.msra.mxu1 %v8615_v45 }
 0x58f   :  { %1289 = vmatprep.subr.bf16.mxu0 %v8738_v54  ;;  %6469 = vmatprep.subr.bf16.mxu1 %v10602_v0 }
 0x590   :  { %1319 = vmatprep.mubr.bf16.mxu0 %v10603_v46  ;;  %6483 = vmatprep.mubr.msk.bf16.mxu1 %vm8181_vm0, %v10602_v0 }
 0x592   :  { %1290 = vmatpush1.bf16.msra.mxu0 %v8745_v63  ;;  %6470 = vmatpush3.bf16.msra.mxu1 %v8620_v47 }
 0x593   :  { %1291 = vmatprep.subr.bf16.mxu0 %v8749_v19  ;;  %6471 = vmatprep.subr.bf16.mxu1 %v10602_v0 }
 0x596   :  { %1292 = vmatpush1.bf16.msra.mxu0 %v8753_v27  ;;  %6472 = vmatpush3.bf16.msra.mxu1 %v8626_v48 }
 0x597   :  { %1293 = vmatprep.subr.bf16.mxu0 %v8757_v31  ;;  %6473 = vmatprep.subr.bf16.mxu1 %v10602_v0 }
 0x59a   :  { %1294 = vmatpush1.bf16.msra.mxu0 %v8761_v34  ;;  %6474 = vmatpush3.bf16.msra.mxu1 %v8630_v49 }
 0x59b   :  { %1295 = vmatprep.subr.bf16.mxu0 %v8811_v6  ;;  %6475 = vmatprep.subr.bf16.mxu1 %v10602_v0 }
 0x59e   :  { %1296 = vmatpush1.bf16.msra.mxu0 %v8815_v22  ;;  %6476 = vmatpush3.bf16.msra.mxu1 %v8636_v50 }
 0x59f   :  { %1297 = vmatprep.subr.bf16.mxu0 %v8819_v30  ;;  %6477 = vmatprep.subr.bf16.mxu1 %v10602_v0 }
 0x5a2   :  { %1298 = vmatpush1.bf16.msra.mxu0 %v8823_v36  ;;  %6478 = vmatpush3.bf16.msra.mxu1 %v8640_v51 }
 0x5a3   :  { %1299 = vmatprep.subr.bf16.mxu0 %v8827_v38  ;;  %6479 = vmatprep.subr.bf16.mxu1 %v10602_v0 }
 0x5a6   :  { %1300 = vmatpush1.bf16.msra.mxu0 %v8831_v41  ;;  %6480 = vmatpush3.bf16.msra.mxu1 %v8644_v52 }
 0x5a7   :  { %1301 = vmatprep.subr.bf16.mxu0 %v8835_v33  ;;  %6481 = vmatprep.subr.bf16.mxu1 %v10602_v0 }
 0x5aa   :  { %1302 = vmatpush1.bf16.msra.mxu0 %v8839_v43  ;;  %6482 = vmatpush3.bf16.msra.mxu1 %v8648_v53 }
 0x5ab   :  { %1390 = vmatprep.subr.bf16.mxu0 %v8781_v18  ;;  %6487 = vmatprep.subr.bf16.mxu1 %v10602_v0 }
 0x660   :  { %v1218_v45 = vpop.f32.mrb[16].mxu0  ;;  %v1259_v47 = vpop.f32.mrb[40].mxu1 }
 0x661   :  { %v1265_v48 = vadd.f32 %v1218_v45, %v8691_v24  ;;  %v1220_v49 = vpop.f32.mrb[17].mxu0  ;;  %v6465_v50 = vpop.f32.mrb[41].mxu1  ;;  %v1279_v10 = vadd.f32 %v8727_v23, %v1259_v47  ;;  %v8943_v45 = vld [vmem:[#allocation4 + $0x8] ss:$12 sps:$4 sm:$0xff]   ;;  %v8958_v47 = vld [vmem:[#allocation4 + $0x38] ss:$12 sps:$4 sm:$0xff]  }
 0x662   :  { %v1266_v3 = vadd.f32 %v1220_v49, %v8693_v28  ;;  %v1222_v62 = vpop.f32.mrb[18].mxu0  ;;  %v1262_v29 = vpop.f32.mrb[42].mxu1  ;;  %v8970_v49 = vld [vmem:[#allocation4 + $0x68] ss:$12 sps:$4 sm:$0xff]  }
 0x663   :  { %v5778_v13 = vmul.f32 -1.442695, %v1265_v48  ;;  %v1223_v61 = vpop.f32.mrb[19].mxu0  ;;  %v6466_v55 = vpop.f32.mrb[43].mxu1  ;;  %v8964_v48 = vld [vmem:[#allocation4 + $0x50] ss:$12 sps:$4 sm:$0xff]  }
 0x664   :  { %v5779_v15 = vmul.f32 -1.442695, %v1266_v3 }
 0x665   :  { %7437 = vpow2.f32 %v5778_v13 }
 0x666   :  { %7439 = vpow2.f32 %v5779_v15 }
 0x66f   :  { %v7438_v2 = vpop.eup %7437 }
 0x670   :  { %v1273_v9 = vadd.f32 1.0, %v7438_v2  ;;  %v7440_v4 = vpop.eup %7439 }
 0x671   :  { %v1274_v8 = vadd.f32 1.0, %v7440_v4 }
 0x672   :  { %7441 = vrcp.f32 %v1273_v9 }
 0x67c   :  { %v7442_v17 = vpop.eup %7441 }
 0x67d   :  { %v1280_v24 = vmul.f32 %v7442_v17, %v1279_v10 }
 0x67f   :  { %v1281_v39 = vadd.f32 %v1280_v24, %v8718_v60  ;;  %v8952_v60 = vld [vmem:[#allocation4 + $0x20] ss:$12 sps:$4 sm:$0xff]  }
 0x681   :  { %7443 = vtanh.f32 %v1281_v39 }
 0x682   :  { %7445 = vrcp.f32 %v1274_v8 }
 0x68b   :  { %v7444_v28 = vpop.eup %7443 }
 0x68c   :  { %v1283_v20 = vsub.f32 %v8894_v16, %v7444_v28  ;;  %v7446_v1 = vpop.eup %7445 }
 0x68e   :  { %v1284_v11 = vmul.f32 %v7446_v1, %v1283_v20 }
 0x690   :  { %v8938_v21 = vadd.f32 %v7444_v28, %v1284_v11 }
 0x692   :  { %v1286_v25 = vpack.c.bf16 %v8938_v21, %v8938_v21 }
 0x694   :  { %1320 = vmatmul.mubr.bf16.vlgmr.msra.gmra.mrb[20].mxu0 %v1286_v25  ;;  %6484 = vmatmul.mubr.bf16.vlgmr.msra.gmra.mrb[44].mxu1 %v1286_v25 }
 0x695   :  { %1391 = vmatpush1.bf16.msra.mxu0 %v8734_v5  ;;  %6488 = vmatpush3.bf16.msra.mxu1 %v8943_v45 }
 0x696   :  { %1392 = vmatprep.subr.bf16.mxu0 %v8738_v54  ;;  %6489 = vmatprep.subr.bf16.mxu1 %v10602_v0 }
 0x697   :  { %1422 = vmatprep.mubr.bf16.mxu0 %v10603_v46  ;;  %6503 = vmatprep.mubr.msk.bf16.mxu1 %vm8181_vm0, %v10602_v0 }
 0x699   :  { %1393 = vmatpush1.bf16.msra.mxu0 %v8745_v63  ;;  %6490 = vmatpush3.bf16.msra.mxu1 %v8952_v60 }
 0x69a   :  { %1394 = vmatprep.subr.bf16.mxu0 %v8749_v19  ;;  %6491 = vmatprep.subr.bf16.mxu1 %v10602_v0 }
 0x69d   :  { %1395 = vmatpush1.bf16.msra.mxu0 %v8753_v27  ;;  %6492 = vmatpush3.bf16.msra.mxu1 %v8958_v47 }
 0x69e   :  { %1396 = vmatprep.subr.bf16.mxu0 %v8757_v31  ;;  %6493 = vmatprep.subr.bf16.mxu1 %v10602_v0 }
 0x6a1   :  { %1397 = vmatpush1.bf16.msra.mxu0 %v8761_v34  ;;  %6494 = vmatpush3.bf16.msra.mxu1 %v8964_v48 }
 0x6a2   :  { %1398 = vmatprep.subr.bf16.mxu0 %v8811_v6  ;;  %6495 = vmatprep.subr.bf16.mxu1 %v10602_v0 }
 0x6a5   :  { %1399 = vmatpush1.bf16.msra.mxu0 %v8815_v22  ;;  %6496 = vmatpush3.bf16.msra.mxu1 %v8970_v49 }
 0x6a6   :  { %1400 = vmatprep.subr.bf16.mxu0 %v8819_v30  ;;  %6497 = vmatprep.subr.bf16.mxu1 %v10602_v0 }
 0x6a9   :  { %1401 = vmatpush1.bf16.msra.mxu0 %v8823_v36  ;;  %6498 = vmatpush3.bf16.msra.mxu1 %v8640_v51 }
 0x6aa   :  { %1402 = vmatprep.subr.bf16.mxu0 %v8827_v38  ;;  %6499 = vmatprep.subr.bf16.mxu1 %v10602_v0 }
 0x6ad   :  { %1403 = vmatpush1.bf16.msra.mxu0 %v8831_v41  ;;  %6500 = vmatpush3.bf16.msra.mxu1 %v8644_v52 }
 0x6ae   :  { %1404 = vmatprep.subr.bf16.mxu0 %v8835_v33  ;;  %6501 = vmatprep.subr.bf16.mxu1 %v10602_v0 }
 0x6b1   :  { %1405 = vmatpush1.bf16.msra.mxu0 %v8839_v43  ;;  %6502 = vmatpush3.bf16.msra.mxu1 %v8648_v53 }
 0x6b2   :  { %1493 = vmatprep.subr.bf16.mxu0 %v8781_v18  ;;  %6507 = vmatprep.subr.bf16.mxu1 %v10602_v0 }
 0x767   :  { %v1321_v51 = vpop.f32.mrb[20].mxu0  ;;  %v1362_v50 = vpop.f32.mrb[44].mxu1 }
 0x768   :  { %v1368_v3 = vadd.f32 %v1321_v51, %v8695_v32  ;;  %v1323_v62 = vpop.f32.mrb[21].mxu0  ;;  %v6485_v29 = vpop.f32.mrb[45].mxu1  ;;  %v1382_v10 = vadd.f32 %v8727_v23, %v1362_v50 }
 0x769   :  { %v1369_v52 = vadd.f32 %v1323_v62, %v8697_v35  ;;  %v1325_v13 = vpop.f32.mrb[22].mxu0  ;;  %v1365_v61 = vpop.f32.mrb[46].mxu1 }
 0x76a   :  { %v5780_v55 = vmul.f32 -1.442695, %v1368_v3  ;;  %v1326_v15 = vpop.f32.mrb[23].mxu0  ;;  %v6486_v2 = vpop.f32.mrb[47].mxu1  ;;  %v7193_v13 = vld [vmem:[#allocation7] ss:$12 sps:$4 sm:$0xff]  }
 0x76b   :  { %v5781_v9 = vmul.f32 -1.442695, %v1369_v52  ;;  %v7197_v15 = vld [vmem:[#allocation7 + $0x18] ss:$12 sps:$4 sm:$0xff]   ;;  %v7203_v2 = vld [vmem:[#allocation7 + $0x34] ss:$12 sps:$4 sm:$0xff]  }
 0x76c   :  { %7447 = vpow2.f32 %v5780_v55  ;;  %v7199_v55 = vld [vmem:[#allocation7 + $0x1c] ss:$12 sps:$4 sm:$0xff]  }
 0x76d   :  { %7449 = vpow2.f32 %v5781_v9  ;;  %v7204_v9 = vld [vmem:[#allocation7 + $0x38] ss:$12 sps:$4 sm:$0xff]  }
 0x776   :  { %v7448_v53 = vpop.eup %7447 }
 0x777   :  { %v1376_v4 = vadd.f32 1.0, %v7448_v53  ;;  %v7450_v18 = vpop.eup %7449  ;;  %v7201_v53 = vld [vmem:[#allocation7 + $0x30] ss:$12 sps:$4 sm:$0xff]  }
 0x778   :  { %v1377_v39 = vadd.f32 1.0, %v7450_v18  ;;  %v7208_v18 = vld [vmem:[#allocation7 + $0x50] ss:$12 sps:$4 sm:$0xff]  }
 0x779   :  { %7451 = vrcp.f32 %v1376_v4  ;;  %v7207_v4 = vld [vmem:[#allocation7 + $0x4c] ss:$12 sps:$4 sm:$0xff]  }
 0x783   :  { %v7452_v17 = vpop.eup %7451 }
 0x784   :  { %v1383_v32 = vmul.f32 %v7452_v17, %v1382_v10  ;;  %v7212_v10 = vld [vmem:[#allocation7 + $0x68] ss:$12 sps:$4 sm:$0xff]   ;;  %v7209_v17 = vld [vmem:[#allocation7 + $0x60] ss:$12 sps:$4 sm:$0xff]  }
 0x786   :  { %v1384_v24 = vadd.f32 %v1383_v32, %v8722_v14  ;;  %v7738_v14 = vld [vmem:[#allocation4 + $0x80] ss:$12 sps:$4 sm:$0xff]  }
 0x787   :  { %v7215_v32 = vld [vmem:[#allocation7 + $0x7c] ss:$12 sps:$4 sm:$0xff]  }
 0x788   :  { %7453 = vtanh.f32 %v1384_v24  ;;  %v7216_v24 = vld [vmem:[#allocation7 + $0x80] ss:$12 sps:$4 sm:$0xff]  }
 0x789   :  { %7455 = vrcp.f32 %v1377_v39  ;;  %v7213_v39 = vld [vmem:[#allocation7 + $0x78] ss:$12 sps:$4 sm:$0xff]  }
 0x792   :  { %v7454_v35 = vpop.eup %7453 }
 0x793   :  { %v1386_v8 = vsub.f32 %v8938_v21, %v7454_v35  ;;  %v7456_v28 = vpop.eup %7455 }
 0x795   :  { %v1387_v20 = vmul.f32 %v7456_v28, %v1386_v8  ;;  %v7220_v8 = vld [vmem:[#allocation7 + $0x98] ss:$12 sps:$4 sm:$0xff]   ;;  %v7217_v28 = vld [vmem:[#allocation7 + $0x90] ss:$12 sps:$4 sm:$0xff]  }
 0x797   :  { %v8992_v1 = vadd.f32 %v7454_v35, %v1387_v20  ;;  %v7219_v35 = vld [vmem:[#allocation7 + $0x94] ss:$12 sps:$4 sm:$0xff]   ;;  %v7223_v20 = vld [vmem:[#allocation7 + $0xac] ss:$12 sps:$4 sm:$0xff]  }
 0x799   :  { %v1389_v11 = vpack.c.bf16 %v8992_v1, %v8992_v1 }
 0x79b   :  { %1423 = vmatmul.mubr.bf16.vlgmr.msra.gmra.mrb[24].mxu0 %v1389_v11  ;;  %6504 = vmatmul.mubr.bf16.vlgmr.msra.gmra.mrb[48].mxu1 %v1389_v11  ;;  %v7224_v11 = vld [vmem:[#allocation7 + $0xb0] ss:$12 sps:$4 sm:$0xff]  }
 0x79c   :  { %1494 = vmatpush1.bf16.msra.mxu0 %v8734_v5  ;;  %6508 = vmatpush3.bf16.msra.mxu1 %v8943_v45  ;;  %v7739_v5 = vld [vmem:[#allocation4 + $0x98] ss:$12 sps:$4 sm:$0xff]  }
 0x79d   :  { %1495 = vmatprep.subr.bf16.mxu0 %v8738_v54  ;;  %6509 = vmatprep.subr.bf16.mxu1 %v10602_v0  ;;  %v7740_v54 = vld [vmem:[#allocation4 + $0xb0] ss:$12 sps:$4 sm:$0xff]  }
 0x79e   :  { %1525 = vmatprep.mubr.bf16.mxu0 %v10603_v46  ;;  %6523 = vmatprep.mubr.msk.bf16.mxu1 %vm8181_vm0, %v10602_v0 }
 0x7a0   :  { %1496 = vmatpush1.bf16.msra.mxu0 %v8745_v63  ;;  %6510 = vmatpush3.bf16.msra.mxu1 %v8952_v60  ;;  %v7195_v63 = vld [vmem:[#allocation7 + $0x4] ss:$12 sps:$4 sm:$0xff]  }
 0x7a1   :  { %1497 = vmatprep.subr.bf16.mxu0 %v8749_v19  ;;  %6511 = vmatprep.subr.bf16.mxu1 %v10602_v0  ;;  %v7196_v19 = vld [vmem:[#allocation7 + $0x8] ss:$12 sps:$4 sm:$0xff]  }
 0x7a4   :  { %1498 = vmatpush1.bf16.msra.mxu0 %v8753_v27  ;;  %6512 = vmatpush3.bf16.msra.mxu1 %v8958_v47 }
 0x7a5   :  { %1499 = vmatprep.subr.bf16.mxu0 %v8757_v31  ;;  %6513 = vmatprep.subr.bf16.mxu1 %v10602_v0 }
 0x7a8   :  { %1500 = vmatpush1.bf16.msra.mxu0 %v8761_v34  ;;  %6514 = vmatpush3.bf16.msra.mxu1 %v8964_v48 }
 0x7a9   :  { %1501 = vmatprep.subr.bf16.mxu0 %v8811_v6  ;;  %6515 = vmatprep.subr.bf16.mxu1 %v10602_v0 }
 0x7ac   :  { %1502 = vmatpush1.bf16.msra.mxu0 %v8815_v22  ;;  %6516 = vmatpush3.bf16.msra.mxu1 %v8970_v49 }
 0x7ad   :  { %1503 = vmatprep.subr.bf16.mxu0 %v8819_v30  ;;  %6517 = vmatprep.subr.bf16.mxu1 %v10602_v0 }
 0x7b0   :  { %1504 = vmatpush1.bf16.msra.mxu0 %v8823_v36  ;;  %6518 = vmatpush3.bf16.msra.mxu1 %v7738_v14  ;;  %v7221_v14 = vld [vmem:[#allocation7 + $0xa8] ss:$12 sps:$4 sm:$0xff]  }
 0x7b1   :  { %1505 = vmatprep.subr.bf16.mxu0 %v8827_v38  ;;  %6519 = vmatprep.subr.bf16.mxu1 %v10602_v0 }
 0x7b4   :  { %1506 = vmatpush1.bf16.msra.mxu0 %v8831_v41  ;;  %6520 = vmatpush3.bf16.msra.mxu1 %v7739_v5  ;;  %v1596_v5 = vpack.c.bf16 %v8894_v16, %v8850_v7  ;;  %v9052_v7 = vld [vmem:[#allocation9 + $0x1c] ss:$12 sps:$4 sm:$0xff]   ;;  %v9054_v16 = vld [vmem:[#allocation9 + $0x18] ss:$12 sps:$4 sm:$0xff]  }
 0x7b5   :  { %1507 = vmatprep.subr.bf16.mxu0 %v8835_v33  ;;  %6521 = vmatprep.subr.bf16.mxu1 %v10602_v0 }
 0x7b8   :  { %1508 = vmatpush1.bf16.msra.mxu0 %v8839_v43  ;;  %6522 = vmatpush3.bf16.msra.mxu1 %v7740_v54  ;;  %v1597_v54 = vpack.c.bf16 %v8992_v1, %v8938_v21  ;;  %v9058_v21 = vld [vmem:[#allocation9 + $0x34] ss:$12 sps:$4 sm:$0xff]  }
 0x7b9   :  { %1776 = vmatprep.subr.bf16.mxu0 %v7195_v63  ;;  %6527 = vmatprep.subr.bf16.mxu1 %v7196_v19  ;;  %v9046_v63 = vld [vmem:[#allocation9 + $0x4] ss:$12 sps:$4 sm:$0xff]  }
 0x86e   :  { %v1424_v27 = vpop.f32.mrb[24].mxu0  ;;  %v1465_v31 = vpop.f32.mrb[48].mxu1 }
 0x86f   :  { %v1471_v34 = vadd.f32 %v1424_v27, %v8699_v37  ;;  %v1426_v6 = vpop.f32.mrb[25].mxu0  ;;  %v6505_v22 = vpop.f32.mrb[49].mxu1  ;;  %v1485_v48 = vadd.f32 %v8727_v23, %v1465_v31  ;;  %v7200_v23 = vld [vmem:[#allocation7 + $0x20] ss:$12 sps:$4 sm:$0xff]   ;;  %v9066_v31 = vld [vmem:[#allocation9 + $0x48] ss:$12 sps:$4 sm:$0xff]  }
 0x870   :  { %v1472_v30 = vadd.f32 %v1426_v6, %v8703_v40  ;;  %v1428_v36 = vpop.f32.mrb[26].mxu0  ;;  %v1468_v38 = vpop.f32.mrb[50].mxu1  ;;  %v9064_v27 = vld [vmem:[#allocation9 + $0x4c] ss:$12 sps:$4 sm:$0xff]   ;;  %v9076_v22 = vld [vmem:[#allocation9 + $0x7c] ss:$12 sps:$4 sm:$0xff]  }
 0x871   :  { %v5782_v41 = vmul.f32 -1.442695, %v1471_v34  ;;  %v1429_v33 = vpop.f32.mrb[27].mxu0  ;;  %v6506_v25 = vpop.f32.mrb[51].mxu1  ;;  %v9070_v34 = vld [vmem:[#allocation9 + $0x64] ss:$12 sps:$4 sm:$0xff]  }
 0x872   :  { %v5783_v43 = vmul.f32 -1.442695, %v1472_v30  ;;  %v9072_v6 = vld [vmem:[#allocation9 + $0x60] ss:$12 sps:$4 sm:$0xff]   ;;  %v9078_v30 = vld [vmem:[#allocation9 + $0x78] ss:$12 sps:$4 sm:$0xff]  }
 0x873   :  { %7457 = vpow2.f32 %v5782_v41  ;;  %v9082_v36 = vld [vmem:[#allocation9 + $0x94] ss:$12 sps:$4 sm:$0xff]   ;;  %v9086_v41 = vld [vmem:[#allocation9 + $0x90] ss:$12 sps:$4 sm:$0xff]   ;;  %v9088_v33 = vld [vmem:[#allocation9 + $0xac] ss:$12 sps:$4 sm:$0xff]  }
 0x874   :  { %7459 = vpow2.f32 %v5783_v43  ;;  %v9084_v38 = vld [vmem:[#allocation9 + $0x8] ss:$12 sps:$4 sm:$0xff]   ;;  %v9092_v25 = vld [vmem:[#allocation9 + $0x20] ss:$12 sps:$4 sm:$0xff]  }
 0x875   :  { %v9096_v43 = vld [vmem:[#allocation9 + $0xa8] ss:$12 sps:$4 sm:$0xff]  }
 0x87d   :  { %v7458_v45 = vpop.eup %7457 }
 0x87e   :  { %v1479_v60 = vadd.f32 1.0, %v7458_v45  ;;  %v7460_v47 = vpop.eup %7459  ;;  %v9102_v45 = vld [vmem:[#allocation9 + $0x38] ss:$12 sps:$4 sm:$0xff]  }
 0x87f   :  { %v1480_v50 = vadd.f32 1.0, %v7460_v47  ;;  %v9110_v47 = vld [vmem:[#allocation9 + $0x68] ss:$12 sps:$4 sm:$0xff]  }
 0x880   :  { %7461 = vrcp.f32 %v1479_v60  ;;  %v9106_v60 = vld [vmem:[#allocation9 + $0x50] ss:$12 sps:$4 sm:$0xff]  }
 0x88a   :  { %v7462_v49 = vpop.eup %7461 }
 0x88b   :  { %v1486_v37 = vmul.f32 %v7462_v49, %v1485_v48  ;;  %v9114_v48 = vld [vmem:[#allocation9 + $0x80] ss:$12 sps:$4 sm:$0xff]   ;;  %v9118_v49 = vld [vmem:[#allocation9 + $0x98] ss:$12 sps:$4 sm:$0xff]  }
 0x88d   :  { %v1487_v51 = vadd.f32 %v1486_v37, %v8716_v59  ;;  %v1595_v59 = vpack.c.bf16 %v8790_v26, %v8730_v12  ;;  %v7205_v12 = vld [vmem:[#allocation7 + $0x48] ss:$12 sps:$4 sm:$0xff]   ;;  %v7211_v26 = vld [vmem:[#allocation7 + $0x64] ss:$12 sps:$4 sm:$0xff]  }
 0x88e   :  { %v9122_v37 = vld [vmem:[#allocation9 + $0xb0] ss:$12 sps:$4 sm:$0xff]  }
 0x88f   :  { %7463 = vtanh.f32 %v1487_v51 }
 0x890   :  { %7465 = vrcp.f32 %v1480_v50 }
 0x899   :  { %v7464_v40 = vpop.eup %7463 }
 0x89a   :  { %v1489_v3 = vsub.f32 %v8992_v1, %v7464_v40  ;;  %v7466_v62 = vpop.eup %7465  ;;  %v9060_v1 = vld [vmem:[#allocation9 + $0x30] ss:$12 sps:$4 sm:$0xff]  }
 0x89c   :  { %v1490_v29 = vmul.f32 %v7466_v62, %v1489_v3 }
 0x89e   :  { %v9031_v52 = vadd.f32 %v7464_v40, %v1490_v29 }
 0x8a0   :  { %v1492_v61 = vpack.c.bf16 %v9031_v52, %v9031_v52 }
 0x8a2   :  { %1526 = vmatmul.mubr.bf16.vlgmr.msra.gmra.mrb[28].mxu0 %v1492_v61  ;;  %6524 = vmatmul.mubr.bf16.vlgmr.msra.gmra.mrb[52].mxu1 %v1492_v61 }
 0x8a3   :  { %1777 = vmatpush1.bf16.msra.mxu0 %v7193_v13  ;;  %6528 = vmatpush3.bf16.msra.mxu1 %v7196_v19  ;;  %v9048_v19 = vld [vmem:[#allocation9] ss:$12 sps:$4 sm:$0xff]  }
 0x8a4   :  { %6543 = vmatprep.mubr.bf16.mxu1 %v1595_v59  ;;  %1778 = vmatprep.subr.bf16.mxu0 %v7199_v55 }
 0x8a5   :  { %6529 = vmatprep.subr.bf16.mxu1 %v7200_v23  ;;  %1808 = vmatprep.mubr.bf16.mxu0 %v10603_v46 }
 0x8a7   :  { %1779 = vmatpush1.bf16.msra.mxu0 %v7197_v15  ;;  %6530 = vmatpush3.bf16.msra.mxu1 %v7200_v23 }
 0x8a8   :  { %1780 = vmatprep.subr.bf16.mxu0 %v7203_v2  ;;  %6531 = vmatprep.subr.bf16.mxu1 %v7204_v9 }
 0x8ab   :  { %1781 = vmatpush1.bf16.msra.mxu0 %v7201_v53  ;;  %6532 = vmatpush3.bf16.msra.mxu1 %v7204_v9 }
 0x8ac   :  { %1782 = vmatprep.subr.bf16.mxu0 %v7207_v4  ;;  %6533 = vmatprep.subr.bf16.mxu1 %v7208_v18 }
 0x8af   :  { %1783 = vmatpush1.bf16.msra.mxu0 %v7205_v12  ;;  %6534 = vmatpush3.bf16.msra.mxu1 %v7208_v18 }
 0x8b0   :  { %1784 = vmatprep.subr.bf16.mxu0 %v7211_v26  ;;  %6535 = vmatprep.subr.bf16.mxu1 %v7212_v10 }
 0x8b3   :  { %1785 = vmatpush1.bf16.msra.mxu0 %v7209_v17  ;;  %6536 = vmatpush3.bf16.msra.mxu1 %v7212_v10 }
 0x8b4   :  { %1786 = vmatprep.subr.bf16.mxu0 %v7215_v32  ;;  %6537 = vmatprep.subr.bf16.mxu1 %v7216_v24 }
 0x8b7   :  { %1787 = vmatpush1.bf16.msra.mxu0 %v7213_v39  ;;  %6538 = vmatpush3.bf16.msra.mxu1 %v7216_v24 }
 0x8b8   :  { %1788 = vmatprep.subr.bf16.mxu0 %v7219_v35  ;;  %6539 = vmatprep.subr.bf16.mxu1 %v7220_v8 }
 0x8bb   :  { %1789 = vmatpush1.bf16.msra.mxu0 %v7217_v28  ;;  %6540 = vmatpush3.bf16.msra.mxu1 %v7220_v8 }
 0x8bc   :  { %1790 = vmatprep.subr.bf16.mxu0 %v7223_v20  ;;  %6541 = vmatprep.subr.bf16.mxu1 %v7224_v11 }
 0x8bf   :  { %1791 = vmatpush1.bf16.msra.mxu0 %v7221_v14  ;;  %6542 = vmatpush3.bf16.msra.mxu1 %v7224_v11 }
 0x8c0   :  { %6551 = vmatprep.subr.bf16.mxu1 %v10602_v0  ;;  %2081 = vmatprep.subr.bf16.mxu0 %v9046_v63 }
 0x8c2   :  { %1809 = vmatmul.mubr.bf16.vlgmr.msra.gmra.mrb[32].mxu0 %v1595_v59  ;;  %6544 = vmatmul.mubr.bf16.vlgmr.msra.gmra.mrb[56].mxu1 %v1596_v5 }
 0x8c3   :  { %6547 = vmatprep.mubr.bf16.mxu1 %v1597_v54  ;;  %1818 = vmatprep.mubr.bf16.mxu0 %v10603_v46 }
 0x8c4   :  { %2082 = vmatpush1.bf16.msra.mxu0 %v9048_v19  ;;  %6552 = vmatpush3.bf16.msra.mxu1 %v9084_v38 }
 0x8c5   :  { %2083 = vmatprep.subr.bf16.mxu0 %v9052_v7  ;;  %6553 = vmatprep.subr.bf16.mxu1 %v10602_v0 }
 0x8c8   :  { %2084 = vmatpush1.bf16.msra.mxu0 %v9054_v16  ;;  %6554 = vmatpush3.bf16.msra.mxu1 %v9092_v25 }
 0x8c9   :  { %2085 = vmatprep.subr.bf16.mxu0 %v9058_v21  ;;  %6555 = vmatprep.subr.bf16.mxu1 %v10602_v0 }
 0x8ca   :  { %1819 = vmatmul.mubr.bf16.gmra.mrb[36].mxu0 %v1596_v5 }
 0x8cb   :  { %1828 = vmatprep.mubr.bf16.mxu0 %v10603_v46 }
 0x8cc   :  { %2086 = vmatpush1.bf16.msra.mxu0 %v9060_v1  ;;  %6556 = vmatpush3.bf16.msra.mxu1 %v9102_v45 }
 0x8cd   :  { %2087 = vmatprep.subr.bf16.mxu0 %v9064_v27  ;;  %6557 = vmatprep.subr.bf16.mxu1 %v10602_v0 }
 0x8d0   :  { %2088 = vmatpush1.bf16.msra.mxu0 %v9066_v31  ;;  %6558 = vmatpush3.bf16.msra.mxu1 %v9106_v60 }
 0x8d1   :  { %2089 = vmatprep.subr.bf16.mxu0 %v9070_v34  ;;  %6559 = vmatprep.subr.bf16.mxu1 %v10602_v0 }
 0x8d2   :  { %1829 = vmatmul.mubr.bf16.gmra.mrb[40].mxu0 %v1597_v54 }
 0x8d3   :  { %1838 = vmatprep.mubr.bf16.mxu0 %v10603_v46 }
 0x8d4   :  { %2090 = vmatpush1.bf16.msra.mxu0 %v9072_v6  ;;  %6560 = vmatpush3.bf16.msra.mxu1 %v9110_v47 }
 0x8d5   :  { %2091 = vmatprep.subr.bf16.mxu0 %v9076_v22  ;;  %6561 = vmatprep.subr.bf16.mxu1 %v10602_v0 }
 0x8d8   :  { %2092 = vmatpush1.bf16.msra.mxu0 %v9078_v30  ;;  %6562 = vmatpush3.bf16.msra.mxu1 %v9114_v48 }
 0x8d9   :  { %2093 = vmatprep.subr.bf16.mxu0 %v9082_v36  ;;  %6563 = vmatprep.subr.bf16.mxu1 %v10602_v0 }
 0x8dc   :  { %2094 = vmatpush1.bf16.msra.mxu0 %v9086_v41  ;;  %6564 = vmatpush3.bf16.msra.mxu1 %v9118_v49 }
 0x8dd   :  { %2095 = vmatprep.subr.bf16.mxu0 %v9088_v33  ;;  %6565 = vmatprep.subr.bf16.mxu1 %v10602_v0 }
 0x8e0   :  { %2096 = vmatpush1.bf16.msra.mxu0 %v9096_v43  ;;  %6566 = vmatpush3.bf16.msra.mxu1 %v9122_v37 }
 0x8e1   :  { %2184 = vmatprep.subr.bf16.mxu0 %v9046_v63  ;;  %6571 = vmatprep.subr.bf16.mxu1 %v10602_v0 }
 0x975   :  { %v1527_v51 = vpop.f32.mrb[28].mxu0  ;;  %v1568_v50 = vpop.f32.mrb[52].mxu1 }
 0x976   :  { %v1574_v40 = vadd.f32 %v1527_v51, %v8705_v42  ;;  %v1529_v3 = vpop.f32.mrb[29].mxu0  ;;  %v6525_v62 = vpop.f32.mrb[53].mxu1  ;;  %v7741_v42 = vld [vmem:[%s10553_s6] ss:$0 sm:$0xff] }
 0x977   :  { %v1575_v29 = vadd.f32 %v1529_v3, %v8707_v44  ;;  %v1531_v13 = vpop.f32.mrb[30].mxu0  ;;  %v1571_v61 = vpop.f32.mrb[54].mxu1  ;;  %v1588_v4 = vadd.f32 %v7741_v42, %v1568_v50 }
 0x978   :  { %v5784_v55 = vmul.f32 -1.442695, %v1574_v40  ;;  %v1532_v23 = vpop.f32.mrb[31].mxu0  ;;  %v6526_v59 = vpop.f32.mrb[55].mxu1 }
 0x979   :  { %v5785_v15 = vmul.f32 -1.442695, %v1575_v29 }
 0x97a   :  { %7467 = vpow2.f32 %v5784_v55 }
 0x97b   :  { %7469 = vpow2.f32 %v5785_v15 }
 0x984   :  { %v7468_v2 = vpop.eup %7467 }
 0x985   :  { %v1582_v9 = vadd.f32 1.0, %v7468_v2  ;;  %v7470_v53 = vpop.eup %7469 }
 0x986   :  { %v1583_v26 = vadd.f32 1.0, %v7470_v53 }
 0x987   :  { %7471 = vrcp.f32 %v1582_v9 }
 0x991   :  { %v7472_v18 = vpop.eup %7471 }
 0x992   :  { %v1589_v12 = vmul.f32 %v7472_v18, %v1588_v4 }
 0x994   :  { %v1590_v44 = vadd.f32 %v1589_v12, %v8720_v57 }
 0x995   :  { %v9133_v10 = vpop.f32.mrb[32].mxu0  ;;  %v9135_v17 = vpop.f32.mrb[56].mxu1 }
 0x996   :  { %7473 = vtanh.f32 %v1590_v44  ;;  %v9137_v32 = vpop.f32.mrb[33].mxu0  ;;  %v9139_v24 = vpop.f32.mrb[57].mxu1 }
 0x997   :  { %v9141_v39 = vpop.f32.mrb[34].mxu0  ;;  %v9143_v35 = vpop.f32.mrb[58].mxu1  ;;  %7475 = vrcp.f32 %v1583_v26 }
 0x998   :  { %v9145_v8 = vpop.f32.mrb[35].mxu0  ;;  %v9147_v28 = vpop.f32.mrb[59].mxu1 }
 0x99d   :  { %v9149_v57 = vpop.f32.mrb[36].mxu0 }
 0x99e   :  { %v9151_v20 = vpop.f32.mrb[37].mxu0 }
 0x99f   :  { %v9153_v11 = vpop.f32.mrb[38].mxu0 }
 0x9a0   :  { %v7474_v14 = vpop.eup %7473  ;;  %v9155_v5 = vpop.f32.mrb[39].mxu0 }
 0x9a1   :  { %v1592_v54 = vsub.f32 %v9031_v52, %v7474_v14  ;;  %v7476_v51 = vpop.eup %7475 }
 0x9a3   :  { %v1593_v50 = vmul.f32 %v7476_v51, %v1592_v54 }
 0x9a5   :  { %v9158_v40 = vpop.f32.mrb[40].mxu0  ;;  %v9160_v3 = vadd.f32 %v7474_v14, %v1593_v50 }
 0x9a6   :  { %v9162_v62 = vpop.f32.mrb[41].mxu0 }
 0x9a7   :  { %10604 = vst [vmem:[#allocation36_spill] sm:$0xff] %v9160_v3  ;;  %v9164_v29 = vpop.f32.mrb[42].mxu0  ;;  %v1598_v13 = vpack.c.bf16 %v9160_v3, %v9031_v52  ;;  %v1631_v52 = vld [vmem:[#allocation10] sm:$0x7] }
 0x9a8   :  { %v9168_v61 = vpop.f32.mrb[43].mxu0  ;;  %v9223_v53 = vrot.slane %v1631_v52, %v8673_v56  ;;  %v9230_v18 = vrot.slane %v1631_v52, %v8675_v58 }
 0x9a9   :  { %1839 = vmatmul.mubr.bf16.gmra.mrb[44].mxu0 %v1598_v13  ;;  %6548 = vmatmul.mubr.bf16.gmra.mrb[60].mxu1 %v1598_v13 }
 0x9aa   :  { %2113 = vmatprep.mubr.bf16.mxu0 %v10603_v46  ;;  %6567 = vmatprep.mubr.msk.bf16.mxu1 %vm8181_vm0, %v10602_v0  ;;  %v1811_v12 = vadd.f32 %v9133_v10, %v9223_v53  ;;  %v1813_v44 = vadd.f32 %v9137_v32, %v9230_v18  ;;  %v9236_v10 = vld [vmem:[#allocation12] ss:$0 sm:$0xff] }
 0x9ab   :  { %v10611_v32 = vld [vmem:[#allocation35_spill] sm:$0xff] }
 0x9b1   :  { %2114 = vmatmul.mubr.bf16.vlgmr.msra.gmra.mrb[48].mxu0 %v10603_v46  ;;  %6568 = vmatmul.mubr.bf16.vlgmr.msra.gmra.mrb[64].mxu1 %v10603_v46 }
 0x9b2   :  { %2185 = vmatpush1.bf16.msra.mxu0 %v9048_v19  ;;  %6572 = vmatpush3.bf16.msra.mxu1 %v9084_v38 }
 0x9b3   :  { %2186 = vmatprep.subr.bf16.mxu0 %v9052_v7  ;;  %6573 = vmatprep.subr.bf16.mxu1 %v10602_v0 }
 0x9b4   :  { %2216 = vmatprep.mubr.bf16.mxu0 %v10603_v46  ;;  %6587 = vmatprep.mubr.msk.bf16.mxu1 %vm8181_vm0, %v10602_v0 }
 0x9b6   :  { %2187 = vmatpush1.bf16.msra.mxu0 %v9054_v16  ;;  %6574 = vmatpush3.bf16.msra.mxu1 %v9092_v25 }
 0x9b7   :  { %2188 = vmatprep.subr.bf16.mxu0 %v9058_v21  ;;  %6575 = vmatprep.subr.bf16.mxu1 %v10602_v0 }
 0x9ba   :  { %2189 = vmatpush1.bf16.msra.mxu0 %v9060_v1  ;;  %6576 = vmatpush3.bf16.msra.mxu1 %v9102_v45 }
 0x9bb   :  { %2190 = vmatprep.subr.bf16.mxu0 %v9064_v27  ;;  %6577 = vmatprep.subr.bf16.mxu1 %v10602_v0 }
 0x9be   :  { %2191 = vmatpush1.bf16.msra.mxu0 %v9066_v31  ;;  %6578 = vmatpush3.bf16.msra.mxu1 %v9106_v60 }
 0x9bf   :  { %2192 = vmatprep.subr.bf16.mxu0 %v9070_v34  ;;  %6579 = vmatprep.subr.bf16.mxu1 %v10602_v0 }
 0x9c2   :  { %2193 = vmatpush1.bf16.msra.mxu0 %v9072_v6  ;;  %6580 = vmatpush3.bf16.msra.mxu1 %v9110_v47 }
 0x9c3   :  { %2194 = vmatprep.subr.bf16.mxu0 %v9076_v22  ;;  %6581 = vmatprep.subr.bf16.mxu1 %v10602_v0 }
 0x9c6   :  { %2195 = vmatpush1.bf16.msra.mxu0 %v9078_v30  ;;  %6582 = vmatpush3.bf16.msra.mxu1 %v9114_v48 }
 0x9c7   :  { %2196 = vmatprep.subr.bf16.mxu0 %v9082_v36  ;;  %6583 = vmatprep.subr.bf16.mxu1 %v10602_v0 }
 0x9ca   :  { %2197 = vmatpush1.bf16.msra.mxu0 %v9086_v41  ;;  %6584 = vmatpush3.bf16.msra.mxu1 %v9118_v49 }
 0x9cb   :  { %2198 = vmatprep.subr.bf16.mxu0 %v9088_v33  ;;  %6585 = vmatprep.subr.bf16.mxu1 %v10602_v0 }
 0x9ce   :  { %2199 = vmatpush1.bf16.msra.mxu0 %v9096_v43  ;;  %6586 = vmatpush3.bf16.msra.mxu1 %v9122_v37 }
 0x9cf   :  { %2287 = vmatprep.subr.bf16.mxu0 %v9046_v63  ;;  %6591 = vmatprep.subr.bf16.mxu1 %v10602_v0 }
 0xa7c   :  { %v9210_v55 = vpop.f32.mrb[44].mxu0  ;;  %v9212_v23 = vpop.f32.mrb[60].mxu1 }
 0xa7d   :  { %10605 = vst [vmem:[#allocation37_spill] sm:$0xff] %v9210_v55  ;;  %10606 = vst [vmem:[#allocation38_spill] sm:$0xff] %v9212_v23  ;;  %v9214_v59 = vpop.f32.mrb[45].mxu0  ;;  %v9216_v15 = vpop.f32.mrb[61].mxu1  ;;  %v9239_v55 = vrot.slane %v1631_v52, %v10611_v32 }
 0xa7e   :  { %10607 = vst [vmem:[#allocation39_spill] sm:$0xff] %v9214_v59  ;;  %v9218_v2 = vpop.f32.mrb[46].mxu0  ;;  %v9220_v9 = vpop.f32.mrb[62].mxu1 }
 0xa7f   :  { %10608 = vst [vmem:[#allocation40_spill] sm:$0xff] %v9218_v2  ;;  %10609 = vst [vmem:[#allocation41_spill] sm:$0xff] %v9220_v9  ;;  %v9225_v42 = vpop.f32.mrb[47].mxu0  ;;  %v9227_v4 = vpop.f32.mrb[63].mxu1 }
 0xa80   :  { %10610 = vst [vmem:[#allocation42_spill] sm:$0xff] %v9225_v42 }
 0xa84   :  { %v2115_v26 = vpop.f32.mrb[48].mxu0  ;;  %v2156_v14 = vpop.f32.mrb[64].mxu1 }
 0xa85   :  { %v2162_v54 = vadd.f32 %v2115_v26, %v1811_v12  ;;  %v2117_v51 = vpop.f32.mrb[49].mxu0  ;;  %v6569_v50 = vpop.f32.mrb[65].mxu1  ;;  %v2176_v12 = vadd.f32 %v9236_v10, %v2156_v14  ;;  %v1817_v14 = vadd.f32 %v9145_v8, %v9230_v18 }
 0xa86   :  { %v2163_v13 = vadd.f32 %v2117_v51, %v1813_v44  ;;  %v2119_v56 = vpop.f32.mrb[50].mxu0  ;;  %v2159_v9 = vpop.f32.mrb[66].mxu1 }
 0xa87   :  { %v5835_v42 = vmul.f32 -1.442695, %v2162_v54  ;;  %v2120_v2 = vpop.f32.mrb[51].mxu0  ;;  %v6570_v3 = vpop.f32.mrb[67].mxu1  ;;  %v1884_v56 = vadd.f32 %v9139_v24, %v9239_v55  ;;  %v1815_v24 = vadd.f32 %v9141_v39, %v9223_v53 }
 0xa88   :  { %v5836_v58 = vmul.f32 -1.442695, %v2163_v13 }
 0xa89   :  { %7477 = vpow2.f32 %v5835_v42 }
 0xa8a   :  { %7479 = vpow2.f32 %v5836_v58 }
 0xa93   :  { %v7478_v23 = vpop.eup %7477 }
 0xa94   :  { %v2170_v59 = vadd.f32 1.0, %v7478_v23  ;;  %v7480_v26 = vpop.eup %7479 }
 0xa95   :  { %v2171_v3 = vadd.f32 1.0, %v7480_v26 }
 0xa96   :  { %7481 = vrcp.f32 %v2170_v59 }
 0xaa0   :  { %v7482_v44 = vpop.eup %7481 }
 0xaa1   :  { %v2177_v2 = vmul.f32 %v7482_v44, %v2176_v12 }
 0xaa3   :  { %v2178_v9 = vadd.f32 %v2177_v2, %v1884_v56 }
 0xaa5   :  { %7483 = vtanh.f32 %v2178_v9 }
 0xaa6   :  { %7485 = vrcp.f32 %v2171_v3 }
 0xaaf   :  { %v7484_v23 = vpop.eup %7483 }
 0xab0   :  { %v2180_v58 = vsub.f32 0.0, %v7484_v23  ;;  %v7486_v59 = vpop.eup %7485 }
 0xab2   :  { %v2181_v42 = vmul.f32 %v7486_v59, %v2180_v58 }
 0xab4   :  { %v9244_v54 = vadd.f32 %v7484_v23, %v2181_v42 }
 0xab6   :  { %v2183_v52 = vpack.c.bf16 %v9244_v54, %v9244_v54 }
 0xab8   :  { %2217 = vmatmul.mubr.bf16.vlgmr.msra.gmra.mrb[52].mxu0 %v2183_v52  ;;  %6588 = vmatmul.mubr.bf16.vlgmr.msra.gmra.mrb[68].mxu1 %v2183_v52 }
 0xab9   :  { %2288 = vmatpush1.bf16.msra.mxu0 %v9048_v19  ;;  %6592 = vmatpush3.bf16.msra.mxu1 %v9084_v38 }
 0xaba   :  { %2289 = vmatprep.subr.bf16.mxu0 %v9052_v7  ;;  %6593 = vmatprep.subr.bf16.mxu1 %v10602_v0 }
 0xabb   :  { %2319 = vmatprep.mubr.bf16.mxu0 %v10603_v46  ;;  %6607 = vmatprep.mubr.msk.bf16.mxu1 %vm8181_vm0, %v10602_v0 }
 0xabd   :  { %2290 = vmatpush1.bf16.msra.mxu0 %v9054_v16  ;;  %6594 = vmatpush3.bf16.msra.mxu1 %v9092_v25 }
 0xabe   :  { %2291 = vmatprep.subr.bf16.mxu0 %v9058_v21  ;;  %6595 = vmatprep.subr.bf16.mxu1 %v10602_v0 }
 0xac1   :  { %2292 = vmatpush1.bf16.msra.mxu0 %v9060_v1  ;;  %6596 = vmatpush3.bf16.msra.mxu1 %v9102_v45 }
 0xac2   :  { %2293 = vmatprep.subr.bf16.mxu0 %v9064_v27  ;;  %6597 = vmatprep.subr.bf16.mxu1 %v10602_v0 }
 0xac5   :  { %2294 = vmatpush1.bf16.msra.mxu0 %v9066_v31  ;;  %6598 = vmatpush3.bf16.msra.mxu1 %v9106_v60 }
 0xac6   :  { %2295 = vmatprep.subr.bf16.mxu0 %v9070_v34  ;;  %6599 = vmatprep.subr.bf16.mxu1 %v10602_v0 }
 0xac9   :  { %2296 = vmatpush1.bf16.msra.mxu0 %v9072_v6  ;;  %6600 = vmatpush3.bf16.msra.mxu1 %v9110_v47 }
 0xaca   :  { %2297 = vmatprep.subr.bf16.mxu0 %v9076_v22  ;;  %6601 = vmatprep.subr.bf16.mxu1 %v10602_v0 }
 0xacd   :  { %2298 = vmatpush1.bf16.msra.mxu0 %v9078_v30  ;;  %6602 = vmatpush3.bf16.msra.mxu1 %v9114_v48 }
 0xace   :  { %2299 = vmatprep.subr.bf16.mxu0 %v9082_v36  ;;  %6603 = vmatprep.subr.bf16.mxu1 %v10602_v0 }
 0xad1   :  { %2300 = vmatpush1.bf16.msra.mxu0 %v9086_v41  ;;  %6604 = vmatpush3.bf16.msra.mxu1 %v9118_v49 }
 0xad2   :  { %2301 = vmatprep.subr.bf16.mxu0 %v9088_v33  ;;  %6605 = vmatprep.subr.bf16.mxu1 %v10602_v0 }
 0xad5   :  { %2302 = vmatpush1.bf16.msra.mxu0 %v9096_v43  ;;  %6606 = vmatpush3.bf16.msra.mxu1 %v9122_v37 }
 0xad6   :  { %2390 = vmatprep.subr.bf16.mxu0 %v9046_v63  ;;  %6611 = vmatprep.subr.bf16.mxu1 %v10602_v0 }
 0xb8b   :  { %v2218_v51 = vpop.f32.mrb[52].mxu0  ;;  %v2259_v50 = vpop.f32.mrb[68].mxu1 }
 0xb8c   :  { %v2265_v13 = vadd.f32 %v2218_v51, %v1815_v24  ;;  %v2220_v12 = vpop.f32.mrb[53].mxu0  ;;  %v6589_v26 = vpop.f32.mrb[69].mxu1  ;;  %v2279_v8 = vadd.f32 %v9236_v10, %v2259_v50  ;;  %v1887_v24 = vadd.f32 %v9147_v28, %v9239_v55  ;;  %v1821_v28 = vadd.f32 %v9149_v57, %v9223_v53 }
 0xb8d   :  { %v2266_v44 = vadd.f32 %v2220_v12, %v1817_v14  ;;  %v2222_v56 = vpop.f32.mrb[54].mxu0  ;;  %v2262_v2 = vpop.f32.mrb[70].mxu1 }
 0xb8e   :  { %v5837_v3 = vmul.f32 -1.442695, %v2265_v13  ;;  %v2223_v9 = vpop.f32.mrb[55].mxu0  ;;  %v6590_v23 = vpop.f32.mrb[71].mxu1 }
 0xb8f   :  { %v5838_v58 = vmul.f32 -1.442695, %v2266_v44 }
 0xb90   :  { %7487 = vpow2.f32 %v5837_v3 }
 0xb91   :  { %7489 = vpow2.f32 %v5838_v58 }
 0xb9a   :  { %v7488_v59 = vpop.eup %7487 }
 0xb9b   :  { %v2273_v42 = vadd.f32 1.0, %v7488_v59  ;;  %v7490_v39 = vpop.eup %7489 }
 0xb9c   :  { %v2274_v12 = vadd.f32 1.0, %v7490_v39 }
 0xb9d   :  { %7491 = vrcp.f32 %v2273_v42 }
 0xba7   :  { %v7492_v52 = vpop.eup %7491 }
 0xba8   :  { %v2280_v51 = vmul.f32 %v7492_v52, %v2279_v8 }
 0xbaa   :  { %v2281_v14 = vadd.f32 %v2280_v51, %v1887_v24 }
 0xbac   :  { %7493 = vtanh.f32 %v2281_v14 }
 0xbad   :  { %7495 = vrcp.f32 %v2274_v12 }
 0xbb6   :  { %v7494_v13 = vpop.eup %7493 }
 0xbb7   :  { %v2283_v26 = vsub.f32 %v9244_v54, %v7494_v13  ;;  %v7496_v44 = vpop.eup %7495  ;;  %v1823_v54 = vadd.f32 %v9151_v20, %v9230_v18 }
 0xbb9   :  { %v2284_v56 = vmul.f32 %v7496_v44, %v2283_v26  ;;  %v1892_v44 = vadd.f32 %v9135_v17, %v9239_v55  ;;  %v1825_v17 = vadd.f32 %v9153_v11, %v9223_v53 }
 0xbbb   :  { %v9291_v2 = vadd.f32 %v7494_v13, %v2284_v56 }
 0xbbd   :  { %v2286_v3 = vpack.c.bf16 %v9291_v2, %v9291_v2 }
 0xbbf   :  { %2320 = vmatmul.mubr.bf16.vlgmr.msra.gmra.mrb[56].mxu0 %v2286_v3  ;;  %6608 = vmatmul.mubr.bf16.vlgmr.msra.gmra.mrb[72].mxu1 %v2286_v3 }
 0xbc0   :  { %2391 = vmatpush1.bf16.msra.mxu0 %v9048_v19  ;;  %6612 = vmatpush3.bf16.msra.mxu1 %v9084_v38 }
 0xbc1   :  { %2392 = vmatprep.subr.bf16.mxu0 %v9052_v7  ;;  %6613 = vmatprep.subr.bf16.mxu1 %v10602_v0 }
 0xbc2   :  { %2422 = vmatprep.mubr.bf16.mxu0 %v10603_v46  ;;  %6627 = vmatprep.mubr.msk.bf16.mxu1 %vm8181_vm0, %v10602_v0 }
 0xbc4   :  { %2393 = vmatpush1.bf16.msra.mxu0 %v9054_v16  ;;  %6614 = vmatpush3.bf16.msra.mxu1 %v9092_v25 }
 0xbc5   :  { %2394 = vmatprep.subr.bf16.mxu0 %v9058_v21  ;;  %6615 = vmatprep.subr.bf16.mxu1 %v10602_v0 }
 0xbc8   :  { %2395 = vmatpush1.bf16.msra.mxu0 %v9060_v1  ;;  %6616 = vmatpush3.bf16.msra.mxu1 %v9102_v45 }
 0xbc9   :  { %2396 = vmatprep.subr.bf16.mxu0 %v9064_v27  ;;  %6617 = vmatprep.subr.bf16.mxu1 %v10602_v0 }
 0xbcc   :  { %2397 = vmatpush1.bf16.msra.mxu0 %v9066_v31  ;;  %6618 = vmatpush3.bf16.msra.mxu1 %v9106_v60 }
 0xbcd   :  { %2398 = vmatprep.subr.bf16.mxu0 %v9070_v34  ;;  %6619 = vmatprep.subr.bf16.mxu1 %v10602_v0 }
 0xbd0   :  { %2399 = vmatpush1.bf16.msra.mxu0 %v9072_v6  ;;  %6620 = vmatpush3.bf16.msra.mxu1 %v9110_v47 }
 0xbd1   :  { %2400 = vmatprep.subr.bf16.mxu0 %v9076_v22  ;;  %6621 = vmatprep.subr.bf16.mxu1 %v10602_v0 }
 0xbd4   :  { %2401 = vmatpush1.bf16.msra.mxu0 %v9078_v30  ;;  %6622 = vmatpush3.bf16.msra.mxu1 %v9114_v48 }
 0xbd5   :  { %2402 = vmatprep.subr.bf16.mxu0 %v9082_v36  ;;  %6623 = vmatprep.subr.bf16.mxu1 %v10602_v0 }
 0xbd8   :  { %2403 = vmatpush1.bf16.msra.mxu0 %v9086_v41  ;;  %6624 = vmatpush3.bf16.msra.mxu1 %v9118_v49 }
 0xbd9   :  { %2404 = vmatprep.subr.bf16.mxu0 %v9088_v33  ;;  %6625 = vmatprep.subr.bf16.mxu1 %v10602_v0 }
 0xbdc   :  { %2405 = vmatpush1.bf16.msra.mxu0 %v9096_v43  ;;  %6626 = vmatpush3.bf16.msra.mxu1 %v9122_v37 }
 0xbdd   :  { %2493 = vmatprep.subr.bf16.mxu0 %v9046_v63  ;;  %6631 = vmatprep.subr.bf16.mxu1 %v10602_v0 }
 0xc92   :  { %v2321_v50 = vpop.f32.mrb[56].mxu0  ;;  %v2362_v9 = vpop.f32.mrb[72].mxu1 }
 0xc93   :  { %v2368_v23 = vadd.f32 %v2321_v50, %v1821_v28  ;;  %v2323_v58 = vpop.f32.mrb[57].mxu0  ;;  %v6609_v59 = vpop.f32.mrb[73].mxu1  ;;  %v2382_v20 = vadd.f32 %v9236_v10, %v2362_v9 }
 0xc94   :  { %v2369_v42 = vadd.f32 %v2323_v58, %v1823_v54  ;;  %v2325_v39 = vpop.f32.mrb[58].mxu0  ;;  %v2365_v8 = vpop.f32.mrb[74].mxu1 }
 0xc95   :  { %v5839_v52 = vmul.f32 -1.442695, %v2368_v23  ;;  %v2326_v24 = vpop.f32.mrb[59].mxu0  ;;  %v6610_v51 = vpop.f32.mrb[75].mxu1 }
 0xc96   :  { %v5840_v14 = vmul.f32 -1.442695, %v2369_v42 }
 0xc97   :  { %7497 = vpow2.f32 %v5839_v52 }
 0xc98   :  { %7499 = vpow2.f32 %v5840_v14 }
 0xca1   :  { %v7498_v12 = vpop.eup %7497 }
 0xca2   :  { %v2376_v13 = vadd.f32 1.0, %v7498_v12  ;;  %v7500_v57 = vpop.eup %7499 }
 0xca3   :  { %v2377_v28 = vadd.f32 1.0, %v7500_v57 }
 0xca4   :  { %7501 = vrcp.f32 %v2376_v13 }
 0xcae   :  { %v7502_v26 = vpop.eup %7501 }
 0xcaf   :  { %v2383_v56 = vmul.f32 %v7502_v26, %v2382_v20 }
 0xcb1   :  { %v2384_v3 = vadd.f32 %v2383_v56, %v1892_v44 }
 0xcb3   :  { %7503 = vtanh.f32 %v2384_v3 }
 0xcb4   :  { %7505 = vrcp.f32 %v2377_v28  ;;  %v1895_v28 = vadd.f32 %v9143_v35, %v9239_v55  ;;  %v1831_v35 = vadd.f32 %v9158_v40, %v9223_v53 }
 0xcbd   :  { %v7504_v54 = vpop.eup %7503 }
 0xcbe   :  { %v2386_v50 = vsub.f32 %v9291_v2, %v7504_v54  ;;  %v7506_v23 = vpop.eup %7505  ;;  %v1827_v2 = vadd.f32 %v9155_v5, %v9230_v18 }
 0xcc0   :  { %v2387_v58 = vmul.f32 %v7506_v23, %v2386_v50 }
 0xcc2   :  { %v9338_v59 = vadd.f32 %v7504_v54, %v2387_v58 }
 0xcc4   :  { %v2389_v42 = vpack.c.bf16 %v9338_v59, %v9338_v59 }
 0xcc6   :  { %2423 = vmatmul.mubr.bf16.vlgmr.msra.gmra.mrb[60].mxu0 %v2389_v42  ;;  %6628 = vmatmul.mubr.bf16.vlgmr.msra.gmra.mrb[76].mxu1 %v2389_v42 }
 0xcc7   :  { %2494 = vmatpush1.bf16.msra.mxu0 %v9048_v19  ;;  %6632 = vmatpush3.bf16.msra.mxu1 %v9084_v38 }
 0xcc8   :  { %2495 = vmatprep.subr.bf16.mxu0 %v9052_v7  ;;  %6633 = vmatprep.subr.bf16.mxu1 %v10602_v0 }
 0xcc9   :  { %2525 = vmatprep.mubr.bf16.mxu0 %v10603_v46  ;;  %6647 = vmatprep.mubr.msk.bf16.mxu1 %vm8181_vm0, %v10602_v0 }
 0xccb   :  { %2496 = vmatpush1.bf16.msra.mxu0 %v9054_v16  ;;  %6634 = vmatpush3.bf16.msra.mxu1 %v9092_v25 }
 0xccc   :  { %2497 = vmatprep.subr.bf16.mxu0 %v9058_v21  ;;  %6635 = vmatprep.subr.bf16.mxu1 %v10602_v0 }
 0xccf   :  { %2498 = vmatpush1.bf16.msra.mxu0 %v9060_v1  ;;  %6636 = vmatpush3.bf16.msra.mxu1 %v9102_v45 }
 0xcd0   :  { %2499 = vmatprep.subr.bf16.mxu0 %v9064_v27  ;;  %6637 = vmatprep.subr.bf16.mxu1 %v10602_v0 }
 0xcd3   :  { %2500 = vmatpush1.bf16.msra.mxu0 %v9066_v31  ;;  %6638 = vmatpush3.bf16.msra.mxu1 %v9106_v60 }
 0xcd4   :  { %2501 = vmatprep.subr.bf16.mxu0 %v9070_v34  ;;  %6639 = vmatprep.subr.bf16.mxu1 %v10602_v0 }
 0xcd7   :  { %2502 = vmatpush1.bf16.msra.mxu0 %v9072_v6  ;;  %6640 = vmatpush3.bf16.msra.mxu1 %v9110_v47 }
 0xcd8   :  { %2503 = vmatprep.subr.bf16.mxu0 %v9076_v22  ;;  %6641 = vmatprep.subr.bf16.mxu1 %v10602_v0 }
 0xcdb   :  { %2504 = vmatpush1.bf16.msra.mxu0 %v9078_v30  ;;  %6642 = vmatpush3.bf16.msra.mxu1 %v9114_v48 }
 0xcdc   :  { %2505 = vmatprep.subr.bf16.mxu0 %v9082_v36  ;;  %6643 = vmatprep.subr.bf16.mxu1 %v10602_v0 }
 0xcdf   :  { %2506 = vmatpush1.bf16.msra.mxu0 %v9086_v41  ;;  %6644 = vmatpush3.bf16.msra.mxu1 %v9118_v49 }
 0xce0   :  { %2507 = vmatprep.subr.bf16.mxu0 %v9088_v33  ;;  %6645 = vmatprep.subr.bf16.mxu1 %v10602_v0 }
 0xce3   :  { %2508 = vmatpush1.bf16.msra.mxu0 %v9096_v43  ;;  %6646 = vmatpush3.bf16.msra.mxu1 %v9122_v37 }
 0xce4   :  { %2596 = vmatprep.subr.bf16.mxu0 %v9046_v63  ;;  %6651 = vmatprep.subr.bf16.mxu1 %v10602_v0 }
 0xd99   :  { %v2424_v9 = vpop.f32.mrb[60].mxu0  ;;  %v2465_v39 = vpop.f32.mrb[76].mxu1 }
 0xd9a   :  { %v2471_v8 = vadd.f32 %v2424_v9, %v1825_v17  ;;  %v2426_v52 = vpop.f32.mrb[61].mxu0  ;;  %v6629_v24 = vpop.f32.mrb[77].mxu1  ;;  %v2485_v5 = vadd.f32 %v9236_v10, %v2465_v39 }
 0xd9b   :  { %v2472_v51 = vadd.f32 %v2426_v52, %v1827_v2  ;;  %v2428_v14 = vpop.f32.mrb[62].mxu0  ;;  %v2468_v12 = vpop.f32.mrb[78].mxu1 }
 0xd9c   :  { %v5841_v13 = vmul.f32 -1.442695, %v2471_v8  ;;  %v2429_v57 = vpop.f32.mrb[63].mxu0  ;;  %v6630_v20 = vpop.f32.mrb[79].mxu1 }
 0xd9d   :  { %v5842_v26 = vmul.f32 -1.442695, %v2472_v51 }
 0xd9e   :  { %7507 = vpow2.f32 %v5841_v13 }
 0xd9f   :  { %7509 = vpow2.f32 %v5842_v26 }
 0xda8   :  { %v7508_v44 = vpop.eup %7507 }
 0xda9   :  { %v2479_v56 = vadd.f32 1.0, %v7508_v44  ;;  %v7510_v11 = vpop.eup %7509 }
 0xdaa   :  { %v2480_v23 = vadd.f32 1.0, %v7510_v11 }
 0xdab   :  { %7511 = vrcp.f32 %v2479_v56 }
 0xdb5   :  { %v7512_v3 = vpop.eup %7511 }
 0xdb6   :  { %v2486_v54 = vmul.f32 %v7512_v3, %v2485_v5 }
 0xdb8   :  { %v2487_v50 = vadd.f32 %v2486_v54, %v1895_v28  ;;  %v1900_v28 = vadd.f32 %v9216_v15, %v9239_v55 }
 0xdba   :  { %7513 = vtanh.f32 %v2487_v50 }
 0xdbb   :  { %7515 = vrcp.f32 %v2480_v23 }
 0xdc4   :  { %v7514_v58 = vpop.eup %7513 }
 0xdc5   :  { %v2489_v42 = vsub.f32 %v9338_v59, %v7514_v58  ;;  %v7516_v17 = vpop.eup %7515  ;;  %v1833_v59 = vadd.f32 %v9162_v62, %v9230_v18 }
 0xdc7   :  { %v2490_v2 = vmul.f32 %v7516_v17, %v2489_v42 }
 0xdc9   :  { %v9385_v9 = vadd.f32 %v7514_v58, %v2490_v2 }
 0xdcb   :  { %v2492_v8 = vpack.c.bf16 %v9385_v9, %v9385_v9 }
 0xdcd   :  { %2526 = vmatmul.mubr.bf16.vlgmr.msra.gmra.mrb[64].mxu0 %v2492_v8  ;;  %6648 = vmatmul.mubr.bf16.vlgmr.msra.gmra.mrb[80].mxu1 %v2492_v8 }
 0xdce   :  { %2597 = vmatpush1.bf16.msra.mxu0 %v9048_v19  ;;  %6652 = vmatpush3.bf16.msra.mxu1 %v9084_v38 }
 0xdcf   :  { %2598 = vmatprep.subr.bf16.mxu0 %v9052_v7  ;;  %6653 = vmatprep.subr.bf16.mxu1 %v10602_v0 }
 0xdd0   :  { %2628 = vmatprep.mubr.bf16.mxu0 %v10603_v46  ;;  %6667 = vmatprep.mubr.msk.bf16.mxu1 %vm8181_vm0, %v10602_v0 }
 0xdd2   :  { %2599 = vmatpush1.bf16.msra.mxu0 %v9054_v16  ;;  %6654 = vmatpush3.bf16.msra.mxu1 %v9092_v25 }
 0xdd3   :  { %2600 = vmatprep.subr.bf16.mxu0 %v9058_v21  ;;  %6655 = vmatprep.subr.bf16.mxu1 %v10602_v0 }
 0xdd6   :  { %2601 = vmatpush1.bf16.msra.mxu0 %v9060_v1  ;;  %6656 = vmatpush3.bf16.msra.mxu1 %v9102_v45 }
 0xdd7   :  { %2602 = vmatprep.subr.bf16.mxu0 %v9064_v27  ;;  %6657 = vmatprep.subr.bf16.mxu1 %v10602_v0 }
 0xdda   :  { %2603 = vmatpush1.bf16.msra.mxu0 %v9066_v31  ;;  %6658 = vmatpush3.bf16.msra.mxu1 %v9106_v60 }
 0xddb   :  { %2604 = vmatprep.subr.bf16.mxu0 %v9070_v34  ;;  %6659 = vmatprep.subr.bf16.mxu1 %v10602_v0 }
 0xdde   :  { %2605 = vmatpush1.bf16.msra.mxu0 %v9072_v6  ;;  %6660 = vmatpush3.bf16.msra.mxu1 %v9110_v47 }
 0xddf   :  { %2606 = vmatprep.subr.bf16.mxu0 %v9076_v22  ;;  %6661 = vmatprep.subr.bf16.mxu1 %v10602_v0 }
 0xde2   :  { %2607 = vmatpush1.bf16.msra.mxu0 %v9078_v30  ;;  %6662 = vmatpush3.bf16.msra.mxu1 %v9114_v48 }
 0xde3   :  { %2608 = vmatprep.subr.bf16.mxu0 %v9082_v36  ;;  %6663 = vmatprep.subr.bf16.mxu1 %v10602_v0 }
 0xde6   :  { %2609 = vmatpush1.bf16.msra.mxu0 %v9086_v41  ;;  %6664 = vmatpush3.bf16.msra.mxu1 %v9118_v49 }
 0xde7   :  { %2610 = vmatprep.subr.bf16.mxu0 %v9088_v33  ;;  %6665 = vmatprep.subr.bf16.mxu1 %v10602_v0 }
 0xdea   :  { %2611 = vmatpush1.bf16.msra.mxu0 %v9096_v43  ;;  %6666 = vmatpush3.bf16.msra.mxu1 %v9122_v37 }
 0xdeb   :  { %2699 = vmatprep.subr.bf16.mxu0 %v9046_v63  ;;  %6671 = vmatprep.subr.bf16.mxu1 %v10602_v0 }
 0xea0   :  { %v2527_v39 = vpop.f32.mrb[64].mxu0  ;;  %v2568_v52 = vpop.f32.mrb[80].mxu1 }
 0xea1   :  { %v2574_v24 = vadd.f32 %v2527_v39, %v1831_v35  ;;  %v2529_v51 = vpop.f32.mrb[65].mxu0  ;;  %v6649_v14 = vpop.f32.mrb[81].mxu1  ;;  %v2588_v62 = vadd.f32 %v9236_v10, %v2568_v52  ;;  %v7742_v39 = vld [vmem:[#allocation9] ss:$12 sps:$4 sm:$0xff]   ;;  %v7744_v52 = vld [vmem:[#allocation9 + $0x1c] ss:$12 sps:$4 sm:$0xff]  }
 0xea2   :  { %v2575_v12 = vadd.f32 %v2529_v51, %v1833_v59  ;;  %v2531_v13 = vpop.f32.mrb[66].mxu0  ;;  %v2571_v57 = vpop.f32.mrb[82].mxu1  ;;  %v7746_v51 = vld [vmem:[#allocation9 + $0x20] ss:$12 sps:$4 sm:$0xff]  }
 0xea3   :  { %v5843_v20 = vmul.f32 -1.442695, %v2574_v24  ;;  %v2532_v26 = vpop.f32.mrb[67].mxu0  ;;  %v6650_v44 = vpop.f32.mrb[83].mxu1  ;;  %v7745_v24 = vld [vmem:[#allocation9 + $0x18] ss:$12 sps:$4 sm:$0xff]  }
 0xea4   :  { %v5844_v56 = vmul.f32 -1.442695, %v2575_v12  ;;  %v7747_v14 = vld [vmem:[#allocation9 + $0x34] ss:$12 sps:$4 sm:$0xff]   ;;  %v7748_v12 = vld [vmem:[#allocation9 + $0x30] ss:$12 sps:$4 sm:$0xff]  }
 0xea5   :  { %7517 = vpow2.f32 %v5843_v20  ;;  %v7749_v13 = vld [vmem:[#allocation9 + $0x38] ss:$12 sps:$4 sm:$0xff]   ;;  %v7751_v20 = vld [vmem:[#allocation9 + $0x48] ss:$12 sps:$4 sm:$0xff]   ;;  %v7752_v26 = vld [vmem:[#allocation9 + $0x50] ss:$12 sps:$4 sm:$0xff]  }
 0xea6   :  { %7519 = vpow2.f32 %v5844_v56  ;;  %v7750_v57 = vld [vmem:[#allocation9 + $0x4c] ss:$12 sps:$4 sm:$0xff]   ;;  %v7753_v44 = vld [vmem:[#allocation9 + $0x64] ss:$12 sps:$4 sm:$0xff]  }
 0xea7   :  { %v7754_v56 = vld [vmem:[#allocation9 + $0x60] ss:$12 sps:$4 sm:$0xff]  }
 0xeaf   :  { %v7518_v11 = vpop.eup %7517 }
 0xeb0   :  { %v2582_v5 = vadd.f32 1.0, %v7518_v11  ;;  %v7520_v40 = vpop.eup %7519  ;;  %v7755_v11 = vld [vmem:[#allocation9 + $0x68] ss:$12 sps:$4 sm:$0xff]  }
 0xeb1   :  { %v2583_v23 = vadd.f32 1.0, %v7520_v40  ;;  %v7757_v40 = vld [vmem:[#allocation9 + $0x78] ss:$12 sps:$4 sm:$0xff]  }
 0xeb2   :  { %7521 = vrcp.f32 %v2582_v5  ;;  %v7756_v5 = vld [vmem:[#allocation9 + $0x7c] ss:$12 sps:$4 sm:$0xff]  }
 0xebc   :  { %v7522_v3 = vpop.eup %7521 }
 0xebd   :  { %v2589_v54 = vmul.f32 %v7522_v3, %v2588_v62  ;;  %v7758_v62 = vld [vmem:[#allocation9 + $0x80] ss:$12 sps:$4 sm:$0xff]  }
 0xebe   :  { %v7759_v3 = vld [vmem:[#allocation9 + $0x94] ss:$12 sps:$4 sm:$0xff]  }
 0xebf   :  { %v2590_v50 = vadd.f32 %v2589_v54, %v1900_v28  ;;  %v7760_v28 = vld [vmem:[#allocation9 + $0x90] ss:$12 sps:$4 sm:$0xff]   ;;  %v7761_v54 = vld [vmem:[#allocation9 + $0x98] ss:$12 sps:$4 sm:$0xff]  }
 0xec1   :  { %7523 = vtanh.f32 %v2590_v50  ;;  %v7762_v50 = vld [vmem:[#allocation9 + $0xac] ss:$12 sps:$4 sm:$0xff]  }
 0xec2   :  { %7525 = vrcp.f32 %v2583_v23  ;;  %v7763_v23 = vld [vmem:[#allocation9 + $0xa8] ss:$12 sps:$4 sm:$0xff]  }
 0xecb   :  { %v7524_v58 = vpop.eup %7523 }
 0xecc   :  { %v2592_v42 = vsub.f32 %v9385_v9, %v7524_v58  ;;  %v7526_v17 = vpop.eup %7525 }
 0xece   :  { %v2593_v2 = vmul.f32 %v7526_v17, %v2592_v42  ;;  %v7259_v42 = vld [vmem:[#allocation13 + $0x4] ss:$12 sps:$4 sm:$0xff]   ;;  %v7260_v17 = vld [vmem:[#allocation13 + $0x8] ss:$12 sps:$4 sm:$0xff]  }
 0xed0   :  { %v9432_v8 = vadd.f32 %v7524_v58, %v2593_v2  ;;  %v7764_v58 = vld [vmem:[#allocation9 + $0xb0] ss:$12 sps:$4 sm:$0xff]  }
 0xed1   :  { %v10612_v2 = vld [vmem:[#allocation37_spill] sm:$0xff] }
 0xed2   :  { %v2595_v35 = vpack.c.bf16 %v9432_v8, %v9432_v8 }
 0xed4   :  { %2629 = vmatmul.mubr.bf16.vlgmr.msra.gmra.mrb[68].mxu0 %v2595_v35  ;;  %6668 = vmatmul.mubr.bf16.vlgmr.msra.gmra.mrb[84].mxu1 %v2595_v35  ;;  %v10613_v35 = vld [vmem:[#allocation39_spill] sm:$0xff] }
 0xed5   :  { %2700 = vmatpush1.bf16.msra.mxu0 %v9048_v19  ;;  %6672 = vmatpush3.bf16.msra.mxu1 %v9084_v38  ;;  %v1835_v19 = vadd.f32 %v9164_v29, %v9223_v53 }
 0xed6   :  { %2701 = vmatprep.subr.bf16.mxu0 %v9052_v7  ;;  %6673 = vmatprep.subr.bf16.mxu1 %v10602_v0  ;;  %v1837_v7 = vadd.f32 %v9168_v61, %v9230_v18 }
 0xed7   :  { %2731 = vmatprep.mubr.bf16.mxu0 %v10603_v46  ;;  %6687 = vmatprep.mubr.msk.bf16.mxu1 %vm8181_vm0, %v10602_v0 }
 0xed9   :  { %2702 = vmatpush1.bf16.msra.mxu0 %v9054_v16  ;;  %6674 = vmatpush3.bf16.msra.mxu1 %v9092_v25 }
 0xeda   :  { %2703 = vmatprep.subr.bf16.mxu0 %v9058_v21  ;;  %6675 = vmatprep.subr.bf16.mxu1 %v10602_v0 }
 0xedd   :  { %2704 = vmatpush1.bf16.msra.mxu0 %v9060_v1  ;;  %6676 = vmatpush3.bf16.msra.mxu1 %v9102_v45 }
 0xede   :  { %2705 = vmatprep.subr.bf16.mxu0 %v9064_v27  ;;  %6677 = vmatprep.subr.bf16.mxu1 %v10602_v0 }
 0xee1   :  { %2706 = vmatpush1.bf16.msra.mxu0 %v9066_v31  ;;  %6678 = vmatpush3.bf16.msra.mxu1 %v9106_v60  ;;  %v1903_v60 = vadd.f32 %v9227_v4, %v9239_v55  ;;  %v7743_v4 = vld [vmem:[#allocation9 + $0x8] ss:$12 sps:$4 sm:$0xff]  }
 0xee2   :  { %2707 = vmatprep.subr.bf16.mxu0 %v9070_v34  ;;  %6679 = vmatprep.subr.bf16.mxu1 %v10602_v0 }
 0xee5   :  { %2708 = vmatpush1.bf16.msra.mxu0 %v9072_v6  ;;  %6680 = vmatpush3.bf16.msra.mxu1 %v9110_v47 }
 0xee6   :  { %2709 = vmatprep.subr.bf16.mxu0 %v9076_v22  ;;  %6681 = vmatprep.subr.bf16.mxu1 %v10602_v0 }
 0xee9   :  { %2710 = vmatpush1.bf16.msra.mxu0 %v9078_v30  ;;  %6682 = vmatpush3.bf16.msra.mxu1 %v9114_v48 }
 0xeea   :  { %2711 = vmatprep.subr.bf16.mxu0 %v9082_v36  ;;  %6683 = vmatprep.subr.bf16.mxu1 %v10602_v0 }
 0xeed   :  { %2712 = vmatpush1.bf16.msra.mxu0 %v9086_v41  ;;  %6684 = vmatpush3.bf16.msra.mxu1 %v9118_v49 }
 0xeee   :  { %2713 = vmatprep.subr.bf16.mxu0 %v9088_v33  ;;  %6685 = vmatprep.subr.bf16.mxu1 %v10602_v0 }
 0xef1   :  { %2714 = vmatpush1.bf16.msra.mxu0 %v9096_v43  ;;  %6686 = vmatpush3.bf16.msra.mxu1 %v9122_v37 }
 0xef2   :  { %2802 = vmatprep.subr.bf16.mxu0 %v9046_v63  ;;  %6691 = vmatprep.subr.bf16.mxu1 %v10602_v0 }
 0xfa7   :  { %v2630_v16 = vpop.f32.mrb[68].mxu0  ;;  %v2671_v21 = vpop.f32.mrb[84].mxu1 }
 0xfa8   :  { %v2677_v1 = vadd.f32 %v2630_v16, %v1835_v19  ;;  %v2632_v27 = vpop.f32.mrb[69].mxu0  ;;  %v6669_v31 = vpop.f32.mrb[85].mxu1  ;;  %v2691_v43 = vadd.f32 %v9236_v10, %v2671_v21  ;;  %v1843_v19 = vadd.f32 %v10613_v35, %v9230_v18  ;;  %v9524_v35 = vld [vmem:[#allocation15 + $0x18] ss:$12 sps:$4 sm:$0xff]  }
 0xfa9   :  { %v2678_v34 = vadd.f32 %v2632_v27, %v1837_v7  ;;  %v2634_v6 = vpop.f32.mrb[70].mxu0  ;;  %v2674_v22 = vpop.f32.mrb[86].mxu1 }
 0xfaa   :  { %v5845_v30 = vmul.f32 -1.442695, %v2677_v1  ;;  %v2635_v36 = vpop.f32.mrb[71].mxu0  ;;  %v6670_v38 = vpop.f32.mrb[87].mxu1 }
 0xfab   :  { %v5846_v63 = vmul.f32 -1.442695, %v2678_v34 }
 0xfac   :  { %7527 = vpow2.f32 %v5845_v30 }
 0xfad   :  { %7529 = vpow2.f32 %v5846_v63 }
 0xfb6   :  { %v7528_v41 = vpop.eup %7527 }
 0xfb7   :  { %v2685_v33 = vadd.f32 1.0, %v7528_v41  ;;  %v7530_v25 = vpop.eup %7529 }
 0xfb8   :  { %v2686_v49 = vadd.f32 1.0, %v7530_v25 }
 0xfb9   :  { %7531 = vrcp.f32 %v2685_v33 }
 0xfc3   :  { %v7532_v45 = vpop.eup %7531 }
 0xfc4   :  { %v2692_v47 = vmul.f32 %v7532_v45, %v2691_v43  ;;  %v10614_v45 = vld [vmem:[#allocation38_spill] sm:$0xff] }
 0xfc6   :  { %v2693_v48 = vadd.f32 %v2692_v47, %v1903_v60  ;;  %v1908_v60 = vadd.f32 %v10614_v45, %v9239_v55  ;;  %v9591_v45 = vld [vmem:[#allocation15 + $0xac] ss:$12 sps:$4 sm:$0xff]  }
 0xfc8   :  { %7533 = vtanh.f32 %v2693_v48 }
 0xfc9   :  { %7535 = vrcp.f32 %v2686_v49 }
 0xfd2   :  { %v7534_v37 = vpop.eup %7533 }
 0xfd3   :  { %v2695_v29 = vsub.f32 %v9432_v8, %v7534_v37  ;;  %v7536_v61 = vpop.eup %7535  ;;  %v1841_v8 = vadd.f32 %v10612_v2, %v9223_v53  ;;  %v9516_v2 = vld [vmem:[#allocation15 + $0x8] ss:$12 sps:$4 sm:$0xff]  }
 0xfd5   :  { %v2696_v15 = vmul.f32 %v7536_v61, %v2695_v29 }
 0xfd7   :  { %v9479_v9 = vadd.f32 %v7534_v37, %v2696_v15 }
 0xfd9   :  { %v2698_v59 = vpack.c.bf16 %v9479_v9, %v9479_v9 }
 0xfdb   :  { %2732 = vmatmul.mubr.bf16.vlgmr.msra.gmra.mrb[72].mxu0 %v2698_v59  ;;  %6688 = vmatmul.mubr.bf16.vlgmr.msra.gmra.mrb[88].mxu1 %v2698_v59 }
 0xfdc   :  { %2803 = vmatpush1.bf16.msra.mxu0 %v7742_v39  ;;  %6692 = vmatpush3.bf16.msra.mxu1 %v7743_v4  ;;  %v7257_v39 = vld [vmem:[#allocation13] ss:$12 sps:$4 sm:$0xff]   ;;  %v7263_v4 = vld [vmem:[#allocation13 + $0x1c] ss:$12 sps:$4 sm:$0xff]  }
 0xfdd   :  { %2804 = vmatprep.subr.bf16.mxu0 %v7744_v52  ;;  %6693 = vmatprep.subr.bf16.mxu1 %v10602_v0  ;;  %v7264_v52 = vld [vmem:[#allocation13 + $0x20] ss:$12 sps:$4 sm:$0xff]  }
 0xfde   :  { %2834 = vmatprep.mubr.bf16.mxu0 %v10603_v46  ;;  %6707 = vmatprep.mubr.msk.bf16.mxu1 %vm8181_vm0, %v10602_v0 }
 0xfe0   :  { %2805 = vmatpush1.bf16.msra.mxu0 %v7745_v24  ;;  %6694 = vmatpush3.bf16.msra.mxu1 %v7746_v51  ;;  %v7289_v24 = vld [vmem:[%s10615_s21] sm:$0xff]  }
 0xfe1   :  { %2806 = vmatprep.subr.bf16.mxu0 %v7747_v14  ;;  %6695 = vmatprep.subr.bf16.mxu1 %v10602_v0  ;;  %v7261_v51 = vld [vmem:[#allocation13 + $0x18] ss:$12 sps:$4 sm:$0xff]  }
 0xfe2   :  { %v7268_v14 = vld [vmem:[#allocation13 + $0x38] ss:$12 sps:$4 sm:$0xff]  }
 0xfe4   :  { %2807 = vmatpush1.bf16.msra.mxu0 %v7748_v12  ;;  %6696 = vmatpush3.bf16.msra.mxu1 %v7749_v13  ;;  %v7265_v12 = vld [vmem:[#allocation13 + $0x30] ss:$12 sps:$4 sm:$0xff]   ;;  %v7271_v13 = vld [vmem:[#allocation13 + $0x4c] ss:$12 sps:$4 sm:$0xff]  }
 0xfe5   :  { %2808 = vmatprep.subr.bf16.mxu0 %v7750_v57  ;;  %6697 = vmatprep.subr.bf16.mxu1 %v10602_v0  ;;  %v7272_v57 = vld [vmem:[#allocation13 + $0x50] ss:$12 sps:$4 sm:$0xff]  }
 0xfe8   :  { %2809 = vmatpush1.bf16.msra.mxu0 %v7751_v20  ;;  %6698 = vmatpush3.bf16.msra.mxu1 %v7752_v26  ;;  %v7269_v20 = vld [vmem:[#allocation13 + $0x48] ss:$12 sps:$4 sm:$0xff]   ;;  %v7275_v26 = vld [vmem:[#allocation13 + $0x64] ss:$12 sps:$4 sm:$0xff]  }
 0xfe9   :  { %2810 = vmatprep.subr.bf16.mxu0 %v7753_v44  ;;  %6699 = vmatprep.subr.bf16.mxu1 %v10602_v0  ;;  %v7276_v44 = vld [vmem:[#allocation13 + $0x68] ss:$12 sps:$4 sm:$0xff]  }
 0xfec   :  { %2811 = vmatpush1.bf16.msra.mxu0 %v7754_v56  ;;  %6700 = vmatpush3.bf16.msra.mxu1 %v7755_v11  ;;  %v7273_v56 = vld [vmem:[#allocation13 + $0x60] ss:$12 sps:$4 sm:$0xff]   ;;  %v7279_v11 = vld [vmem:[#allocation13 + $0x7c] ss:$12 sps:$4 sm:$0xff]  }
 0xfed   :  { %2812 = vmatprep.subr.bf16.mxu0 %v7756_v5  ;;  %6701 = vmatprep.subr.bf16.mxu1 %v10602_v0  ;;  %v7280_v5 = vld [vmem:[#allocation13 + $0x80] ss:$12 sps:$4 sm:$0xff]  }
 0xff0   :  { %2813 = vmatpush1.bf16.msra.mxu0 %v7757_v40  ;;  %6702 = vmatpush3.bf16.msra.mxu1 %v7758_v62  ;;  %v7277_v40 = vld [vmem:[#allocation13 + $0x78] ss:$12 sps:$4 sm:$0xff]   ;;  %v7283_v62 = vld [vmem:[#allocation13 + $0x94] ss:$12 sps:$4 sm:$0xff]  }
 0xff1   :  { %2814 = vmatprep.subr.bf16.mxu0 %v7759_v3  ;;  %6703 = vmatprep.subr.bf16.mxu1 %v10602_v0  ;;  %v7284_v3 = vld [vmem:[#allocation13 + $0x98] ss:$12 sps:$4 sm:$0xff]  }
 0xff4   :  { %2815 = vmatpush1.bf16.msra.mxu0 %v7760_v28  ;;  %6704 = vmatpush3.bf16.msra.mxu1 %v7761_v54  ;;  %v7281_v28 = vld [vmem:[#allocation13 + $0x90] ss:$12 sps:$4 sm:$0xff]   ;;  %v7287_v54 = vld [vmem:[#allocation13 + $0xac] ss:$12 sps:$4 sm:$0xff]  }
 0xff5   :  { %2816 = vmatprep.subr.bf16.mxu0 %v7762_v50  ;;  %6705 = vmatprep.subr.bf16.mxu1 %v10602_v0  ;;  %v7288_v50 = vld [vmem:[#allocation13 + $0xb0] ss:$12 sps:$4 sm:$0xff]  }
 0xff8   :  { %2817 = vmatpush1.bf16.msra.mxu0 %v7763_v23  ;;  %6706 = vmatpush3.bf16.msra.mxu1 %v7764_v58  ;;  %v7285_v23 = vld [vmem:[#allocation13 + $0xa8] ss:$12 sps:$4 sm:$0xff]   ;;  %v9509_v58 = vld [vmem:[#allocation15 + $0x4] ss:$12 sps:$4 sm:$0xff]  }
 0xff9   :  { %3115 = vmatprep.subr.bf16.mxu0 %v7259_v42  ;;  %6711 = vmatprep.subr.bf16.mxu1 %v7260_v17  ;;  %v7292_v42 = vld [vmem:[%s10615_s21 + $0x8] sm:$0xff]  }
0x10ae   :  { %v2733_v7 = vpop.f32.mrb[72].mxu0  ;;  %v2774_v16 = vpop.f32.mrb[88].mxu1 }
0x10af   :  { %v2780_v21 = vadd.f32 %v2733_v7, %v1841_v8  ;;  %v2735_v1 = vpop.f32.mrb[73].mxu0  ;;  %v6689_v27 = vpop.f32.mrb[89].mxu1  ;;  %v2794_v25 = vadd.f32 %v9236_v10, %v2774_v16  ;;  %v9520_v8 = vld [vmem:[#allocation15 + $0x1c] ss:$12 sps:$4 sm:$0xff]   ;;  %v9533_v16 = vld [vmem:[#allocation15 + $0x34] ss:$12 sps:$4 sm:$0xff]  }
0x10b0   :  { %v2781_v31 = vadd.f32 %v2735_v1, %v1843_v19  ;;  %v2737_v34 = vpop.f32.mrb[74].mxu0  ;;  %v2777_v6 = vpop.f32.mrb[90].mxu1  ;;  %v9526_v19 = vld [vmem:[#allocation15 + $0x20] ss:$12 sps:$4 sm:$0xff]   ;;  %v9541_v1 = vld [vmem:[#allocation15 + $0x30] ss:$12 sps:$4 sm:$0xff]  }
0x10b1   :  { %v5847_v22 = vmul.f32 -1.442695, %v2780_v21  ;;  %v2738_v30 = vpop.f32.mrb[75].mxu0  ;;  %v6690_v36 = vpop.f32.mrb[91].mxu1  ;;  %v7307_v7 = vld [vmem:[%s10615_s21 + $0x10] sm:$0xff]   ;;  %v7316_v21 = vld [vmem:[%s10615_s21 + $0x18] sm:$0xff]  }
0x10b2   :  { %v5848_v38 = vmul.f32 -1.442695, %v2781_v31  ;;  %v9543_v27 = vld [vmem:[#allocation15 + $0x38] ss:$12 sps:$4 sm:$0xff]   ;;  %v9551_v34 = vld [vmem:[#allocation15 + $0x48] ss:$12 sps:$4 sm:$0xff]  }
0x10b3   :  { %7537 = vpow2.f32 %v5847_v22  ;;  %v9547_v31 = vld [vmem:[#allocation15 + $0x4c] ss:$12 sps:$4 sm:$0xff]   ;;  %v9553_v6 = vld [vmem:[#allocation15 + $0x50] ss:$12 sps:$4 sm:$0xff]   ;;  %v9566_v36 = vld [vmem:[#allocation15 + $0x68] ss:$12 sps:$4 sm:$0xff]  }
0x10b4   :  { %7539 = vpow2.f32 %v5848_v38  ;;  %v9557_v22 = vld [vmem:[#allocation15 + $0x64] ss:$12 sps:$4 sm:$0xff]   ;;  %v9564_v30 = vld [vmem:[#allocation15 + $0x60] ss:$12 sps:$4 sm:$0xff]   ;;  %v9570_v38 = vld [vmem:[#allocation15 + $0x7c] ss:$12 sps:$4 sm:$0xff]  }
0x10bd   :  { %v7538_v63 = vpop.eup %7537 }
0x10be   :  { %v2788_v41 = vadd.f32 1.0, %v7538_v63  ;;  %v7540_v33 = vpop.eup %7539  ;;  %v9574_v63 = vld [vmem:[#allocation15 + $0x78] ss:$12 sps:$4 sm:$0xff]  }
0x10bf   :  { %v2789_v49 = vadd.f32 1.0, %v7540_v33  ;;  %v9580_v33 = vld [vmem:[#allocation15 + $0x94] ss:$12 sps:$4 sm:$0xff]  }
0x10c0   :  { %7541 = vrcp.f32 %v2788_v41  ;;  %v9576_v41 = vld [vmem:[#allocation15 + $0x80] ss:$12 sps:$4 sm:$0xff]  }
0x10ca   :  { %v7542_v43 = vpop.eup %7541 }
0x10cb   :  { %v2795_v47 = vmul.f32 %v7542_v43, %v2794_v25  ;;  %v9585_v25 = vld [vmem:[#allocation15 + $0x90] ss:$12 sps:$4 sm:$0xff]   ;;  %v9587_v43 = vld [vmem:[#allocation15 + $0x98] ss:$12 sps:$4 sm:$0xff]  }
0x10cd   :  { %v2796_v48 = vadd.f32 %v2795_v47, %v1908_v60  ;;  %v2912_v60 = vld [vmem:[%s10616_s4] sm:$0xff] }
0x10ce   :  { %v9598_v47 = vld [vmem:[#allocation15 + $0xa8] ss:$12 sps:$4 sm:$0xff]  }
0x10cf   :  { %7543 = vtanh.f32 %v2796_v48  ;;  %v9600_v48 = vld [vmem:[#allocation15 + $0xb0] ss:$12 sps:$4 sm:$0xff]  }
0x10d0   :  { %7545 = vrcp.f32 %v2789_v49  ;;  %v10617_v49 = vld [vmem:[#allocation36_spill] sm:$0xff] }
0x10d9   :  { %v7544_v37 = vpop.eup %7543 }
0x10da   :  { %v2798_v29 = vsub.f32 %v9479_v9, %v7544_v37  ;;  %v7546_v61 = vpop.eup %7545  ;;  %v7267_v9 = vld [vmem:[#allocation13 + $0x34] ss:$12 sps:$4 sm:$0xff]  }
0x10dc   :  { %v2799_v15 = vmul.f32 %v7546_v61, %v2798_v29  ;;  %v10618_v61 = vld [vmem:[#allocation40_spill] sm:$0xff] }
0x10de   :  { %v9501_v59 = vadd.f32 %v7544_v37, %v2799_v15  ;;  %v9603_v37 = vadd.f32 %v2912_v60, %v10617_v49  ;;  %v1845_v15 = vadd.f32 %v10618_v61, %v9223_v53  ;;  %v10621_v60 = vld [vmem:[#allocation33_spill] sm:$0xff] }
0x10e0   :  { %v2801_v10 = vpack.c.bf16 %v9501_v59, %v9501_v59  ;;  %v3292_v29 = vpack.c.bf16 %v9603_v37, %v9603_v37 }
0x10e2   :  { %2835 = vmatmul.mubr.bf16.vlgmr.msra.gmra.mrb[76].mxu0 %v2801_v10  ;;  %6708 = vmatmul.mubr.bf16.vlgmr.msra.gmra.mrb[92].mxu1 %v2801_v10 }
0x10e3   :  { %3116 = vmatpush1.bf16.msra.mxu0 %v7257_v39  ;;  %6712 = vmatpush3.bf16.msra.mxu1 %v7260_v17  ;;  %v9514_v17 = vld [vmem:[#allocation15] ss:$12 sps:$4 sm:$0xff]   ;;  %v10619_v39 = vld [vmem:[#allocation42_spill] sm:$0xff] }
0x10e4   :  { %3117 = vmatprep.subr.bf16.mxu0 %v7263_v4  ;;  %6713 = vmatprep.subr.bf16.mxu1 %v7264_v52  ;;  %v1847_v10 = vadd.f32 %v10619_v39, %v9230_v18  ;;  %v10622_v39 = vld [vmem:[#allocation34_spill] sm:$0xff] }
0x10e5   :  { %3147 = vmatprep.mubr.bf16.mxu0 %v10603_v46  ;;  %6727 = vmatprep.mubr.bf16.mxu1 %v7289_v24 }
0x10e7   :  { %3118 = vmatpush1.bf16.msra.mxu0 %v7261_v51  ;;  %6714 = vmatpush3.bf16.msra.mxu1 %v7264_v52 }
0x10e8   :  { %3119 = vmatprep.subr.bf16.mxu0 %v7267_v9  ;;  %6715 = vmatprep.subr.bf16.mxu1 %v7268_v14 }
0x10eb   :  { %3120 = vmatpush1.bf16.msra.mxu0 %v7265_v12  ;;  %6716 = vmatpush3.bf16.msra.mxu1 %v7268_v14 }
0x10ec   :  { %3121 = vmatprep.subr.bf16.mxu0 %v7271_v13  ;;  %6717 = vmatprep.subr.bf16.mxu1 %v7272_v57 }
0x10ef   :  { %3122 = vmatpush1.bf16.msra.mxu0 %v7269_v20  ;;  %6718 = vmatpush3.bf16.msra.mxu1 %v7272_v57 }
0x10f0   :  { %3123 = vmatprep.subr.bf16.mxu0 %v7275_v26  ;;  %6719 = vmatprep.subr.bf16.mxu1 %v7276_v44 }
0x10f3   :  { %3124 = vmatpush1.bf16.msra.mxu0 %v7273_v56  ;;  %6720 = vmatpush3.bf16.msra.mxu1 %v7276_v44 }
0x10f4   :  { %3125 = vmatprep.subr.bf16.mxu0 %v7279_v11  ;;  %6721 = vmatprep.subr.bf16.mxu1 %v7280_v5 }
0x10f7   :  { %3126 = vmatpush1.bf16.msra.mxu0 %v7277_v40  ;;  %6722 = vmatpush3.bf16.msra.mxu1 %v7280_v5  ;;  %v7765_v5 = vld [vmem:[#allocation12] ss:$0 sm:$0xff] }
0x10f8   :  { %3127 = vmatprep.subr.bf16.mxu0 %v7283_v62  ;;  %6723 = vmatprep.subr.bf16.mxu1 %v7284_v3  ;;  %v2946_v62 = vld [vmem:[#allocation16] sm:$0x7] }
0x10f9   :  { %v2951_v49 = vrot.slane %v2946_v62, %v10621_v60 }
0x10fb   :  { %3128 = vmatpush1.bf16.msra.mxu0 %v7281_v28  ;;  %6724 = vmatpush3.bf16.msra.mxu1 %v7284_v3  ;;  %v10620_v3 = vld [vmem:[#allocation41_spill] sm:$0xff] }
0x10fc   :  { %3129 = vmatprep.subr.bf16.mxu0 %v7287_v54  ;;  %6725 = vmatprep.subr.bf16.mxu1 %v7288_v50  ;;  %v1911_v28 = vadd.f32 %v10620_v3, %v9239_v55 }
0x10ff   :  { %3130 = vmatpush1.bf16.msra.mxu0 %v7285_v23  ;;  %6726 = vmatpush3.bf16.msra.mxu1 %v7288_v50  ;;  %v9656_v50 = vrot.slane %v2946_v62, %v10611_v32 }
0x1100   :  { %3421 = vmatprep.subr.bf16.mxu0 %v9509_v58  ;;  %6735 = vmatprep.subr.bf16.mxu1 %v10602_v0 }
0x1102   :  { %3148 = vmatmul.mubr.bf16.vlgmr.msra.gmra.mrb[80].mxu0 %v7289_v24  ;;  %6728 = vmatmul.mubr.bf16.vlgmr.msra.gmra.mrb[96].mxu1 %v7292_v42 }
0x1103   :  { %3422 = vmatpush1.bf16.msra.mxu0 %v9514_v17  ;;  %6736 = vmatpush3.bf16.msra.mxu1 %v9516_v2 }
0x1104   :  { %3423 = vmatprep.subr.bf16.mxu0 %v9520_v8  ;;  %6737 = vmatprep.subr.bf16.mxu1 %v10602_v0 }
0x1105   :  { %3157 = vmatprep.mubr.bf16.mxu0 %v10603_v46  ;;  %6731 = vmatprep.mubr.bf16.mxu1 %v7307_v7 }
0x1107   :  { %3424 = vmatpush1.bf16.msra.mxu0 %v9524_v35  ;;  %6738 = vmatpush3.bf16.msra.mxu1 %v9526_v19 }
0x1108   :  { %3425 = vmatprep.subr.bf16.mxu0 %v9533_v16  ;;  %6739 = vmatprep.subr.bf16.mxu1 %v10602_v0 }
0x110a   :  { %3158 = vmatmul.mubr.bf16.gmra.mrb[84].mxu0 %v7292_v42  ;;  %6732 = vmatmul.mubr.bf16.gmra.mrb[100].mxu1 %v7316_v21 }
0x110b   :  { %3426 = vmatpush1.bf16.msra.mxu0 %v9541_v1  ;;  %6740 = vmatpush3.bf16.msra.mxu1 %v9543_v27 }
0x110c   :  { %3427 = vmatprep.subr.bf16.mxu0 %v9547_v31  ;;  %6741 = vmatprep.subr.bf16.mxu1 %v10602_v0 }
0x110d   :  { %3167 = vmatprep.mubr.bf16.mxu0 %v10603_v46  ;;  %6751 = vmatprep.mubr.msk.bf16.mxu1 %vm8181_vm0, %v10602_v0 }
0x110f   :  { %3428 = vmatpush1.bf16.msra.mxu0 %v9551_v34  ;;  %6742 = vmatpush3.bf16.msra.mxu1 %v9553_v6 }
0x1110   :  { %3429 = vmatprep.subr.bf16.mxu0 %v9557_v22  ;;  %6743 = vmatprep.subr.bf16.mxu1 %v10602_v0 }
0x1112   :  { %3168 = vmatmul.mubr.bf16.gmra.mrb[88].mxu0 %v7307_v7 }
0x1113   :  { %3430 = vmatpush1.bf16.msra.mxu0 %v9564_v30  ;;  %6744 = vmatpush3.bf16.msra.mxu1 %v9566_v36 }
0x1114   :  { %3431 = vmatprep.subr.bf16.mxu0 %v9570_v38  ;;  %6745 = vmatprep.subr.bf16.mxu1 %v10602_v0 }
0x1115   :  { %3177 = vmatprep.mubr.bf16.mxu0 %v10603_v46 }
0x1117   :  { %3432 = vmatpush1.bf16.msra.mxu0 %v9574_v63  ;;  %6746 = vmatpush3.bf16.msra.mxu1 %v9576_v41 }
0x1118   :  { %3433 = vmatprep.subr.bf16.mxu0 %v9580_v33  ;;  %6747 = vmatprep.subr.bf16.mxu1 %v10602_v0 }
0x111a   :  { %3178 = vmatmul.mubr.bf16.gmra.mrb[92].mxu0 %v7316_v21 }
0x111b   :  { %3434 = vmatpush1.bf16.msra.mxu0 %v9585_v25  ;;  %6748 = vmatpush3.bf16.msra.mxu1 %v9587_v43 }
0x111c   :  { %3435 = vmatprep.subr.bf16.mxu0 %v9591_v45  ;;  %6749 = vmatprep.subr.bf16.mxu1 %v10602_v0 }
0x111d   :  { %3453 = vmatprep.mubr.bf16.mxu0 %v10603_v46 }
0x111f   :  { %3436 = vmatpush1.bf16.msra.mxu0 %v9598_v47  ;;  %6750 = vmatpush3.bf16.msra.mxu1 %v9600_v48 }
0x1120   :  { %3524 = vmatprep.subr.bf16.mxu0 %v9509_v58  ;;  %6755 = vmatprep.subr.bf16.mxu1 %v10602_v0 }
0x1122   :  { %3454 = vmatmul.mubr.bf16.vlgmr.msra.gmra.mrb[96].mxu0 %v3292_v29  ;;  %6752 = vmatmul.mubr.bf16.vlgmr.msra.gmra.mrb[104].mxu1 %v3292_v29 }
0x1123   :  { %3525 = vmatpush1.bf16.msra.mxu0 %v9514_v17  ;;  %6756 = vmatpush3.bf16.msra.mxu1 %v9516_v2 }
0x1124   :  { %3526 = vmatprep.subr.bf16.mxu0 %v9520_v8  ;;  %6757 = vmatprep.subr.bf16.mxu1 %v10602_v0 }
0x1125   :  { %3556 = vmatprep.mubr.bf16.mxu0 %v10603_v46  ;;  %6771 = vmatprep.mubr.msk.bf16.mxu1 %vm8181_vm0, %v10602_v0 }
0x1127   :  { %3527 = vmatpush1.bf16.msra.mxu0 %v9524_v35  ;;  %6758 = vmatpush3.bf16.msra.mxu1 %v9526_v19 }
0x1128   :  { %3528 = vmatprep.subr.bf16.mxu0 %v9533_v16  ;;  %6759 = vmatprep.subr.bf16.mxu1 %v10602_v0 }
0x112b   :  { %3529 = vmatpush1.bf16.msra.mxu0 %v9541_v1  ;;  %6760 = vmatpush3.bf16.msra.mxu1 %v9543_v27 }
0x112c   :  { %3530 = vmatprep.subr.bf16.mxu0 %v9547_v31  ;;  %6761 = vmatprep.subr.bf16.mxu1 %v10602_v0 }
0x112f   :  { %3531 = vmatpush1.bf16.msra.mxu0 %v9551_v34  ;;  %6762 = vmatpush3.bf16.msra.mxu1 %v9553_v6 }
0x1130   :  { %3532 = vmatprep.subr.bf16.mxu0 %v9557_v22  ;;  %6763 = vmatprep.subr.bf16.mxu1 %v10602_v0 }
0x1133   :  { %3533 = vmatpush1.bf16.msra.mxu0 %v9564_v30  ;;  %6764 = vmatpush3.bf16.msra.mxu1 %v9566_v36 }
0x1134   :  { %3534 = vmatprep.subr.bf16.mxu0 %v9570_v38  ;;  %6765 = vmatprep.subr.bf16.mxu1 %v10602_v0 }
0x1137   :  { %3535 = vmatpush1.bf16.msra.mxu0 %v9574_v63  ;;  %6766 = vmatpush3.bf16.msra.mxu1 %v9576_v41 }
0x1138   :  { %3536 = vmatprep.subr.bf16.mxu0 %v9580_v33  ;;  %6767 = vmatprep.subr.bf16.mxu1 %v10602_v0 }
0x113b   :  { %3537 = vmatpush1.bf16.msra.mxu0 %v9585_v25  ;;  %6768 = vmatpush3.bf16.msra.mxu1 %v9587_v43 }
0x113c   :  { %3538 = vmatprep.subr.bf16.mxu0 %v9591_v45  ;;  %6769 = vmatprep.subr.bf16.mxu1 %v10602_v0 }
0x113f   :  { %3539 = vmatpush1.bf16.msra.mxu0 %v9598_v47  ;;  %6770 = vmatpush3.bf16.msra.mxu1 %v9600_v48 }
0x1140   :  { %3627 = vmatprep.subr.bf16.mxu0 %v9509_v58  ;;  %6775 = vmatprep.subr.bf16.mxu1 %v10602_v0 }
0x11b5   :  { %v2836_v4 = vpop.f32.mrb[76].mxu0  ;;  %v2877_v52 = vpop.f32.mrb[92].mxu1 }
0x11b6   :  { %v2883_v24 = vadd.f32 %v2836_v4, %v1845_v15  ;;  %v2838_v51 = vpop.f32.mrb[77].mxu0  ;;  %v6709_v9 = vpop.f32.mrb[93].mxu1  ;;  %v2897_v18 = vadd.f32 %v7765_v5, %v2877_v52 }
0x11b7   :  { %v2884_v14 = vadd.f32 %v2838_v51, %v1847_v10  ;;  %v2840_v12 = vpop.f32.mrb[78].mxu0  ;;  %v2880_v13 = vpop.f32.mrb[94].mxu1  ;;  %v2955_v10 = vrot.slane %v2946_v62, %v10622_v39 }
0x11b8   :  { %v5849_v57 = vmul.f32 -1.442695, %v2883_v24  ;;  %v2841_v20 = vpop.f32.mrb[79].mxu0  ;;  %v6710_v26 = vpop.f32.mrb[95].mxu1 }
0x11b9   :  { %v5850_v44 = vmul.f32 -1.442695, %v2884_v14 }
0x11ba   :  { %7547 = vpow2.f32 %v5849_v57 }
0x11bb   :  { %7549 = vpow2.f32 %v5850_v44 }
0x11c4   :  { %v7548_v56 = vpop.eup %7547 }
0x11c5   :  { %v2891_v11 = vadd.f32 1.0, %v7548_v56  ;;  %v7550_v53 = vpop.eup %7549 }
0x11c6   :  { %v2892_v42 = vadd.f32 1.0, %v7550_v53 }
0x11c7   :  { %7551 = vrcp.f32 %v2891_v11 }
0x11d1   :  { %v7552_v40 = vpop.eup %7551 }
0x11d2   :  { %v2898_v54 = vmul.f32 %v7552_v40, %v2897_v18 }
0x11d4   :  { %v2899_v23 = vadd.f32 %v2898_v54, %v1911_v28 }
0x11d5   :  { %v3149_v7 = vpop.f32.mrb[80].mxu0  ;;  %v6729_v21 = vpop.f32.mrb[96].mxu1 }
0x11d6   :  { %7553 = vtanh.f32 %v2899_v23  ;;  %v3151_v29 = vpop.f32.mrb[81].mxu0  ;;  %v9660_v61 = vadd.f32 %v6729_v21, %v9656_v50  ;;  %v9662_v15 = vpop.f32.mrb[97].mxu1 }
0x11d7   :  { %v3153_v55 = vpop.f32.mrb[82].mxu0  ;;  %v6730_v4 = vpop.f32.mrb[98].mxu1  ;;  %7555 = vrcp.f32 %v2892_v42 }
0x11d8   :  { %v9665_v52 = vadd.f32 %v3153_v55, %v2951_v49  ;;  %v3155_v24 = vpop.f32.mrb[83].mxu0  ;;  %v9668_v51 = vadd.f32 %v6730_v4, %v9656_v50  ;;  %v3225_v9 = vpop.f32.mrb[99].mxu1 }
0x11d9   :  { %v9670_v14 = vadd.f32 %v3155_v24, %v2955_v10  ;;  %v9673_v12 = vadd.f32 %v3225_v9, %v9656_v50 }
0x11dd   :  { %v3159_v13 = vpop.f32.mrb[84].mxu0  ;;  %v6733_v57 = vpop.f32.mrb[100].mxu1 }
0x11de   :  { %v9675_v20 = vadd.f32 %v3159_v13, %v2951_v49  ;;  %v3161_v26 = vpop.f32.mrb[85].mxu0  ;;  %v9678_v44 = vadd.f32 %v6733_v57, %v9656_v50  ;;  %v3238_v56 = vpop.f32.mrb[101].mxu1 }
0x11df   :  { %v9680_v11 = vadd.f32 %v3161_v26, %v2955_v10  ;;  %v3163_v53 = vpop.f32.mrb[86].mxu0  ;;  %v9683_v5 = vadd.f32 %v3238_v56, %v9656_v50  ;;  %v6734_v18 = vpop.f32.mrb[102].mxu1 }
0x11e0   :  { %10623 = vst [vmem:[#allocation37_spill] sm:$0xff] %v9678_v44  ;;  %v7554_v40 = vpop.eup %7553  ;;  %v9685_v62 = vadd.f32 %v3163_v53, %v2951_v49  ;;  %v3165_v3 = vpop.f32.mrb[87].mxu0  ;;  %v9688_v28 = vadd.f32 %v6734_v18, %v9656_v50 }
0x11e1   :  { %v3241_v54 = vpop.f32.mrb[103].mxu1  ;;  %v2901_v23 = vsub.f32 %v9501_v59, %v7554_v40  ;;  %v9691_v42 = vadd.f32 %v3165_v3, %v2955_v10  ;;  %v7556_v55 = vpop.eup %7555 }
0x11e2   :  { %10624 = vst [vmem:[#allocation39_spill] sm:$0xff] %v9688_v28  ;;  %v9694_v21 = vadd.f32 %v3241_v54, %v9656_v50 }
0x11e3   :  { %v2902_v4 = vmul.f32 %v7556_v55, %v2901_v23 }
0x11e4   :  { %10625 = vst [vmem:[#allocation38_spill] sm:$0xff] %v9694_v21 }
0x11e5   :  { %v3169_v24 = vpop.f32.mrb[88].mxu0  ;;  %v9696_v9 = vadd.f32 %v7554_v40, %v2902_v4 }
0x11e6   :  { %v9698_v13 = vadd.f32 %v3169_v24, %v2951_v49  ;;  %v3171_v57 = vpop.f32.mrb[89].mxu0  ;;  %v3150_v24 = vadd.f32 %v3149_v7, %v2951_v49 }
0x11e7   :  { %10626 = vst [vmem:[#allocation36_spill] sm:$0xff] %v9696_v9  ;;  %v9700_v26 = vadd.f32 %v3171_v57, %v2955_v10  ;;  %v3173_v56 = vpop.f32.mrb[90].mxu0  ;;  %v3152_v57 = vadd.f32 %v3151_v29, %v2955_v10  ;;  %v3223_v29 = vadd.f32 %v9662_v15, %v9656_v50 }
0x11e8   :  { %v9702_v53 = vadd.f32 %v3173_v56, %v2951_v49  ;;  %v3175_v18 = vpop.f32.mrb[91].mxu0 }
0x11e9   :  { %v9704_v59 = vadd.f32 %v3175_v18, %v2955_v10 }
0x11eb   :  { %10627 = vst [vmem:[#allocation40_spill] sm:$0xff] %v9704_v59 }
0x11ed   :  { %v3179_v3 = vpop.f32.mrb[92].mxu0 }
0x11ee   :  { %v9706_v32 = vadd.f32 %v3179_v3, %v2951_v49  ;;  %v3181_v54 = vpop.f32.mrb[93].mxu0 }
0x11ef   :  { %v9708_v39 = vadd.f32 %v3181_v54, %v2955_v10  ;;  %v3183_v23 = vpop.f32.mrb[94].mxu0 }
0x11f0   :  { %10628 = vst [vmem:[#allocation42_spill] sm:$0xff] %v9706_v32  ;;  %v9710_v40 = vadd.f32 %v3183_v23, %v2951_v49  ;;  %v3185_v55 = vpop.f32.mrb[95].mxu0 }
0x11f1   :  { %10629 = vst [vmem:[#allocation41_spill] sm:$0xff] %v9708_v39  ;;  %v9712_v4 = vadd.f32 %v3185_v55, %v2955_v10  ;;  %v9714_v55 = vld [vmem:[#allocation18] ss:$0 sm:$0xff] }
0x11f2   :  { %10630 = vst [vmem:[#allocation43_spill] sm:$0xff] %v9710_v40 }
0x11f5   :  { %v3455_v60 = vpop.f32.mrb[96].mxu0  ;;  %v3496_v56 = vpop.f32.mrb[104].mxu1 }
0x11f6   :  { %v3502_v9 = vadd.f32 %v3455_v60, %v3150_v24  ;;  %v3457_v28 = vpop.f32.mrb[97].mxu0  ;;  %v6753_v18 = vpop.f32.mrb[105].mxu1  ;;  %v3516_v49 = vadd.f32 %v9714_v55, %v3496_v56 }
0x11f7   :  { %v3503_v44 = vadd.f32 %v3457_v28, %v3152_v57  ;;  %v3459_v21 = vpop.f32.mrb[98].mxu0  ;;  %v3499_v3 = vpop.f32.mrb[106].mxu1 }
0x11f8   :  { %v5904_v32 = vmul.f32 -1.442695, %v3502_v9  ;;  %v3460_v59 = vpop.f32.mrb[99].mxu0  ;;  %v6754_v54 = vpop.f32.mrb[107].mxu1 }
0x11f9   :  { %v5905_v39 = vmul.f32 -1.442695, %v3503_v44 }
0x11fa   :  { %7557 = vpow2.f32 %v5904_v32 }
0x11fb   :  { %7559 = vpow2.f32 %v5905_v39 }
0x1204   :  { %v7558_v23 = vpop.eup %7557 }
0x1205   :  { %v3510_v40 = vadd.f32 1.0, %v7558_v23  ;;  %v7560_v7 = vpop.eup %7559 }
0x1206   :  { %v3511_v21 = vadd.f32 1.0, %v7560_v7 }
0x1207   :  { %7561 = vrcp.f32 %v3510_v40 }
0x1211   :  { %v7562_v60 = vpop.eup %7561 }
0x1212   :  { %v3517_v10 = vmul.f32 %v7562_v60, %v3516_v49 }
0x1214   :  { %v3518_v28 = vadd.f32 %v3517_v10, %v3223_v29 }
0x1216   :  { %7563 = vtanh.f32 %v3518_v28 }
0x1217   :  { %7565 = vrcp.f32 %v3511_v21 }
0x1220   :  { %v7564_v32 = vpop.eup %7563 }
0x1221   :  { %v3520_v44 = vsub.f32 %v9603_v37, %v7564_v32  ;;  %v7566_v9 = vpop.eup %7565 }
0x1223   :  { %v3521_v39 = vmul.f32 %v7566_v9, %v3520_v44 }
0x1225   :  { %v9720_v59 = vadd.f32 %v7564_v32, %v3521_v39 }
0x1227   :  { %v3523_v40 = vpack.c.bf16 %v9720_v59, %v9720_v59 }
0x1229   :  { %3557 = vmatmul.mubr.bf16.vlgmr.msra.gmra.mrb[100].mxu0 %v3523_v40  ;;  %6772 = vmatmul.mubr.bf16.vlgmr.msra.gmra.mrb[108].mxu1 %v3523_v40 }
0x122a   :  { %3628 = vmatpush1.bf16.msra.mxu0 %v9514_v17  ;;  %6776 = vmatpush3.bf16.msra.mxu1 %v9516_v2 }
0x122b   :  { %3629 = vmatprep.subr.bf16.mxu0 %v9520_v8  ;;  %6777 = vmatprep.subr.bf16.mxu1 %v10602_v0 }
0x122c   :  { %3659 = vmatprep.mubr.bf16.mxu0 %v10603_v46  ;;  %6791 = vmatprep.mubr.msk.bf16.mxu1 %vm8181_vm0, %v10602_v0 }
0x122e   :  { %3630 = vmatpush1.bf16.msra.mxu0 %v9524_v35  ;;  %6778 = vmatpush3.bf16.msra.mxu1 %v9526_v19 }
0x122f   :  { %3631 = vmatprep.subr.bf16.mxu0 %v9533_v16  ;;  %6779 = vmatprep.subr.bf16.mxu1 %v10602_v0 }
0x1232   :  { %3632 = vmatpush1.bf16.msra.mxu0 %v9541_v1  ;;  %6780 = vmatpush3.bf16.msra.mxu1 %v9543_v27 }
0x1233   :  { %3633 = vmatprep.subr.bf16.mxu0 %v9547_v31  ;;  %6781 = vmatprep.subr.bf16.mxu1 %v10602_v0 }
0x1236   :  { %3634 = vmatpush1.bf16.msra.mxu0 %v9551_v34  ;;  %6782 = vmatpush3.bf16.msra.mxu1 %v9553_v6 }
0x1237   :  { %3635 = vmatprep.subr.bf16.mxu0 %v9557_v22  ;;  %6783 = vmatprep.subr.bf16.mxu1 %v10602_v0 }
0x123a   :  { %3636 = vmatpush1.bf16.msra.mxu0 %v9564_v30  ;;  %6784 = vmatpush3.bf16.msra.mxu1 %v9566_v36 }
0x123b   :  { %3637 = vmatprep.subr.bf16.mxu0 %v9570_v38  ;;  %6785 = vmatprep.subr.bf16.mxu1 %v10602_v0 }
0x123e   :  { %3638 = vmatpush1.bf16.msra.mxu0 %v9574_v63  ;;  %6786 = vmatpush3.bf16.msra.mxu1 %v9576_v41 }
0x123f   :  { %3639 = vmatprep.subr.bf16.mxu0 %v9580_v33  ;;  %6787 = vmatprep.subr.bf16.mxu1 %v10602_v0 }
0x1242   :  { %3640 = vmatpush1.bf16.msra.mxu0 %v9585_v25  ;;  %6788 = vmatpush3.bf16.msra.mxu1 %v9587_v43 }
0x1243   :  { %3641 = vmatprep.subr.bf16.mxu0 %v9591_v45  ;;  %6789 = vmatprep.subr.bf16.mxu1 %v10602_v0 }
0x1246   :  { %3642 = vmatpush1.bf16.msra.mxu0 %v9598_v47  ;;  %6790 = vmatpush3.bf16.msra.mxu1 %v9600_v48 }
0x1247   :  { %3730 = vmatprep.subr.bf16.mxu0 %v9509_v58  ;;  %6795 = vmatprep.subr.bf16.mxu1 %v10602_v0 }
0x12fc   :  { %v3558_v37 = vpop.f32.mrb[100].mxu0  ;;  %v3599_v50 = vpop.f32.mrb[108].mxu1 }
0x12fd   :  { %v3605_v15 = vadd.f32 %v3558_v37, %v9665_v52  ;;  %v3560_v24 = vpop.f32.mrb[101].mxu0  ;;  %v6773_v57 = vpop.f32.mrb[109].mxu1  ;;  %v3619_v28 = vadd.f32 %v9714_v55, %v3599_v50 }
0x12fe   :  { %v3606_v56 = vadd.f32 %v3560_v24, %v9670_v14  ;;  %v3562_v18 = vpop.f32.mrb[102].mxu0  ;;  %v3602_v3 = vpop.f32.mrb[110].mxu1 }
0x12ff   :  { %v5906_v54 = vmul.f32 -1.442695, %v3605_v15  ;;  %v3563_v23 = vpop.f32.mrb[103].mxu0  ;;  %v6774_v7 = vpop.f32.mrb[111].mxu1 }
0x1300   :  { %v5907_v49 = vmul.f32 -1.442695, %v3606_v56 }
0x1301   :  { %7567 = vpow2.f32 %v5906_v54 }
0x1302   :  { %7569 = vpow2.f32 %v5907_v49 }
0x130b   :  { %v7568_v60 = vpop.eup %7567 }
0x130c   :  { %v3613_v29 = vadd.f32 1.0, %v7568_v60  ;;  %v7570_v10 = vpop.eup %7569 }
0x130d   :  { %v3614_v44 = vadd.f32 1.0, %v7570_v10 }
0x130e   :  { %7571 = vrcp.f32 %v3613_v29 }
0x1318   :  { %v7572_v21 = vpop.eup %7571 }
0x1319   :  { %v3620_v52 = vmul.f32 %v7572_v21, %v3619_v28 }
0x131b   :  { %v3621_v32 = vadd.f32 %v3620_v52, %v9673_v12 }
0x131d   :  { %7573 = vtanh.f32 %v3621_v32 }
0x131e   :  { %7575 = vrcp.f32 %v3614_v44 }
0x1327   :  { %v7574_v14 = vpop.eup %7573 }
0x1328   :  { %v3623_v9 = vsub.f32 %v9720_v59, %v7574_v14  ;;  %v7576_v39 = vpop.eup %7575 }
0x132a   :  { %v3624_v40 = vmul.f32 %v7576_v39, %v3623_v9 }
0x132c   :  { %v9764_v37 = vadd.f32 %v7574_v14, %v3624_v40 }
0x132e   :  { %v3626_v15 = vpack.c.bf16 %v9764_v37, %v9764_v37 }
0x1330   :  { %3660 = vmatmul.mubr.bf16.vlgmr.msra.gmra.mrb[104].mxu0 %v3626_v15  ;;  %6792 = vmatmul.mubr.bf16.vlgmr.msra.gmra.mrb[112].mxu1 %v3626_v15 }
0x1331   :  { %3731 = vmatpush1.bf16.msra.mxu0 %v9514_v17  ;;  %6796 = vmatpush3.bf16.msra.mxu1 %v9516_v2 }
0x1332   :  { %3732 = vmatprep.subr.bf16.mxu0 %v9520_v8  ;;  %6797 = vmatprep.subr.bf16.mxu1 %v10602_v0 }
0x1333   :  { %3762 = vmatprep.mubr.bf16.mxu0 %v10603_v46  ;;  %6811 = vmatprep.mubr.msk.bf16.mxu1 %vm8181_vm0, %v10602_v0 }
0x1335   :  { %3733 = vmatpush1.bf16.msra.mxu0 %v9524_v35  ;;  %6798 = vmatpush3.bf16.msra.mxu1 %v9526_v19 }
0x1336   :  { %3734 = vmatprep.subr.bf16.mxu0 %v9533_v16  ;;  %6799 = vmatprep.subr.bf16.mxu1 %v10602_v0 }
0x1339   :  { %3735 = vmatpush1.bf16.msra.mxu0 %v9541_v1  ;;  %6800 = vmatpush3.bf16.msra.mxu1 %v9543_v27 }
0x133a   :  { %3736 = vmatprep.subr.bf16.mxu0 %v9547_v31  ;;  %6801 = vmatprep.subr.bf16.mxu1 %v10602_v0 }
0x133d   :  { %3737 = vmatpush1.bf16.msra.mxu0 %v9551_v34  ;;  %6802 = vmatpush3.bf16.msra.mxu1 %v9553_v6 }
0x133e   :  { %3738 = vmatprep.subr.bf16.mxu0 %v9557_v22  ;;  %6803 = vmatprep.subr.bf16.mxu1 %v10602_v0 }
0x1341   :  { %3739 = vmatpush1.bf16.msra.mxu0 %v9564_v30  ;;  %6804 = vmatpush3.bf16.msra.mxu1 %v9566_v36 }
0x1342   :  { %3740 = vmatprep.subr.bf16.mxu0 %v9570_v38  ;;  %6805 = vmatprep.subr.bf16.mxu1 %v10602_v0 }
0x1345   :  { %3741 = vmatpush1.bf16.msra.mxu0 %v9574_v63  ;;  %6806 = vmatpush3.bf16.msra.mxu1 %v9576_v41 }
0x1346   :  { %3742 = vmatprep.subr.bf16.mxu0 %v9580_v33  ;;  %6807 = vmatprep.subr.bf16.mxu1 %v10602_v0 }
0x1349   :  { %3743 = vmatpush1.bf16.msra.mxu0 %v9585_v25  ;;  %6808 = vmatpush3.bf16.msra.mxu1 %v9587_v43 }
0x134a   :  { %3744 = vmatprep.subr.bf16.mxu0 %v9591_v45  ;;  %6809 = vmatprep.subr.bf16.mxu1 %v10602_v0 }
0x134d   :  { %3745 = vmatpush1.bf16.msra.mxu0 %v9598_v47  ;;  %6810 = vmatpush3.bf16.msra.mxu1 %v9600_v48 }
0x134e   :  { %3833 = vmatprep.subr.bf16.mxu0 %v9509_v58  ;;  %6815 = vmatprep.subr.bf16.mxu1 %v10602_v0 }
0x1403   :  { %v3661_v12 = vpop.f32.mrb[104].mxu0  ;;  %v3702_v50 = vpop.f32.mrb[112].mxu1 }
0x1404   :  { %v3708_v24 = vadd.f32 %v3661_v12, %v9675_v20  ;;  %v3663_v57 = vpop.f32.mrb[105].mxu0  ;;  %v6793_v56 = vpop.f32.mrb[113].mxu1  ;;  %v3722_v21 = vadd.f32 %v9714_v55, %v3702_v50 }
0x1405   :  { %v3709_v18 = vadd.f32 %v3663_v57, %v9680_v11  ;;  %v3665_v3 = vpop.f32.mrb[106].mxu0  ;;  %v3705_v54 = vpop.f32.mrb[114].mxu1 }
0x1406   :  { %v5908_v23 = vmul.f32 -1.442695, %v3708_v24  ;;  %v3666_v7 = vpop.f32.mrb[107].mxu0  ;;  %v6794_v49 = vpop.f32.mrb[115].mxu1 }
0x1407   :  { %v5909_v60 = vmul.f32 -1.442695, %v3709_v18 }
0x1408   :  { %7577 = vpow2.f32 %v5908_v23 }
0x1409   :  { %7579 = vpow2.f32 %v5909_v60 }
0x1412   :  { %v7578_v29 = vpop.eup %7577 }
0x1413   :  { %v3716_v10 = vadd.f32 1.0, %v7578_v29  ;;  %v7580_v28 = vpop.eup %7579 }
0x1414   :  { %v3717_v44 = vadd.f32 1.0, %v7580_v28 }
0x1415   :  { %7581 = vrcp.f32 %v3716_v10 }
0x141f   :  { %v7582_v52 = vpop.eup %7581 }
0x1420   :  { %v3723_v20 = vmul.f32 %v7582_v52, %v3722_v21 }
0x1422   :  { %v3724_v32 = vadd.f32 %v3723_v20, %v9660_v61 }
0x1424   :  { %7583 = vtanh.f32 %v3724_v32 }
0x1425   :  { %7585 = vrcp.f32 %v3717_v44 }
0x142e   :  { %v7584_v11 = vpop.eup %7583 }
0x142f   :  { %v3726_v14 = vsub.f32 %v9764_v37, %v7584_v11  ;;  %v7586_v9 = vpop.eup %7585 }
0x1431   :  { %v3727_v39 = vmul.f32 %v7586_v9, %v3726_v14 }
0x1433   :  { %v9808_v40 = vadd.f32 %v7584_v11, %v3727_v39 }
0x1435   :  { %v3729_v15 = vpack.c.bf16 %v9808_v40, %v9808_v40 }
0x1437   :  { %3763 = vmatmul.mubr.bf16.vlgmr.msra.gmra.mrb[108].mxu0 %v3729_v15  ;;  %6812 = vmatmul.mubr.bf16.vlgmr.msra.gmra.mrb[116].mxu1 %v3729_v15 }
0x1438   :  { %3834 = vmatpush1.bf16.msra.mxu0 %v9514_v17  ;;  %6816 = vmatpush3.bf16.msra.mxu1 %v9516_v2 }
0x1439   :  { %3835 = vmatprep.subr.bf16.mxu0 %v9520_v8  ;;  %6817 = vmatprep.subr.bf16.mxu1 %v10602_v0 }
0x143a   :  { %3865 = vmatprep.mubr.bf16.mxu0 %v10603_v46  ;;  %6831 = vmatprep.mubr.msk.bf16.mxu1 %vm8181_vm0, %v10602_v0 }
0x143c   :  { %3836 = vmatpush1.bf16.msra.mxu0 %v9524_v35  ;;  %6818 = vmatpush3.bf16.msra.mxu1 %v9526_v19 }
0x143d   :  { %3837 = vmatprep.subr.bf16.mxu0 %v9533_v16  ;;  %6819 = vmatprep.subr.bf16.mxu1 %v10602_v0 }
0x1440   :  { %3838 = vmatpush1.bf16.msra.mxu0 %v9541_v1  ;;  %6820 = vmatpush3.bf16.msra.mxu1 %v9543_v27 }
0x1441   :  { %3839 = vmatprep.subr.bf16.mxu0 %v9547_v31  ;;  %6821 = vmatprep.subr.bf16.mxu1 %v10602_v0 }
0x1444   :  { %3840 = vmatpush1.bf16.msra.mxu0 %v9551_v34  ;;  %6822 = vmatpush3.bf16.msra.mxu1 %v9553_v6 }
0x1445   :  { %3841 = vmatprep.subr.bf16.mxu0 %v9557_v22  ;;  %6823 = vmatprep.subr.bf16.mxu1 %v10602_v0 }
0x1448   :  { %3842 = vmatpush1.bf16.msra.mxu0 %v9564_v30  ;;  %6824 = vmatpush3.bf16.msra.mxu1 %v9566_v36 }
0x1449   :  { %3843 = vmatprep.subr.bf16.mxu0 %v9570_v38  ;;  %6825 = vmatprep.subr.bf16.mxu1 %v10602_v0 }
0x144c   :  { %3844 = vmatpush1.bf16.msra.mxu0 %v9574_v63  ;;  %6826 = vmatpush3.bf16.msra.mxu1 %v9576_v41 }
0x144d   :  { %3845 = vmatprep.subr.bf16.mxu0 %v9580_v33  ;;  %6827 = vmatprep.subr.bf16.mxu1 %v10602_v0 }
0x1450   :  { %3846 = vmatpush1.bf16.msra.mxu0 %v9585_v25  ;;  %6828 = vmatpush3.bf16.msra.mxu1 %v9587_v43 }
0x1451   :  { %3847 = vmatprep.subr.bf16.mxu0 %v9591_v45  ;;  %6829 = vmatprep.subr.bf16.mxu1 %v10602_v0 }
0x1454   :  { %3848 = vmatpush1.bf16.msra.mxu0 %v9598_v47  ;;  %6830 = vmatpush3.bf16.msra.mxu1 %v9600_v48 }
0x1455   :  { %3936 = vmatprep.subr.bf16.mxu0 %v9509_v58  ;;  %6835 = vmatprep.subr.bf16.mxu1 %v10602_v0 }
0x150a   :  { %v3764_v61 = vpop.f32.mrb[108].mxu0  ;;  %v3805_v12 = vpop.f32.mrb[116].mxu1 }
0x150b   :  { %v3811_v50 = vadd.f32 %v3764_v61, %v9685_v62  ;;  %v3766_v24 = vpop.f32.mrb[109].mxu0  ;;  %v6813_v57 = vpop.f32.mrb[117].mxu1  ;;  %v3825_v28 = vadd.f32 %v9714_v55, %v3805_v12 }
0x150c   :  { %v3812_v56 = vadd.f32 %v3766_v24, %v9691_v42  ;;  %v3768_v18 = vpop.f32.mrb[110].mxu0  ;;  %v3808_v3 = vpop.f32.mrb[118].mxu1 }
0x150d   :  { %v5910_v54 = vmul.f32 -1.442695, %v3811_v50  ;;  %v3769_v23 = vpop.f32.mrb[111].mxu0  ;;  %v6814_v7 = vpop.f32.mrb[119].mxu1 }
0x150e   :  { %v5911_v49 = vmul.f32 -1.442695, %v3812_v56 }
0x150f   :  { %7587 = vpow2.f32 %v5910_v54 }
0x1510   :  { %7589 = vpow2.f32 %v5911_v49 }
0x1519   :  { %v7588_v60 = vpop.eup %7587 }
0x151a   :  { %v3819_v29 = vadd.f32 1.0, %v7588_v60  ;;  %v7590_v10 = vpop.eup %7589 }
0x151b   :  { %v3820_v20 = vadd.f32 1.0, %v7590_v10 }
0x151c   :  { %7591 = vrcp.f32 %v3819_v29 }
0x1526   :  { %v7592_v21 = vpop.eup %7591 }
0x1527   :  { %v3826_v62 = vmul.f32 %v7592_v21, %v3825_v28 }
0x1529   :  { %v3827_v52 = vadd.f32 %v3826_v62, %v9668_v51 }
0x152b   :  { %7593 = vtanh.f32 %v3827_v52 }
0x152c   :  { %7595 = vrcp.f32 %v3820_v20 }
0x1535   :  { %v7594_v42 = vpop.eup %7593 }
0x1536   :  { %v3829_v32 = vsub.f32 %v9808_v40, %v7594_v42  ;;  %v7596_v44 = vpop.eup %7595 }
0x1538   :  { %v3830_v11 = vmul.f32 %v7596_v44, %v3829_v32 }
0x153a   :  { %v9852_v14 = vadd.f32 %v7594_v42, %v3830_v11 }
0x153c   :  { %v3832_v9 = vpack.c.bf16 %v9852_v14, %v9852_v14 }
0x153e   :  { %3866 = vmatmul.mubr.bf16.vlgmr.msra.gmra.mrb[112].mxu0 %v3832_v9  ;;  %6832 = vmatmul.mubr.bf16.vlgmr.msra.gmra.mrb[120].mxu1 %v3832_v9  ;;  %v7767_v9 = vld [vmem:[#allocation15] ss:$12 sps:$4 sm:$0xff]  }
0x153f   :  { %3937 = vmatpush1.bf16.msra.mxu0 %v9514_v17  ;;  %6836 = vmatpush3.bf16.msra.mxu1 %v9516_v2 }
0x1540   :  { %3938 = vmatprep.subr.bf16.mxu0 %v9520_v8  ;;  %6837 = vmatprep.subr.bf16.mxu1 %v10602_v0 }
0x1541   :  { %3968 = vmatprep.mubr.bf16.mxu0 %v10603_v46  ;;  %6851 = vmatprep.mubr.msk.bf16.mxu1 %vm8181_vm0, %v10602_v0 }
0x1543   :  { %3939 = vmatpush1.bf16.msra.mxu0 %v9524_v35  ;;  %6838 = vmatpush3.bf16.msra.mxu1 %v9526_v19 }
0x1544   :  { %3940 = vmatprep.subr.bf16.mxu0 %v9533_v16  ;;  %6839 = vmatprep.subr.bf16.mxu1 %v10602_v0 }
0x1547   :  { %3941 = vmatpush1.bf16.msra.mxu0 %v9541_v1  ;;  %6840 = vmatpush3.bf16.msra.mxu1 %v9543_v27 }
0x1548   :  { %3942 = vmatprep.subr.bf16.mxu0 %v9547_v31  ;;  %6841 = vmatprep.subr.bf16.mxu1 %v10602_v0 }
0x154b   :  { %3943 = vmatpush1.bf16.msra.mxu0 %v9551_v34  ;;  %6842 = vmatpush3.bf16.msra.mxu1 %v9553_v6 }
0x154c   :  { %3944 = vmatprep.subr.bf16.mxu0 %v9557_v22  ;;  %6843 = vmatprep.subr.bf16.mxu1 %v10602_v0 }
0x154f   :  { %3945 = vmatpush1.bf16.msra.mxu0 %v9564_v30  ;;  %6844 = vmatpush3.bf16.msra.mxu1 %v9566_v36 }
0x1550   :  { %3946 = vmatprep.subr.bf16.mxu0 %v9570_v38  ;;  %6845 = vmatprep.subr.bf16.mxu1 %v10602_v0 }
0x1553   :  { %3947 = vmatpush1.bf16.msra.mxu0 %v9574_v63  ;;  %6846 = vmatpush3.bf16.msra.mxu1 %v9576_v41 }
0x1554   :  { %3948 = vmatprep.subr.bf16.mxu0 %v9580_v33  ;;  %6847 = vmatprep.subr.bf16.mxu1 %v10602_v0 }
0x1557   :  { %3949 = vmatpush1.bf16.msra.mxu0 %v9585_v25  ;;  %6848 = vmatpush3.bf16.msra.mxu1 %v9587_v43 }
0x1558   :  { %3950 = vmatprep.subr.bf16.mxu0 %v9591_v45  ;;  %6849 = vmatprep.subr.bf16.mxu1 %v10602_v0 }
0x155b   :  { %3951 = vmatpush1.bf16.msra.mxu0 %v9598_v47  ;;  %6850 = vmatpush3.bf16.msra.mxu1 %v9600_v48 }
0x155c   :  { %4039 = vmatprep.subr.bf16.mxu0 %v9509_v58  ;;  %6855 = vmatprep.subr.bf16.mxu1 %v10602_v0 }
0x1611   :  { %v3867_v51 = vpop.f32.mrb[112].mxu0  ;;  %v3908_v39 = vpop.f32.mrb[120].mxu1 }
0x1612   :  { %v3914_v15 = vadd.f32 %v3867_v51, %v9698_v13  ;;  %v3869_v61 = vpop.f32.mrb[113].mxu0  ;;  %v6833_v12 = vpop.f32.mrb[121].mxu1  ;;  %v3928_v49 = vadd.f32 %v9714_v55, %v3908_v39  ;;  %v7768_v51 = vld [vmem:[#allocation15 + $0x8] ss:$12 sps:$4 sm:$0xff]  }
0x1613   :  { %v3915_v50 = vadd.f32 %v3869_v61, %v9700_v26  ;;  %v3871_v24 = vpop.f32.mrb[114].mxu0  ;;  %v3911_v57 = vpop.f32.mrb[122].mxu1  ;;  %v7769_v39 = vld [vmem:[#allocation15 + $0x1c] ss:$12 sps:$4 sm:$0xff]   ;;  %v7771_v61 = vld [vmem:[#allocation15 + $0x20] ss:$12 sps:$4 sm:$0xff]  }
0x1614   :  { %v5912_v56 = vmul.f32 -1.442695, %v3914_v15  ;;  %v3872_v18 = vpop.f32.mrb[115].mxu0  ;;  %v6834_v3 = vpop.f32.mrb[123].mxu1  ;;  %v7770_v15 = vld [vmem:[#allocation15 + $0x18] ss:$12 sps:$4 sm:$0xff]  }
0x1615   :  { %v5913_v54 = vmul.f32 -1.442695, %v3915_v50  ;;  %v7772_v12 = vld [vmem:[#allocation15 + $0x34] ss:$12 sps:$4 sm:$0xff]   ;;  %v7773_v50 = vld [vmem:[#allocation15 + $0x30] ss:$12 sps:$4 sm:$0xff]  }
0x1616   :  { %7597 = vpow2.f32 %v5912_v56  ;;  %v7774_v24 = vld [vmem:[#allocation15 + $0x38] ss:$12 sps:$4 sm:$0xff]   ;;  %v7776_v56 = vld [vmem:[#allocation15 + $0x48] ss:$12 sps:$4 sm:$0xff]   ;;  %v7777_v18 = vld [vmem:[#allocation15 + $0x50] ss:$12 sps:$4 sm:$0xff]  }
0x1617   :  { %7599 = vpow2.f32 %v5913_v54  ;;  %v7775_v57 = vld [vmem:[#allocation15 + $0x4c] ss:$12 sps:$4 sm:$0xff]   ;;  %v7778_v3 = vld [vmem:[#allocation15 + $0x64] ss:$12 sps:$4 sm:$0xff]  }
0x1618   :  { %v7779_v54 = vld [vmem:[#allocation15 + $0x60] ss:$12 sps:$4 sm:$0xff]  }
0x1620   :  { %v7598_v23 = vpop.eup %7597 }
0x1621   :  { %v3922_v7 = vadd.f32 1.0, %v7598_v23  ;;  %v7600_v58 = vpop.eup %7599  ;;  %v7780_v23 = vld [vmem:[#allocation15 + $0x68] ss:$12 sps:$4 sm:$0xff]  }
0x1622   :  { %v3923_v10 = vadd.f32 1.0, %v7600_v58  ;;  %v7782_v58 = vld [vmem:[#allocation15 + $0x78] ss:$12 sps:$4 sm:$0xff]  }
0x1623   :  { %7601 = vrcp.f32 %v3922_v7  ;;  %v7781_v7 = vld [vmem:[#allocation15 + $0x7c] ss:$12 sps:$4 sm:$0xff]  }
0x162d   :  { %v7602_v60 = vpop.eup %7601 }
0x162e   :  { %v3929_v13 = vmul.f32 %v7602_v60, %v3928_v49  ;;  %v7783_v49 = vld [vmem:[#allocation15 + $0x80] ss:$12 sps:$4 sm:$0xff]  }
0x162f   :  { %v7784_v60 = vld [vmem:[#allocation15 + $0x94] ss:$12 sps:$4 sm:$0xff]  }
0x1630   :  { %v3930_v29 = vadd.f32 %v3929_v13, %v9683_v5  ;;  %v7785_v13 = vld [vmem:[#allocation15 + $0x90] ss:$12 sps:$4 sm:$0xff]  }
0x1632   :  { %7603 = vtanh.f32 %v3930_v29  ;;  %v7786_v29 = vld [vmem:[#allocation15 + $0x98] ss:$12 sps:$4 sm:$0xff]  }
0x1633   :  { %7605 = vrcp.f32 %v3923_v10  ;;  %v7787_v10 = vld [vmem:[#allocation15 + $0xac] ss:$12 sps:$4 sm:$0xff]  }
0x163c   :  { %v7604_v26 = vpop.eup %7603 }
0x163d   :  { %v3932_v28 = vsub.f32 %v9852_v14, %v7604_v26  ;;  %v7606_v21 = vpop.eup %7605 }
0x163f   :  { %v3933_v62 = vmul.f32 %v7606_v21, %v3932_v28  ;;  %v7789_v28 = vld [vmem:[#allocation15 + $0xb0] ss:$12 sps:$4 sm:$0xff]  }
0x1640   :  { %v7327_v21 = vld [vmem:[%s10562_s15 + $0x4] ss:$12 sps:$4 sm:$0xff]  }
0x1641   :  { %v9896_v52 = vadd.f32 %v7604_v26, %v3933_v62  ;;  %v7788_v26 = vld [vmem:[#allocation15 + $0xa8] ss:$12 sps:$4 sm:$0xff]  }
0x1642   :  { %v7328_v62 = vld [vmem:[%s10562_s15 + $0x8] ss:$12 sps:$4 sm:$0xff]  }
0x1643   :  { %v3935_v20 = vpack.c.bf16 %v9896_v52, %v9896_v52 }
0x1645   :  { %3969 = vmatmul.mubr.bf16.vlgmr.msra.gmra.mrb[116].mxu0 %v3935_v20  ;;  %6852 = vmatmul.mubr.bf16.vlgmr.msra.gmra.mrb[124].mxu1 %v3935_v20 }
0x1646   :  { %4040 = vmatpush1.bf16.msra.mxu0 %v9514_v17  ;;  %6856 = vmatpush3.bf16.msra.mxu1 %v9516_v2  ;;  %v7766_v17 = vld [vmem:[#allocation15 + $0x4] ss:$12 sps:$4 sm:$0xff]  }
0x1647   :  { %4041 = vmatprep.subr.bf16.mxu0 %v9520_v8  ;;  %6857 = vmatprep.subr.bf16.mxu1 %v10602_v0 }
0x1648   :  { %4071 = vmatprep.mubr.bf16.mxu0 %v10603_v46  ;;  %6871 = vmatprep.mubr.msk.bf16.mxu1 %vm8181_vm0, %v10602_v0 }
0x164a   :  { %4042 = vmatpush1.bf16.msra.mxu0 %v9524_v35  ;;  %6858 = vmatpush3.bf16.msra.mxu1 %v9526_v19 }
0x164b   :  { %4043 = vmatprep.subr.bf16.mxu0 %v9533_v16  ;;  %6859 = vmatprep.subr.bf16.mxu1 %v10602_v0 }
0x164e   :  { %4044 = vmatpush1.bf16.msra.mxu0 %v9541_v1  ;;  %6860 = vmatpush3.bf16.msra.mxu1 %v9543_v27  ;;  %v10631_v1 = vld [vmem:[#allocation40_spill] sm:$0xff] }
0x164f   :  { %4045 = vmatprep.subr.bf16.mxu0 %v9547_v31  ;;  %6861 = vmatprep.subr.bf16.mxu1 %v10602_v0 }
0x1652   :  { %4046 = vmatpush1.bf16.msra.mxu0 %v9551_v34  ;;  %6862 = vmatpush3.bf16.msra.mxu1 %v9553_v6 }
0x1653   :  { %4047 = vmatprep.subr.bf16.mxu0 %v9557_v22  ;;  %6863 = vmatprep.subr.bf16.mxu1 %v10602_v0 }
0x1656   :  { %4048 = vmatpush1.bf16.msra.mxu0 %v9564_v30  ;;  %6864 = vmatpush3.bf16.msra.mxu1 %v9566_v36 }
0x1657   :  { %4049 = vmatprep.subr.bf16.mxu0 %v9570_v38  ;;  %6865 = vmatprep.subr.bf16.mxu1 %v10602_v0 }
0x165a   :  { %4050 = vmatpush1.bf16.msra.mxu0 %v9574_v63  ;;  %6866 = vmatpush3.bf16.msra.mxu1 %v9576_v41 }
0x165b   :  { %4051 = vmatprep.subr.bf16.mxu0 %v9580_v33  ;;  %6867 = vmatprep.subr.bf16.mxu1 %v10602_v0 }
0x165e   :  { %4052 = vmatpush1.bf16.msra.mxu0 %v9585_v25  ;;  %6868 = vmatpush3.bf16.msra.mxu1 %v9587_v43 }
0x165f   :  { %4053 = vmatprep.subr.bf16.mxu0 %v9591_v45  ;;  %6869 = vmatprep.subr.bf16.mxu1 %v10602_v0  ;;  %v10632_v45 = vld [vmem:[#allocation38_spill] sm:$0xff] }
0x1662   :  { %4054 = vmatpush1.bf16.msra.mxu0 %v9598_v47  ;;  %6870 = vmatpush3.bf16.msra.mxu1 %v9600_v48 }
0x1663   :  { %4142 = vmatprep.subr.bf16.mxu0 %v7766_v17  ;;  %6875 = vmatprep.subr.bf16.mxu1 %v10602_v0 }
0x1718   :  { %v3970_v2 = vpop.f32.mrb[116].mxu0  ;;  %v4011_v8 = vpop.f32.mrb[124].mxu1 }
0x1719   :  { %v4017_v35 = vadd.f32 %v3970_v2, %v9702_v53  ;;  %v3972_v19 = vpop.f32.mrb[117].mxu0  ;;  %v6853_v16 = vpop.f32.mrb[125].mxu1  ;;  %v4031_v33 = vadd.f32 %v9714_v55, %v4011_v8  ;;  %v10633_v2 = vld [vmem:[#allocation42_spill] sm:$0xff] }
0x171a   :  { %v4018_v27 = vadd.f32 %v3972_v19, %v10631_v1  ;;  %v3974_v31 = vpop.f32.mrb[118].mxu0  ;;  %v4014_v34 = vpop.f32.mrb[126].mxu1  ;;  %v10634_v16 = vld [vmem:[#allocation41_spill] sm:$0xff] }
0x171b   :  { %v5914_v6 = vmul.f32 -1.442695, %v4017_v35  ;;  %v3975_v22 = vpop.f32.mrb[119].mxu0  ;;  %v6854_v30 = vpop.f32.mrb[127].mxu1 }
0x171c   :  { %v5915_v36 = vmul.f32 -1.442695, %v4018_v27 }
0x171d   :  { %7607 = vpow2.f32 %v5914_v6 }
0x171e   :  { %7609 = vpow2.f32 %v5915_v36 }
0x1727   :  { %v7608_v38 = vpop.eup %7607 }
0x1728   :  { %v4025_v63 = vadd.f32 1.0, %v7608_v38  ;;  %v7610_v41 = vpop.eup %7609 }
0x1729   :  { %v4026_v48 = vadd.f32 1.0, %v7610_v41 }
0x172a   :  { %7611 = vrcp.f32 %v4025_v63 }
0x1734   :  { %v7612_v25 = vpop.eup %7611 }
0x1735   :  { %v4032_v43 = vmul.f32 %v7612_v25, %v4031_v33 }
0x1737   :  { %v4033_v47 = vadd.f32 %v4032_v43, %v10632_v45  ;;  %v10635_v43 = vld [vmem:[#allocation37_spill] sm:$0xff] }
0x1739   :  { %7613 = vtanh.f32 %v4033_v47 }
0x173a   :  { %7615 = vrcp.f32 %v4026_v48 }
0x1743   :  { %v7614_v5 = vpop.eup %7613 }
0x1744   :  { %v4035_v53 = vsub.f32 %v9896_v52, %v7614_v5  ;;  %v7616_v42 = vpop.eup %7615 }
0x1746   :  { %v4036_v32 = vmul.f32 %v7616_v42, %v4035_v53 }
0x1748   :  { %v9939_v44 = vadd.f32 %v7614_v5, %v4036_v32 }
0x174a   :  { %v4038_v11 = vpack.c.bf16 %v9939_v44, %v9939_v44 }
0x174c   :  { %4072 = vmatmul.mubr.bf16.vlgmr.msra.gmra.mrb[120].mxu0 %v4038_v11  ;;  %6872 = vmatmul.mubr.bf16.vlgmr.msra.gmra.mrb[128].mxu1 %v4038_v11  ;;  %v7325_v11 = vld [vmem:[%s10562_s15] ss:$12 sps:$4 sm:$0xff]  }
0x174d   :  { %4143 = vmatpush1.bf16.msra.mxu0 %v7767_v9  ;;  %6876 = vmatpush3.bf16.msra.mxu1 %v7768_v51  ;;  %v7331_v9 = vld [vmem:[%s10562_s15 + $0x1c] ss:$12 sps:$4 sm:$0xff]   ;;  %v7332_v51 = vld [vmem:[%s10562_s15 + $0x20] ss:$12 sps:$4 sm:$0xff]  }
0x174e   :  { %4144 = vmatprep.subr.bf16.mxu0 %v7769_v39  ;;  %6877 = vmatprep.subr.bf16.mxu1 %v10602_v0  ;;  %v4244_v39 = vpack.c.bf16 %v9764_v37, %v9720_v59  ;;  %v7333_v59 = vld [vmem:[%s10562_s15 + $0x30] ss:$12 sps:$4 sm:$0xff]   ;;  %v7339_v37 = vld [vmem:[%s10562_s15 + $0x4c] ss:$12 sps:$4 sm:$0xff]  }
0x174f   :  { %4174 = vmatprep.mubr.bf16.mxu0 %v10603_v46  ;;  %6891 = vmatprep.mubr.msk.bf16.mxu1 %vm8181_vm0, %v10602_v0 }
0x1751   :  { %4145 = vmatpush1.bf16.msra.mxu0 %v7770_v15  ;;  %6878 = vmatpush3.bf16.msra.mxu1 %v7771_v61  ;;  %v7329_v15 = vld [vmem:[%s10562_s15 + $0x18] ss:$12 sps:$4 sm:$0xff]   ;;  %v7335_v61 = vld [vmem:[%s10562_s15 + $0x34] ss:$12 sps:$4 sm:$0xff]  }
0x1752   :  { %4146 = vmatprep.subr.bf16.mxu0 %v7772_v12  ;;  %6879 = vmatprep.subr.bf16.mxu1 %v10602_v0  ;;  %v7336_v12 = vld [vmem:[%s10562_s15 + $0x38] ss:$12 sps:$4 sm:$0xff]  }
0x1755   :  { %4147 = vmatpush1.bf16.msra.mxu0 %v7773_v50  ;;  %6880 = vmatpush3.bf16.msra.mxu1 %v7774_v24  ;;  %v7340_v50 = vld [vmem:[%s10562_s15 + $0x50] ss:$12 sps:$4 sm:$0xff]   ;;  %v7337_v24 = vld [vmem:[%s10562_s15 + $0x48] ss:$12 sps:$4 sm:$0xff]  }
0x1756   :  { %4148 = vmatprep.subr.bf16.mxu0 %v7775_v57  ;;  %6881 = vmatprep.subr.bf16.mxu1 %v10602_v0  ;;  %v7343_v57 = vld [vmem:[%s10562_s15 + $0x64] ss:$12 sps:$4 sm:$0xff]  }
0x1759   :  { %4149 = vmatpush1.bf16.msra.mxu0 %v7776_v56  ;;  %6882 = vmatpush3.bf16.msra.mxu1 %v7777_v18  ;;  %v7344_v56 = vld [vmem:[%s10562_s15 + $0x68] ss:$12 sps:$4 sm:$0xff]   ;;  %v7341_v18 = vld [vmem:[%s10562_s15 + $0x60] ss:$12 sps:$4 sm:$0xff]  }
0x175a   :  { %4150 = vmatprep.subr.bf16.mxu0 %v7778_v3  ;;  %6883 = vmatprep.subr.bf16.mxu1 %v10602_v0  ;;  %v7347_v3 = vld [vmem:[%s10562_s15 + $0x7c] ss:$12 sps:$4 sm:$0xff]  }
0x175d   :  { %4151 = vmatpush1.bf16.msra.mxu0 %v7779_v54  ;;  %6884 = vmatpush3.bf16.msra.mxu1 %v7780_v23  ;;  %v7348_v54 = vld [vmem:[%s10562_s15 + $0x80] ss:$12 sps:$4 sm:$0xff]   ;;  %v7345_v23 = vld [vmem:[%s10562_s15 + $0x78] ss:$12 sps:$4 sm:$0xff]  }
0x175e   :  { %4152 = vmatprep.subr.bf16.mxu0 %v7781_v7  ;;  %6885 = vmatprep.subr.bf16.mxu1 %v10602_v0  ;;  %v7351_v7 = vld [vmem:[%s10562_s15 + $0x94] ss:$12 sps:$4 sm:$0xff]  }
0x1761   :  { %4153 = vmatpush1.bf16.msra.mxu0 %v7782_v58  ;;  %6886 = vmatpush3.bf16.msra.mxu1 %v7783_v49  ;;  %v7352_v58 = vld [vmem:[%s10562_s15 + $0x98] ss:$12 sps:$4 sm:$0xff]   ;;  %v7349_v49 = vld [vmem:[%s10562_s15 + $0x90] ss:$12 sps:$4 sm:$0xff]  }
0x1762   :  { %4154 = vmatprep.subr.bf16.mxu0 %v7784_v60  ;;  %6887 = vmatprep.subr.bf16.mxu1 %v10602_v0  ;;  %v7355_v60 = vld [vmem:[%s10562_s15 + $0xac] ss:$12 sps:$4 sm:$0xff]  }
0x1765   :  { %4155 = vmatpush1.bf16.msra.mxu0 %v7785_v13  ;;  %6888 = vmatpush3.bf16.msra.mxu1 %v7786_v29  ;;  %v7356_v13 = vld [vmem:[%s10562_s15 + $0xb0] ss:$12 sps:$4 sm:$0xff]   ;;  %v7353_v29 = vld [vmem:[%s10562_s15 + $0xa8] ss:$12 sps:$4 sm:$0xff]  }
0x1766   :  { %4156 = vmatprep.subr.bf16.mxu0 %v7787_v10  ;;  %6889 = vmatprep.subr.bf16.mxu1 %v10602_v0  ;;  %v4245_v10 = vpack.c.bf16 %v9852_v14, %v9808_v40  ;;  %v10049_v40 = vld [vmem:[#allocation19 + $0x8] ss:$12 sps:$4 sm:$0xff]  }
0x1767   :  { %v10054_v14 = vld [vmem:[#allocation19 + $0x1c] ss:$12 sps:$4 sm:$0xff]  }
0x1769   :  { %4157 = vmatpush1.bf16.msra.mxu0 %v7788_v26  ;;  %6890 = vmatpush3.bf16.msra.mxu1 %v7789_v28  ;;  %v4246_v26 = vpack.c.bf16 %v9939_v44, %v9896_v52  ;;  %v10045_v28 = vld [vmem:[#allocation19 + $0x4] ss:$12 sps:$4 sm:$0xff]  }
0x176a   :  { %4428 = vmatprep.subr.bf16.mxu0 %v7327_v21  ;;  %6895 = vmatprep.subr.bf16.mxu1 %v7328_v62  ;;  %v10047_v21 = vld [vmem:[#allocation19] ss:$12 sps:$4 sm:$0xff]   ;;  %v10057_v52 = vld [vmem:[#allocation19 + $0x18] ss:$12 sps:$4 sm:$0xff]  }
0x181f   :  { %v4073_v20 = vpop.f32.mrb[120].mxu0  ;;  %v4114_v17 = vpop.f32.mrb[128].mxu1 }
0x1820   :  { %v4120_v8 = vadd.f32 %v4073_v20, %v10633_v2  ;;  %v4075_v35 = vpop.f32.mrb[121].mxu0  ;;  %v6873_v19 = vpop.f32.mrb[129].mxu1  ;;  %v4134_v41 = vadd.f32 %v9714_v55, %v4114_v17  ;;  %v10067_v20 = vld [vmem:[#allocation19 + $0x30] ss:$12 sps:$4 sm:$0xff]   ;;  %v10069_v17 = vld [vmem:[#allocation19 + $0x38] ss:$12 sps:$4 sm:$0xff]  }
0x1821   :  { %v4121_v1 = vadd.f32 %v4075_v35, %v10634_v16  ;;  %v4077_v27 = vpop.f32.mrb[122].mxu0  ;;  %v4117_v31 = vpop.f32.mrb[130].mxu1  ;;  %v10074_v2 = vld [vmem:[#allocation19 + $0x4c] ss:$12 sps:$4 sm:$0xff]   ;;  %v10079_v35 = vld [vmem:[#allocation19 + $0x50] ss:$12 sps:$4 sm:$0xff]  }
0x1822   :  { %v5916_v34 = vmul.f32 -1.442695, %v4120_v8  ;;  %v4078_v6 = vpop.f32.mrb[123].mxu0  ;;  %v6874_v22 = vpop.f32.mrb[131].mxu1  ;;  %v10077_v8 = vld [vmem:[#allocation19 + $0x48] ss:$12 sps:$4 sm:$0xff]  }
0x1823   :  { %v5917_v30 = vmul.f32 -1.442695, %v4121_v1  ;;  %v10084_v19 = vld [vmem:[#allocation19 + $0x64] ss:$12 sps:$4 sm:$0xff]   ;;  %v10087_v16 = vld [vmem:[#allocation19 + $0x60] ss:$12 sps:$4 sm:$0xff]  }
0x1824   :  { %7617 = vpow2.f32 %v5916_v34  ;;  %v10089_v1 = vld [vmem:[#allocation19 + $0x68] ss:$12 sps:$4 sm:$0xff]   ;;  %v10097_v31 = vld [vmem:[#allocation19 + $0x78] ss:$12 sps:$4 sm:$0xff]   ;;  %v10099_v34 = vld [vmem:[#allocation19 + $0x80] ss:$12 sps:$4 sm:$0xff]  }
0x1825   :  { %7619 = vpow2.f32 %v5917_v30  ;;  %v10094_v27 = vld [vmem:[#allocation19 + $0x7c] ss:$12 sps:$4 sm:$0xff]   ;;  %v10104_v6 = vld [vmem:[#allocation19 + $0x94] ss:$12 sps:$4 sm:$0xff]   ;;  %v10109_v30 = vld [vmem:[#allocation19 + $0x98] ss:$12 sps:$4 sm:$0xff]  }
0x1826   :  { %v10107_v22 = vld [vmem:[#allocation19 + $0x90] ss:$12 sps:$4 sm:$0xff]  }
0x182e   :  { %v7618_v36 = vpop.eup %7617 }
0x182f   :  { %v4128_v38 = vadd.f32 1.0, %v7618_v36  ;;  %v7620_v63 = vpop.eup %7619  ;;  %v10111_v36 = vld [vmem:[#allocation19 + $0xac] ss:$12 sps:$4 sm:$0xff]  }
0x1830   :  { %v4129_v47 = vadd.f32 1.0, %v7620_v63  ;;  %v10118_v63 = vld [vmem:[#allocation19 + $0xb0] ss:$12 sps:$4 sm:$0xff]  }
0x1831   :  { %7621 = vrcp.f32 %v4128_v38  ;;  %v10116_v38 = vld [vmem:[#allocation19 + $0xa8] ss:$12 sps:$4 sm:$0xff]  }
0x183b   :  { %v7622_v33 = vpop.eup %7621 }
0x183c   :  { %v4135_v25 = vmul.f32 %v7622_v33, %v4134_v41 }
0x183e   :  { %v4136_v45 = vadd.f32 %v4135_v25, %v10635_v43  ;;  %v10636_v25 = vld [vmem:[#allocation43_spill] sm:$0xff] }
0x1840   :  { %7623 = vtanh.f32 %v4136_v45 }
0x1841   :  { %7625 = vrcp.f32 %v4129_v47 }
0x184a   :  { %v7624_v48 = vpop.eup %7623 }
0x184b   :  { %v4138_v5 = vsub.f32 %v9939_v44, %v7624_v48  ;;  %v7626_v53 = vpop.eup %7625  ;;  %v10059_v44 = vld [vmem:[#allocation19 + $0x20] ss:$12 sps:$4 sm:$0xff]  }
0x184d   :  { %v4139_v42 = vmul.f32 %v7626_v53, %v4138_v5 }
0x184f   :  { %v9964_v32 = vadd.f32 %v7624_v48, %v4139_v42 }
0x1851   :  { %v4141_v55 = vpack.c.bf16 %v9964_v32, %v9964_v32 }
0x1853   :  { %4175 = vmatmul.mubr.bf16.vlgmr.msra.gmra.mrb[124].mxu0 %v4141_v55  ;;  %6892 = vmatmul.mubr.bf16.vlgmr.msra.gmra.mrb[132].mxu1 %v4141_v55 }
0x1854   :  { %4429 = vmatpush1.bf16.msra.mxu0 %v7325_v11  ;;  %6896 = vmatpush3.bf16.msra.mxu1 %v7328_v62  ;;  %v10064_v62 = vld [vmem:[#allocation19 + $0x34] ss:$12 sps:$4 sm:$0xff]  }
0x1855   :  { %6911 = vmatprep.mubr.bf16.mxu1 %v4244_v39  ;;  %4430 = vmatprep.subr.bf16.mxu0 %v7331_v9 }
0x1856   :  { %6897 = vmatprep.subr.bf16.mxu1 %v7332_v51  ;;  %4460 = vmatprep.mubr.bf16.mxu0 %v10603_v46 }
0x1858   :  { %4431 = vmatpush1.bf16.msra.mxu0 %v7329_v15  ;;  %6898 = vmatpush3.bf16.msra.mxu1 %v7332_v51 }
0x1859   :  { %4432 = vmatprep.subr.bf16.mxu0 %v7335_v61  ;;  %6899 = vmatprep.subr.bf16.mxu1 %v7336_v12  ;;  %v7790_v61 = vld [vmem:[#allocation18] ss:$0 sm:$0xff] }
0x185c   :  { %4433 = vmatpush1.bf16.msra.mxu0 %v7333_v59  ;;  %6900 = vmatpush3.bf16.msra.mxu1 %v7336_v12 }
0x185d   :  { %4434 = vmatprep.subr.bf16.mxu0 %v7339_v37  ;;  %6901 = vmatprep.subr.bf16.mxu1 %v7340_v50 }
0x1860   :  { %4435 = vmatpush1.bf16.msra.mxu0 %v7337_v24  ;;  %6902 = vmatpush3.bf16.msra.mxu1 %v7340_v50  ;;  %v10637_v50 = vld [vmem:[#allocation39_spill] sm:$0xff] }
0x1861   :  { %4436 = vmatprep.subr.bf16.mxu0 %v7343_v57  ;;  %6903 = vmatprep.subr.bf16.mxu1 %v7344_v56 }
0x1864   :  { %4437 = vmatpush1.bf16.msra.mxu0 %v7341_v18  ;;  %6904 = vmatpush3.bf16.msra.mxu1 %v7344_v56 }
0x1865   :  { %4438 = vmatprep.subr.bf16.mxu0 %v7347_v3  ;;  %6905 = vmatprep.subr.bf16.mxu1 %v7348_v54 }
0x1868   :  { %4439 = vmatpush1.bf16.msra.mxu0 %v7345_v23  ;;  %6906 = vmatpush3.bf16.msra.mxu1 %v7348_v54 }
0x1869   :  { %4440 = vmatprep.subr.bf16.mxu0 %v7351_v7  ;;  %6907 = vmatprep.subr.bf16.mxu1 %v7352_v58 }
0x186c   :  { %4441 = vmatpush1.bf16.msra.mxu0 %v7349_v49  ;;  %6908 = vmatpush3.bf16.msra.mxu1 %v7352_v58 }
0x186d   :  { %4442 = vmatprep.subr.bf16.mxu0 %v7355_v60  ;;  %6909 = vmatprep.subr.bf16.mxu1 %v7356_v13 }
0x1870   :  { %4443 = vmatpush1.bf16.msra.mxu0 %v7353_v29  ;;  %6910 = vmatpush3.bf16.msra.mxu1 %v7356_v13 }
0x1871   :  { %6919 = vmatprep.subr.bf16.mxu1 %v10602_v0  ;;  %4734 = vmatprep.subr.bf16.mxu0 %v10045_v28 }
0x1873   :  { %4461 = vmatmul.mubr.bf16.vlgmr.msra.gmra.mrb[128].mxu0 %v4244_v39  ;;  %6912 = vmatmul.mubr.bf16.vlgmr.msra.gmra.mrb[136].mxu1 %v4245_v10 }
0x1874   :  { %6915 = vmatprep.mubr.bf16.mxu1 %v4246_v26  ;;  %4470 = vmatprep.mubr.bf16.mxu0 %v10603_v46 }
0x1875   :  { %4735 = vmatpush1.bf16.msra.mxu0 %v10047_v21  ;;  %6920 = vmatpush3.bf16.msra.mxu1 %v10049_v40 }
0x1876   :  { %6921 = vmatprep.subr.bf16.mxu1 %v10602_v0  ;;  %4736 = vmatprep.subr.bf16.mxu0 %v10054_v14 }
0x1879   :  { %4737 = vmatpush1.bf16.msra.mxu0 %v10057_v52  ;;  %6922 = vmatpush3.bf16.msra.mxu1 %v10059_v44 }
0x187a   :  { %6923 = vmatprep.subr.bf16.mxu1 %v10602_v0  ;;  %4738 = vmatprep.subr.bf16.mxu0 %v10064_v62 }
0x187b   :  { %4471 = vmatmul.mubr.bf16.gmra.mrb[132].mxu0 %v4245_v10 }
0x187c   :  { %4480 = vmatprep.mubr.bf16.mxu0 %v10603_v46 }
0x187d   :  { %4739 = vmatpush1.bf16.msra.mxu0 %v10067_v20  ;;  %6924 = vmatpush3.bf16.msra.mxu1 %v10069_v17 }
0x187e   :  { %6925 = vmatprep.subr.bf16.mxu1 %v10602_v0  ;;  %4740 = vmatprep.subr.bf16.mxu0 %v10074_v2 }
0x1881   :  { %4741 = vmatpush1.bf16.msra.mxu0 %v10077_v8  ;;  %6926 = vmatpush3.bf16.msra.mxu1 %v10079_v35 }
0x1882   :  { %6927 = vmatprep.subr.bf16.mxu1 %v10602_v0  ;;  %4742 = vmatprep.subr.bf16.mxu0 %v10084_v19 }
0x1883   :  { %4481 = vmatmul.mubr.bf16.gmra.mrb[136].mxu0 %v4246_v26 }
0x1884   :  { %4490 = vmatprep.mubr.bf16.mxu0 %v10603_v46 }
0x1885   :  { %4743 = vmatpush1.bf16.msra.mxu0 %v10087_v16  ;;  %6928 = vmatpush3.bf16.msra.mxu1 %v10089_v1 }
0x1886   :  { %6929 = vmatprep.subr.bf16.mxu1 %v10602_v0  ;;  %4744 = vmatprep.subr.bf16.mxu0 %v10094_v27 }
0x1889   :  { %4745 = vmatpush1.bf16.msra.mxu0 %v10097_v31  ;;  %6930 = vmatpush3.bf16.msra.mxu1 %v10099_v34 }
0x188a   :  { %6931 = vmatprep.subr.bf16.mxu1 %v10602_v0  ;;  %4746 = vmatprep.subr.bf16.mxu0 %v10104_v6 }
0x188d   :  { %4747 = vmatpush1.bf16.msra.mxu0 %v10107_v22  ;;  %6932 = vmatpush3.bf16.msra.mxu1 %v10109_v30 }
0x188e   :  { %4748 = vmatprep.subr.bf16.mxu0 %v10111_v36  ;;  %6933 = vmatprep.subr.bf16.mxu1 %v10602_v0 }
0x1891   :  { %4749 = vmatpush1.bf16.msra.mxu0 %v10116_v38  ;;  %6934 = vmatpush3.bf16.msra.mxu1 %v10118_v63 }
0x1892   :  { %4837 = vmatprep.subr.bf16.mxu0 %v10045_v28  ;;  %6939 = vmatprep.subr.bf16.mxu1 %v10602_v0 }
0x1926   :  { %v4176_v41 = vpop.f32.mrb[124].mxu0  ;;  %v4217_v33 = vpop.f32.mrb[132].mxu1 }
0x1927   :  { %v4223_v43 = vadd.f32 %v4176_v41, %v10636_v25  ;;  %v4178_v45 = vpop.f32.mrb[125].mxu0  ;;  %v6893_v47 = vpop.f32.mrb[133].mxu1  ;;  %v4237_v12 = vadd.f32 %v7790_v61, %v4217_v33 }
0x1928   :  { %v4224_v48 = vadd.f32 %v4178_v45, %v9712_v4  ;;  %v4180_v5 = vpop.f32.mrb[126].mxu0  ;;  %v4220_v53 = vpop.f32.mrb[134].mxu1 }
0x1929   :  { %v5918_v42 = vmul.f32 -1.442695, %v4223_v43  ;;  %v4181_v11 = vpop.f32.mrb[127].mxu0  ;;  %v6894_v55 = vpop.f32.mrb[135].mxu1  ;;  %v5920_v53 = vld [vmem:[%s10616_s4 + $0x8] sm:$0xff] }
0x192a   :  { %v5919_v9 = vmul.f32 -1.442695, %v4224_v48 }
0x192b   :  { %7627 = vpow2.f32 %v5918_v42  ;;  %v10638_v42 = vld [vmem:[#allocation36_spill] sm:$0xff] }
0x192c   :  { %7629 = vpow2.f32 %v5919_v9  ;;  %v10170_v11 = vadd.f32 %v5920_v53, %v10638_v42 }
0x192e   :  { %v4605_v55 = vpack.c.bf16 %v10170_v11, %v10170_v11 }
0x1935   :  { %v7628_v51 = vpop.eup %7627 }
0x1936   :  { %v4231_v39 = vadd.f32 1.0, %v7628_v51  ;;  %v7630_v15 = vpop.eup %7629 }
0x1937   :  { %v4232_v57 = vadd.f32 1.0, %v7630_v15 }
0x1938   :  { %7631 = vrcp.f32 %v4231_v39 }
0x1942   :  { %v7632_v59 = vpop.eup %7631 }
0x1943   :  { %v4238_v37 = vmul.f32 %v7632_v59, %v4237_v12  ;;  %v10644_v59 = vld [vmem:[#allocation33_spill] sm:$0xff] }
0x1945   :  { %v4239_v24 = vadd.f32 %v4238_v37, %v10637_v50 }
0x1946   :  { %v10129_v4 = vpop.f32.mrb[128].mxu0  ;;  %v10131_v56 = vpop.f32.mrb[136].mxu1 }
0x1947   :  { %7633 = vtanh.f32 %v4239_v24  ;;  %v10133_v18 = vpop.f32.mrb[129].mxu0  ;;  %v10135_v3 = vpop.f32.mrb[137].mxu1 }
0x1948   :  { %v10137_v54 = vpop.f32.mrb[130].mxu0  ;;  %v10139_v23 = vpop.f32.mrb[138].mxu1  ;;  %7635 = vrcp.f32 %v4232_v57  ;;  %v10647_v57 = vld [vmem:[#allocation34_spill] sm:$0xff] }
0x1949   :  { %v10141_v7 = vpop.f32.mrb[131].mxu0  ;;  %v10143_v58 = vpop.f32.mrb[139].mxu1 }
0x194e   :  { %v10145_v49 = vpop.f32.mrb[132].mxu0 }
0x194f   :  { %v10147_v60 = vpop.f32.mrb[133].mxu0 }
0x1950   :  { %v10149_v13 = vpop.f32.mrb[134].mxu0 }
0x1951   :  { %v7634_v29 = vpop.eup %7633  ;;  %v10151_v10 = vpop.f32.mrb[135].mxu0 }
0x1952   :  { %v4241_v26 = vsub.f32 %v9964_v32, %v7634_v29  ;;  %v7636_v41 = vpop.eup %7635 }
0x1954   :  { %v4242_v33 = vmul.f32 %v7636_v41, %v4241_v26 }
0x1956   :  { %v10154_v25 = vpop.f32.mrb[136].mxu0  ;;  %v4243_v43 = vadd.f32 %v7634_v29, %v4242_v33 }
0x1957   :  { %v10156_v45 = vpop.f32.mrb[137].mxu0 }
0x1958   :  { %v10158_v47 = vpop.f32.mrb[138].mxu0  ;;  %v4247_v48 = vpack.c.bf16 %v4243_v43, %v9964_v32  ;;  %v4283_v32 = vld [vmem:[#allocation21] sm:$0x7] }
0x1959   :  { %v10161_v5 = vpop.f32.mrb[139].mxu0  ;;  %v10222_v37 = vrot.slane %v4283_v32, %v10644_v59  ;;  %v10229_v29 = vrot.slane %v4283_v32, %v10647_v57 }
0x195a   :  { %4491 = vmatmul.mubr.bf16.gmra.mrb[140].mxu0 %v4247_v48  ;;  %6916 = vmatmul.mubr.bf16.gmra.mrb[140].mxu1 %v4247_v48 }
0x195b   :  { %4766 = vmatprep.mubr.bf16.mxu0 %v10603_v46  ;;  %6935 = vmatprep.mubr.msk.bf16.mxu1 %vm8181_vm0, %v10602_v0  ;;  %v4463_v26 = vadd.f32 %v10129_v4, %v10222_v37  ;;  %v4465_v41 = vadd.f32 %v10133_v18, %v10229_v29  ;;  %v10235_v4 = vld [vmem:[#allocation22] ss:$0 sm:$0xff]  ;;  %v10648_v18 = vld [vmem:[#allocation35_spill] sm:$0xff] }
0x1962   :  { %4767 = vmatmul.mubr.bf16.vlgmr.msra.gmra.mrb[144].mxu0 %v4605_v55  ;;  %6936 = vmatmul.mubr.bf16.vlgmr.msra.gmra.mrb[144].mxu1 %v4605_v55 }
0x1963   :  { %4838 = vmatpush1.bf16.msra.mxu0 %v10047_v21  ;;  %6940 = vmatpush3.bf16.msra.mxu1 %v10049_v40 }
0x1964   :  { %4839 = vmatprep.subr.bf16.mxu0 %v10054_v14  ;;  %6941 = vmatprep.subr.bf16.mxu1 %v10602_v0 }
0x1965   :  { %4869 = vmatprep.mubr.bf16.mxu0 %v10603_v46  ;;  %6955 = vmatprep.mubr.msk.bf16.mxu1 %vm8181_vm0, %v10602_v0 }
0x1967   :  { %4840 = vmatpush1.bf16.msra.mxu0 %v10057_v52  ;;  %6942 = vmatpush3.bf16.msra.mxu1 %v10059_v44 }
0x1968   :  { %4841 = vmatprep.subr.bf16.mxu0 %v10064_v62  ;;  %6943 = vmatprep.subr.bf16.mxu1 %v10602_v0 }
0x196b   :  { %4842 = vmatpush1.bf16.msra.mxu0 %v10067_v20  ;;  %6944 = vmatpush3.bf16.msra.mxu1 %v10069_v17 }
0x196c   :  { %4843 = vmatprep.subr.bf16.mxu0 %v10074_v2  ;;  %6945 = vmatprep.subr.bf16.mxu1 %v10602_v0 }
0x196f   :  { %4844 = vmatpush1.bf16.msra.mxu0 %v10077_v8  ;;  %6946 = vmatpush3.bf16.msra.mxu1 %v10079_v35 }
0x1970   :  { %4845 = vmatprep.subr.bf16.mxu0 %v10084_v19  ;;  %6947 = vmatprep.subr.bf16.mxu1 %v10602_v0 }
0x1973   :  { %4846 = vmatpush1.bf16.msra.mxu0 %v10087_v16  ;;  %6948 = vmatpush3.bf16.msra.mxu1 %v10089_v1 }
0x1974   :  { %4847 = vmatprep.subr.bf16.mxu0 %v10094_v27  ;;  %6949 = vmatprep.subr.bf16.mxu1 %v10602_v0 }
0x1977   :  { %4848 = vmatpush1.bf16.msra.mxu0 %v10097_v31  ;;  %6950 = vmatpush3.bf16.msra.mxu1 %v10099_v34 }
0x1978   :  { %4849 = vmatprep.subr.bf16.mxu0 %v10104_v6  ;;  %6951 = vmatprep.subr.bf16.mxu1 %v10602_v0 }
0x197b   :  { %4850 = vmatpush1.bf16.msra.mxu0 %v10107_v22  ;;  %6952 = vmatpush3.bf16.msra.mxu1 %v10109_v30 }
0x197c   :  { %4851 = vmatprep.subr.bf16.mxu0 %v10111_v36  ;;  %6953 = vmatprep.subr.bf16.mxu1 %v10602_v0 }
0x197f   :  { %4852 = vmatpush1.bf16.msra.mxu0 %v10116_v38  ;;  %6954 = vmatpush3.bf16.msra.mxu1 %v10118_v63 }
0x1980   :  { %4940 = vmatprep.subr.bf16.mxu0 %v10045_v28  ;;  %6959 = vmatprep.subr.bf16.mxu1 %v10602_v0 }
0x1a2d   :  { %v10209_v9 = vpop.f32.mrb[140].mxu0  ;;  %v10211_v51 = vpop.f32.mrb[140].mxu1 }
0x1a2e   :  { %10639 = vst [vmem:[#allocation40_spill] sm:$0xff] %v10209_v9  ;;  %10640 = vst [vmem:[#allocation38_spill] sm:$0xff] %v10211_v51  ;;  %v10213_v39 = vpop.f32.mrb[141].mxu0  ;;  %v10215_v15 = vpop.f32.mrb[141].mxu1 }
0x1a2f   :  { %10641 = vst [vmem:[#allocation42_spill] sm:$0xff] %v10213_v39  ;;  %v10217_v61 = vpop.f32.mrb[142].mxu0  ;;  %v10219_v12 = vpop.f32.mrb[142].mxu1 }
0x1a30   :  { %10642 = vst [vmem:[#allocation41_spill] sm:$0xff] %v10217_v61  ;;  %10643 = vst [vmem:[#allocation37_spill] sm:$0xff] %v10219_v12  ;;  %v10224_v50 = vpop.f32.mrb[143].mxu0  ;;  %v10226_v24 = vpop.f32.mrb[143].mxu1 }
0x1a31   :  { %10645 = vst [vmem:[#allocation43_spill] sm:$0xff] %v10224_v50  ;;  %10646 = vst [vmem:[#allocation39_spill] sm:$0xff] %v10226_v24  ;;  %v10238_v24 = vrot.slane %v4283_v32, %v10648_v18 }
0x1a35   :  { %v4768_v33 = vpop.f32.mrb[144].mxu0  ;;  %v4809_v43 = vpop.f32.mrb[144].mxu1 }
0x1a36   :  { %v4815_v48 = vadd.f32 %v4768_v33, %v4463_v26  ;;  %v4770_v53 = vpop.f32.mrb[145].mxu0  ;;  %v6937_v42 = vpop.f32.mrb[145].mxu1  ;;  %v4829_v33 = vadd.f32 %v10235_v4, %v4809_v43 }
0x1a37   :  { %v4816_v55 = vadd.f32 %v4770_v53, %v4465_v41  ;;  %v4772_v59 = vpop.f32.mrb[146].mxu0  ;;  %v4812_v12 = vpop.f32.mrb[146].mxu1 }
0x1a38   :  { %v5970_v50 = vmul.f32 -1.442695, %v4815_v48  ;;  %v4773_v61 = vpop.f32.mrb[147].mxu0  ;;  %v6938_v51 = vpop.f32.mrb[147].mxu1  ;;  %v4536_v12 = vadd.f32 %v10135_v3, %v10238_v24  ;;  %v4467_v3 = vadd.f32 %v10137_v54, %v10222_v37 }
0x1a39   :  { %v5971_v57 = vmul.f32 -1.442695, %v4816_v55 }
0x1a3a   :  { %7637 = vpow2.f32 %v5970_v50 }
0x1a3b   :  { %7639 = vpow2.f32 %v5971_v57 }
0x1a44   :  { %v7638_v39 = vpop.eup %7637 }
0x1a45   :  { %v4823_v9 = vadd.f32 1.0, %v7638_v39  ;;  %v7640_v26 = vpop.eup %7639 }
0x1a46   :  { %v4824_v50 = vadd.f32 1.0, %v7640_v26 }
0x1a47   :  { %7641 = vrcp.f32 %v4823_v9 }
0x1a51   :  { %v7642_v41 = vpop.eup %7641 }
0x1a52   :  { %v4830_v61 = vmul.f32 %v7642_v41, %v4829_v33 }
0x1a54   :  { %v4831_v51 = vadd.f32 %v4830_v61, %v4536_v12 }
0x1a56   :  { %7643 = vtanh.f32 %v4831_v51 }
0x1a57   :  { %7645 = vrcp.f32 %v4824_v50 }
0x1a60   :  { %v7644_v39 = vpop.eup %7643 }
0x1a61   :  { %v4833_v9 = vsub.f32 %v10170_v11, %v7644_v39  ;;  %v7646_v48 = vpop.eup %7645  ;;  %v4469_v11 = vadd.f32 %v10141_v7, %v10229_v29 }
0x1a63   :  { %v4834_v53 = vmul.f32 %v7646_v48, %v4833_v9 }
0x1a65   :  { %v10244_v42 = vadd.f32 %v7644_v39, %v4834_v53  ;;  %v4539_v53 = vadd.f32 %v10143_v58, %v10238_v24  ;;  %v4473_v58 = vadd.f32 %v10145_v49, %v10222_v37 }
0x1a67   :  { %v4836_v32 = vpack.c.bf16 %v10244_v42, %v10244_v42 }
0x1a69   :  { %4870 = vmatmul.mubr.bf16.vlgmr.msra.gmra.mrb[148].mxu0 %v4836_v32  ;;  %6956 = vmatmul.mubr.bf16.vlgmr.msra.gmra.mrb[148].mxu1 %v4836_v32 }
0x1a6a   :  { %4941 = vmatpush1.bf16.msra.mxu0 %v10047_v21  ;;  %6960 = vmatpush3.bf16.msra.mxu1 %v10049_v40 }
0x1a6b   :  { %4942 = vmatprep.subr.bf16.mxu0 %v10054_v14  ;;  %6961 = vmatprep.subr.bf16.mxu1 %v10602_v0 }
0x1a6c   :  { %4972 = vmatprep.mubr.bf16.mxu0 %v10603_v46  ;;  %6975 = vmatprep.mubr.msk.bf16.mxu1 %vm8181_vm0, %v10602_v0 }
0x1a6e   :  { %4943 = vmatpush1.bf16.msra.mxu0 %v10057_v52  ;;  %6962 = vmatpush3.bf16.msra.mxu1 %v10059_v44 }
0x1a6f   :  { %4944 = vmatprep.subr.bf16.mxu0 %v10064_v62  ;;  %6963 = vmatprep.subr.bf16.mxu1 %v10602_v0 }
0x1a72   :  { %4945 = vmatpush1.bf16.msra.mxu0 %v10067_v20  ;;  %6964 = vmatpush3.bf16.msra.mxu1 %v10069_v17 }
0x1a73   :  { %4946 = vmatprep.subr.bf16.mxu0 %v10074_v2  ;;  %6965 = vmatprep.subr.bf16.mxu1 %v10602_v0 }
0x1a76   :  { %4947 = vmatpush1.bf16.msra.mxu0 %v10077_v8  ;;  %6966 = vmatpush3.bf16.msra.mxu1 %v10079_v35 }
0x1a77   :  { %4948 = vmatprep.subr.bf16.mxu0 %v10084_v19  ;;  %6967 = vmatprep.subr.bf16.mxu1 %v10602_v0 }
0x1a7a   :  { %4949 = vmatpush1.bf16.msra.mxu0 %v10087_v16  ;;  %6968 = vmatpush3.bf16.msra.mxu1 %v10089_v1 }
0x1a7b   :  { %4950 = vmatprep.subr.bf16.mxu0 %v10094_v27  ;;  %6969 = vmatprep.subr.bf16.mxu1 %v10602_v0 }
0x1a7e   :  { %4951 = vmatpush1.bf16.msra.mxu0 %v10097_v31  ;;  %6970 = vmatpush3.bf16.msra.mxu1 %v10099_v34 }
0x1a7f   :  { %4952 = vmatprep.subr.bf16.mxu0 %v10104_v6  ;;  %6971 = vmatprep.subr.bf16.mxu1 %v10602_v0 }
0x1a82   :  { %4953 = vmatpush1.bf16.msra.mxu0 %v10107_v22  ;;  %6972 = vmatpush3.bf16.msra.mxu1 %v10109_v30 }
0x1a83   :  { %4954 = vmatprep.subr.bf16.mxu0 %v10111_v36  ;;  %6973 = vmatprep.subr.bf16.mxu1 %v10602_v0 }
0x1a86   :  { %4955 = vmatpush1.bf16.msra.mxu0 %v10116_v38  ;;  %6974 = vmatpush3.bf16.msra.mxu1 %v10118_v63 }
0x1a87   :  { %5043 = vmatprep.subr.bf16.mxu0 %v10045_v28  ;;  %6979 = vmatprep.subr.bf16.mxu1 %v10602_v0 }
0x1b3c   :  { %v4871_v43 = vpop.f32.mrb[148].mxu0  ;;  %v4912_v55 = vpop.f32.mrb[148].mxu1 }
0x1b3d   :  { %v4918_v59 = vadd.f32 %v4871_v43, %v4467_v3  ;;  %v4873_v57 = vpop.f32.mrb[149].mxu0  ;;  %v6957_v18 = vpop.f32.mrb[149].mxu1  ;;  %v4932_v7 = vadd.f32 %v10235_v4, %v4912_v55  ;;  %v4475_v55 = vadd.f32 %v10147_v60, %v10229_v29 }
0x1b3e   :  { %v4919_v26 = vadd.f32 %v4873_v57, %v4469_v11  ;;  %v4875_v33 = vpop.f32.mrb[150].mxu0  ;;  %v4915_v41 = vpop.f32.mrb[150].mxu1 }
0x1b3f   :  { %v5972_v12 = vmul.f32 -1.442695, %v4918_v59  ;;  %v4876_v61 = vpop.f32.mrb[151].mxu0  ;;  %v6958_v51 = vpop.f32.mrb[151].mxu1 }
0x1b40   :  { %v5973_v50 = vmul.f32 -1.442695, %v4919_v26 }
0x1b41   :  { %7647 = vpow2.f32 %v5972_v12 }
0x1b42   :  { %7649 = vpow2.f32 %v5973_v50 }
0x1b4b   :  { %v7648_v39 = vpop.eup %7647 }
0x1b4c   :  { %v4926_v9 = vadd.f32 1.0, %v7648_v39  ;;  %v7650_v54 = vpop.eup %7649 }
0x1b4d   :  { %v4927_v11 = vadd.f32 1.0, %v7650_v54 }
0x1b4e   :  { %7651 = vrcp.f32 %v4926_v9 }
0x1b58   :  { %v7652_v48 = vpop.eup %7651 }
0x1b59   :  { %v4933_v32 = vmul.f32 %v7652_v48, %v4932_v7 }
0x1b5b   :  { %v4934_v3 = vadd.f32 %v4933_v32, %v4539_v53 }
0x1b5d   :  { %7653 = vtanh.f32 %v4934_v3 }
0x1b5e   :  { %7655 = vrcp.f32 %v4927_v11 }
0x1b67   :  { %v7654_v43 = vpop.eup %7653 }
0x1b68   :  { %v4936_v59 = vsub.f32 %v10244_v42, %v7654_v43  ;;  %v7656_v57 = vpop.eup %7655 }
0x1b6a   :  { %v4937_v18 = vmul.f32 %v7656_v57, %v4936_v59  ;;  %v4544_v59 = vadd.f32 %v10131_v56, %v10238_v24  ;;  %v4477_v56 = vadd.f32 %v10149_v13, %v10222_v37 }
0x1b6c   :  { %v10291_v26 = vadd.f32 %v7654_v43, %v4937_v18 }
0x1b6e   :  { %v4939_v33 = vpack.c.bf16 %v10291_v26, %v10291_v26 }
0x1b70   :  { %4973 = vmatmul.mubr.bf16.vlgmr.msra.gmra.mrb[152].mxu0 %v4939_v33  ;;  %6976 = vmatmul.mubr.bf16.vlgmr.msra.gmra.mrb[152].mxu1 %v4939_v33 }
0x1b71   :  { %5044 = vmatpush1.bf16.msra.mxu0 %v10047_v21  ;;  %6980 = vmatpush3.bf16.msra.mxu1 %v10049_v40 }
0x1b72   :  { %5045 = vmatprep.subr.bf16.mxu0 %v10054_v14  ;;  %6981 = vmatprep.subr.bf16.mxu1 %v10602_v0 }
0x1b73   :  { %5075 = vmatprep.mubr.bf16.mxu0 %v10603_v46  ;;  %6995 = vmatprep.mubr.msk.bf16.mxu1 %vm8181_vm0, %v10602_v0 }
0x1b75   :  { %5046 = vmatpush1.bf16.msra.mxu0 %v10057_v52  ;;  %6982 = vmatpush3.bf16.msra.mxu1 %v10059_v44 }
0x1b76   :  { %5047 = vmatprep.subr.bf16.mxu0 %v10064_v62  ;;  %6983 = vmatprep.subr.bf16.mxu1 %v10602_v0 }
0x1b79   :  { %5048 = vmatpush1.bf16.msra.mxu0 %v10067_v20  ;;  %6984 = vmatpush3.bf16.msra.mxu1 %v10069_v17 }
0x1b7a   :  { %5049 = vmatprep.subr.bf16.mxu0 %v10074_v2  ;;  %6985 = vmatprep.subr.bf16.mxu1 %v10602_v0 }
0x1b7d   :  { %5050 = vmatpush1.bf16.msra.mxu0 %v10077_v8  ;;  %6986 = vmatpush3.bf16.msra.mxu1 %v10079_v35 }
0x1b7e   :  { %5051 = vmatprep.subr.bf16.mxu0 %v10084_v19  ;;  %6987 = vmatprep.subr.bf16.mxu1 %v10602_v0 }
0x1b81   :  { %5052 = vmatpush1.bf16.msra.mxu0 %v10087_v16  ;;  %6988 = vmatpush3.bf16.msra.mxu1 %v10089_v1 }
0x1b82   :  { %5053 = vmatprep.subr.bf16.mxu0 %v10094_v27  ;;  %6989 = vmatprep.subr.bf16.mxu1 %v10602_v0 }
0x1b85   :  { %5054 = vmatpush1.bf16.msra.mxu0 %v10097_v31  ;;  %6990 = vmatpush3.bf16.msra.mxu1 %v10099_v34 }
0x1b86   :  { %5055 = vmatprep.subr.bf16.mxu0 %v10104_v6  ;;  %6991 = vmatprep.subr.bf16.mxu1 %v10602_v0 }
0x1b89   :  { %5056 = vmatpush1.bf16.msra.mxu0 %v10107_v22  ;;  %6992 = vmatpush3.bf16.msra.mxu1 %v10109_v30 }
0x1b8a   :  { %5057 = vmatprep.subr.bf16.mxu0 %v10111_v36  ;;  %6993 = vmatprep.subr.bf16.mxu1 %v10602_v0 }
0x1b8d   :  { %5058 = vmatpush1.bf16.msra.mxu0 %v10116_v38  ;;  %6994 = vmatpush3.bf16.msra.mxu1 %v10118_v63 }
0x1b8e   :  { %5146 = vmatprep.subr.bf16.mxu0 %v10045_v28  ;;  %6999 = vmatprep.subr.bf16.mxu1 %v10602_v0 }
0x1c43   :  { %v4974_v41 = vpop.f32.mrb[152].mxu0  ;;  %v5015_v12 = vpop.f32.mrb[152].mxu1 }
0x1c44   :  { %v5021_v61 = vadd.f32 %v4974_v41, %v4473_v58  ;;  %v4976_v51 = vpop.f32.mrb[153].mxu0  ;;  %v6977_v50 = vpop.f32.mrb[153].mxu1  ;;  %v5035_v60 = vadd.f32 %v10235_v4, %v5015_v12  ;;  %v4479_v12 = vadd.f32 %v10151_v10, %v10229_v29 }
0x1c45   :  { %v5022_v39 = vadd.f32 %v4976_v51, %v4475_v55  ;;  %v4978_v9 = vpop.f32.mrb[154].mxu0  ;;  %v5018_v54 = vpop.f32.mrb[154].mxu1 }
0x1c46   :  { %v5974_v7 = vmul.f32 -1.442695, %v5021_v61  ;;  %v4979_v48 = vpop.f32.mrb[155].mxu0  ;;  %v6978_v53 = vpop.f32.mrb[155].mxu1 }
0x1c47   :  { %v5975_v32 = vmul.f32 -1.442695, %v5022_v39 }
0x1c48   :  { %7657 = vpow2.f32 %v5974_v7 }
0x1c49   :  { %7659 = vpow2.f32 %v5975_v32 }
0x1c52   :  { %v7658_v3 = vpop.eup %7657 }
0x1c53   :  { %v5029_v11 = vadd.f32 1.0, %v7658_v3  ;;  %v7660_v49 = vpop.eup %7659 }
0x1c54   :  { %v5030_v33 = vadd.f32 1.0, %v7660_v49 }
0x1c55   :  { %7661 = vrcp.f32 %v5029_v11 }
0x1c5f   :  { %v7662_v43 = vpop.eup %7661 }
0x1c60   :  { %v5036_v57 = vmul.f32 %v7662_v43, %v5035_v60 }
0x1c62   :  { %v5037_v18 = vadd.f32 %v5036_v57, %v4544_v59 }
0x1c64   :  { %7663 = vtanh.f32 %v5037_v18 }
0x1c65   :  { %7665 = vrcp.f32 %v5030_v33  ;;  %v4547_v33 = vadd.f32 %v10139_v23, %v10238_v24  ;;  %v4483_v23 = vadd.f32 %v10154_v25, %v10222_v37 }
0x1c6e   :  { %v7664_v58 = vpop.eup %7663 }
0x1c6f   :  { %v5039_v55 = vsub.f32 %v10291_v26, %v7664_v58  ;;  %v7666_v41 = vpop.eup %7665 }
0x1c71   :  { %v5040_v61 = vmul.f32 %v7666_v41, %v5039_v55 }
0x1c73   :  { %v10338_v51 = vadd.f32 %v7664_v58, %v5040_v61 }
0x1c75   :  { %v5042_v50 = vpack.c.bf16 %v10338_v51, %v10338_v51 }
0x1c77   :  { %5076 = vmatmul.mubr.bf16.vlgmr.msra.gmra.mrb[156].mxu0 %v5042_v50  ;;  %6996 = vmatmul.mubr.bf16.vlgmr.msra.gmra.mrb[156].mxu1 %v5042_v50 }
0x1c78   :  { %5147 = vmatpush1.bf16.msra.mxu0 %v10047_v21  ;;  %7000 = vmatpush3.bf16.msra.mxu1 %v10049_v40 }
0x1c79   :  { %5148 = vmatprep.subr.bf16.mxu0 %v10054_v14  ;;  %7001 = vmatprep.subr.bf16.mxu1 %v10602_v0 }
0x1c7a   :  { %5178 = vmatprep.mubr.bf16.mxu0 %v10603_v46  ;;  %7015 = vmatprep.mubr.msk.bf16.mxu1 %vm8181_vm0, %v10602_v0 }
0x1c7c   :  { %5149 = vmatpush1.bf16.msra.mxu0 %v10057_v52  ;;  %7002 = vmatpush3.bf16.msra.mxu1 %v10059_v44 }
0x1c7d   :  { %5150 = vmatprep.subr.bf16.mxu0 %v10064_v62  ;;  %7003 = vmatprep.subr.bf16.mxu1 %v10602_v0 }
0x1c80   :  { %5151 = vmatpush1.bf16.msra.mxu0 %v10067_v20  ;;  %7004 = vmatpush3.bf16.msra.mxu1 %v10069_v17 }
0x1c81   :  { %5152 = vmatprep.subr.bf16.mxu0 %v10074_v2  ;;  %7005 = vmatprep.subr.bf16.mxu1 %v10602_v0 }
0x1c84   :  { %5153 = vmatpush1.bf16.msra.mxu0 %v10077_v8  ;;  %7006 = vmatpush3.bf16.msra.mxu1 %v10079_v35 }
0x1c85   :  { %5154 = vmatprep.subr.bf16.mxu0 %v10084_v19  ;;  %7007 = vmatprep.subr.bf16.mxu1 %v10602_v0 }
0x1c88   :  { %5155 = vmatpush1.bf16.msra.mxu0 %v10087_v16  ;;  %7008 = vmatpush3.bf16.msra.mxu1 %v10089_v1 }
0x1c89   :  { %5156 = vmatprep.subr.bf16.mxu0 %v10094_v27  ;;  %7009 = vmatprep.subr.bf16.mxu1 %v10602_v0 }
0x1c8c   :  { %5157 = vmatpush1.bf16.msra.mxu0 %v10097_v31  ;;  %7010 = vmatpush3.bf16.msra.mxu1 %v10099_v34 }
0x1c8d   :  { %5158 = vmatprep.subr.bf16.mxu0 %v10104_v6  ;;  %7011 = vmatprep.subr.bf16.mxu1 %v10602_v0 }
0x1c90   :  { %5159 = vmatpush1.bf16.msra.mxu0 %v10107_v22  ;;  %7012 = vmatpush3.bf16.msra.mxu1 %v10109_v30 }
0x1c91   :  { %5160 = vmatprep.subr.bf16.mxu0 %v10111_v36  ;;  %7013 = vmatprep.subr.bf16.mxu1 %v10602_v0 }
0x1c94   :  { %5161 = vmatpush1.bf16.msra.mxu0 %v10116_v38  ;;  %7014 = vmatpush3.bf16.msra.mxu1 %v10118_v63 }
0x1c95   :  { %5249 = vmatprep.subr.bf16.mxu0 %v10045_v28  ;;  %7019 = vmatprep.subr.bf16.mxu1 %v10602_v0 }
0x1d4a   :  { %v5077_v39 = vpop.f32.mrb[156].mxu0  ;;  %v5118_v9 = vpop.f32.mrb[156].mxu1 }
0x1d4b   :  { %v5124_v54 = vadd.f32 %v5077_v39, %v4477_v56  ;;  %v5079_v7 = vpop.f32.mrb[157].mxu0  ;;  %v6997_v48 = vpop.f32.mrb[157].mxu1  ;;  %v5138_v10 = vadd.f32 %v10235_v4, %v5118_v9  ;;  %v4485_v9 = vadd.f32 %v10156_v45, %v10229_v29 }
0x1d4c   :  { %v5125_v53 = vadd.f32 %v5079_v7, %v4479_v12  ;;  %v5081_v32 = vpop.f32.mrb[158].mxu0  ;;  %v5121_v3 = vpop.f32.mrb[158].mxu1 }
0x1d4d   :  { %v5976_v11 = vmul.f32 -1.442695, %v5124_v54  ;;  %v5082_v49 = vpop.f32.mrb[159].mxu0  ;;  %v6998_v60 = vpop.f32.mrb[159].mxu1 }
0x1d4e   :  { %v5977_v43 = vmul.f32 -1.442695, %v5125_v53 }
0x1d4f   :  { %7667 = vpow2.f32 %v5976_v11 }
0x1d50   :  { %7669 = vpow2.f32 %v5977_v43 }
0x1d59   :  { %v7668_v59 = vpop.eup %7667 }
0x1d5a   :  { %v5132_v57 = vadd.f32 1.0, %v7668_v59  ;;  %v7670_v13 = vpop.eup %7669 }
0x1d5b   :  { %v5133_v41 = vadd.f32 1.0, %v7670_v13 }
0x1d5c   :  { %7671 = vrcp.f32 %v5132_v57 }
0x1d66   :  { %v7672_v18 = vpop.eup %7671 }
0x1d67   :  { %v5139_v58 = vmul.f32 %v7672_v18, %v5138_v10 }
0x1d69   :  { %v5140_v55 = vadd.f32 %v5139_v58, %v4547_v33  ;;  %v4552_v58 = vadd.f32 %v10215_v15, %v10238_v24 }
0x1d6b   :  { %7673 = vtanh.f32 %v5140_v55 }
0x1d6c   :  { %7675 = vrcp.f32 %v5133_v41 }
0x1d75   :  { %v7674_v61 = vpop.eup %7673 }
0x1d76   :  { %v5142_v50 = vsub.f32 %v10338_v51, %v7674_v61  ;;  %v7676_v56 = vpop.eup %7675 }
0x1d78   :  { %v5143_v12 = vmul.f32 %v7676_v56, %v5142_v50 }
0x1d7a   :  { %v10385_v39 = vadd.f32 %v7674_v61, %v5143_v12 }
0x1d7c   :  { %v5145_v54 = vpack.c.bf16 %v10385_v39, %v10385_v39 }
0x1d7e   :  { %5179 = vmatmul.mubr.bf16.vlgmr.msra.gmra.mrb[160].mxu0 %v5145_v54  ;;  %7016 = vmatmul.mubr.bf16.vlgmr.msra.gmra.mrb[160].mxu1 %v5145_v54 }
0x1d7f   :  { %5250 = vmatpush1.bf16.msra.mxu0 %v10047_v21  ;;  %7020 = vmatpush3.bf16.msra.mxu1 %v10049_v40 }
0x1d80   :  { %5251 = vmatprep.subr.bf16.mxu0 %v10054_v14  ;;  %7021 = vmatprep.subr.bf16.mxu1 %v10602_v0 }
0x1d81   :  { %5281 = vmatprep.mubr.bf16.mxu0 %v10603_v46  ;;  %7035 = vmatprep.mubr.msk.bf16.mxu1 %vm8181_vm0, %v10602_v0 }
0x1d83   :  { %5252 = vmatpush1.bf16.msra.mxu0 %v10057_v52  ;;  %7022 = vmatpush3.bf16.msra.mxu1 %v10059_v44 }
0x1d84   :  { %5253 = vmatprep.subr.bf16.mxu0 %v10064_v62  ;;  %7023 = vmatprep.subr.bf16.mxu1 %v10602_v0 }
0x1d87   :  { %5254 = vmatpush1.bf16.msra.mxu0 %v10067_v20  ;;  %7024 = vmatpush3.bf16.msra.mxu1 %v10069_v17 }
0x1d88   :  { %5255 = vmatprep.subr.bf16.mxu0 %v10074_v2  ;;  %7025 = vmatprep.subr.bf16.mxu1 %v10602_v0 }
0x1d8b   :  { %5256 = vmatpush1.bf16.msra.mxu0 %v10077_v8  ;;  %7026 = vmatpush3.bf16.msra.mxu1 %v10079_v35 }
0x1d8c   :  { %5257 = vmatprep.subr.bf16.mxu0 %v10084_v19  ;;  %7027 = vmatprep.subr.bf16.mxu1 %v10602_v0 }
0x1d8f   :  { %5258 = vmatpush1.bf16.msra.mxu0 %v10087_v16  ;;  %7028 = vmatpush3.bf16.msra.mxu1 %v10089_v1 }
0x1d90   :  { %5259 = vmatprep.subr.bf16.mxu0 %v10094_v27  ;;  %7029 = vmatprep.subr.bf16.mxu1 %v10602_v0 }
0x1d93   :  { %5260 = vmatpush1.bf16.msra.mxu0 %v10097_v31  ;;  %7030 = vmatpush3.bf16.msra.mxu1 %v10099_v34 }
0x1d94   :  { %5261 = vmatprep.subr.bf16.mxu0 %v10104_v6  ;;  %7031 = vmatprep.subr.bf16.mxu1 %v10602_v0 }
0x1d97   :  { %5262 = vmatpush1.bf16.msra.mxu0 %v10107_v22  ;;  %7032 = vmatpush3.bf16.msra.mxu1 %v10109_v30 }
0x1d98   :  { %5263 = vmatprep.subr.bf16.mxu0 %v10111_v36  ;;  %7033 = vmatprep.subr.bf16.mxu1 %v10602_v0 }
0x1d9b   :  { %5264 = vmatpush1.bf16.msra.mxu0 %v10116_v38  ;;  %7034 = vmatpush3.bf16.msra.mxu1 %v10118_v63 }
0x1d9c   :  { %5352 = vmatprep.subr.bf16.mxu0 %v10045_v28  ;;  %7039 = vmatprep.subr.bf16.mxu1 %v10602_v0 }
0x1e51   :  { %v5180_v7 = vpop.f32.mrb[160].mxu0  ;;  %v5221_v48 = vpop.f32.mrb[160].mxu1 }
0x1e52   :  { %v5227_v53 = vadd.f32 %v5180_v7, %v4483_v23  ;;  %v5182_v32 = vpop.f32.mrb[161].mxu0  ;;  %v7017_v3 = vpop.f32.mrb[161].mxu1  ;;  %v5241_v45 = vadd.f32 %v10235_v4, %v5221_v48 }
0x1e53   :  { %v5228_v11 = vadd.f32 %v5182_v32, %v4485_v9  ;;  %v5184_v49 = vpop.f32.mrb[162].mxu0  ;;  %v5224_v60 = vpop.f32.mrb[162].mxu1  ;;  %v7791_v32 = vld [vmem:[#allocation19] ss:$12 sps:$4 sm:$0xff]   ;;  %v7792_v3 = vld [vmem:[#allocation19 + $0x8] ss:$12 sps:$4 sm:$0xff]  }
0x1e54   :  { %v5978_v43 = vmul.f32 -1.442695, %v5227_v53  ;;  %v5185_v59 = vpop.f32.mrb[163].mxu0  ;;  %v7018_v57 = vpop.f32.mrb[163].mxu1  ;;  %v7794_v49 = vld [vmem:[#allocation19 + $0x18] ss:$12 sps:$4 sm:$0xff]  }
0x1e55   :  { %v5979_v13 = vmul.f32 -1.442695, %v5228_v11  ;;  %v7793_v11 = vld [vmem:[#allocation19 + $0x1c] ss:$12 sps:$4 sm:$0xff]   ;;  %v7795_v60 = vld [vmem:[#allocation19 + $0x20] ss:$12 sps:$4 sm:$0xff]  }
0x1e56   :  { %7677 = vpow2.f32 %v5978_v43  ;;  %v7796_v43 = vld [vmem:[#allocation19 + $0x34] ss:$12 sps:$4 sm:$0xff]   ;;  %v7797_v59 = vld [vmem:[#allocation19 + $0x30] ss:$12 sps:$4 sm:$0xff]   ;;  %v7798_v57 = vld [vmem:[#allocation19 + $0x38] ss:$12 sps:$4 sm:$0xff]  }
0x1e57   :  { %7679 = vpow2.f32 %v5979_v13  ;;  %v7799_v13 = vld [vmem:[#allocation19 + $0x4c] ss:$12 sps:$4 sm:$0xff]  }
0x1e60   :  { %v7678_v10 = vpop.eup %7677 }
0x1e61   :  { %v5235_v18 = vadd.f32 1.0, %v7678_v10  ;;  %v7680_v25 = vpop.eup %7679  ;;  %v7801_v10 = vld [vmem:[#allocation19 + $0x50] ss:$12 sps:$4 sm:$0xff]  }
0x1e62   :  { %v5236_v61 = vadd.f32 1.0, %v7680_v25  ;;  %v7803_v25 = vld [vmem:[#allocation19 + $0x60] ss:$12 sps:$4 sm:$0xff]  }
0x1e63   :  { %7681 = vrcp.f32 %v5235_v18  ;;  %v7802_v18 = vld [vmem:[#allocation19 + $0x64] ss:$12 sps:$4 sm:$0xff]  }
0x1e6d   :  { %v7682_v33 = vpop.eup %7681 }
0x1e6e   :  { %v5242_v55 = vmul.f32 %v7682_v33, %v5241_v45  ;;  %v7804_v45 = vld [vmem:[#allocation19 + $0x68] ss:$12 sps:$4 sm:$0xff]  }
0x1e6f   :  { %v7805_v33 = vld [vmem:[#allocation19 + $0x7c] ss:$12 sps:$4 sm:$0xff]  }
0x1e70   :  { %v5243_v41 = vadd.f32 %v5242_v55, %v4552_v58  ;;  %v7806_v58 = vld [vmem:[#allocation19 + $0x78] ss:$12 sps:$4 sm:$0xff]   ;;  %v7807_v55 = vld [vmem:[#allocation19 + $0x80] ss:$12 sps:$4 sm:$0xff]  }
0x1e72   :  { %7683 = vtanh.f32 %v5243_v41  ;;  %v7808_v41 = vld [vmem:[#allocation19 + $0x94] ss:$12 sps:$4 sm:$0xff]  }
0x1e73   :  { %7685 = vrcp.f32 %v5236_v61  ;;  %v7809_v61 = vld [vmem:[#allocation19 + $0x90] ss:$12 sps:$4 sm:$0xff]  }
0x1e7c   :  { %v7684_v50 = vpop.eup %7683 }
0x1e7d   :  { %v5245_v56 = vsub.f32 %v10385_v39, %v7684_v50  ;;  %v7686_v12 = vpop.eup %7685 }
0x1e7f   :  { %v5246_v54 = vmul.f32 %v7686_v12, %v5245_v56  ;;  %v7811_v56 = vld [vmem:[#allocation19 + $0xac] ss:$12 sps:$4 sm:$0xff]   ;;  %v7812_v12 = vld [vmem:[#allocation19 + $0xa8] ss:$12 sps:$4 sm:$0xff]  }
0x1e81   :  { %v10432_v23 = vadd.f32 %v7684_v50, %v5246_v54  ;;  %v7810_v50 = vld [vmem:[#allocation19 + $0x98] ss:$12 sps:$4 sm:$0xff]   ;;  %v7813_v54 = vld [vmem:[#allocation19 + $0xb0] ss:$12 sps:$4 sm:$0xff]  }
0x1e83   :  { %v5248_v9 = vpack.c.bf16 %v10432_v23, %v10432_v23 }
0x1e85   :  { %5282 = vmatmul.mubr.bf16.vlgmr.msra.gmra.mrb[164].mxu0 %v5248_v9  ;;  %7036 = vmatmul.mubr.bf16.vlgmr.msra.gmra.mrb[164].mxu1 %v5248_v9  ;;  %v7389_v9 = vld [vmem:[#allocation24] sm:$0xff]  }
0x1e86   :  { %5353 = vmatpush1.bf16.msra.mxu0 %v10047_v21  ;;  %7040 = vmatpush3.bf16.msra.mxu1 %v10049_v40  ;;  %v4487_v21 = vadd.f32 %v10158_v47, %v10222_v37  ;;  %v4489_v40 = vadd.f32 %v10161_v5, %v10229_v29 }
0x1e87   :  { %5354 = vmatprep.subr.bf16.mxu0 %v10054_v14  ;;  %7041 = vmatprep.subr.bf16.mxu1 %v10602_v0 }
0x1e88   :  { %5384 = vmatprep.mubr.bf16.mxu0 %v10603_v46  ;;  %7055 = vmatprep.mubr.msk.bf16.mxu1 %vm8181_vm0, %v10602_v0 }
0x1e8a   :  { %5355 = vmatpush1.bf16.msra.mxu0 %v10057_v52  ;;  %7042 = vmatpush3.bf16.msra.mxu1 %v10059_v44 }
0x1e8b   :  { %5356 = vmatprep.subr.bf16.mxu0 %v10064_v62  ;;  %7043 = vmatprep.subr.bf16.mxu1 %v10602_v0 }
0x1e8e   :  { %5357 = vmatpush1.bf16.msra.mxu0 %v10067_v20  ;;  %7044 = vmatpush3.bf16.msra.mxu1 %v10069_v17 }
0x1e8f   :  { %5358 = vmatprep.subr.bf16.mxu0 %v10074_v2  ;;  %7045 = vmatprep.subr.bf16.mxu1 %v10602_v0 }
0x1e92   :  { %5359 = vmatpush1.bf16.msra.mxu0 %v10077_v8  ;;  %7046 = vmatpush3.bf16.msra.mxu1 %v10079_v35 }
0x1e93   :  { %5360 = vmatprep.subr.bf16.mxu0 %v10084_v19  ;;  %7047 = vmatprep.subr.bf16.mxu1 %v10602_v0 }
0x1e96   :  { %5361 = vmatpush1.bf16.msra.mxu0 %v10087_v16  ;;  %7048 = vmatpush3.bf16.msra.mxu1 %v10089_v1 }
0x1e97   :  { %5362 = vmatprep.subr.bf16.mxu0 %v10094_v27  ;;  %7049 = vmatprep.subr.bf16.mxu1 %v10602_v0 }
0x1e9a   :  { %5363 = vmatpush1.bf16.msra.mxu0 %v10097_v31  ;;  %7050 = vmatpush3.bf16.msra.mxu1 %v10099_v34 }
0x1e9b   :  { %5364 = vmatprep.subr.bf16.mxu0 %v10104_v6  ;;  %7051 = vmatprep.subr.bf16.mxu1 %v10602_v0 }
0x1e9e   :  { %5365 = vmatpush1.bf16.msra.mxu0 %v10107_v22  ;;  %7052 = vmatpush3.bf16.msra.mxu1 %v10109_v30  ;;  %v10649_v22 = vld [vmem:[#allocation39_spill] sm:$0xff] }
0x1e9f   :  { %5366 = vmatprep.subr.bf16.mxu0 %v10111_v36  ;;  %7053 = vmatprep.subr.bf16.mxu1 %v10602_v0  ;;  %v4555_v30 = vadd.f32 %v10649_v22, %v10238_v24 }
0x1ea2   :  { %5367 = vmatpush1.bf16.msra.mxu0 %v10116_v38  ;;  %7054 = vmatpush3.bf16.msra.mxu1 %v10118_v63 }
0x1ea3   :  { %5455 = vmatprep.subr.bf16.mxu0 %v10045_v28  ;;  %7059 = vmatprep.subr.bf16.mxu1 %v10602_v0 }
0x1f58   :  { %v5283_v14 = vpop.f32.mrb[164].mxu0  ;;  %v5324_v52 = vpop.f32.mrb[164].mxu1 }
0x1f59   :  { %v5330_v44 = vadd.f32 %v5283_v14, %v4487_v21  ;;  %v5285_v62 = vpop.f32.mrb[165].mxu0  ;;  %v7037_v20 = vpop.f32.mrb[165].mxu1  ;;  %v5344_v34 = vadd.f32 %v10235_v4, %v5324_v52  ;;  %v10650_v21 = vld [vmem:[#allocation40_spill] sm:$0xff]  ;;  %v10651_v14 = vld [vmem:[#allocation42_spill] sm:$0xff] }
0x1f5a   :  { %v5331_v17 = vadd.f32 %v5285_v62, %v4489_v40  ;;  %v5287_v2 = vpop.f32.mrb[166].mxu0  ;;  %v5327_v8 = vpop.f32.mrb[166].mxu1  ;;  %v4493_v40 = vadd.f32 %v10650_v21, %v10222_v37  ;;  %v4495_v52 = vadd.f32 %v10651_v14, %v10229_v29 }
0x1f5b   :  { %v5980_v35 = vmul.f32 -1.442695, %v5330_v44  ;;  %v5288_v19 = vpop.f32.mrb[167].mxu0  ;;  %v7038_v16 = vpop.f32.mrb[167].mxu1 }
0x1f5c   :  { %v5981_v28 = vmul.f32 -1.442695, %v5331_v17 }
0x1f5d   :  { %7687 = vpow2.f32 %v5980_v35 }
0x1f5e   :  { %7689 = vpow2.f32 %v5981_v28 }
0x1f67   :  { %v7688_v1 = vpop.eup %7687 }
0x1f68   :  { %v5338_v27 = vadd.f32 1.0, %v7688_v1  ;;  %v7690_v31 = vpop.eup %7689 }
0x1f69   :  { %v5339_v63 = vadd.f32 1.0, %v7690_v31 }
0x1f6a   :  { %7691 = vrcp.f32 %v5338_v27 }
0x1f74   :  { %v7692_v6 = vpop.eup %7691 }
0x1f75   :  { %v5345_v36 = vmul.f32 %v7692_v6, %v5344_v34 }
0x1f77   :  { %v5346_v38 = vadd.f32 %v5345_v36, %v4555_v30  ;;  %v10652_v30 = vld [vmem:[#allocation38_spill] sm:$0xff] }
0x1f78   :  { %v4560_v36 = vadd.f32 %v10652_v30, %v10238_v24 }
0x1f79   :  { %7693 = vtanh.f32 %v5346_v38 }
0x1f7a   :  { %7695 = vrcp.f32 %v5339_v63 }
0x1f83   :  { %v7694_v47 = vpop.eup %7693 }
0x1f84   :  { %v5348_v5 = vsub.f32 %v10432_v23, %v7694_v47  ;;  %v7696_v15 = vpop.eup %7695 }
0x1f86   :  { %v5349_v7 = vmul.f32 %v7696_v15, %v5348_v5 }
0x1f88   :  { %v10479_v48 = vadd.f32 %v7694_v47, %v5349_v7 }
0x1f8a   :  { %v5351_v53 = vpack.c.bf16 %v10479_v48, %v10479_v48 }
0x1f8c   :  { %5385 = vmatmul.mubr.bf16.vlgmr.msra.gmra.mrb[168].mxu0 %v5351_v53  ;;  %7056 = vmatmul.mubr.bf16.vlgmr.msra.gmra.mrb[168].mxu1 %v5351_v53 }
0x1f8d   :  { %5456 = vmatpush1.bf16.msra.mxu0 %v7791_v32  ;;  %7060 = vmatpush3.bf16.msra.mxu1 %v7792_v3 }
0x1f8e   :  { %5457 = vmatprep.subr.bf16.mxu0 %v7793_v11  ;;  %7061 = vmatprep.subr.bf16.mxu1 %v10602_v0  ;;  %v7390_v11 = vld [vmem:[#allocation24 + $0x8] sm:$0xff]  }
0x1f8f   :  { %5487 = vmatprep.mubr.bf16.mxu0 %v10603_v46  ;;  %7075 = vmatprep.mubr.msk.bf16.mxu1 %vm8181_vm0, %v10602_v0  ;;  %v7800_v46 = vld [vmem:[#allocation19 + $0x48] ss:$12 sps:$4 sm:$0xff]  }
0x1f91   :  { %5458 = vmatpush1.bf16.msra.mxu0 %v7794_v49  ;;  %7062 = vmatpush3.bf16.msra.mxu1 %v7795_v60  ;;  %v5557_v49 = vpack.c.bf16 %v10291_v26, %v10244_v42  ;;  %v7391_v60 = vld [vmem:[#allocation24 + $0x10] sm:$0xff]   ;;  %v7396_v42 = vld [vmem:[#allocation24 + $0x38] sm:$0xff]   ;;  %v5558_v26 = vpack.c.bf16 %v10385_v39, %v10338_v51 }
0x1f92   :  { %5459 = vmatprep.subr.bf16.mxu0 %v7796_v43  ;;  %7063 = vmatprep.subr.bf16.mxu1 %v10602_v0  ;;  %v7392_v43 = vld [vmem:[#allocation24 + $0x18] sm:$0xff]  }
0x1f95   :  { %5460 = vmatpush1.bf16.msra.mxu0 %v7797_v59  ;;  %7064 = vmatpush3.bf16.msra.mxu1 %v7798_v57  ;;  %v7393_v59 = vld [vmem:[#allocation24 + $0x20] sm:$0xff]   ;;  %v7394_v57 = vld [vmem:[#allocation24 + $0x28] sm:$0xff]  }
0x1f96   :  { %5461 = vmatprep.subr.bf16.mxu0 %v7799_v13  ;;  %7065 = vmatprep.subr.bf16.mxu1 %v10602_v0  ;;  %v7395_v13 = vld [vmem:[#allocation24 + $0x30] sm:$0xff]  }
0x1f99   :  { %5462 = vmatpush1.bf16.msra.mxu0 %v7800_v46  ;;  %7066 = vmatpush3.bf16.msra.mxu1 %v7801_v10  ;;  %v5559_v46 = vpack.c.bf16 %v10479_v48, %v10432_v23  ;;  %v10653_v10 = vld [vmem:[#allocation41_spill] sm:$0xff] }
0x1f9a   :  { %5463 = vmatprep.subr.bf16.mxu0 %v7802_v18  ;;  %7067 = vmatprep.subr.bf16.mxu1 %v10602_v0  ;;  %v4497_v18 = vadd.f32 %v10653_v10, %v10222_v37 }
0x1f9d   :  { %5464 = vmatpush1.bf16.msra.mxu0 %v7803_v25  ;;  %7068 = vmatpush3.bf16.msra.mxu1 %v7804_v45  ;;  %v10654_v25 = vld [vmem:[#allocation43_spill] sm:$0xff] }
0x1f9e   :  { %5465 = vmatprep.subr.bf16.mxu0 %v7805_v33  ;;  %7069 = vmatprep.subr.bf16.mxu1 %v10602_v0  ;;  %v4499_v45 = vadd.f32 %v10654_v25, %v10229_v29 }
0x1fa1   :  { %5466 = vmatpush1.bf16.msra.mxu0 %v7806_v58  ;;  %7070 = vmatpush3.bf16.msra.mxu1 %v7807_v55 }
0x1fa2   :  { %5467 = vmatprep.subr.bf16.mxu0 %v7808_v41  ;;  %7071 = vmatprep.subr.bf16.mxu1 %v10602_v0 }
0x1fa5   :  { %5468 = vmatpush1.bf16.msra.mxu0 %v7809_v61  ;;  %7072 = vmatpush3.bf16.msra.mxu1 %v7810_v50 }
0x1fa6   :  { %5469 = vmatprep.subr.bf16.mxu0 %v7811_v56  ;;  %7073 = vmatprep.subr.bf16.mxu1 %v10602_v0 }
0x1fa9   :  { %5470 = vmatpush1.bf16.msra.mxu0 %v7812_v12  ;;  %7074 = vmatpush3.bf16.msra.mxu1 %v7813_v54 }
0x1faa   :  { %7079 = vmatprep.subr.bf16.mxu0 %v7389_v9 }
0x205f   :  { %v5386_v44 = vpop.f32.mrb[168].mxu0  ;;  %v5427_v62 = vpop.f32.mrb[168].mxu1 }
0x2060   :  { %v5433_v20 = vadd.f32 %v5386_v44, %v4493_v40  ;;  %v5388_v17 = vpop.f32.mrb[169].mxu0  ;;  %v7057_v2 = vpop.f32.mrb[169].mxu1  ;;  %v5447_v6 = vadd.f32 %v10235_v4, %v5427_v62  ;;  %v10655_v40 = vld [vmem:[#allocation37_spill] sm:$0xff]  ;;  %v5986_v44 = vld [vmem:[%s10567_s20] ss:$0 sm:$0xff] }
0x2061   :  { %v5434_v8 = vadd.f32 %v5388_v17, %v4495_v52  ;;  %v5390_v35 = vpop.f32.mrb[170].mxu0  ;;  %v5430_v0 = vpop.f32.mrb[170].mxu1  ;;  %v4563_v14 = vadd.f32 %v10655_v40, %v10238_v24 }
0x2062   :  { %v5982_v19 = vmul.f32 -1.442695, %v5433_v20  ;;  %v5391_v16 = vpop.f32.mrb[171].mxu0  ;;  %v7058_v28 = vpop.f32.mrb[171].mxu1 }
0x2063   :  { %v5983_v1 = vmul.f32 -1.442695, %v5434_v8 }
0x2064   :  { %7697 = vpow2.f32 %v5982_v19 }
0x2065   :  { %7699 = vpow2.f32 %v5983_v1 }
0x206e   :  { %v7698_v27 = vpop.eup %7697 }
0x206f   :  { %v5441_v31 = vadd.f32 1.0, %v7698_v27  ;;  %v7700_v34 = vpop.eup %7699 }
0x2070   :  { %v5442_v47 = vadd.f32 1.0, %v7700_v34 }
0x2071   :  { %7701 = vrcp.f32 %v5441_v31 }
0x207b   :  { %v7702_v22 = vpop.eup %7701 }
0x207c   :  { %v5448_v38 = vmul.f32 %v7702_v22, %v5447_v6 }
0x207e   :  { %v5449_v63 = vadd.f32 %v5448_v38, %v4560_v36 }
0x2080   :  { %7703 = vtanh.f32 %v5449_v63 }
0x2081   :  { %7705 = vrcp.f32 %v5442_v47 }
0x208a   :  { %v7704_v5 = vpop.eup %7703 }
0x208b   :  { %v5451_v15 = vsub.f32 %v10479_v48, %v7704_v5  ;;  %v7706_v7 = vpop.eup %7705 }
0x208d   :  { %v5452_v53 = vmul.f32 %v7706_v7, %v5451_v15 }
0x208f   :  { %v10501_v32 = vadd.f32 %v7704_v5, %v5452_v53 }
0x2091   :  { %v5454_v3 = vpack.c.bf16 %v10501_v32, %v10501_v32 }
0x2093   :  { %5488 = vmatmul.mubr.bf16.vlgmr.msra.gmra.mrb[172].mxu0 %v5454_v3  ;;  %7076 = vmatmul.mubr.bf16.vlgmr.msra.gmra.mrb[172].mxu1 %v5454_v3 }
0x2094   :  { %7080 = vmatpush3.bf16.msra.mxu0 %v7389_v9  ;;  %7095 = vmatprep.mubr.bf16.mxu0 %v5557_v49 }
0x2095   :  { %7081 = vmatprep.subr.bf16.mxu0 %v7390_v11 }
0x2098   :  { %7082 = vmatpush3.bf16.msra.mxu0 %v7390_v11 }
0x2099   :  { %7083 = vmatprep.subr.bf16.mxu0 %v7391_v60 }
0x209c   :  { %7084 = vmatpush3.bf16.msra.mxu0 %v7391_v60 }
0x209d   :  { %7085 = vmatprep.subr.bf16.mxu0 %v7392_v43 }
0x20a0   :  { %7086 = vmatpush3.bf16.msra.mxu0 %v7392_v43 }
0x20a1   :  { %7087 = vmatprep.subr.bf16.mxu0 %v7393_v59 }
0x20a4   :  { %7088 = vmatpush3.bf16.msra.mxu0 %v7393_v59 }
0x20a5   :  { %7089 = vmatprep.subr.bf16.mxu0 %v7394_v57 }
0x20a8   :  { %7090 = vmatpush3.bf16.msra.mxu0 %v7394_v57 }
0x20a9   :  { %7091 = vmatprep.subr.bf16.mxu0 %v7395_v13 }
0x20ac   :  { %7092 = vmatpush3.bf16.msra.mxu0 %v7395_v13 }
0x20ad   :  { %7093 = vmatprep.subr.bf16.mxu0 %v7396_v42 }
0x20b0   :  { %7094 = vmatpush3.bf16.msra.mxu0 %v7396_v42 }
0x20b3   :  { %7096 = vmatmul.mubr.bf16.vlgmr.msra.gmra.mrb[176].mxu0 %v5558_v26 }
0x20b4   :  { %7099 = vmatprep.mubr.bf16.mxu0 %v5559_v46 }
0x2166   :  { %v5489_v33 = vpop.f32.mrb[172].mxu0  ;;  %v5530_v58 = vpop.f32.mrb[172].mxu1 }
0x2167   :  { %v5536_v55 = vadd.f32 %v5489_v33, %v4497_v18  ;;  %v5491_v41 = vpop.f32.mrb[173].mxu0  ;;  %v7077_v61 = vpop.f32.mrb[173].mxu1  ;;  %v5550_v29 = vadd.f32 %v10235_v4, %v5530_v58 }
0x2168   :  { %v5537_v50 = vadd.f32 %v5491_v41, %v4499_v45  ;;  %v5493_v56 = vpop.f32.mrb[174].mxu0  ;;  %v5533_v12 = vpop.f32.mrb[174].mxu1 }
0x2169   :  { %v5984_v51 = vmul.f32 -1.442695, %v5536_v55  ;;  %v5494_v39 = vpop.f32.mrb[175].mxu0  ;;  %v7078_v54 = vpop.f32.mrb[175].mxu1 }
0x216a   :  { %v5985_v23 = vmul.f32 -1.442695, %v5537_v50 }
0x216b   :  { %7707 = vpow2.f32 %v5984_v51 }
0x216c   :  { %7709 = vpow2.f32 %v5985_v23 }
0x2175   :  { %v7708_v48 = vpop.eup %7707 }
0x2176   :  { %v5544_v9 = vadd.f32 1.0, %v7708_v48  ;;  %v7710_v37 = vpop.eup %7709 }
0x2177   :  { %v5545_v20 = vadd.f32 1.0, %v7710_v37 }
0x2178   :  { %7711 = vrcp.f32 %v5544_v9 }
0x2182   :  { %v7712_v21 = vpop.eup %7711 }
0x2183   :  { %v5551_v52 = vmul.f32 %v7712_v21, %v5550_v29 }
0x2185   :  { %v5552_v62 = vadd.f32 %v5551_v52, %v4563_v14 }
0x2186   :  { %v7097_v17 = vpop.f32.mrb[176].mxu0 }
0x2187   :  { %7713 = vtanh.f32 %v5552_v62  ;;  %v5675_v2 = vadd.f32 %v7097_v17, %v5986_v44  ;;  %v5666_v8 = vpop.f32.mrb[177].mxu0 }
0x2188   :  { %v5667_v35 = vadd.f32 %v5986_v44, %v5666_v8  ;;  %v7098_v0 = vpop.f32.mrb[178].mxu0  ;;  %7715 = vrcp.f32 %v5545_v20 }
0x2189   :  { %5699 = vst [vmem:[%s10656_s22 + $0x10] sm:$0xff] %v5675_v2  ;;  %v5678_v4 = vadd.f32 %v7098_v0, %v5986_v44  ;;  %v5669_v24 = vpop.f32.mrb[179].mxu0 }
0x218a   :  { %5697 = vst [vmem:[%s10656_s22] sm:$0xff] %v5667_v35  ;;  %v5670_v19 = vadd.f32 %v5986_v44, %v5669_v24 }
0x218b   :  { %5700 = vst [vmem:[%s10656_s22 + $0x18] sm:$0xff] %v5678_v4 }
0x218c   :  { %5698 = vst [vmem:[%s10656_s22 + $0x8] sm:$0xff] %v5670_v19 }
0x2191   :  { %v7714_v16 = vpop.eup %7713 }
0x2192   :  { %v5554_v28 = vsub.f32 %v10501_v32, %v7714_v16  ;;  %v7716_v1 = vpop.eup %7715 }
0x2194   :  { %v5555_v27 = vmul.f32 %v7716_v1, %v5554_v28 }
0x2196   :  { %v5556_v31 = vadd.f32 %v7714_v16, %v5555_v27 }
0x2198   :  { %v5560_v34 = vpack.c.bf16 %v5556_v31, %v10501_v32 }
0x219a   :  { %7100 = vmatmul.mubr.bf16.gmra.mrb[180].mxu0 %v5560_v34 }
0x226d   :  { %v7101_v6 = vpop.f32.mrb[180].mxu0 }
0x226e   :  { %v5691_v22 = vadd.f32 %v7101_v6, %v5986_v44  ;;  %v5682_v30 = vpop.f32.mrb[181].mxu0 }
0x226f   :  { %v5683_v36 = vadd.f32 %v5986_v44, %v5682_v30  ;;  %v7102_v38 = vpop.f32.mrb[182].mxu0 }
0x2270   :  { %5703 = vst [vmem:[%s10656_s22 + $0x30] sm:$0xff] %v5691_v22  ;;  %v5694_v63 = vadd.f32 %v7102_v38, %v5986_v44  ;;  %v5685_v47 = vpop.f32.mrb[183].mxu0 }
0x2271   :  { %5701 = vst [vmem:[%s10656_s22 + $0x20] sm:$0xff] %v5683_v36  ;;  %v5686_v5 = vadd.f32 %v5986_v44, %v5685_v47 }
0x2272   :  { %5704 = vst [vmem:[%s10656_s22 + $0x38] sm:$0xff] %v5694_v63 }
0x2273   :  { %5702 = vst [vmem:[%s10656_s22 + $0x28] sm:$0xff] %v5686_v5 }
0x2274   :  { %5709 = vsyncpa [#allocation3], 1 }
0x2275   :  { %5710 = vsyncpa [#allocation5], 1 }
0x2276   :  { %5711 = vsyncpa [#allocation8], 1 }
0x2277   :  { %5712 = vsyncpa [#allocation11], 1 }
0x2278   :  { %5713 = vsyncpa [#allocation14], 1 }
0x2279   :  { %5714 = vsyncpa [#allocation17], 1 }
0x227a   :  { %5715 = vsyncpa [#allocation20], 1 }
0x227b   :  { %5716 = vsyncpa [#allocation23], 1 }

</bundles_post_ra>
